<compile_context>
chip_gen: v5e
topology: v5e:2x2
jax: 0.10.0
libtpu: 0.0.40
codegen_flags: <defaults>
</compile_context>

<pallas_src>
import functools

import jax
import jax.numpy as jnp
from jax.experimental import pallas as pl
from jax.experimental.pallas import tpu as pltpu

BOARD = 8          # board_size (Hex board, small for this synthetic test)
C1, C2 = 16, 32    # conv1 / conv2 output channels (from the module __init__)
KH = KW = 3        # 3x3 kernels, padding=1


def _fused_kernel(x_ref, w1_ref, b1_ref, w2_ref, b2_ref, wh_ref, bh_ref,
                  out_ref, pad_ref, col_ref, feat_ref, *, H, W, BT, A):
    """conv1+ReLU, conv2+ReLU, flatten, actor-softmax + critic for one batch tile."""
    M = BT * H * W

    # ---- conv1 (1 -> C1), padding=1, ReLU: 9 broadcast taps on the VPU -------
    xp = x_ref[...]                                   # (BT, H+2, W+2, 1) padded input
    w1 = w1_ref[...]                                  # (9, C1), row = dh*3 + dw
    acc1 = jnp.zeros((BT, H, W, C1), jnp.float32)
    for dh in range(KH):
        for dw in range(KW):
            acc1 = acc1 + xp[:, dh:dh + H, dw:dw + W, :] * w1[dh * KW + dw]
    a1 = jnp.maximum(acc1 + b1_ref[...], 0.0)         # (BT, H, W, C1)

    # ---- zero only the 1-pixel border of pad_ref (interior is overwritten) ---
    # Correct regardless of grid step / core assignment; much cheaper than a
    # full (BT, H+2, W+2, C1) zero fill every step (review item).
    zrow = jnp.zeros((BT, 1, W + 2, C1), jnp.float32)
    zcol = jnp.zeros((BT, H + 2, 1, C1), jnp.float32)
    pad_ref[:, 0:1, :, :] = zrow
    pad_ref[:, H + 1:H + 2, :, :] = zrow
    pad_ref[:, :, 0:1, :] = zcol
    pad_ref[:, :, W + 1:W + 2, :] = zcol
    pad_ref[:, 1:H + 1, 1:W + 1, :] = a1              # interior write

    # ---- im2col for conv2: one (M, 9*C1) bf16 patch matrix in VMEM -----------
    for dh in range(KH):
        for dw in range(KW):
            t = dh * KW + dw
            col_ref[:, t * C1:(t + 1) * C1] = (
                pad_ref[:, dh:dh + H, dw:dw + W, :]
                .reshape(M, C1).astype(col_ref.dtype))

    # ---- conv2 (C1 -> C2), padding=1, ReLU: single bf16 MXU contraction ------
    a2 = jnp.maximum(
        jnp.dot(col_ref[...], w2_ref[...],
                preferred_element_type=jnp.float32) + b2_ref[...], 0.0)   # (M, C2) f32

    # ---- flatten to (BT, F) in HWC order via lane-slice stores (bf16) --------
    # (A (M, C2) -> (BT, F) vector reshape would need a minor-dim relayout; the
    #  explicit stores into a VMEM scratch are guaranteed to lower.)
    a2_3d = a2.reshape(BT, H * W, C2)                 # leading-dim split only
    for hw in range(H * W):
        feat_ref[:, hw * C2:(hw + 1) * C2] = a2_3d[:, hw, :].astype(feat_ref.dtype)

    # ---- fused actor+critic head: one (BT, F) @ (F, 128) bf16 matmul ---------
    logits = jnp.dot(feat_ref[...], wh_ref[...],
                     preferred_element_type=jnp.float32) + bh_ref[...]    # (BT, 128)
    col_idx = jax.lax.broadcasted_iota(jnp.int32, logits.shape, 1)
    masked = jnp.where(col_idx < A, logits, -jnp.inf)  # pad lanes excluded from softmax
    m = jnp.max(masked, axis=-1, keepdims=True)
    e = jnp.exp(masked - m)
    probs = e / jnp.sum(e, axis=-1, keepdims=True)
    # lane-dense 128-wide output slab: [softmax(actor) | critic value | zeros]
    out_ref[0] = jnp.where(col_idx < A, probs,
                           jnp.where(col_idx == A, logits, 0.0))


def _plan_batch_tiling(B, H, W):
    """Pick (batch_tile, num_tiles): whole batch in one step on single-TC chips,
    exactly two fat steps on multi-TC chips, with a VMEM-derived cap on BT."""
    row_bytes = ((H + 2) * (W + 2) * C1 * 4        # pad_ref (f32)
                 + H * W * KH * KW * C1 * 2        # col_ref (bf16)
                 + C2 * H * W * 2                  # feat_ref (bf16)
                 + 2 * (H + 2) * (W + 2) * 4       # double-buffered input block
                 + 2 * 128 * 4)                    # double-buffered output block
    budget = 24 * 1024 * 1024                      # headroom under v7x's 64 MiB VMEM
    cap = int(max(1, min(256, budget // row_bytes)))
    kind = ""
    try:
        kind = jax.devices()[0].device_kind.lower()
    except Exception:                              # pragma: no cover - defensive
        pass
    multi_tc = any(tag in kind for tag in ("v7", "v4", "v5p"))
    target_tiles = 2 if (multi_tc and B >= 2) else 1
    bt = max(1, min(cap, pl.cdiv(B, target_tiles)))
    num_tiles = pl.cdiv(B, bt)
    return bt, num_tiles


def actor_critic_forward(x_nchw, params):
    (w1_pt, b1, w2_pt, b2, wa_pt, ba, wc_pt, bc) = params
    B, _, H, W = x_nchw.shape
    A = wa_pt.shape[0]
    F = C2 * H * W
    HEAD_N = 128 * pl.cdiv(A + 1, 128)     # actor logits + critic col, lane-dense
    BT, num_tiles = _plan_batch_tiling(B, H, W)
    B_pad = BT * num_tiles
    if B_pad != B:                          # pad batch so the grid tiles evenly
        x_nchw = jnp.concatenate(
            [x_nchw, jnp.zeros((B_pad - B,) + x_nchw.shape[1:], x_nchw.dtype)], axis=0)

    # ---------- plain-JAX glue: layout conversion of input & parameters -------
    x_pad = jnp.pad(x_nchw[:, 0], ((0, 0), (1, 1), (1, 1)))[..., None]  # (Bp,H+2,W+2,1)
    w1_k = w1_pt[:, 0].reshape(C1, KH * KW).T                           # (9, C1) f32
    w2_k = (jnp.transpose(w2_pt, (2, 3, 1, 0))
            .reshape(KH * KW * C1, C2).astype(jnp.bfloat16))            # (144, C2) bf16
    # FC columns: PyTorch CHW flatten order -> kernel HWC flatten order; fuse the
    # actor and critic weights into one lane-dense (F, 128) bf16 slab.
    wa_hwc = wa_pt.reshape(A, C2, H, W).transpose(0, 2, 3, 1).reshape(A, F)
    wc_hwc = wc_pt.reshape(1, C2, H, W).transpose(0, 2, 3, 1).reshape(1, F)
    w_head = jnp.zeros((F, HEAD_N), jnp.float32)
    w_head = (w_head.at[:, :A].set(wa_hwc.T).at[:, A:A + 1].set(wc_hwc.T)
              .astype(jnp.bfloat16))
    b_head = jnp.zeros((1, HEAD_N), jnp.float32)
    b_head = b_head.at[0, :A].set(ba).at[0, A].set(bc[0])
    b1_2d = b1.reshape(1, C1)
    b2_2d = b2.reshape(1, C2)

    kernel = functools.partial(_fused_kernel, H=H, W=W, BT=BT, A=A)
    out = pl.pallas_call(
        kernel,
        out_shape=jax.ShapeDtypeStruct((num_tiles, BT, HEAD_N), jnp.float32),
        grid=(num_tiles,),
        in_specs=[
            pl.BlockSpec((BT, H + 2, W + 2, 1), lambda i: (i, 0, 0, 0)),
            pl.BlockSpec((KH * KW, C1), lambda i: (0, 0)),
            pl.BlockSpec((1, C1), lambda i: (0, 0)),
            pl.BlockSpec((KH * KW * C1, C2), lambda i: (0, 0)),
            pl.BlockSpec((1, C2), lambda i: (0, 0)),
            pl.BlockSpec((F, HEAD_N), lambda i: (0, 0)),
            pl.BlockSpec((1, HEAD_N), lambda i: (0, 0)),
        ],
        out_specs=pl.BlockSpec((1, BT, HEAD_N), lambda i: (i, 0, 0)),
        scratch_shapes=[
            pltpu.VMEM((BT, H + 2, W + 2, C1), jnp.float32),            # padded conv1 act
            pltpu.VMEM((BT * H * W, KH * KW * C1), jnp.bfloat16),       # conv2 im2col
            pltpu.VMEM((BT, F), jnp.bfloat16),                          # flattened features
        ],
        compiler_params=pltpu.CompilerParams(
            dimension_semantics=("parallel",),
            vmem_limit_bytes=48 * 1024 * 1024),
    )(x_pad, w1_k, b1_2d, w2_k, b2_2d, w_head, b_head)

    slab = out.reshape(B_pad, HEAD_N)[:B]    # glue: regroup batch tiles, drop pad rows
    policy = slab[:, :A]
    value = slab[:, A:A + 1]
    return policy, value


def reference_forward(x, params):
    """Pure-JAX reference replicating the PyTorch module exactly."""
    (w1_pt, b1, w2_pt, b2, wa_pt, ba, wc_pt, bc) = params
    dn = ("NCHW", "OIHW", "NCHW")
    hi = jax.lax.Precision.HIGHEST
    y = jax.lax.conv_general_dilated(x, w1_pt, (1, 1), ((1, 1), (1, 1)),
                                     dimension_numbers=dn, precision=hi)
    y = jnp.maximum(y + b1[None, :, None, None], 0.0)
    y = jax.lax.conv_general_dilated(y, w2_pt, (1, 1), ((1, 1), (1, 1)),
                                     dimension_numbers=dn, precision=hi)
    y = jnp.maximum(y + b2[None, :, None, None], 0.0)
    flat = y.reshape(y.shape[0], -1)
    logits = jnp.dot(flat, wa_pt.T, precision=hi) + ba
    policy = jax.nn.softmax(logits, axis=-1)
    value = jnp.dot(flat, wc_pt.T, precision=hi) + bc
    return policy, value


if __name__ == "__main__":
    B, H, W = 2, BOARD, BOARD
    A = H * W                    # action_size = board_size**2
    F = C2 * H * W               # conv_output_size from _get_conv_output_size

    key = jax.random.PRNGKey(0)
    ks = jax.random.split(key, 9)
    # deterministic synthetic parameters in PyTorch layout conventions
    params = (
        0.20 * jax.random.normal(ks[0], (C1, 1, KH, KW), jnp.float32),   # conv1.weight
        0.10 * jax.random.normal(ks[1], (C1,), jnp.float32),             # conv1.bias
        0.05 * jax.random.normal(ks[2], (C2, C1, KH, KW), jnp.float32),  # conv2.weight
        0.10 * jax.random.normal(ks[3], (C2,), jnp.float32),             # conv2.bias
        0.05 * jax.random.normal(ks[4], (A, F), jnp.float32),            # actor_fc.weight
        0.10 * jax.random.normal(ks[5], (A,), jnp.float32),              # actor_fc.bias
        0.05 * jax.random.normal(ks[6], (1, F), jnp.float32),            # critic_fc.weight
        0.10 * jax.random.normal(ks[7], (1,), jnp.float32),              # critic_fc.bias
    )
    x = jax.random.normal(ks[8], (B, 1, H, W), jnp.float32)              # NCHW input

    policy, value = jax.block_until_ready(jax.jit(actor_critic_forward)(x, params))

    pol_ref, val_ref = reference_forward(x, params)
    assert policy.shape == (B, A) and value.shape == (B, 1)
    assert bool(jnp.allclose(policy, pol_ref, atol=3e-3)), "policy mismatch"
    assert bool(jnp.allclose(value, val_ref, atol=3e-2)), "value mismatch"
    assert bool(jnp.allclose(jnp.sum(policy, axis=-1), 1.0, atol=1e-4))

    print("KERNEL_OK")
</pallas_src>

<mosaic_0001>
module attributes {stable_mosaic.version = 11 : i64} {
  func.func @_fused_kernel(%arg0: i32, %arg1: memref<2x10x10x1xf32, #tpu.memory_space<vmem>>, %arg2: memref<9x16xf32, #tpu.memory_space<vmem>>, %arg3: memref<1x16xf32, #tpu.memory_space<vmem>>, %arg4: memref<144x32xbf16, #tpu.memory_space<vmem>>, %arg5: memref<1x32xf32, #tpu.memory_space<vmem>>, %arg6: memref<2048x128xbf16, #tpu.memory_space<vmem>>, %arg7: memref<1x128xf32, #tpu.memory_space<vmem>>, %arg8: memref<1x2x128xf32, #tpu.memory_space<vmem>>, %arg9: memref<2x10x10x16xf32, #tpu.memory_space<vmem>>, %arg10: memref<128x144xbf16, #tpu.memory_space<vmem>>, %arg11: memref<2x2048xbf16, #tpu.memory_space<vmem>>) attributes {dimension_semantics = [#tpu.dimension_semantics<parallel>], iteration_bounds = array<i64: 1>, scalar_prefetch = 0 : i64, scratch_operands = 3 : i64, tpu.core_type = #tpu.core_type<tc>, window_params = [{transform_indices = @transform_0, window_bounds = array<i64: 2, 10, 10, 1>}, {pipeline_mode = #tpu.pipeline_mode<synchronous>, transform_indices = @transform_1, window_bounds = array<i64: 9, 16>}, {pipeline_mode = #tpu.pipeline_mode<synchronous>, transform_indices = @transform_2, window_bounds = array<i64: 1, 16>}, {pipeline_mode = #tpu.pipeline_mode<synchronous>, transform_indices = @transform_3, window_bounds = array<i64: 144, 32>}, {pipeline_mode = #tpu.pipeline_mode<synchronous>, transform_indices = @transform_4, window_bounds = array<i64: 1, 32>}, {pipeline_mode = #tpu.pipeline_mode<synchronous>, transform_indices = @transform_5, window_bounds = array<i64: 2048, 128>}, {pipeline_mode = #tpu.pipeline_mode<synchronous>, transform_indices = @transform_6, window_bounds = array<i64: 1, 128>}, {transform_indices = @transform_7, window_bounds = array<i64: 1, 2, 128>}]} {
    %c0 = arith.constant 0 : index
    %c0_0 = arith.constant 0 : index
    %c0_1 = arith.constant 0 : index
    %c0_2 = arith.constant 0 : index
    %0 = vector.load %arg1[%c0, %c0_0, %c0_1, %c0_2] : memref<2x10x10x1xf32, #tpu.memory_space<vmem>>, vector<2x10x10x1xf32>
    %c0_3 = arith.constant 0 : index
    %c0_4 = arith.constant 0 : index
    %1 = vector.load %arg2[%c0_3, %c0_4] : memref<9x16xf32, #tpu.memory_space<vmem>>, vector<9x16xf32>
    %cst = arith.constant 0.000000e+00 : f32
    %2 = vector.broadcast %cst : f32 to vector<2x8x8x16xf32>
    %3 = vector.extract_strided_slice %0 {offsets = [0, 0, 0, 0], sizes = [2, 8, 8, 1], strides = [1, 1, 1, 1]} : vector<2x10x10x1xf32> to vector<2x8x8x1xf32>
    %4 = vector.extract_strided_slice %1 {offsets = [0, 0], sizes = [1, 16], strides = [1, 1]} : vector<9x16xf32> to vector<1x16xf32>
    %5 = vector.shape_cast %4 : vector<1x16xf32> to vector<16xf32>
    %6 = vector.shape_cast %5 : vector<16xf32> to vector<1x1x1x16xf32>
    %7 = vector.broadcast %3 : vector<2x8x8x1xf32> to vector<2x8x8x16xf32>
    %8 = vector.broadcast %6 : vector<1x1x1x16xf32> to vector<2x8x8x16xf32>
    %9 = arith.mulf %7, %8 : vector<2x8x8x16xf32>
    %10 = arith.addf %2, %9 : vector<2x8x8x16xf32>
    %11 = vector.extract_strided_slice %0 {offsets = [0, 0, 1, 0], sizes = [2, 8, 8, 1], strides = [1, 1, 1, 1]} : vector<2x10x10x1xf32> to vector<2x8x8x1xf32>
    %12 = vector.extract_strided_slice %1 {offsets = [1, 0], sizes = [1, 16], strides = [1, 1]} : vector<9x16xf32> to vector<1x16xf32>
    %13 = vector.shape_cast %12 : vector<1x16xf32> to vector<16xf32>
    %14 = vector.shape_cast %13 : vector<16xf32> to vector<1x1x1x16xf32>
    %15 = vector.broadcast %11 : vector<2x8x8x1xf32> to vector<2x8x8x16xf32>
    %16 = vector.broadcast %14 : vector<1x1x1x16xf32> to vector<2x8x8x16xf32>
    %17 = arith.mulf %15, %16 : vector<2x8x8x16xf32>
    %18 = arith.addf %10, %17 : vector<2x8x8x16xf32>
    %19 = vector.extract_strided_slice %0 {offsets = [0, 0, 2, 0], sizes = [2, 8, 8, 1], strides = [1, 1, 1, 1]} : vector<2x10x10x1xf32> to vector<2x8x8x1xf32>
    %20 = vector.extract_strided_slice %1 {offsets = [2, 0], sizes = [1, 16], strides = [1, 1]} : vector<9x16xf32> to vector<1x16xf32>
    %21 = vector.shape_cast %20 : vector<1x16xf32> to vector<16xf32>
    %22 = vector.shape_cast %21 : vector<16xf32> to vector<1x1x1x16xf32>
    %23 = vector.broadcast %19 : vector<2x8x8x1xf32> to vector<2x8x8x16xf32>
    %24 = vector.broadcast %22 : vector<1x1x1x16xf32> to vector<2x8x8x16xf32>
    %25 = arith.mulf %23, %24 : vector<2x8x8x16xf32>
    %26 = arith.addf %18, %25 : vector<2x8x8x16xf32>
    %27 = vector.extract_strided_slice %0 {offsets = [0, 1, 0, 0], sizes = [2, 8, 8, 1], strides = [1, 1, 1, 1]} : vector<2x10x10x1xf32> to vector<2x8x8x1xf32>
    %28 = vector.extract_strided_slice %1 {offsets = [3, 0], sizes = [1, 16], strides = [1, 1]} : vector<9x16xf32> to vector<1x16xf32>
    %29 = vector.shape_cast %28 : vector<1x16xf32> to vector<16xf32>
    %30 = vector.shape_cast %29 : vector<16xf32> to vector<1x1x1x16xf32>
    %31 = vector.broadcast %27 : vector<2x8x8x1xf32> to vector<2x8x8x16xf32>
    %32 = vector.broadcast %30 : vector<1x1x1x16xf32> to vector<2x8x8x16xf32>
    %33 = arith.mulf %31, %32 : vector<2x8x8x16xf32>
    %34 = arith.addf %26, %33 : vector<2x8x8x16xf32>
    %35 = vector.extract_strided_slice %0 {offsets = [0, 1, 1, 0], sizes = [2, 8, 8, 1], strides = [1, 1, 1, 1]} : vector<2x10x10x1xf32> to vector<2x8x8x1xf32>
    %36 = vector.extract_strided_slice %1 {offsets = [4, 0], sizes = [1, 16], strides = [1, 1]} : vector<9x16xf32> to vector<1x16xf32>
    %37 = vector.shape_cast %36 : vector<1x16xf32> to vector<16xf32>
    %38 = vector.shape_cast %37 : vector<16xf32> to vector<1x1x1x16xf32>
    %39 = vector.broadcast %35 : vector<2x8x8x1xf32> to vector<2x8x8x16xf32>
    %40 = vector.broadcast %38 : vector<1x1x1x16xf32> to vector<2x8x8x16xf32>
    %41 = arith.mulf %39, %40 : vector<2x8x8x16xf32>
    %42 = arith.addf %34, %41 : vector<2x8x8x16xf32>
    %43 = vector.extract_strided_slice %0 {offsets = [0, 1, 2, 0], sizes = [2, 8, 8, 1], strides = [1, 1, 1, 1]} : vector<2x10x10x1xf32> to vector<2x8x8x1xf32>
    %44 = vector.extract_strided_slice %1 {offsets = [5, 0], sizes = [1, 16], strides = [1, 1]} : vector<9x16xf32> to vector<1x16xf32>
    %45 = vector.shape_cast %44 : vector<1x16xf32> to vector<16xf32>
    %46 = vector.shape_cast %45 : vector<16xf32> to vector<1x1x1x16xf32>
    %47 = vector.broadcast %43 : vector<2x8x8x1xf32> to vector<2x8x8x16xf32>
    %48 = vector.broadcast %46 : vector<1x1x1x16xf32> to vector<2x8x8x16xf32>
    %49 = arith.mulf %47, %48 : vector<2x8x8x16xf32>
    %50 = arith.addf %42, %49 : vector<2x8x8x16xf32>
    %51 = vector.extract_strided_slice %0 {offsets = [0, 2, 0, 0], sizes = [2, 8, 8, 1], strides = [1, 1, 1, 1]} : vector<2x10x10x1xf32> to vector<2x8x8x1xf32>
    %52 = vector.extract_strided_slice %1 {offsets = [6, 0], sizes = [1, 16], strides = [1, 1]} : vector<9x16xf32> to vector<1x16xf32>
    %53 = vector.shape_cast %52 : vector<1x16xf32> to vector<16xf32>
    %54 = vector.shape_cast %53 : vector<16xf32> to vector<1x1x1x16xf32>
    %55 = vector.broadcast %51 : vector<2x8x8x1xf32> to vector<2x8x8x16xf32>
    %56 = vector.broadcast %54 : vector<1x1x1x16xf32> to vector<2x8x8x16xf32>
    %57 = arith.mulf %55, %56 : vector<2x8x8x16xf32>
    %58 = arith.addf %50, %57 : vector<2x8x8x16xf32>
    %59 = vector.extract_strided_slice %0 {offsets = [0, 2, 1, 0], sizes = [2, 8, 8, 1], strides = [1, 1, 1, 1]} : vector<2x10x10x1xf32> to vector<2x8x8x1xf32>
    %60 = vector.extract_strided_slice %1 {offsets = [7, 0], sizes = [1, 16], strides = [1, 1]} : vector<9x16xf32> to vector<1x16xf32>
    %61 = vector.shape_cast %60 : vector<1x16xf32> to vector<16xf32>
    %62 = vector.shape_cast %61 : vector<16xf32> to vector<1x1x1x16xf32>
    %63 = vector.broadcast %59 : vector<2x8x8x1xf32> to vector<2x8x8x16xf32>
    %64 = vector.broadcast %62 : vector<1x1x1x16xf32> to vector<2x8x8x16xf32>
    %65 = arith.mulf %63, %64 : vector<2x8x8x16xf32>
    %66 = arith.addf %58, %65 : vector<2x8x8x16xf32>
    %67 = vector.extract_strided_slice %0 {offsets = [0, 2, 2, 0], sizes = [2, 8, 8, 1], strides = [1, 1, 1, 1]} : vector<2x10x10x1xf32> to vector<2x8x8x1xf32>
    %68 = vector.extract_strided_slice %1 {offsets = [8, 0], sizes = [1, 16], strides = [1, 1]} : vector<9x16xf32> to vector<1x16xf32>
    %69 = vector.shape_cast %68 : vector<1x16xf32> to vector<16xf32>
    %70 = vector.shape_cast %69 : vector<16xf32> to vector<1x1x1x16xf32>
    %71 = vector.broadcast %67 : vector<2x8x8x1xf32> to vector<2x8x8x16xf32>
    %72 = vector.broadcast %70 : vector<1x1x1x16xf32> to vector<2x8x8x16xf32>
    %73 = arith.mulf %71, %72 : vector<2x8x8x16xf32>
    %74 = arith.addf %66, %73 : vector<2x8x8x16xf32>
    %c0_5 = arith.constant 0 : index
    %c0_6 = arith.constant 0 : index
    %75 = vector.load %arg3[%c0_5, %c0_6] : memref<1x16xf32, #tpu.memory_space<vmem>>, vector<1x16xf32>
    %76 = vector.shape_cast %75 : vector<1x16xf32> to vector<1x1x1x16xf32>
    %77 = vector.broadcast %76 : vector<1x1x1x16xf32> to vector<2x8x8x16xf32>
    %78 = arith.addf %74, %77 : vector<2x8x8x16xf32>
    %cst_7 = arith.constant 0.000000e+00 : f32
    %79 = vector.broadcast %cst_7 : f32 to vector<2x8x8x16xf32>
    %80 = arith.maximumf %78, %79 : vector<2x8x8x16xf32>
    %cst_8 = arith.constant 0.000000e+00 : f32
    %81 = vector.broadcast %cst_8 : f32 to vector<2x1x10x16xf32>
    %cst_9 = arith.constant 0.000000e+00 : f32
    %82 = vector.broadcast %cst_9 : f32 to vector<2x10x1x16xf32>
    %c0_10 = arith.constant 0 : index
    %c0_11 = arith.constant 0 : index
    %c0_12 = arith.constant 0 : index
    %c0_13 = arith.constant 0 : index
    %83 = vector.load %arg9[%c0_10, %c0_11, %c0_12, %c0_13] : memref<2x10x10x16xf32, #tpu.memory_space<vmem>>, vector<2x1x10x16xf32>
    tpu.vector_store %arg9[%c0_10, %c0_11, %c0_12, %c0_13], %81 {strides = array<i32>} : memref<2x10x10x16xf32, #tpu.memory_space<vmem>>, vector<2x1x10x16xf32>,
    %c0_14 = arith.constant 0 : index
    %c9 = arith.constant 9 : index
    %c0_15 = arith.constant 0 : index
    %c0_16 = arith.constant 0 : index
    %84 = vector.load %arg9[%c0_14, %c9, %c0_15, %c0_16] : memref<2x10x10x16xf32, #tpu.memory_space<vmem>>, vector<2x1x10x16xf32>
    tpu.vector_store %arg9[%c0_14, %c9, %c0_15, %c0_16], %81 {strides = array<i32>} : memref<2x10x10x16xf32, #tpu.memory_space<vmem>>, vector<2x1x10x16xf32>,
    %c0_17 = arith.constant 0 : index
    %c0_18 = arith.constant 0 : index
    %c0_19 = arith.constant 0 : index
    %c0_20 = arith.constant 0 : index
    %85 = vector.load %arg9[%c0_17, %c0_18, %c0_19, %c0_20] : memref<2x10x10x16xf32, #tpu.memory_space<vmem>>, vector<2x10x1x16xf32>
    tpu.vector_store %arg9[%c0_17, %c0_18, %c0_19, %c0_20], %82 {strides = array<i32>} : memref<2x10x10x16xf32, #tpu.memory_space<vmem>>, vector<2x10x1x16xf32>,
    %c0_21 = arith.constant 0 : index
    %c0_22 = arith.constant 0 : index
    %c9_23 = arith.constant 9 : index
    %c0_24 = arith.constant 0 : index
    %86 = vector.load %arg9[%c0_21, %c0_22, %c9_23, %c0_24] : memref<2x10x10x16xf32, #tpu.memory_space<vmem>>, vector<2x10x1x16xf32>
    tpu.vector_store %arg9[%c0_21, %c0_22, %c9_23, %c0_24], %82 {strides = array<i32>} : memref<2x10x10x16xf32, #tpu.memory_space<vmem>>, vector<2x10x1x16xf32>,
    %c0_25 = arith.constant 0 : index
    %c1 = arith.constant 1 : index
    %c1_26 = arith.constant 1 : index
    %c0_27 = arith.constant 0 : index
    %87 = vector.load %arg9[%c0_25, %c1, %c1_26, %c0_27] : memref<2x10x10x16xf32, #tpu.memory_space<vmem>>, vector<2x8x8x16xf32>
    tpu.vector_store %arg9[%c0_25, %c1, %c1_26, %c0_27], %80 {strides = array<i32>} : memref<2x10x10x16xf32, #tpu.memory_space<vmem>>, vector<2x8x8x16xf32>,
    %c0_28 = arith.constant 0 : index
    %c0_29 = arith.constant 0 : index
    %c0_30 = arith.constant 0 : index
    %c0_31 = arith.constant 0 : index
    %88 = vector.load %arg9[%c0_28, %c0_29, %c0_30, %c0_31] : memref<2x10x10x16xf32, #tpu.memory_space<vmem>>, vector<2x8x8x16xf32>
    %89 = vector.shape_cast %88 : vector<2x8x8x16xf32> to vector<128x16xf32>
    %90 = arith.truncf %89 : vector<128x16xf32> to vector<128x16xbf16>
    %c0_32 = arith.constant 0 : index
    %c0_33 = arith.constant 0 : index
    %91 = vector.load %arg10[%c0_32, %c0_33] : memref<128x144xbf16, #tpu.memory_space<vmem>>, vector<128x16xbf16>
    tpu.vector_store %arg10[%c0_32, %c0_33], %90 {strides = array<i32>} : memref<128x144xbf16, #tpu.memory_space<vmem>>, vector<128x16xbf16>,
    %c0_34 = arith.constant 0 : index
    %c0_35 = arith.constant 0 : index
    %c1_36 = arith.constant 1 : index
    %c0_37 = arith.constant 0 : index
    %92 = vector.load %arg9[%c0_34, %c0_35, %c1_36, %c0_37] : memref<2x10x10x16xf32, #tpu.memory_space<vmem>>, vector<2x8x8x16xf32>
    %93 = vector.shape_cast %92 : vector<2x8x8x16xf32> to vector<128x16xf32>
    %94 = arith.truncf %93 : vector<128x16xf32> to vector<128x16xbf16>
    %c0_38 = arith.constant 0 : index
    %c16 = arith.constant 16 : index
    %95 = vector.load %arg10[%c0_38, %c16] : memref<128x144xbf16, #tpu.memory_space<vmem>>, vector<128x16xbf16>
    tpu.vector_store %arg10[%c0_38, %c16], %94 {strides = array<i32>} : memref<128x144xbf16, #tpu.memory_space<vmem>>, vector<128x16xbf16>,
    %c0_39 = arith.constant 0 : index
    %c0_40 = arith.constant 0 : index
    %c2 = arith.constant 2 : index
    %c0_41 = arith.constant 0 : index
    %96 = vector.load %arg9[%c0_39, %c0_40, %c2, %c0_41] : memref<2x10x10x16xf32, #tpu.memory_space<vmem>>, vector<2x8x8x16xf32>
    %97 = vector.shape_cast %96 : vector<2x8x8x16xf32> to vector<128x16xf32>
    %98 = arith.truncf %97 : vector<128x16xf32> to vector<128x16xbf16>
    %c0_42 = arith.constant 0 : index
    %c32 = arith.constant 32 : index
    %99 = vector.load %arg10[%c0_42, %c32] : memref<128x144xbf16, #tpu.memory_space<vmem>>, vector<128x16xbf16>
    tpu.vector_store %arg10[%c0_42, %c32], %98 {strides = array<i32>} : memref<128x144xbf16, #tpu.memory_space<vmem>>, vector<128x16xbf16>,
    %c0_43 = arith.constant 0 : index
    %c1_44 = arith.constant 1 : index
    %c0_45 = arith.constant 0 : index
    %c0_46 = arith.constant 0 : index
    %100 = vector.load %arg9[%c0_43, %c1_44, %c0_45, %c0_46] : memref<2x10x10x16xf32, #tpu.memory_space<vmem>>, vector<2x8x8x16xf32>
    %101 = vector.shape_cast %100 : vector<2x8x8x16xf32> to vector<128x16xf32>
    %102 = arith.truncf %101 : vector<128x16xf32> to vector<128x16xbf16>
    %c0_47 = arith.constant 0 : index
    %c48 = arith.constant 48 : index
    %103 = vector.load %arg10[%c0_47, %c48] : memref<128x144xbf16, #tpu.memory_space<vmem>>, vector<128x16xbf16>
    tpu.vector_store %arg10[%c0_47, %c48], %102 {strides = array<i32>} : memref<128x144xbf16, #tpu.memory_space<vmem>>, vector<128x16xbf16>,
    %c0_48 = arith.constant 0 : index
    %c1_49 = arith.constant 1 : index
    %c1_50 = arith.constant 1 : index
    %c0_51 = arith.constant 0 : index
    %104 = vector.load %arg9[%c0_48, %c1_49, %c1_50, %c0_51] : memref<2x10x10x16xf32, #tpu.memory_space<vmem>>, vector<2x8x8x16xf32>
    %105 = vector.shape_cast %104 : vector<2x8x8x16xf32> to vector<128x16xf32>
    %106 = arith.truncf %105 : vector<128x16xf32> to vector<128x16xbf16>
    %c0_52 = arith.constant 0 : index
    %c64 = arith.constant 64 : index
    %107 = vector.load %arg10[%c0_52, %c64] : memref<128x144xbf16, #tpu.memory_space<vmem>>, vector<128x16xbf16>
    tpu.vector_store %arg10[%c0_52, %c64], %106 {strides = array<i32>} : memref<128x144xbf16, #tpu.memory_space<vmem>>, vector<128x16xbf16>,
    %c0_53 = arith.constant 0 : index
    %c1_54 = arith.constant 1 : index
    %c2_55 = arith.constant 2 : index
    %c0_56 = arith.constant 0 : index
    %108 = vector.load %arg9[%c0_53, %c1_54, %c2_55, %c0_56] : memref<2x10x10x16xf32, #tpu.memory_space<vmem>>, vector<2x8x8x16xf32>
    %109 = vector.shape_cast %108 : vector<2x8x8x16xf32> to vector<128x16xf32>
    %110 = arith.truncf %109 : vector<128x16xf32> to vector<128x16xbf16>
    %c0_57 = arith.constant 0 : index
    %c80 = arith.constant 80 : index
    %111 = vector.load %arg10[%c0_57, %c80] : memref<128x144xbf16, #tpu.memory_space<vmem>>, vector<128x16xbf16>
    tpu.vector_store %arg10[%c0_57, %c80], %110 {strides = array<i32>} : memref<128x144xbf16, #tpu.memory_space<vmem>>, vector<128x16xbf16>,
    %c0_58 = arith.constant 0 : index
    %c2_59 = arith.constant 2 : index
    %c0_60 = arith.constant 0 : index
    %c0_61 = arith.constant 0 : index
    %112 = vector.load %arg9[%c0_58, %c2_59, %c0_60, %c0_61] : memref<2x10x10x16xf32, #tpu.memory_space<vmem>>, vector<2x8x8x16xf32>
    %113 = vector.shape_cast %112 : vector<2x8x8x16xf32> to vector<128x16xf32>
    %114 = arith.truncf %113 : vector<128x16xf32> to vector<128x16xbf16>
    %c0_62 = arith.constant 0 : index
    %c96 = arith.constant 96 : index
    %115 = vector.load %arg10[%c0_62, %c96] : memref<128x144xbf16, #tpu.memory_space<vmem>>, vector<128x16xbf16>
    tpu.vector_store %arg10[%c0_62, %c96], %114 {strides = array<i32>} : memref<128x144xbf16, #tpu.memory_space<vmem>>, vector<128x16xbf16>,
    %c0_63 = arith.constant 0 : index
    %c2_64 = arith.constant 2 : index
    %c1_65 = arith.constant 1 : index
    %c0_66 = arith.constant 0 : index
    %116 = vector.load %arg9[%c0_63, %c2_64, %c1_65, %c0_66] : memref<2x10x10x16xf32, #tpu.memory_space<vmem>>, vector<2x8x8x16xf32>
    %117 = vector.shape_cast %116 : vector<2x8x8x16xf32> to vector<128x16xf32>
    %118 = arith.truncf %117 : vector<128x16xf32> to vector<128x16xbf16>
    %c0_67 = arith.constant 0 : index
    %c112 = arith.constant 112 : index
    %119 = vector.load %arg10[%c0_67, %c112] : memref<128x144xbf16, #tpu.memory_space<vmem>>, vector<128x16xbf16>
    tpu.vector_store %arg10[%c0_67, %c112], %118 {strides = array<i32>} : memref<128x144xbf16, #tpu.memory_space<vmem>>, vector<128x16xbf16>,
    %c0_68 = arith.constant 0 : index
    %c2_69 = arith.constant 2 : index
    %c2_70 = arith.constant 2 : index
    %c0_71 = arith.constant 0 : index
    %120 = vector.load %arg9[%c0_68, %c2_69, %c2_70, %c0_71] : memref<2x10x10x16xf32, #tpu.memory_space<vmem>>, vector<2x8x8x16xf32>
    %121 = vector.shape_cast %120 : vector<2x8x8x16xf32> to vector<128x16xf32>
    %122 = arith.truncf %121 : vector<128x16xf32> to vector<128x16xbf16>
    %c0_72 = arith.constant 0 : index
    %c128 = arith.constant 128 : index
    %123 = vector.load %arg10[%c0_72, %c128] : memref<128x144xbf16, #tpu.memory_space<vmem>>, vector<128x16xbf16>
    tpu.vector_store %arg10[%c0_72, %c128], %122 {strides = array<i32>} : memref<128x144xbf16, #tpu.memory_space<vmem>>, vector<128x16xbf16>,
    %c0_73 = arith.constant 0 : index
    %c0_74 = arith.constant 0 : index
    %124 = vector.load %arg10[%c0_73, %c0_74] : memref<128x144xbf16, #tpu.memory_space<vmem>>, vector<128x144xbf16>
    %c0_75 = arith.constant 0 : index
    %c0_76 = arith.constant 0 : index
    %125 = vector.load %arg4[%c0_75, %c0_76] : memref<144x32xbf16, #tpu.memory_space<vmem>>, vector<144x32xbf16>
    %cst_77 = arith.constant dense<0.000000e+00> : vector<128x32xf32>
    %126 = tpu.matmul %124, %125, %cst_77 {dimension_numbers = #tpu.dot_dimension_numbers<[1], [0], [0], [1], [0, 0, 1, 1], [], []>} : vector<128x144xbf16>, vector<144x32xbf16>, vector<128x32xf32> -> vector<128x32xf32>
    %c0_78 = arith.constant 0 : index
    %c0_79 = arith.constant 0 : index
    %127 = vector.load %arg5[%c0_78, %c0_79] : memref<1x32xf32, #tpu.memory_space<vmem>>, vector<1x32xf32>
    %128 = vector.broadcast %127 : vector<1x32xf32> to vector<128x32xf32>
    %129 = arith.addf %126, %128 : vector<128x32xf32>
    %cst_80 = arith.constant 0.000000e+00 : f32
    %130 = vector.broadcast %cst_80 : f32 to vector<128x32xf32>
    %131 = arith.maximumf %129, %130 : vector<128x32xf32>
    %132 = vector.shape_cast %131 : vector<128x32xf32> to vector<2x64x32xf32>
    %133 = vector.extract_strided_slice %132 {offsets = [0, 0, 0], sizes = [2, 1, 32], strides = [1, 1, 1]} : vector<2x64x32xf32> to vector<2x1x32xf32>
    %134 = vector.shape_cast %133 : vector<2x1x32xf32> to vector<2x32xf32>
    %135 = arith.truncf %134 : vector<2x32xf32> to vector<2x32xbf16>
    %c0_81 = arith.constant 0 : index
    %c0_82 = arith.constant 0 : index
    %136 = vector.load %arg11[%c0_81, %c0_82] : memref<2x2048xbf16, #tpu.memory_space<vmem>>, vector<2x32xbf16>
    tpu.vector_store %arg11[%c0_81, %c0_82], %135 {strides = array<i32>} : memref<2x2048xbf16, #tpu.memory_space<vmem>>, vector<2x32xbf16>,
    %137 = vector.extract_strided_slice %132 {offsets = [0, 1, 0], sizes = [2, 1, 32], strides = [1, 1, 1]} : vector<2x64x32xf32> to vector<2x1x32xf32>
    %138 = vector.shape_cast %137 : vector<2x1x32xf32> to vector<2x32xf32>
    %139 = arith.truncf %138 : vector<2x32xf32> to vector<2x32xbf16>
    %c0_83 = arith.constant 0 : index
    %c32_84 = arith.constant 32 : index
    %140 = vector.load %arg11[%c0_83, %c32_84] : memref<2x2048xbf16, #tpu.memory_space<vmem>>, vector<2x32xbf16>
    tpu.vector_store %arg11[%c0_83, %c32_84], %139 {strides = array<i32>} : memref<2x2048xbf16, #tpu.memory_space<vmem>>, vector<2x32xbf16>,
    %141 = vector.extract_strided_slice %132 {offsets = [0, 2, 0], sizes = [2, 1, 32], strides = [1, 1, 1]} : vector<2x64x32xf32> to vector<2x1x32xf32>
    %142 = vector.shape_cast %141 : vector<2x1x32xf32> to vector<2x32xf32>
    %143 = arith.truncf %142 : vector<2x32xf32> to vector<2x32xbf16>
    %c0_85 = arith.constant 0 : index
    %c64_86 = arith.constant 64 : index
    %144 = vector.load %arg11[%c0_85, %c64_86] : memref<2x2048xbf16, #tpu.memory_space<vmem>>, vector<2x32xbf16>
    tpu.vector_store %arg11[%c0_85, %c64_86], %143 {strides = array<i32>} : memref<2x2048xbf16, #tpu.memory_space<vmem>>, vector<2x32xbf16>,
    %145 = vector.extract_strided_slice %132 {offsets = [0, 3, 0], sizes = [2, 1, 32], strides = [1, 1, 1]} : vector<2x64x32xf32> to vector<2x1x32xf32>
    %146 = vector.shape_cast %145 : vector<2x1x32xf32> to vector<2x32xf32>
    %147 = arith.truncf %146 : vector<2x32xf32> to vector<2x32xbf16>
    %c0_87 = arith.constant 0 : index
    %c96_88 = arith.constant 96 : index
    %148 = vector.load %arg11[%c0_87, %c96_88] : memref<2x2048xbf16, #tpu.memory_space<vmem>>, vector<2x32xbf16>
    tpu.vector_store %arg11[%c0_87, %c96_88], %147 {strides = array<i32>} : memref<2x2048xbf16, #tpu.memory_space<vmem>>, vector<2x32xbf16>,
    %149 = vector.extract_strided_slice %132 {offsets = [0, 4, 0], sizes = [2, 1, 32], strides = [1, 1, 1]} : vector<2x64x32xf32> to vector<2x1x32xf32>
    %150 = vector.shape_cast %149 : vector<2x1x32xf32> to vector<2x32xf32>
    %151 = arith.truncf %150 : vector<2x32xf32> to vector<2x32xbf16>
    %c0_89 = arith.constant 0 : index
    %c128_90 = arith.constant 128 : index
    %152 = vector.load %arg11[%c0_89, %c128_90] : memref<2x2048xbf16, #tpu.memory_space<vmem>>, vector<2x32xbf16>
    tpu.vector_store %arg11[%c0_89, %c128_90], %151 {strides = array<i32>} : memref<2x2048xbf16, #tpu.memory_space<vmem>>, vector<2x32xbf16>,
    %153 = vector.extract_strided_slice %132 {offsets = [0, 5, 0], sizes = [2, 1, 32], strides = [1, 1, 1]} : vector<2x64x32xf32> to vector<2x1x32xf32>
    %154 = vector.shape_cast %153 : vector<2x1x32xf32> to vector<2x32xf32>
    %155 = arith.truncf %154 : vector<2x32xf32> to vector<2x32xbf16>
    %c0_91 = arith.constant 0 : index
    %c160 = arith.constant 160 : index
    %156 = vector.load %arg11[%c0_91, %c160] : memref<2x2048xbf16, #tpu.memory_space<vmem>>, vector<2x32xbf16>
    tpu.vector_store %arg11[%c0_91, %c160], %155 {strides = array<i32>} : memref<2x2048xbf16, #tpu.memory_space<vmem>>, vector<2x32xbf16>,
    %157 = vector.extract_strided_slice %132 {offsets = [0, 6, 0], sizes = [2, 1, 32], strides = [1, 1, 1]} : vector<2x64x32xf32> to vector<2x1x32xf32>
    %158 = vector.shape_cast %157 : vector<2x1x32xf32> to vector<2x32xf32>
    %159 = arith.truncf %158 : vector<2x32xf32> to vector<2x32xbf16>
    %c0_92 = arith.constant 0 : index
    %c192 = arith.constant 192 : index
    %160 = vector.load %arg11[%c0_92, %c192] : memref<2x2048xbf16, #tpu.memory_space<vmem>>, vector<2x32xbf16>
    tpu.vector_store %arg11[%c0_92, %c192], %159 {strides = array<i32>} : memref<2x2048xbf16, #tpu.memory_space<vmem>>, vector<2x32xbf16>,
    %161 = vector.extract_strided_slice %132 {offsets = [0, 7, 0], sizes = [2, 1, 32], strides = [1, 1, 1]} : vector<2x64x32xf32> to vector<2x1x32xf32>
    %162 = vector.shape_cast %161 : vector<2x1x32xf32> to vector<2x32xf32>
    %163 = arith.truncf %162 : vector<2x32xf32> to vector<2x32xbf16>
    %c0_93 = arith.constant 0 : index
    %c224 = arith.constant 224 : index
    %164 = vector.load %arg11[%c0_93, %c224] : memref<2x2048xbf16, #tpu.memory_space<vmem>>, vector<2x32xbf16>
    tpu.vector_store %arg11[%c0_93, %c224], %163 {strides = array<i32>} : memref<2x2048xbf16, #tpu.memory_space<vmem>>, vector<2x32xbf16>,
    %165 = vector.extract_strided_slice %132 {offsets = [0, 8, 0], sizes = [2, 1, 32], strides = [1, 1, 1]} : vector<2x64x32xf32> to vector<2x1x32xf32>
    %166 = vector.shape_cast %165 : vector<2x1x32xf32> to vector<2x32xf32>
    %167 = arith.truncf %166 : vector<2x32xf32> to vector<2x32xbf16>
    %c0_94 = arith.constant 0 : index
    %c256 = arith.constant 256 : index
    %168 = vector.load %arg11[%c0_94, %c256] : memref<2x2048xbf16, #tpu.memory_space<vmem>>, vector<2x32xbf16>
    tpu.vector_store %arg11[%c0_94, %c256], %167 {strides = array<i32>} : memref<2x2048xbf16, #tpu.memory_space<vmem>>, vector<2x32xbf16>,
    %169 = vector.extract_strided_slice %132 {offsets = [0, 9, 0], sizes = [2, 1, 32], strides = [1, 1, 1]} : vector<2x64x32xf32> to vector<2x1x32xf32>
    %170 = vector.shape_cast %169 : vector<2x1x32xf32> to vector<2x32xf32>
    %171 = arith.truncf %170 : vector<2x32xf32> to vector<2x32xbf16>
    %c0_95 = arith.constant 0 : index
    %c288 = arith.constant 288 : index
    %172 = vector.load %arg11[%c0_95, %c288] : memref<2x2048xbf16, #tpu.memory_space<vmem>>, vector<2x32xbf16>
    tpu.vector_store %arg11[%c0_95, %c288], %171 {strides = array<i32>} : memref<2x2048xbf16, #tpu.memory_space<vmem>>, vector<2x32xbf16>,
    %173 = vector.extract_strided_slice %132 {offsets = [0, 10, 0], sizes = [2, 1, 32], strides = [1, 1, 1]} : vector<2x64x32xf32> to vector<2x1x32xf32>
    %174 = vector.shape_cast %173 : vector<2x1x32xf32> to vector<2x32xf32>
    %175 = arith.truncf %174 : vector<2x32xf32> to vector<2x32xbf16>
    %c0_96 = arith.constant 0 : index
    %c320 = arith.constant 320 : index
    %176 = vector.load %arg11[%c0_96, %c320] : memref<2x2048xbf16, #tpu.memory_space<vmem>>, vector<2x32xbf16>
    tpu.vector_store %arg11[%c0_96, %c320], %175 {strides = array<i32>} : memref<2x2048xbf16, #tpu.memory_space<vmem>>, vector<2x32xbf16>,
    %177 = vector.extract_strided_slice %132 {offsets = [0, 11, 0], sizes = [2, 1, 32], strides = [1, 1, 1]} : vector<2x64x32xf32> to vector<2x1x32xf32>
    %178 = vector.shape_cast %177 : vector<2x1x32xf32> to vector<2x32xf32>
    %179 = arith.truncf %178 : vector<2x32xf32> to vector<2x32xbf16>
    %c0_97 = arith.constant 0 : index
    %c352 = arith.constant 352 : index
    %180 = vector.load %arg11[%c0_97, %c352] : memref<2x2048xbf16, #tpu.memory_space<vmem>>, vector<2x32xbf16>
    tpu.vector_store %arg11[%c0_97, %c352], %179 {strides = array<i32>} : memref<2x2048xbf16, #tpu.memory_space<vmem>>, vector<2x32xbf16>,
    %181 = vector.extract_strided_slice %132 {offsets = [0, 12, 0], sizes = [2, 1, 32], strides = [1, 1, 1]} : vector<2x64x32xf32> to vector<2x1x32xf32>
    %182 = vector.shape_cast %181 : vector<2x1x32xf32> to vector<2x32xf32>
    %183 = arith.truncf %182 : vector<2x32xf32> to vector<2x32xbf16>
    %c0_98 = arith.constant 0 : index
    %c384 = arith.constant 384 : index
    %184 = vector.load %arg11[%c0_98, %c384] : memref<2x2048xbf16, #tpu.memory_space<vmem>>, vector<2x32xbf16>
    tpu.vector_store %arg11[%c0_98, %c384], %183 {strides = array<i32>} : memref<2x2048xbf16, #tpu.memory_space<vmem>>, vector<2x32xbf16>,
    %185 = vector.extract_strided_slice %132 {offsets = [0, 13, 0], sizes = [2, 1, 32], strides = [1, 1, 1]} : vector<2x64x32xf32> to vector<2x1x32xf32>
    %186 = vector.shape_cast %185 : vector<2x1x32xf32> to vector<2x32xf32>
    %187 = arith.truncf %186 : vector<2x32xf32> to vector<2x32xbf16>
    %c0_99 = arith.constant 0 : index
    %c416 = arith.constant 416 : index
    %188 = vector.load %arg11[%c0_99, %c416] : memref<2x2048xbf16, #tpu.memory_space<vmem>>, vector<2x32xbf16>
    tpu.vector_store %arg11[%c0_99, %c416], %187 {strides = array<i32>} : memref<2x2048xbf16, #tpu.memory_space<vmem>>, vector<2x32xbf16>,
    %189 = vector.extract_strided_slice %132 {offsets = [0, 14, 0], sizes = [2, 1, 32], strides = [1, 1, 1]} : vector<2x64x32xf32> to vector<2x1x32xf32>
    %190 = vector.shape_cast %189 : vector<2x1x32xf32> to vector<2x32xf32>
    %191 = arith.truncf %190 : vector<2x32xf32> to vector<2x32xbf16>
    %c0_100 = arith.constant 0 : index
    %c448 = arith.constant 448 : index
    %192 = vector.load %arg11[%c0_100, %c448] : memref<2x2048xbf16, #tpu.memory_space<vmem>>, vector<2x32xbf16>
    tpu.vector_store %arg11[%c0_100, %c448], %191 {strides = array<i32>} : memref<2x2048xbf16, #tpu.memory_space<vmem>>, vector<2x32xbf16>,
    %193 = vector.extract_strided_slice %132 {offsets = [0, 15, 0], sizes = [2, 1, 32], strides = [1, 1, 1]} : vector<2x64x32xf32> to vector<2x1x32xf32>
    %194 = vector.shape_cast %193 : vector<2x1x32xf32> to vector<2x32xf32>
    %195 = arith.truncf %194 : vector<2x32xf32> to vector<2x32xbf16>
    %c0_101 = arith.constant 0 : index
    %c480 = arith.constant 480 : index
    %196 = vector.load %arg11[%c0_101, %c480] : memref<2x2048xbf16, #tpu.memory_space<vmem>>, vector<2x32xbf16>
    tpu.vector_store %arg11[%c0_101, %c480], %195 {strides = array<i32>} : memref<2x2048xbf16, #tpu.memory_space<vmem>>, vector<2x32xbf16>,
    %197 = vector.extract_strided_slice %132 {offsets = [0, 16, 0], sizes = [2, 1, 32], strides = [1, 1, 1]} : vector<2x64x32xf32> to vector<2x1x32xf32>
    %198 = vector.shape_cast %197 : vector<2x1x32xf32> to vector<2x32xf32>
    %199 = arith.truncf %198 : vector<2x32xf32> to vector<2x32xbf16>
    %c0_102 = arith.constant 0 : index
    %c512 = arith.constant 512 : index
    %200 = vector.load %arg11[%c0_102, %c512] : memref<2x2048xbf16, #tpu.memory_space<vmem>>, vector<2x32xbf16>
    tpu.vector_store %arg11[%c0_102, %c512], %199 {strides = array<i32>} : memref<2x2048xbf16, #tpu.memory_space<vmem>>, vector<2x32xbf16>,
    %201 = vector.extract_strided_slice %132 {offsets = [0, 17, 0], sizes = [2, 1, 32], strides = [1, 1, 1]} : vector<2x64x32xf32> to vector<2x1x32xf32>
    %202 = vector.shape_cast %201 : vector<2x1x32xf32> to vector<2x32xf32>
    %203 = arith.truncf %202 : vector<2x32xf32> to vector<2x32xbf16>
    %c0_103 = arith.constant 0 : index
    %c544 = arith.constant 544 : index
    %204 = vector.load %arg11[%c0_103, %c544] : memref<2x2048xbf16, #tpu.memory_space<vmem>>, vector<2x32xbf16>
    tpu.vector_store %arg11[%c0_103, %c544], %203 {strides = array<i32>} : memref<2x2048xbf16, #tpu.memory_space<vmem>>, vector<2x32xbf16>,
    %205 = vector.extract_strided_slice %132 {offsets = [0, 18, 0], sizes = [2, 1, 32], strides = [1, 1, 1]} : vector<2x64x32xf32> to vector<2x1x32xf32>
    %206 = vector.shape_cast %205 : vector<2x1x32xf32> to vector<2x32xf32>
    %207 = arith.truncf %206 : vector<2x32xf32> to vector<2x32xbf16>
    %c0_104 = arith.constant 0 : index
    %c576 = arith.constant 576 : index
    %208 = vector.load %arg11[%c0_104, %c576] : memref<2x2048xbf16, #tpu.memory_space<vmem>>, vector<2x32xbf16>
    tpu.vector_store %arg11[%c0_104, %c576], %207 {strides = array<i32>} : memref<2x2048xbf16, #tpu.memory_space<vmem>>, vector<2x32xbf16>,
    %209 = vector.extract_strided_slice %132 {offsets = [0, 19, 0], sizes = [2, 1, 32], strides = [1, 1, 1]} : vector<2x64x32xf32> to vector<2x1x32xf32>
    %210 = vector.shape_cast %209 : vector<2x1x32xf32> to vector<2x32xf32>
    %211 = arith.truncf %210 : vector<2x32xf32> to vector<2x32xbf16>
    %c0_105 = arith.constant 0 : index
    %c608 = arith.constant 608 : index
    %212 = vector.load %arg11[%c0_105, %c608] : memref<2x2048xbf16, #tpu.memory_space<vmem>>, vector<2x32xbf16>
    tpu.vector_store %arg11[%c0_105, %c608], %211 {strides = array<i32>} : memref<2x2048xbf16, #tpu.memory_space<vmem>>, vector<2x32xbf16>,
    %213 = vector.extract_strided_slice %132 {offsets = [0, 20, 0], sizes = [2, 1, 32], strides = [1, 1, 1]} : vector<2x64x32xf32> to vector<2x1x32xf32>
    %214 = vector.shape_cast %213 : vector<2x1x32xf32> to vector<2x32xf32>
    %215 = arith.truncf %214 : vector<2x32xf32> to vector<2x32xbf16>
    %c0_106 = arith.constant 0 : index
    %c640 = arith.constant 640 : index
    %216 = vector.load %arg11[%c0_106, %c640] : memref<2x2048xbf16, #tpu.memory_space<vmem>>, vector<2x32xbf16>
    tpu.vector_store %arg11[%c0_106, %c640], %215 {strides = array<i32>} : memref<2x2048xbf16, #tpu.memory_space<vmem>>, vector<2x32xbf16>,
    %217 = vector.extract_strided_slice %132 {offsets = [0, 21, 0], sizes = [2, 1, 32], strides = [1, 1, 1]} : vector<2x64x32xf32> to vector<2x1x32xf32>
    %218 = vector.shape_cast %217 : vector<2x1x32xf32> to vector<2x32xf32>
    %219 = arith.truncf %218 : vector<2x32xf32> to vector<2x32xbf16>
    %c0_107 = arith.constant 0 : index
    %c672 = arith.constant 672 : index
    %220 = vector.load %arg11[%c0_107, %c672] : memref<2x2048xbf16, #tpu.memory_space<vmem>>, vector<2x32xbf16>
    tpu.vector_store %arg11[%c0_107, %c672], %219 {strides = array<i32>} : memref<2x2048xbf16, #tpu.memory_space<vmem>>, vector<2x32xbf16>,
    %221 = vector.extract_strided_slice %132 {offsets = [0, 22, 0], sizes = [2, 1, 32], strides = [1, 1, 1]} : vector<2x64x32xf32> to vector<2x1x32xf32>
    %222 = vector.shape_cast %221 : vector<2x1x32xf32> to vector<2x32xf32>
    %223 = arith.truncf %222 : vector<2x32xf32> to vector<2x32xbf16>
    %c0_108 = arith.constant 0 : index
    %c704 = arith.constant 704 : index
    %224 = vector.load %arg11[%c0_108, %c704] : memref<2x2048xbf16, #tpu.memory_space<vmem>>, vector<2x32xbf16>
    tpu.vector_store %arg11[%c0_108, %c704], %223 {strides = array<i32>} : memref<2x2048xbf16, #tpu.memory_space<vmem>>, vector<2x32xbf16>,
    %225 = vector.extract_strided_slice %132 {offsets = [0, 23, 0], sizes = [2, 1, 32], strides = [1, 1, 1]} : vector<2x64x32xf32> to vector<2x1x32xf32>
    %226 = vector.shape_cast %225 : vector<2x1x32xf32> to vector<2x32xf32>
    %227 = arith.truncf %226 : vector<2x32xf32> to vector<2x32xbf16>
    %c0_109 = arith.constant 0 : index
    %c736 = arith.constant 736 : index
    %228 = vector.load %arg11[%c0_109, %c736] : memref<2x2048xbf16, #tpu.memory_space<vmem>>, vector<2x32xbf16>
    tpu.vector_store %arg11[%c0_109, %c736], %227 {strides = array<i32>} : memref<2x2048xbf16, #tpu.memory_space<vmem>>, vector<2x32xbf16>,
    %229 = vector.extract_strided_slice %132 {offsets = [0, 24, 0], sizes = [2, 1, 32], strides = [1, 1, 1]} : vector<2x64x32xf32> to vector<2x1x32xf32>
    %230 = vector.shape_cast %229 : vector<2x1x32xf32> to vector<2x32xf32>
    %231 = arith.truncf %230 : vector<2x32xf32> to vector<2x32xbf16>
    %c0_110 = arith.constant 0 : index
    %c768 = arith.constant 768 : index
    %232 = vector.load %arg11[%c0_110, %c768] : memref<2x2048xbf16, #tpu.memory_space<vmem>>, vector<2x32xbf16>
    tpu.vector_store %arg11[%c0_110, %c768], %231 {strides = array<i32>} : memref<2x2048xbf16, #tpu.memory_space<vmem>>, vector<2x32xbf16>,
    %233 = vector.extract_strided_slice %132 {offsets = [0, 25, 0], sizes = [2, 1, 32], strides = [1, 1, 1]} : vector<2x64x32xf32> to vector<2x1x32xf32>
    %234 = vector.shape_cast %233 : vector<2x1x32xf32> to vector<2x32xf32>
    %235 = arith.truncf %234 : vector<2x32xf32> to vector<2x32xbf16>
    %c0_111 = arith.constant 0 : index
    %c800 = arith.constant 800 : index
    %236 = vector.load %arg11[%c0_111, %c800] : memref<2x2048xbf16, #tpu.memory_space<vmem>>, vector<2x32xbf16>
    tpu.vector_store %arg11[%c0_111, %c800], %235 {strides = array<i32>} : memref<2x2048xbf16, #tpu.memory_space<vmem>>, vector<2x32xbf16>,
    %237 = vector.extract_strided_slice %132 {offsets = [0, 26, 0], sizes = [2, 1, 32], strides = [1, 1, 1]} : vector<2x64x32xf32> to vector<2x1x32xf32>
    %238 = vector.shape_cast %237 : vector<2x1x32xf32> to vector<2x32xf32>
    %239 = arith.truncf %238 : vector<2x32xf32> to vector<2x32xbf16>
    %c0_112 = arith.constant 0 : index
    %c832 = arith.constant 832 : index
    %240 = vector.load %arg11[%c0_112, %c832] : memref<2x2048xbf16, #tpu.memory_space<vmem>>, vector<2x32xbf16>
    tpu.vector_store %arg11[%c0_112, %c832], %239 {strides = array<i32>} : memref<2x2048xbf16, #tpu.memory_space<vmem>>, vector<2x32xbf16>,
    %241 = vector.extract_strided_slice %132 {offsets = [0, 27, 0], sizes = [2, 1, 32], strides = [1, 1, 1]} : vector<2x64x32xf32> to vector<2x1x32xf32>
    %242 = vector.shape_cast %241 : vector<2x1x32xf32> to vector<2x32xf32>
    %243 = arith.truncf %242 : vector<2x32xf32> to vector<2x32xbf16>
    %c0_113 = arith.constant 0 : index
    %c864 = arith.constant 864 : index
    %244 = vector.load %arg11[%c0_113, %c864] : memref<2x2048xbf16, #tpu.memory_space<vmem>>, vector<2x32xbf16>
    tpu.vector_store %arg11[%c0_113, %c864], %243 {strides = array<i32>} : memref<2x2048xbf16, #tpu.memory_space<vmem>>, vector<2x32xbf16>,
    %245 = vector.extract_strided_slice %132 {offsets = [0, 28, 0], sizes = [2, 1, 32], strides = [1, 1, 1]} : vector<2x64x32xf32> to vector<2x1x32xf32>
    %246 = vector.shape_cast %245 : vector<2x1x32xf32> to vector<2x32xf32>
    %247 = arith.truncf %246 : vector<2x32xf32> to vector<2x32xbf16>
    %c0_114 = arith.constant 0 : index
    %c896 = arith.constant 896 : index
    %248 = vector.load %arg11[%c0_114, %c896] : memref<2x2048xbf16, #tpu.memory_space<vmem>>, vector<2x32xbf16>
    tpu.vector_store %arg11[%c0_114, %c896], %247 {strides = array<i32>} : memref<2x2048xbf16, #tpu.memory_space<vmem>>, vector<2x32xbf16>,
    %249 = vector.extract_strided_slice %132 {offsets = [0, 29, 0], sizes = [2, 1, 32], strides = [1, 1, 1]} : vector<2x64x32xf32> to vector<2x1x32xf32>
    %250 = vector.shape_cast %249 : vector<2x1x32xf32> to vector<2x32xf32>
    %251 = arith.truncf %250 : vector<2x32xf32> to vector<2x32xbf16>
    %c0_115 = arith.constant 0 : index
    %c928 = arith.constant 928 : index
    %252 = vector.load %arg11[%c0_115, %c928] : memref<2x2048xbf16, #tpu.memory_space<vmem>>, vector<2x32xbf16>
    tpu.vector_store %arg11[%c0_115, %c928], %251 {strides = array<i32>} : memref<2x2048xbf16, #tpu.memory_space<vmem>>, vector<2x32xbf16>,
    %253 = vector.extract_strided_slice %132 {offsets = [0, 30, 0], sizes = [2, 1, 32], strides = [1, 1, 1]} : vector<2x64x32xf32> to vector<2x1x32xf32>
    %254 = vector.shape_cast %253 : vector<2x1x32xf32> to vector<2x32xf32>
    %255 = arith.truncf %254 : vector<2x32xf32> to vector<2x32xbf16>
    %c0_116 = arith.constant 0 : index
    %c960 = arith.constant 960 : index
    %256 = vector.load %arg11[%c0_116, %c960] : memref<2x2048xbf16, #tpu.memory_space<vmem>>, vector<2x32xbf16>
    tpu.vector_store %arg11[%c0_116, %c960], %255 {strides = array<i32>} : memref<2x2048xbf16, #tpu.memory_space<vmem>>, vector<2x32xbf16>,
    %257 = vector.extract_strided_slice %132 {offsets = [0, 31, 0], sizes = [2, 1, 32], strides = [1, 1, 1]} : vector<2x64x32xf32> to vector<2x1x32xf32>
    %258 = vector.shape_cast %257 : vector<2x1x32xf32> to vector<2x32xf32>
    %259 = arith.truncf %258 : vector<2x32xf32> to vector<2x32xbf16>
    %c0_117 = arith.constant 0 : index
    %c992 = arith.constant 992 : index
    %260 = vector.load %arg11[%c0_117, %c992] : memref<2x2048xbf16, #tpu.memory_space<vmem>>, vector<2x32xbf16>
    tpu.vector_store %arg11[%c0_117, %c992], %259 {strides = array<i32>} : memref<2x2048xbf16, #tpu.memory_space<vmem>>, vector<2x32xbf16>,
    %261 = vector.extract_strided_slice %132 {offsets = [0, 32, 0], sizes = [2, 1, 32], strides = [1, 1, 1]} : vector<2x64x32xf32> to vector<2x1x32xf32>
    %262 = vector.shape_cast %261 : vector<2x1x32xf32> to vector<2x32xf32>
    %263 = arith.truncf %262 : vector<2x32xf32> to vector<2x32xbf16>
    %c0_118 = arith.constant 0 : index
    %c1024 = arith.constant 1024 : index
    %264 = vector.load %arg11[%c0_118, %c1024] : memref<2x2048xbf16, #tpu.memory_space<vmem>>, vector<2x32xbf16>
    tpu.vector_store %arg11[%c0_118, %c1024], %263 {strides = array<i32>} : memref<2x2048xbf16, #tpu.memory_space<vmem>>, vector<2x32xbf16>,
    %265 = vector.extract_strided_slice %132 {offsets = [0, 33, 0], sizes = [2, 1, 32], strides = [1, 1, 1]} : vector<2x64x32xf32> to vector<2x1x32xf32>
    %266 = vector.shape_cast %265 : vector<2x1x32xf32> to vector<2x32xf32>
    %267 = arith.truncf %266 : vector<2x32xf32> to vector<2x32xbf16>
    %c0_119 = arith.constant 0 : index
    %c1056 = arith.constant 1056 : index
    %268 = vector.load %arg11[%c0_119, %c1056] : memref<2x2048xbf16, #tpu.memory_space<vmem>>, vector<2x32xbf16>
    tpu.vector_store %arg11[%c0_119, %c1056], %267 {strides = array<i32>} : memref<2x2048xbf16, #tpu.memory_space<vmem>>, vector<2x32xbf16>,
    %269 = vector.extract_strided_slice %132 {offsets = [0, 34, 0], sizes = [2, 1, 32], strides = [1, 1, 1]} : vector<2x64x32xf32> to vector<2x1x32xf32>
    %270 = vector.shape_cast %269 : vector<2x1x32xf32> to vector<2x32xf32>
    %271 = arith.truncf %270 : vector<2x32xf32> to vector<2x32xbf16>
    %c0_120 = arith.constant 0 : index
    %c1088 = arith.constant 1088 : index
    %272 = vector.load %arg11[%c0_120, %c1088] : memref<2x2048xbf16, #tpu.memory_space<vmem>>, vector<2x32xbf16>
    tpu.vector_store %arg11[%c0_120, %c1088], %271 {strides = array<i32>} : memref<2x2048xbf16, #tpu.memory_space<vmem>>, vector<2x32xbf16>,
    %273 = vector.extract_strided_slice %132 {offsets = [0, 35, 0], sizes = [2, 1, 32], strides = [1, 1, 1]} : vector<2x64x32xf32> to vector<2x1x32xf32>
    %274 = vector.shape_cast %273 : vector<2x1x32xf32> to vector<2x32xf32>
    %275 = arith.truncf %274 : vector<2x32xf32> to vector<2x32xbf16>
    %c0_121 = arith.constant 0 : index
    %c1120 = arith.constant 1120 : index
    %276 = vector.load %arg11[%c0_121, %c1120] : memref<2x2048xbf16, #tpu.memory_space<vmem>>, vector<2x32xbf16>
    tpu.vector_store %arg11[%c0_121, %c1120], %275 {strides = array<i32>} : memref<2x2048xbf16, #tpu.memory_space<vmem>>, vector<2x32xbf16>,
    %277 = vector.extract_strided_slice %132 {offsets = [0, 36, 0], sizes = [2, 1, 32], strides = [1, 1, 1]} : vector<2x64x32xf32> to vector<2x1x32xf32>
    %278 = vector.shape_cast %277 : vector<2x1x32xf32> to vector<2x32xf32>
    %279 = arith.truncf %278 : vector<2x32xf32> to vector<2x32xbf16>
    %c0_122 = arith.constant 0 : index
    %c1152 = arith.constant 1152 : index
    %280 = vector.load %arg11[%c0_122, %c1152] : memref<2x2048xbf16, #tpu.memory_space<vmem>>, vector<2x32xbf16>
    tpu.vector_store %arg11[%c0_122, %c1152], %279 {strides = array<i32>} : memref<2x2048xbf16, #tpu.memory_space<vmem>>, vector<2x32xbf16>,
    %281 = vector.extract_strided_slice %132 {offsets = [0, 37, 0], sizes = [2, 1, 32], strides = [1, 1, 1]} : vector<2x64x32xf32> to vector<2x1x32xf32>
    %282 = vector.shape_cast %281 : vector<2x1x32xf32> to vector<2x32xf32>
    %283 = arith.truncf %282 : vector<2x32xf32> to vector<2x32xbf16>
    %c0_123 = arith.constant 0 : index
    %c1184 = arith.constant 1184 : index
    %284 = vector.load %arg11[%c0_123, %c1184] : memref<2x2048xbf16, #tpu.memory_space<vmem>>, vector<2x32xbf16>
    tpu.vector_store %arg11[%c0_123, %c1184], %283 {strides = array<i32>} : memref<2x2048xbf16, #tpu.memory_space<vmem>>, vector<2x32xbf16>,
    %285 = vector.extract_strided_slice %132 {offsets = [0, 38, 0], sizes = [2, 1, 32], strides = [1, 1, 1]} : vector<2x64x32xf32> to vector<2x1x32xf32>
    %286 = vector.shape_cast %285 : vector<2x1x32xf32> to vector<2x32xf32>
    %287 = arith.truncf %286 : vector<2x32xf32> to vector<2x32xbf16>
    %c0_124 = arith.constant 0 : index
    %c1216 = arith.constant 1216 : index
    %288 = vector.load %arg11[%c0_124, %c1216] : memref<2x2048xbf16, #tpu.memory_space<vmem>>, vector<2x32xbf16>
    tpu.vector_store %arg11[%c0_124, %c1216], %287 {strides = array<i32>} : memref<2x2048xbf16, #tpu.memory_space<vmem>>, vector<2x32xbf16>,
    %289 = vector.extract_strided_slice %132 {offsets = [0, 39, 0], sizes = [2, 1, 32], strides = [1, 1, 1]} : vector<2x64x32xf32> to vector<2x1x32xf32>
    %290 = vector.shape_cast %289 : vector<2x1x32xf32> to vector<2x32xf32>
    %291 = arith.truncf %290 : vector<2x32xf32> to vector<2x32xbf16>
    %c0_125 = arith.constant 0 : index
    %c1248 = arith.constant 1248 : index
    %292 = vector.load %arg11[%c0_125, %c1248] : memref<2x2048xbf16, #tpu.memory_space<vmem>>, vector<2x32xbf16>
    tpu.vector_store %arg11[%c0_125, %c1248], %291 {strides = array<i32>} : memref<2x2048xbf16, #tpu.memory_space<vmem>>, vector<2x32xbf16>,
    %293 = vector.extract_strided_slice %132 {offsets = [0, 40, 0], sizes = [2, 1, 32], strides = [1, 1, 1]} : vector<2x64x32xf32> to vector<2x1x32xf32>
    %294 = vector.shape_cast %293 : vector<2x1x32xf32> to vector<2x32xf32>
    %295 = arith.truncf %294 : vector<2x32xf32> to vector<2x32xbf16>
    %c0_126 = arith.constant 0 : index
    %c1280 = arith.constant 1280 : index
    %296 = vector.load %arg11[%c0_126, %c1280] : memref<2x2048xbf16, #tpu.memory_space<vmem>>, vector<2x32xbf16>
    tpu.vector_store %arg11[%c0_126, %c1280], %295 {strides = array<i32>} : memref<2x2048xbf16, #tpu.memory_space<vmem>>, vector<2x32xbf16>,
    %297 = vector.extract_strided_slice %132 {offsets = [0, 41, 0], sizes = [2, 1, 32], strides = [1, 1, 1]} : vector<2x64x32xf32> to vector<2x1x32xf32>
    %298 = vector.shape_cast %297 : vector<2x1x32xf32> to vector<2x32xf32>
    %299 = arith.truncf %298 : vector<2x32xf32> to vector<2x32xbf16>
    %c0_127 = arith.constant 0 : index
    %c1312 = arith.constant 1312 : index
    %300 = vector.load %arg11[%c0_127, %c1312] : memref<2x2048xbf16, #tpu.memory_space<vmem>>, vector<2x32xbf16>
    tpu.vector_store %arg11[%c0_127, %c1312], %299 {strides = array<i32>} : memref<2x2048xbf16, #tpu.memory_space<vmem>>, vector<2x32xbf16>,
    %301 = vector.extract_strided_slice %132 {offsets = [0, 42, 0], sizes = [2, 1, 32], strides = [1, 1, 1]} : vector<2x64x32xf32> to vector<2x1x32xf32>
    %302 = vector.shape_cast %301 : vector<2x1x32xf32> to vector<2x32xf32>
    %303 = arith.truncf %302 : vector<2x32xf32> to vector<2x32xbf16>
    %c0_128 = arith.constant 0 : index
    %c1344 = arith.constant 1344 : index
    %304 = vector.load %arg11[%c0_128, %c1344] : memref<2x2048xbf16, #tpu.memory_space<vmem>>, vector<2x32xbf16>
    tpu.vector_store %arg11[%c0_128, %c1344], %303 {strides = array<i32>} : memref<2x2048xbf16, #tpu.memory_space<vmem>>, vector<2x32xbf16>,
    %305 = vector.extract_strided_slice %132 {offsets = [0, 43, 0], sizes = [2, 1, 32], strides = [1, 1, 1]} : vector<2x64x32xf32> to vector<2x1x32xf32>
    %306 = vector.shape_cast %305 : vector<2x1x32xf32> to vector<2x32xf32>
    %307 = arith.truncf %306 : vector<2x32xf32> to vector<2x32xbf16>
    %c0_129 = arith.constant 0 : index
    %c1376 = arith.constant 1376 : index
    %308 = vector.load %arg11[%c0_129, %c1376] : memref<2x2048xbf16, #tpu.memory_space<vmem>>, vector<2x32xbf16>
    tpu.vector_store %arg11[%c0_129, %c1376], %307 {strides = array<i32>} : memref<2x2048xbf16, #tpu.memory_space<vmem>>, vector<2x32xbf16>,
    %309 = vector.extract_strided_slice %132 {offsets = [0, 44, 0], sizes = [2, 1, 32], strides = [1, 1, 1]} : vector<2x64x32xf32> to vector<2x1x32xf32>
    %310 = vector.shape_cast %309 : vector<2x1x32xf32> to vector<2x32xf32>
    %311 = arith.truncf %310 : vector<2x32xf32> to vector<2x32xbf16>
    %c0_130 = arith.constant 0 : index
    %c1408 = arith.constant 1408 : index
    %312 = vector.load %arg11[%c0_130, %c1408] : memref<2x2048xbf16, #tpu.memory_space<vmem>>, vector<2x32xbf16>
    tpu.vector_store %arg11[%c0_130, %c1408], %311 {strides = array<i32>} : memref<2x2048xbf16, #tpu.memory_space<vmem>>, vector<2x32xbf16>,
    %313 = vector.extract_strided_slice %132 {offsets = [0, 45, 0], sizes = [2, 1, 32], strides = [1, 1, 1]} : vector<2x64x32xf32> to vector<2x1x32xf32>
    %314 = vector.shape_cast %313 : vector<2x1x32xf32> to vector<2x32xf32>
    %315 = arith.truncf %314 : vector<2x32xf32> to vector<2x32xbf16>
    %c0_131 = arith.constant 0 : index
    %c1440 = arith.constant 1440 : index
    %316 = vector.load %arg11[%c0_131, %c1440] : memref<2x2048xbf16, #tpu.memory_space<vmem>>, vector<2x32xbf16>
    tpu.vector_store %arg11[%c0_131, %c1440], %315 {strides = array<i32>} : memref<2x2048xbf16, #tpu.memory_space<vmem>>, vector<2x32xbf16>,
    %317 = vector.extract_strided_slice %132 {offsets = [0, 46, 0], sizes = [2, 1, 32], strides = [1, 1, 1]} : vector<2x64x32xf32> to vector<2x1x32xf32>
    %318 = vector.shape_cast %317 : vector<2x1x32xf32> to vector<2x32xf32>
    %319 = arith.truncf %318 : vector<2x32xf32> to vector<2x32xbf16>
    %c0_132 = arith.constant 0 : index
    %c1472 = arith.constant 1472 : index
    %320 = vector.load %arg11[%c0_132, %c1472] : memref<2x2048xbf16, #tpu.memory_space<vmem>>, vector<2x32xbf16>
    tpu.vector_store %arg11[%c0_132, %c1472], %319 {strides = array<i32>} : memref<2x2048xbf16, #tpu.memory_space<vmem>>, vector<2x32xbf16>,
    %321 = vector.extract_strided_slice %132 {offsets = [0, 47, 0], sizes = [2, 1, 32], strides = [1, 1, 1]} : vector<2x64x32xf32> to vector<2x1x32xf32>
    %322 = vector.shape_cast %321 : vector<2x1x32xf32> to vector<2x32xf32>
    %323 = arith.truncf %322 : vector<2x32xf32> to vector<2x32xbf16>
    %c0_133 = arith.constant 0 : index
    %c1504 = arith.constant 1504 : index
    %324 = vector.load %arg11[%c0_133, %c1504] : memref<2x2048xbf16, #tpu.memory_space<vmem>>, vector<2x32xbf16>
    tpu.vector_store %arg11[%c0_133, %c1504], %323 {strides = array<i32>} : memref<2x2048xbf16, #tpu.memory_space<vmem>>, vector<2x32xbf16>,
    %325 = vector.extract_strided_slice %132 {offsets = [0, 48, 0], sizes = [2, 1, 32], strides = [1, 1, 1]} : vector<2x64x32xf32> to vector<2x1x32xf32>
    %326 = vector.shape_cast %325 : vector<2x1x32xf32> to vector<2x32xf32>
    %327 = arith.truncf %326 : vector<2x32xf32> to vector<2x32xbf16>
    %c0_134 = arith.constant 0 : index
    %c1536 = arith.constant 1536 : index
    %328 = vector.load %arg11[%c0_134, %c1536] : memref<2x2048xbf16, #tpu.memory_space<vmem>>, vector<2x32xbf16>
    tpu.vector_store %arg11[%c0_134, %c1536], %327 {strides = array<i32>} : memref<2x2048xbf16, #tpu.memory_space<vmem>>, vector<2x32xbf16>,
    %329 = vector.extract_strided_slice %132 {offsets = [0, 49, 0], sizes = [2, 1, 32], strides = [1, 1, 1]} : vector<2x64x32xf32> to vector<2x1x32xf32>
    %330 = vector.shape_cast %329 : vector<2x1x32xf32> to vector<2x32xf32>
    %331 = arith.truncf %330 : vector<2x32xf32> to vector<2x32xbf16>
    %c0_135 = arith.constant 0 : index
    %c1568 = arith.constant 1568 : index
    %332 = vector.load %arg11[%c0_135, %c1568] : memref<2x2048xbf16, #tpu.memory_space<vmem>>, vector<2x32xbf16>
    tpu.vector_store %arg11[%c0_135, %c1568], %331 {strides = array<i32>} : memref<2x2048xbf16, #tpu.memory_space<vmem>>, vector<2x32xbf16>,
    %333 = vector.extract_strided_slice %132 {offsets = [0, 50, 0], sizes = [2, 1, 32], strides = [1, 1, 1]} : vector<2x64x32xf32> to vector<2x1x32xf32>
    %334 = vector.shape_cast %333 : vector<2x1x32xf32> to vector<2x32xf32>
    %335 = arith.truncf %334 : vector<2x32xf32> to vector<2x32xbf16>
    %c0_136 = arith.constant 0 : index
    %c1600 = arith.constant 1600 : index
    %336 = vector.load %arg11[%c0_136, %c1600] : memref<2x2048xbf16, #tpu.memory_space<vmem>>, vector<2x32xbf16>
    tpu.vector_store %arg11[%c0_136, %c1600], %335 {strides = array<i32>} : memref<2x2048xbf16, #tpu.memory_space<vmem>>, vector<2x32xbf16>,
    %337 = vector.extract_strided_slice %132 {offsets = [0, 51, 0], sizes = [2, 1, 32], strides = [1, 1, 1]} : vector<2x64x32xf32> to vector<2x1x32xf32>
    %338 = vector.shape_cast %337 : vector<2x1x32xf32> to vector<2x32xf32>
    %339 = arith.truncf %338 : vector<2x32xf32> to vector<2x32xbf16>
    %c0_137 = arith.constant 0 : index
    %c1632 = arith.constant 1632 : index
    %340 = vector.load %arg11[%c0_137, %c1632] : memref<2x2048xbf16, #tpu.memory_space<vmem>>, vector<2x32xbf16>
    tpu.vector_store %arg11[%c0_137, %c1632], %339 {strides = array<i32>} : memref<2x2048xbf16, #tpu.memory_space<vmem>>, vector<2x32xbf16>,
    %341 = vector.extract_strided_slice %132 {offsets = [0, 52, 0], sizes = [2, 1, 32], strides = [1, 1, 1]} : vector<2x64x32xf32> to vector<2x1x32xf32>
    %342 = vector.shape_cast %341 : vector<2x1x32xf32> to vector<2x32xf32>
    %343 = arith.truncf %342 : vector<2x32xf32> to vector<2x32xbf16>
    %c0_138 = arith.constant 0 : index
    %c1664 = arith.constant 1664 : index
    %344 = vector.load %arg11[%c0_138, %c1664] : memref<2x2048xbf16, #tpu.memory_space<vmem>>, vector<2x32xbf16>
    tpu.vector_store %arg11[%c0_138, %c1664], %343 {strides = array<i32>} : memref<2x2048xbf16, #tpu.memory_space<vmem>>, vector<2x32xbf16>,
    %345 = vector.extract_strided_slice %132 {offsets = [0, 53, 0], sizes = [2, 1, 32], strides = [1, 1, 1]} : vector<2x64x32xf32> to vector<2x1x32xf32>
    %346 = vector.shape_cast %345 : vector<2x1x32xf32> to vector<2x32xf32>
    %347 = arith.truncf %346 : vector<2x32xf32> to vector<2x32xbf16>
    %c0_139 = arith.constant 0 : index
    %c1696 = arith.constant 1696 : index
    %348 = vector.load %arg11[%c0_139, %c1696] : memref<2x2048xbf16, #tpu.memory_space<vmem>>, vector<2x32xbf16>
    tpu.vector_store %arg11[%c0_139, %c1696], %347 {strides = array<i32>} : memref<2x2048xbf16, #tpu.memory_space<vmem>>, vector<2x32xbf16>,
    %349 = vector.extract_strided_slice %132 {offsets = [0, 54, 0], sizes = [2, 1, 32], strides = [1, 1, 1]} : vector<2x64x32xf32> to vector<2x1x32xf32>
    %350 = vector.shape_cast %349 : vector<2x1x32xf32> to vector<2x32xf32>
    %351 = arith.truncf %350 : vector<2x32xf32> to vector<2x32xbf16>
    %c0_140 = arith.constant 0 : index
    %c1728 = arith.constant 1728 : index
    %352 = vector.load %arg11[%c0_140, %c1728] : memref<2x2048xbf16, #tpu.memory_space<vmem>>, vector<2x32xbf16>
    tpu.vector_store %arg11[%c0_140, %c1728], %351 {strides = array<i32>} : memref<2x2048xbf16, #tpu.memory_space<vmem>>, vector<2x32xbf16>,
    %353 = vector.extract_strided_slice %132 {offsets = [0, 55, 0], sizes = [2, 1, 32], strides = [1, 1, 1]} : vector<2x64x32xf32> to vector<2x1x32xf32>
    %354 = vector.shape_cast %353 : vector<2x1x32xf32> to vector<2x32xf32>
    %355 = arith.truncf %354 : vector<2x32xf32> to vector<2x32xbf16>
    %c0_141 = arith.constant 0 : index
    %c1760 = arith.constant 1760 : index
    %356 = vector.load %arg11[%c0_141, %c1760] : memref<2x2048xbf16, #tpu.memory_space<vmem>>, vector<2x32xbf16>
    tpu.vector_store %arg11[%c0_141, %c1760], %355 {strides = array<i32>} : memref<2x2048xbf16, #tpu.memory_space<vmem>>, vector<2x32xbf16>,
    %357 = vector.extract_strided_slice %132 {offsets = [0, 56, 0], sizes = [2, 1, 32], strides = [1, 1, 1]} : vector<2x64x32xf32> to vector<2x1x32xf32>
    %358 = vector.shape_cast %357 : vector<2x1x32xf32> to vector<2x32xf32>
    %359 = arith.truncf %358 : vector<2x32xf32> to vector<2x32xbf16>
    %c0_142 = arith.constant 0 : index
    %c1792 = arith.constant 1792 : index
    %360 = vector.load %arg11[%c0_142, %c1792] : memref<2x2048xbf16, #tpu.memory_space<vmem>>, vector<2x32xbf16>
    tpu.vector_store %arg11[%c0_142, %c1792], %359 {strides = array<i32>} : memref<2x2048xbf16, #tpu.memory_space<vmem>>, vector<2x32xbf16>,
    %361 = vector.extract_strided_slice %132 {offsets = [0, 57, 0], sizes = [2, 1, 32], strides = [1, 1, 1]} : vector<2x64x32xf32> to vector<2x1x32xf32>
    %362 = vector.shape_cast %361 : vector<2x1x32xf32> to vector<2x32xf32>
    %363 = arith.truncf %362 : vector<2x32xf32> to vector<2x32xbf16>
    %c0_143 = arith.constant 0 : index
    %c1824 = arith.constant 1824 : index
    %364 = vector.load %arg11[%c0_143, %c1824] : memref<2x2048xbf16, #tpu.memory_space<vmem>>, vector<2x32xbf16>
    tpu.vector_store %arg11[%c0_143, %c1824], %363 {strides = array<i32>} : memref<2x2048xbf16, #tpu.memory_space<vmem>>, vector<2x32xbf16>,
    %365 = vector.extract_strided_slice %132 {offsets = [0, 58, 0], sizes = [2, 1, 32], strides = [1, 1, 1]} : vector<2x64x32xf32> to vector<2x1x32xf32>
    %366 = vector.shape_cast %365 : vector<2x1x32xf32> to vector<2x32xf32>
    %367 = arith.truncf %366 : vector<2x32xf32> to vector<2x32xbf16>
    %c0_144 = arith.constant 0 : index
    %c1856 = arith.constant 1856 : index
    %368 = vector.load %arg11[%c0_144, %c1856] : memref<2x2048xbf16, #tpu.memory_space<vmem>>, vector<2x32xbf16>
    tpu.vector_store %arg11[%c0_144, %c1856], %367 {strides = array<i32>} : memref<2x2048xbf16, #tpu.memory_space<vmem>>, vector<2x32xbf16>,
    %369 = vector.extract_strided_slice %132 {offsets = [0, 59, 0], sizes = [2, 1, 32], strides = [1, 1, 1]} : vector<2x64x32xf32> to vector<2x1x32xf32>
    %370 = vector.shape_cast %369 : vector<2x1x32xf32> to vector<2x32xf32>
    %371 = arith.truncf %370 : vector<2x32xf32> to vector<2x32xbf16>
    %c0_145 = arith.constant 0 : index
    %c1888 = arith.constant 1888 : index
    %372 = vector.load %arg11[%c0_145, %c1888] : memref<2x2048xbf16, #tpu.memory_space<vmem>>, vector<2x32xbf16>
    tpu.vector_store %arg11[%c0_145, %c1888], %371 {strides = array<i32>} : memref<2x2048xbf16, #tpu.memory_space<vmem>>, vector<2x32xbf16>,
    %373 = vector.extract_strided_slice %132 {offsets = [0, 60, 0], sizes = [2, 1, 32], strides = [1, 1, 1]} : vector<2x64x32xf32> to vector<2x1x32xf32>
    %374 = vector.shape_cast %373 : vector<2x1x32xf32> to vector<2x32xf32>
    %375 = arith.truncf %374 : vector<2x32xf32> to vector<2x32xbf16>
    %c0_146 = arith.constant 0 : index
    %c1920 = arith.constant 1920 : index
    %376 = vector.load %arg11[%c0_146, %c1920] : memref<2x2048xbf16, #tpu.memory_space<vmem>>, vector<2x32xbf16>
    tpu.vector_store %arg11[%c0_146, %c1920], %375 {strides = array<i32>} : memref<2x2048xbf16, #tpu.memory_space<vmem>>, vector<2x32xbf16>,
    %377 = vector.extract_strided_slice %132 {offsets = [0, 61, 0], sizes = [2, 1, 32], strides = [1, 1, 1]} : vector<2x64x32xf32> to vector<2x1x32xf32>
    %378 = vector.shape_cast %377 : vector<2x1x32xf32> to vector<2x32xf32>
    %379 = arith.truncf %378 : vector<2x32xf32> to vector<2x32xbf16>
    %c0_147 = arith.constant 0 : index
    %c1952 = arith.constant 1952 : index
    %380 = vector.load %arg11[%c0_147, %c1952] : memref<2x2048xbf16, #tpu.memory_space<vmem>>, vector<2x32xbf16>
    tpu.vector_store %arg11[%c0_147, %c1952], %379 {strides = array<i32>} : memref<2x2048xbf16, #tpu.memory_space<vmem>>, vector<2x32xbf16>,
    %381 = vector.extract_strided_slice %132 {offsets = [0, 62, 0], sizes = [2, 1, 32], strides = [1, 1, 1]} : vector<2x64x32xf32> to vector<2x1x32xf32>
    %382 = vector.shape_cast %381 : vector<2x1x32xf32> to vector<2x32xf32>
    %383 = arith.truncf %382 : vector<2x32xf32> to vector<2x32xbf16>
    %c0_148 = arith.constant 0 : index
    %c1984 = arith.constant 1984 : index
    %384 = vector.load %arg11[%c0_148, %c1984] : memref<2x2048xbf16, #tpu.memory_space<vmem>>, vector<2x32xbf16>
    tpu.vector_store %arg11[%c0_148, %c1984], %383 {strides = array<i32>} : memref<2x2048xbf16, #tpu.memory_space<vmem>>, vector<2x32xbf16>,
    %385 = vector.extract_strided_slice %132 {offsets = [0, 63, 0], sizes = [2, 1, 32], strides = [1, 1, 1]} : vector<2x64x32xf32> to vector<2x1x32xf32>
    %386 = vector.shape_cast %385 : vector<2x1x32xf32> to vector<2x32xf32>
    %387 = arith.truncf %386 : vector<2x32xf32> to vector<2x32xbf16>
    %c0_149 = arith.constant 0 : index
    %c2016 = arith.constant 2016 : index
    %388 = vector.load %arg11[%c0_149, %c2016] : memref<2x2048xbf16, #tpu.memory_space<vmem>>, vector<2x32xbf16>
    tpu.vector_store %arg11[%c0_149, %c2016], %387 {strides = array<i32>} : memref<2x2048xbf16, #tpu.memory_space<vmem>>, vector<2x32xbf16>,
    %c0_150 = arith.constant 0 : index
    %c0_151 = arith.constant 0 : index
    %389 = vector.load %arg11[%c0_150, %c0_151] : memref<2x2048xbf16, #tpu.memory_space<vmem>>, vector<2x2048xbf16>
    %c0_152 = arith.constant 0 : index
    %c0_153 = arith.constant 0 : index
    %390 = vector.load %arg6[%c0_152, %c0_153] : memref<2048x128xbf16, #tpu.memory_space<vmem>>, vector<2048x128xbf16>
    %cst_154 = arith.constant dense<0.000000e+00> : vector<2x128xf32>
    %391 = tpu.matmul %389, %390, %cst_154 {dimension_numbers = #tpu.dot_dimension_numbers<[1], [0], [0], [1], [0, 0, 1, 1], [], []>} : vector<2x2048xbf16>, vector<2048x128xbf16>, vector<2x128xf32> -> vector<2x128xf32>
    %c0_155 = arith.constant 0 : index
    %c0_156 = arith.constant 0 : index
    %392 = vector.load %arg7[%c0_155, %c0_156] : memref<1x128xf32, #tpu.memory_space<vmem>>, vector<1x128xf32>
    %393 = vector.broadcast %392 : vector<1x128xf32> to vector<2x128xf32>
    %394 = arith.addf %391, %393 : vector<2x128xf32>
    %395 = tpu.iota {dimensions = array<i32: 1>} : vector<2x128xi32>
    %c64_i32 = arith.constant 64 : i32
    %396 = vector.broadcast %c64_i32 : i32 to vector<2x128xi32>
    %397 = arith.cmpi slt, %395, %396 : vector<2x128xi32>
    %cst_157 = arith.constant 0xFF800000 : f32
    %398 = vector.broadcast %cst_157 : f32 to vector<2x128xf32>
    %399 = arith.select %397, %394, %398 : vector<2x128xi1>, vector<2x128xf32>
    %cst_158 = arith.constant dense<0xFF800000> : vector<2xf32>
    %400 = vector.multi_reduction <maximumf>, %399, %cst_158 [1] : vector<2x128xf32> to vector<2xf32>
    %401 = vector.shape_cast %400 : vector<2xf32> to vector<2x1xf32>
    %402 = vector.broadcast %401 : vector<2x1xf32> to vector<2x128xf32>
    %403 = arith.subf %399, %402 : vector<2x128xf32>
    %404 = math.exp %403 : vector<2x128xf32>
    %cst_159 = arith.constant dense<0.000000e+00> : vector<2xf32>
    %405 = vector.multi_reduction <add>, %404, %cst_159 [1] : vector<2x128xf32> to vector<2xf32>
    %406 = vector.shape_cast %405 : vector<2xf32> to vector<2x1xf32>
    %407 = vector.broadcast %406 : vector<2x1xf32> to vector<2x128xf32>
    %408 = arith.divf %404, %407 : vector<2x128xf32>
    %c64_i32_160 = arith.constant 64 : i32
    %409 = vector.broadcast %c64_i32_160 : i32 to vector<2x128xi32>
    %410 = arith.cmpi slt, %395, %409 : vector<2x128xi32>
    %c64_i32_161 = arith.constant 64 : i32
    %411 = vector.broadcast %c64_i32_161 : i32 to vector<2x128xi32>
    %412 = arith.cmpi eq, %395, %411 : vector<2x128xi32>
    %cst_162 = arith.constant 0.000000e+00 : f32
    %413 = vector.broadcast %cst_162 : f32 to vector<2x128xf32>
    %414 = arith.select %412, %394, %413 : vector<2x128xi1>, vector<2x128xf32>
    %415 = arith.select %410, %408, %414 : vector<2x128xi1>, vector<2x128xf32>
    %c0_163 = arith.constant 0 : index
    %c0_164 = arith.constant 0 : index
    %c0_165 = arith.constant 0 : index
    %416 = vector.load %arg8[%c0_163, %c0_164, %c0_165] : memref<1x2x128xf32, #tpu.memory_space<vmem>>, vector<1x2x128xf32>
    %417 = vector.shape_cast %416 : vector<1x2x128xf32> to vector<2x128xf32>
    %418 = vector.shape_cast %415 : vector<2x128xf32> to vector<1x2x128xf32>
    tpu.vector_store %arg8[%c0_163, %c0_164, %c0_165], %418 {strides = array<i32>} : memref<1x2x128xf32, #tpu.memory_space<vmem>>, vector<1x2x128xf32>,
    return
  }
  func.func @transform_0(%arg0: i32) -> (i32, i32, i32, i32) {
    %c0_i32 = arith.constant 0 : i32
    %c0_i32_0 = arith.constant 0 : i32
    %c0_i32_1 = arith.constant 0 : i32
    %c0_i32_2 = arith.constant 0 : i32
    return %arg0, %c0_i32, %c0_i32_0, %c0_i32_1 : i32, i32, i32, i32
  }
  func.func @transform_1(%arg0: i32) -> (i32, i32) {
    %c0_i32 = arith.constant 0 : i32
    %c0_i32_0 = arith.constant 0 : i32
    %c0_i32_1 = arith.constant 0 : i32
    return %c0_i32, %c0_i32_0 : i32, i32
  }
  func.func @transform_2(%arg0: i32) -> (i32, i32) {
    %c0_i32 = arith.constant 0 : i32
    %c0_i32_0 = arith.constant 0 : i32
    %c0_i32_1 = arith.constant 0 : i32
    return %c0_i32, %c0_i32_0 : i32, i32
  }
  func.func @transform_3(%arg0: i32) -> (i32, i32) {
    %c0_i32 = arith.constant 0 : i32
    %c0_i32_0 = arith.constant 0 : i32
    %c0_i32_1 = arith.constant 0 : i32
    return %c0_i32, %c0_i32_0 : i32, i32
  }
  func.func @transform_4(%arg0: i32) -> (i32, i32) {
    %c0_i32 = arith.constant 0 : i32
    %c0_i32_0 = arith.constant 0 : i32
    %c0_i32_1 = arith.constant 0 : i32
    return %c0_i32, %c0_i32_0 : i32, i32
  }
  func.func @transform_5(%arg0: i32) -> (i32, i32) {
    %c0_i32 = arith.constant 0 : i32
    %c0_i32_0 = arith.constant 0 : i32
    %c0_i32_1 = arith.constant 0 : i32
    return %c0_i32, %c0_i32_0 : i32, i32
  }
  func.func @transform_6(%arg0: i32) -> (i32, i32) {
    %c0_i32 = arith.constant 0 : i32
    %c0_i32_0 = arith.constant 0 : i32
    %c0_i32_1 = arith.constant 0 : i32
    return %c0_i32, %c0_i32_0 : i32, i32
  }
  func.func @transform_7(%arg0: i32) -> (i32, i32, i32) {
    %c0_i32 = arith.constant 0 : i32
    %c0_i32_0 = arith.constant 0 : i32
    %c0_i32_1 = arith.constant 0 : i32
    return %arg0, %c0_i32, %c0_i32_0 : i32, i32, i32
  }
}

</mosaic_0001>

<bundles_post_ra>
// kernel: squeeze.4
= control target key start
LH: loop header
LB: loop body
LE: loop exit
PB: predicated region body
PF: predicated region fallthrough
CT: control target
= control target key end

     0   :  { %vm15_vm0 = vcmask 130048   ;;  %s59_s0 = inlined_call_operand.vmem [shape: f32[16,3,3], index: 0, kind: input, shape index: {}]   ;;  %s60_s1 = inlined_call_operand.vmem [shape: f32[16,9], index: 1, kind: output, shape index: {}]  }
   0x1   :  { %v27_v0 = vld [vmem:[%s59_s0 + $0x8] sm:$0xf]  ;;  %v28_v1 = vld [vmem:[%s59_s0 + $0x4] sm:$0xf]  ;;  %v12_v2 = vld [vmem:[%s59_s0] sm:$0xf] }
   0x2   :  { %7 = vst [vmem:[#allocation0] sm:$0xf] %v27_v0 }
   0x3   :  { %11 = vst [vmem:[#allocation0 + $0x10] sm:$0xf] %v28_v1 }
   0x4   :  { %13 = vst [vmem:[#allocation0 + $0x8] sm:$0xf] %v12_v2 }
   0x9   :  { %v23_v3 = vld [vmem:[#allocation0] sm:$0x7]  }
   0xa   :  { %v18_v4 = vld [vmem:[#allocation0 + $0x10] sm:$0x7]   ;;  %30 = vst.msk [vmem:[%s60_s1 + $0x6] sm:$0x7] %vm15_vm0, %v23_v3  }
   0xb   :  { %v14_v5 = vld [vmem:[#allocation0 + $0x8] sm:$0x7]   ;;  %29 = vst.msk [vmem:[%s60_s1 + $0x3] sm:$0x7] %vm15_vm0, %v18_v4  }
   0xc   :  { %16 = vst.msk [vmem:[%s60_s1] sm:$0x7] %vm15_vm0, %v14_v5  }

// kernel: actor_critic_forward.1
= control target key start
LH: loop header
LB: loop body
LE: loop exit
PB: predicated region body
PF: predicated region fallthrough
CT: control target
= control target key end

     0   :  { %v6332_v0 = vmov 0   ;;  %vm1276_vm0 = vcmask 130048   ;;  %vm1278_vm1 = vcmask 123904   ;;  %v6333_v13 = vmov 0.0   ;;  %s6334_s30 = smov 16   ;;  %s6335_s12 = smov 32   ;;  %s8888_s0 = inlined_call_operand.vmem [shape: f32[2,10,10,1], index: 0, kind: input, shape index: {}]   ;;  %s8889_s1 = inlined_call_operand.vmem [shape: f32[9,16], index: 1, kind: input, shape index: {}]   ;;  %s8890_s2 = inlined_call_operand.vmem [shape: f32[1,16], index: 2, kind: input, shape index: {}]   ;;  %s8891_s3 = inlined_call_operand.vmem [shape: bf16[144,32], index: 3, kind: input, shape index: {}]   ;;  %s8892_s4 = inlined_call_operand.vmem [shape: f32[1,32], index: 4, kind: input, shape index: {}]   ;;  %s8893_s5 = inlined_call_operand.vmem [shape: bf16[2048,128], index: 5, kind: input, shape index: {}]   ;;  %s8894_s6 = inlined_call_operand.vmem [shape: f32[1,128], index: 6, kind: input, shape index: {}]   ;;  %s8895_s7 = inlined_call_operand.vmem [shape: f32[1,2,128], index: 7, kind: output, shape index: {}]  }
   0x1   :  { %6317 = vset.pattern.permute.xlu2 %v6332_v0  ;;  %6316 = vset.pattern.permute.xlu1 %v6332_v0  ;;  %v31_v1 = vld [vmem:[%s8888_s0 + $0x20] sm:$0xff]  ;;  %v29_v2 = vld [vmem:[%s8888_s0 + $0x10] sm:$0xff]  ;;  %v32_v4 = vld [vmem:[%s8888_s0 + $0x28] sm:$0x3]  ;;  %1277 = vst.msk [vmem:[#allocation2] sm:$0xff] %vm1276_vm0, %v6333_v13  ;;  %vm1287_vm2 = vcmask 122880  }
   0x2   :  { %v27_v3 = vld [vmem:[%s8888_s0] sm:$0xff]  ;;  %6315 = vset.pattern.permute.xlu0 %v6332_v0  ;;  %81 = vperm.xlu2 %6317, %v31_v1   ;;  %v30_v5 = vld [vmem:[%s8888_s0 + $0x18] sm:$0x3]  ;;  %v28_v6 = vld [vmem:[%s8888_s0 + $0x8] sm:$0x3]  ;;  %1280 = vst.msk [vmem:[#allocation2 + $0xa0] sm:$0xff] %vm1276_vm0, %v6333_v13 }
   0x3   :  { %76 = vperm.xlu1 %6316, %v29_v2   ;;  %71 = vperm.xlu0 %6315, %v27_v3   ;;  %v35_v7 = vld [vmem:[%s8888_s0 + $0x40] sm:$0xff]  ;;  %v34_v8 = vld [vmem:[%s8888_s0 + $0x38] sm:$0x3]  ;;  %v33_v9 = vld [vmem:[%s8888_s0 + $0x30] sm:$0xff]  ;;  %1279 = vst.msk [vmem:[#allocation2 + $0x8] sm:$0x3] %vm1278_vm1, %v6333_v13 }
   0x4   :  { %v38_v10 = vld [vmem:[%s8888_s0 + $0x58] sm:$0x3]  ;;  %v37_v11 = vld [vmem:[%s8888_s0 + $0x50] sm:$0xff]  ;;  %v36_v12 = vld [vmem:[%s8888_s0 + $0x48] sm:$0x3]  ;;  %1283 = vst.msk [vmem:[#allocation2 + $0x90] sm:$0xff] %vm1276_vm0, %v6333_v13 }
   0x5   :  { %1284 = vst.msk [vmem:[#allocation2 + $0x98] sm:$0x3] %vm1278_vm1, %v6333_v13  ;;  %v41_v14 = vld [vmem:[%s8888_s0 + $0x70] sm:$0xff]  ;;  %v40_v15 = vld [vmem:[%s8888_s0 + $0x68] sm:$0x3]  ;;  %v39_v16 = vld [vmem:[%s8888_s0 + $0x60] sm:$0xff] }
   0x6   :  { %1286 = vst.msk [vmem:[#allocation2 + $0x138] sm:$0x3] %vm1278_vm1, %v6333_v13  ;;  %v44_v17 = vld [vmem:[%s8888_s0 + $0x88] sm:$0x3]  ;;  %v43_v18 = vld [vmem:[%s8888_s0 + $0x80] sm:$0xff]  ;;  %v45_v22 = vld [vmem:[%s8888_s0 + $0x90] sm:$0xff] }
   0x7   :  { %1317 = vst.msk [vmem:[#allocation2 + $0x99] sm:$0x1] %vm1287_vm2, %v6333_v13  ;;  %v42_v19 = vld [vmem:[%s8888_s0 + $0x78] sm:$0x3]  ;;  %v47_v20 = vld [vmem:[%s8888_s0 + $0xa0] sm:$0xff]  ;;  %v49_v24 = vld [vmem:[%s8888_s0 + $0xb0] sm:$0xff] }
   0x8   :  { %1327 = vst.msk [vmem:[#allocation2 + $0x139] sm:$0x1] %vm1287_vm2, %v6333_v13  ;;  %v46_v21 = vld [vmem:[%s8888_s0 + $0x98] sm:$0x3]  ;;  %v48_v25 = vld [vmem:[%s8888_s0 + $0xa8] sm:$0x3] }
   0x9   :  { %1281 = vst.msk [vmem:[#allocation2 + $0xa8] sm:$0x3] %vm1278_vm1, %v6333_v13  ;;  %v50_v23 = vld [vmem:[%s8888_s0 + $0xb8] sm:$0x3]  ;;  %v52_v28 = vld [vmem:[%s8888_s0 + $0xc8] sm:$0x3] }
   0xa   :  { %194 = vperm.xlu2 %6317, %v32_v4   ;;  %1285 = vst.msk [vmem:[#allocation2 + $0x130] sm:$0xff] %vm1276_vm0, %v6333_v13  ;;  %v1394_v26 = vld [vmem:[#allocation2 + $0x1] sm:$0xff]  ;;  %v51_v29 = vld [vmem:[%s8888_s0 + $0xc0] sm:$0xff]  ;;  %v54_v31 = vld [vmem:[%s8888_s0 + $0xd8] sm:$0x3]  ;;  %vm327_vm3 = vcmask 1046528  }
   0xb   :  { %189 = vperm.xlu1 %6316, %v30_v5   ;;  %184 = vperm.xlu0 %6315, %v28_v6   ;;  %1288 = vst.msk [vmem:[#allocation2] sm:$0x1] %vm1287_vm2, %v6333_v13  ;;  %v1410_v27 = vpack.c.bf16 %v1394_v26, %v1394_v26  ;;  %v53_v33 = vld [vmem:[%s8888_s0 + $0xd0] sm:$0xff]  ;;  %v56_v34 = vld [vmem:[%s8888_s0 + $0xe8] sm:$0x3]  ;;  %v55_v35 = vld [vmem:[%s8888_s0 + $0xe0] sm:$0xff] }
   0xc   :  { %1289 = vst.msk [vmem:[#allocation2 + $0x10] sm:$0x1] %vm1287_vm2, %v6333_v13  ;;  %v67_v38 = vld [vmem:[%s8889_s1] sm:$0xff]  ;;  %v6583_v44 = vld [vmem:[%s8889_s1 + $0x8] ss:$0 sm:$0xff]  ;;  %vm473_vm4 = vcmask 1045504  }
   0xd   :  { %1290 = vst.msk [vmem:[#allocation2 + $0x20] sm:$0x1] %vm1287_vm2, %v6333_v13  ;;  %v6572_v39 = vperm.slane %v67_v38, 1  ;;  %v6578_v43 = vperm.slane %v67_v38, 2  ;;  %v6585_v45 = vperm.slane %v67_v38, 5  ;;  %v6587_v46 = vperm.slane %v67_v38, 7 }
   0xe   :  { %1291 = vst.msk [vmem:[#allocation2 + $0x30] sm:$0x1] %vm1287_vm2, %v6333_v13  ;;  %v6589_v47 = vperm.slane %v67_v38, 0  ;;  %v6592_v49 = vperm.slane %v67_v38, 4  ;;  %v6604_v62 = vperm.slane %v67_v38, 3  ;;  %vm1490_vm5 = vcmask 257152  }
   0xf   :  { %1292 = vst.msk [vmem:[#allocation2 + $0x40] sm:$0x1] %vm1287_vm2, %v6333_v13  ;;  %vm1377_vm6 = vcmask 125952   ;;  %s6336_s25 = smov 48   ;;  %s6337_s26 = smov 64   ;;  %vm1603_vm7 = vcmask 388352  }
  0x10   :  { %1293 = vst.msk [vmem:[#allocation2 + $0x50] sm:$0x1] %vm1287_vm2, %v6333_v13  ;;  %s6338_s27 = smov 80   ;;  %s6339_s28 = smov 96   ;;  %vm1716_vm8 = vcmask 519552   ;;  %vm1829_vm9 = vcmask 650752  }
  0x11   :  { %1294 = vst.msk [vmem:[#allocation2 + $0x60] sm:$0x1] %vm1287_vm2, %v6333_v13  ;;  %s6340_s29 = smov 112   ;;  %vm1942_vm10 = vcmask 781952   ;;  %vm2056_vm11 = vcmask 913152   ;;  %vm2169_vm12 = vcmask 1044352  }
  0x12   :  { %91 = vperm.xlu2 %6317, %v35_v7   ;;  %1295 = vst.msk [vmem:[#allocation2 + $0x70] sm:$0x1] %vm1287_vm2, %v6333_v13  ;;  %vm2542_vm13 = vcmask 1040384   ;;  %vm2559_vm14 = vcmask 1041409   ;;  %vm2567_vm15 = vcmask 253952   ;;  %vm2617_vm1 = vcmask 778752  }
  0x13   :  { %199 = vperm.xlu1 %6316, %v34_v8   ;;  %86 = vperm.xlu0 %6315, %v33_v9   ;;  %1296 = vst.msk [vmem:[#allocation2 + $0x80] sm:$0x1] %vm1287_vm2, %v6333_v13  ;;  %v6611_v9 = vperm.slane %v67_v38, 6 }
  0x14   :  { %1299 = vst.msk [vmem:[#allocation2 + $0xb0] sm:$0x1] %vm1287_vm2, %v6333_v13 }
  0x15   :  { %1300 = vst.msk [vmem:[#allocation2 + $0xc0] sm:$0x1] %vm1287_vm2, %v6333_v13 }
  0x16   :  { %1301 = vst.msk [vmem:[#allocation2 + $0xd0] sm:$0x1] %vm1287_vm2, %v6333_v13 }
  0x17   :  { %1302 = vst.msk [vmem:[#allocation2 + $0xe0] sm:$0x1] %vm1287_vm2, %v6333_v13 }
  0x18   :  { %1303 = vst.msk [vmem:[#allocation2 + $0xf0] sm:$0x1] %vm1287_vm2, %v6333_v13 }
  0x19   :  { %1304 = vst.msk [vmem:[#allocation2 + $0x100] sm:$0x1] %vm1287_vm2, %v6333_v13 }
  0x1a   :  { %209 = vperm.xlu2 %6317, %v38_v10   ;;  %1305 = vst.msk [vmem:[#allocation2 + $0x110] sm:$0x1] %vm1287_vm2, %v6333_v13 }
  0x1b   :  { %96 = vperm.xlu1 %6316, %v37_v11   ;;  %204 = vperm.xlu0 %6315, %v36_v12   ;;  %1306 = vst.msk [vmem:[#allocation2 + $0x120] sm:$0x1] %vm1287_vm2, %v6333_v13 }
  0x1c   :  { %1308 = vst.msk [vmem:[#allocation2 + $0x9] sm:$0x1] %vm1287_vm2, %v6333_v13 }
  0x1d   :  { %1309 = vst.msk [vmem:[#allocation2 + $0x19] sm:$0x1] %vm1287_vm2, %v6333_v13 }
  0x1e   :  { %1310 = vst.msk [vmem:[#allocation2 + $0x29] sm:$0x1] %vm1287_vm2, %v6333_v13 }
  0x1f   :  { %1311 = vst.msk [vmem:[#allocation2 + $0x39] sm:$0x1] %vm1287_vm2, %v6333_v13 }
  0x20   :  { %1312 = vst.msk [vmem:[#allocation2 + $0x49] sm:$0x1] %vm1287_vm2, %v6333_v13 }
  0x21   :  { %1313 = vst.msk [vmem:[#allocation2 + $0x59] sm:$0x1] %vm1287_vm2, %v6333_v13 }
  0x22   :  { %106 = vperm.xlu2 %6317, %v41_v14   ;;  %1314 = vst.msk [vmem:[#allocation2 + $0x69] sm:$0x1] %vm1287_vm2, %v6333_v13 }
  0x23   :  { %214 = vperm.xlu1 %6316, %v40_v15   ;;  %101 = vperm.xlu0 %6315, %v39_v16   ;;  %1315 = vst.msk [vmem:[#allocation2 + $0x79] sm:$0x1] %vm1287_vm2, %v6333_v13  ;;  %v1507_v30 = vld [vmem:[#allocation2 + $0x2] sm:$0xff] }
  0x24   :  { %1316 = vst.msk [vmem:[#allocation2 + $0x89] sm:$0x1] %vm1287_vm2, %v6333_v13  ;;  %v1523_v32 = vpack.c.bf16 %v1507_v30, %v1507_v30 }
  0x25   :  { %1319 = vst.msk [vmem:[#allocation2 + $0xb9] sm:$0x1] %vm1287_vm2, %v6333_v13 }
  0x26   :  { %1320 = vst.msk [vmem:[#allocation2 + $0xc9] sm:$0x1] %vm1287_vm2, %v6333_v13 }
  0x27   :  { %1321 = vst.msk [vmem:[#allocation2 + $0xd9] sm:$0x1] %vm1287_vm2, %v6333_v13 }
  0x28   :  { %1322 = vst.msk [vmem:[#allocation2 + $0xe9] sm:$0x1] %vm1287_vm2, %v6333_v13 }
  0x29   :  { %1323 = vst.msk [vmem:[#allocation2 + $0xf9] sm:$0x1] %vm1287_vm2, %v6333_v13 }
  0x2a   :  { %599 = vperm.xlu2 %6317, %v44_v17   ;;  %1324 = vst.msk [vmem:[#allocation2 + $0x109] sm:$0x1] %vm1287_vm2, %v6333_v13 }
  0x2b   :  { %556 = vperm.xlu1 %6316, %v43_v18   ;;  %219 = vperm.xlu0 %6315, %v42_v19   ;;  %1325 = vst.msk [vmem:[#allocation2 + $0x119] sm:$0x1] %vm1287_vm2, %v6333_v13 }
  0x2c   :  { %1326 = vst.msk [vmem:[#allocation2 + $0x129] sm:$0x1] %vm1287_vm2, %v6333_v13 }
  0x2d   :  { %1297 = vst.msk [vmem:[#allocation2 + $0x90] sm:$0x1] %vm1287_vm2, %v6333_v13 }
  0x2e   :  { %1298 = vst.msk [vmem:[#allocation2 + $0xa0] sm:$0x1] %vm1287_vm2, %v6333_v13 }
  0x2f   :  { %1307 = vst.msk [vmem:[#allocation2 + $0x130] sm:$0x1] %vm1287_vm2, %v6333_v13 }
  0x30   :  { %1318 = vst.msk [vmem:[#allocation2 + $0xa9] sm:$0x1] %vm1287_vm2, %v6333_v13  ;;  %vm2645_vm2 = vcmask 1041152  }
  0x32   :  { %111 = vperm.xlu2 %6317, %v47_v20  }
  0x33   :  { %942 = vperm.xlu1 %6316, %v46_v21   ;;  %899 = vperm.xlu0 %6315, %v45_v22  }
  0x3a   :  { %229 = vperm.xlu2 %6317, %v50_v23  }
  0x3b   :  { %116 = vperm.xlu1 %6316, %v49_v24   ;;  %224 = vperm.xlu0 %6315, %v48_v25  }
  0x42   :  { %1442 = vrot.lane.b32.xlu2 %v1410_v27, %s6334_s30 }
  0x43   :  { %234 = vperm.xlu1 %6316, %v52_v28   ;;  %121 = vperm.xlu0 %6315, %v51_v29  }
  0x4a   :  { %239 = vperm.xlu2 %6317, %v54_v31  }
  0x4b   :  { %126 = vperm.xlu1 %6316, %v53_v33   ;;  %1555 = vrot.lane.b32.xlu0 %v1523_v32, %s6335_s12 }
  0x53   :  { %244 = vperm.xlu1 %6316, %v56_v34   ;;  %131 = vperm.xlu0 %6315, %v55_v35  }
  0x5c   :  { %v82_v36 = vpop.permute.xlu2 %81 }
  0x5d   :  { %v267_v40 = vmul.f32 %v6572_v39, %v82_v36  ;;  %v413_v48 = vmul.f32 %v6578_v43, %v82_v36  ;;  %v755_v51 = vmul.f32 %v6585_v45, %v82_v36  ;;  %v1096_v54 = vmul.f32 %v6583_v44, %v82_v36 }
  0x5e   :  { %v610_v56 = vmul.f32 %v6592_v49, %v82_v36  ;;  %v951_v60 = vmul.f32 %v6587_v46, %v82_v36  ;;  %v152_v61 = vmul.f32 %v6589_v47, %v82_v36  ;;  %v6615_v16 = vmul.f32 %v6604_v62, %v82_v36 }
  0x5f   :  { %v334_v50 = vrot.slane %v267_v40, 1  ;;  %v480_v63 = vrot.slane %v413_v48, 2  ;;  %v820_v0 = vrot.slane %v755_v51, 2  ;;  %v1160_v4 = vrot.slane %v1096_v54, 2 }
  0x60   :  { %v675_v8 = vrot.slane %v610_v56, 1  ;;  %v1015_v13 = vrot.slane %v951_v60, 1  ;;  %v6622_v18 = vmul.f32 %v6611_v9, %v82_v36 }
  0x64   :  { %v195_v37 = vpop.permute.xlu2 %194 }
  0x65   :  { %v268_v41 = vmul.f32 %v6572_v39, %v195_v37  ;;  %v414_v53 = vmul.f32 %v6578_v43, %v195_v37  ;;  %v611_v55 = vmul.f32 %v6592_v49, %v195_v37  ;;  %v756_v57 = vmul.f32 %v6585_v45, %v195_v37 }
  0x66   :  { %v952_v58 = vmul.f32 %v6587_v46, %v195_v37  ;;  %v1097_v59 = vmul.f32 %v6583_v44, %v195_v37 }
  0x67   :  { %v335_v52 = vrot.slane %v268_v41, 1  ;;  %v481_v2 = vrot.slane %v414_v53, 2  ;;  %v676_v5 = vrot.slane %v611_v55, 1  ;;  %v821_v10 = vrot.slane %v756_v57, 2 }
  0x68   :  { %v1016_v11 = vrot.slane %v952_v58, 1  ;;  %v1161_v12 = vrot.slane %v1097_v59, 2 }
  0x69   :  { %v336_v1 = vsel %vm327_vm3, %v334_v50, %v335_v52  ;;  %v482_v15 = vsel %vm473_vm4, %v480_v63, %v481_v2  ;;  %v6637_v22 = vsel %vm473_vm4, %v820_v0, %v821_v10  ;;  %v6643_v24 = vsel %vm327_vm3, %v675_v8, %v676_v5 }
  0x6a   :  { %v394_v14 = vadd.f32 %v336_v1, %v152_v61  ;;  %v6640_v23 = vsel %vm473_vm4, %v1160_v4, %v1161_v12  ;;  %v6646_v25 = vsel %vm327_vm3, %v1015_v13, %v1016_v11 }
  0x6c   :  { %v6576_v42 = vpop.permute.xlu2 %91  ;;  %v6648_v26 = vadd.f32 %v482_v15, %v394_v14 }
  0x6d   :  { %v6619_v17 = vmul.f32 %v6572_v39, %v6576_v42  ;;  %v6626_v19 = vmul.f32 %v6578_v43, %v6576_v42  ;;  %v6630_v20 = vmul.f32 %v6592_v49, %v6576_v42  ;;  %v6634_v21 = vmul.f32 %v6585_v45, %v6576_v42 }
  0x6e   :  { %v6652_v27 = vmul.f32 %v6589_v47, %v6576_v42  ;;  %v6656_v28 = vmul.f32 %v6604_v62, %v6576_v42  ;;  %v6660_v29 = vmul.f32 %v6611_v9, %v6576_v42  ;;  %v6670_v34 = vmul.f32 %v6587_v46, %v6576_v42 }
  0x6f   :  { %v6677_v41 = vmul.f32 %v6583_v44, %v6576_v42 }
  0x74   :  { %v6607_v3 = vpop.permute.xlu2 %209 }
  0x75   :  { %v6609_v6 = vpop.permute.xlu1 %76  ;;  %v72_v7 = vpop.permute.xlu0 %71  ;;  %v6681_v48 = vmul.f32 %v6572_v39, %v6607_v3  ;;  %v6689_v53 = vmul.f32 %v6578_v43, %v6607_v3  ;;  %v6705_v13 = vmul.f32 %v6592_v49, %v6607_v3  ;;  %v6709_v14 = vmul.f32 %v6585_v45, %v6607_v3 }
  0x76   :  { %v265_v30 = vmul.f32 %v6572_v39, %v6609_v6  ;;  %v263_v31 = vmul.f32 %v6572_v39, %v72_v7  ;;  %v411_v50 = vmul.f32 %v6578_v43, %v6609_v6  ;;  %v409_v54 = vmul.f32 %v6578_v43, %v72_v7 }
  0x77   :  { %v151_v56 = vmul.f32 %v6589_v47, %v6609_v6  ;;  %v608_v2 = vmul.f32 %v6592_v49, %v6609_v6  ;;  %v150_v4 = vmul.f32 %v6589_v47, %v72_v7  ;;  %v6713_v15 = vmul.f32 %v6587_v46, %v6607_v3 }
  0x78   :  { %v331_v57 = vrot.slane %v265_v30, 1  ;;  %v328_v58 = vrot.slane %v263_v31, 1  ;;  %v477_v1 = vrot.slane %v411_v50, 2  ;;  %v474_v8 = vrot.slane %v409_v54, 2 }
  0x79   :  { %v753_v30 = vmul.f32 %v6585_v45, %v6609_v6  ;;  %v6721_v50 = vmul.f32 %v6583_v44, %v6607_v3 }
  0x7c   :  { %v6665_v32 = vpop.permute.xlu2 %106 }
  0x7d   :  { %v190_v35 = vpop.permute.xlu1 %189  ;;  %v185_v36 = vpop.permute.xlu0 %184 }
  0x7e   :  { %v266_v51 = vmul.f32 %v6572_v39, %v190_v35  ;;  %v412_v52 = vmul.f32 %v6578_v43, %v190_v35  ;;  %v264_v42 = vmul.f32 %v6572_v39, %v185_v36  ;;  %v410_v55 = vmul.f32 %v6578_v43, %v185_v36 }
  0x7f   :  { %v609_v61 = vmul.f32 %v6592_v49, %v190_v35  ;;  %v754_v11 = vmul.f32 %v6585_v45, %v190_v35 }
  0x80   :  { %v332_v59 = vrot.slane %v266_v51, 1  ;;  %v478_v60 = vrot.slane %v412_v52, 2  ;;  %v329_v63 = vrot.slane %v264_v42, 1  ;;  %v475_v0 = vrot.slane %v410_v55, 2 }
  0x81   :  { %v673_v35 = vrot.slane %v609_v61, 1  ;;  %v565_v52 = vmul.f32 %v6604_v62, %v6609_v6 }
  0x82   :  { %v333_v5 = vsel %vm327_vm3, %v331_v57, %v332_v59  ;;  %v330_v12 = vsel %vm327_vm3, %v328_v58, %v329_v63  ;;  %v479_v31 = vsel %vm473_vm4, %v477_v1, %v478_v60  ;;  %v476_v36 = vsel %vm473_vm4, %v474_v8, %v475_v0  ;;  %v6777_v59 = vld [vmem:[%s8890_s2] ss:$0 sm:$0xff] }
  0x83   :  { %v393_v10 = vadd.f32 %v333_v5, %v151_v56  ;;  %v392_v7 = vadd.f32 %v330_v12, %v150_v4  ;;  %v672_v56 = vrot.slane %v608_v2, 1  ;;  %v818_v57 = vrot.slane %v754_v11, 2 }
  0x84   :  { %v600_v42 = vpop.permute.xlu2 %599  ;;  %v817_v63 = vrot.slane %v753_v30, 2  ;;  %v6736_v2 = vmul.f32 %v6592_v49, %v6665_v32 }
  0x85   :  { %v539_v51 = vadd.f32 %v479_v31, %v393_v10  ;;  %v538_v54 = vadd.f32 %v476_v36, %v392_v7  ;;  %v674_v0 = vsel %vm327_vm3, %v672_v56, %v673_v35  ;;  %v6732_v6 = vmul.f32 %v6592_v49, %v600_v42  ;;  %v200_v1 = vpop.permute.xlu1 %199  ;;  %v87_v30 = vpop.permute.xlu0 %86 }
  0x86   :  { %v819_v11 = vsel %vm473_vm4, %v817_v63, %v818_v57  ;;  %v6743_v12 = vmul.f32 %v6585_v45, %v600_v42  ;;  %v6746_v7 = vmul.f32 %v6587_v46, %v600_v42  ;;  %v6750_v36 = vmul.f32 %v6583_v44, %v600_v42 }
  0x87   :  { %v581_v3 = vadd.f32 %v565_v52, %v538_v54  ;;  %8901 = vst [vmem:[#allocation5_spill] sm:$0xff] %v6732_v6  ;;  %v582_v8 = vadd.f32 %v6615_v16, %v539_v51  ;;  %v270_v52 = vmul.f32 %v6572_v39, %v200_v1  ;;  %v6755_v16 = vmul.f32 %v6604_v62, %v6665_v32 }
  0x88   :  { %8902 = vst [vmem:[#allocation6_spill] sm:$0xff] %v6743_v12  ;;  %v416_v54 = vmul.f32 %v6578_v43, %v200_v1  ;;  %v6762_v57 = vmul.f32 %v6585_v45, %v6665_v32  ;;  %v613_v63 = vmul.f32 %v6592_v49, %v200_v1  ;;  %v6771_v51 = vmul.f32 %v6587_v46, %v200_v1 }
  0x89   :  { %v736_v10 = vadd.f32 %v674_v0, %v581_v3  ;;  %8903 = vst [vmem:[#allocation7_spill] sm:$0xff] %v6746_v7  ;;  %v737_v3 = vadd.f32 %v6643_v24, %v582_v8  ;;  %v758_v0 = vmul.f32 %v6585_v45, %v200_v1  ;;  %v269_v56 = vmul.f32 %v6572_v39, %v87_v30 }
  0x8a   :  { %8904 = vst [vmem:[#allocation8_spill] sm:$0xff] %v6750_v36  ;;  %v338_v8 = vrot.slane %v270_v52, 1  ;;  %v415_v55 = vmul.f32 %v6578_v43, %v87_v30  ;;  %v757_v5 = vmul.f32 %v6585_v45, %v87_v30  ;;  %v679_v60 = vrot.slane %v613_v63, 1 }
  0x8b   :  { %v881_v35 = vadd.f32 %v819_v11, %v736_v10  ;;  %v484_v10 = vrot.slane %v416_v54, 2  ;;  %v6783_v11 = vmul.f32 %v6583_v44, %v200_v1  ;;  %v882_v61 = vadd.f32 %v6637_v22, %v737_v3 }
  0x8c   :  { %v824_v31 = vrot.slane %v758_v0, 2  ;;  %v337_v52 = vrot.slane %v269_v56, 1  ;;  %v6791_v24 = vmul.f32 %v6587_v46, %v87_v30  ;;  %v6794_v1 = vmul.f32 %v6583_v44, %v87_v30 }
  0x8d   :  { %v924_v42 = vadd.f32 %v6622_v18, %v881_v35  ;;  %v612_v35 = vmul.f32 %v6592_v49, %v87_v30  ;;  %v567_v40 = vmul.f32 %v6604_v62, %v87_v30  ;;  %v909_v22 = vmul.f32 %v6611_v9, %v87_v30  ;;  %v97_v56 = vpop.permute.xlu1 %96 }
  0x8e   :  { %v483_v3 = vrot.slane %v415_v55, 2  ;;  %v823_v63 = vrot.slane %v757_v5, 2  ;;  %v339_v55 = vsel %vm327_vm3, %v337_v52, %v338_v8  ;;  %v6815_v5 = vmul.f32 %v6589_v47, %v97_v56 }
  0x8f   :  { %v1079_v18 = vadd.f32 %v6646_v25, %v924_v42  ;;  %v112_v25 = vpop.permute.xlu2 %111  ;;  %v678_v37 = vrot.slane %v612_v35, 1  ;;  %v925_v58 = vadd.f32 %v909_v22, %v882_v61  ;;  %v1018_v35 = vrot.slane %v6791_v24, 1 }
  0x90   :  { %v6801_v0 = vmul.f32 %v6589_v47, %v112_v25  ;;  %v6804_v38 = vmul.f32 %v6572_v39, %v112_v25  ;;  %v6823_v24 = vmul.f32 %v6578_v43, %v97_v56  ;;  %v485_v8 = vsel %vm473_vm4, %v483_v3, %v484_v10 }
  0x91   :  { %v1224_v4 = vadd.f32 %v6640_v23, %v1079_v18  ;;  %v205_v18 = vpop.permute.xlu0 %204  ;;  %v6810_v23 = vmul.f32 %v6578_v43, %v112_v25  ;;  %v680_v22 = vsel %vm327_vm3, %v678_v37, %v679_v60  ;;  %v616_v25 = vmul.f32 %v6592_v49, %v97_v56 }
  0x92   :  { %8905 = vst [vmem:[#allocation9_spill] sm:$0xff] %v6801_v0  ;;  %v418_v37 = vmul.f32 %v6578_v43, %v205_v18  ;;  %v760_v60 = vmul.f32 %v6585_v45, %v205_v18  ;;  %v956_v12 = vmul.f32 %v6587_v46, %v205_v18  ;;  %v1101_v10 = vmul.f32 %v6583_v44, %v205_v18 }
  0x93   :  { %v1244_v54 = vadd.f32 %v6777_v59, %v1224_v4  ;;  %v153_v4 = vmul.f32 %v6589_v47, %v87_v30  ;;  %8906 = vst [vmem:[#allocation10_spill] sm:$0xff] %v6810_v23  ;;  %v6820_v30 = vmul.f32 %v6572_v39, %v97_v56  ;;  %v684_v36 = vrot.slane %v616_v25, 1 }
  0x94   :  { %v1167_v6 = vrot.slane %v1101_v10, 2  ;;  %v8907_v23 = vrot.slane %v6619_v17, 1  ;;  %v8910_v17 = vrot.slane %v6626_v19, 2  ;;  %v8912_v10 = vrot.slane %v6677_v41, 2 }
  0x95   :  { %v1260_v42 = vmax.f32 %v1244_v54, 0.0  ;;  %v395_v61 = vadd.f32 %v339_v55, %v153_v4  ;;  %v583_v54 = vadd.f32 %v567_v40, %v6648_v26  ;;  %v825_v4 = vsel %vm473_vm4, %v823_v63, %v824_v31 }
  0x96   :  { %v272_v26 = vmul.f32 %v6572_v39, %v205_v18  ;;  %v615_v40 = vmul.f32 %v6592_v49, %v205_v18  ;;  %v957_v55 = vmul.f32 %v6587_v46, %v97_v56  ;;  %v1102_v31 = vmul.f32 %v6583_v44, %v97_v56 }
  0x97   :  { %1329 = vst.msk [vmem:[#allocation2 + $0x11] sm:$0xff] %vm1276_vm0, %v1260_v42  ;;  %v761_v42 = vmul.f32 %v6585_v45, %v97_v56  ;;  %v541_v52 = vadd.f32 %v485_v8, %v395_v61  ;;  %v738_v33 = vadd.f32 %v680_v22, %v583_v54  ;;  %v487_v61 = vrot.slane %v418_v37, 2 }
  0x98   :  { %v341_v3 = vrot.slane %v272_v26, 1  ;;  %v682_v54 = vrot.slane %v615_v40, 1  ;;  %v827_v22 = vrot.slane %v760_v60, 2  ;;  %v1022_v8 = vrot.slane %v956_v12, 1 }
  0x99   :  { %v883_v0 = vadd.f32 %v825_v4, %v738_v33  ;;  %v584_v63 = vadd.f32 %v6656_v28, %v541_v52  ;;  %v8908_v4 = vrot.slane %v6630_v20, 1  ;;  %v6845_v26 = vpop.permute.xlu0 %101  ;;  %v1024_v37 = vrot.slane %v957_v55, 1 }
  0x9a   :  { %v342_v33 = vsel %vm327_vm3, %v8907_v23, %v341_v3  ;;  %v8909_v28 = vrot.slane %v6670_v34, 1  ;;  %v488_v23 = vsel %vm473_vm4, %v8910_v17, %v487_v61  ;;  %v8911_v20 = vrot.slane %v6634_v21, 2  ;;  %v215_v3 = vpop.permute.xlu1 %214 }
  0x9b   :  { %v926_v7 = vadd.f32 %v6660_v29, %v883_v0  ;;  %v683_v18 = vsel %vm327_vm3, %v8908_v4, %v682_v54  ;;  %v396_v40 = vadd.f32 %v342_v33, %v6652_v27  ;;  %v569_v29 = vmul.f32 %v6604_v62, %v97_v56 }
  0x9c   :  { %v739_v60 = vadd.f32 %v683_v18, %v584_v63  ;;  %v1023_v12 = vsel %vm327_vm3, %v8909_v28, %v1022_v8  ;;  %v828_v0 = vsel %vm473_vm4, %v8911_v20, %v827_v22  ;;  %v911_v52 = vmul.f32 %v6611_v9, %v97_v56  ;;  %v1345_v20 = vld [vmem:[#allocation2] sm:$0xff] }
  0x9d   :  { %v1081_v25 = vadd.f32 %v1023_v12, %v926_v7  ;;  %v542_v55 = vadd.f32 %v488_v23, %v396_v40  ;;  %v1168_v34 = vsel %vm473_vm4, %v8912_v10, %v1167_v6  ;;  %v8913_v54 = vrot.slane %v6771_v51, 1 }
  0x9e   :  { %v884_v27 = vadd.f32 %v828_v0, %v739_v60  ;;  %v829_v63 = vrot.slane %v761_v42, 2  ;;  %v1169_v61 = vrot.slane %v1102_v31, 2  ;;  %v343_v7 = vrot.slane %v6820_v30, 1 }
  0x9f   :  { %v1020_v19 = vsel %vm327_vm3, %v1018_v35, %v8913_v54  ;;  %v1226_v8 = vadd.f32 %v1168_v34, %v1081_v25  ;;  %v585_v22 = vadd.f32 %v569_v29, %v542_v55  ;;  %v8914_v33 = vrot.slane %v6705_v13, 1  ;;  %v6875_v35 = vpop.permute.xlu2 %229 }
  0xa0   :  { %v6865_v21 = vadd.f32 %v1020_v19, %v925_v58  ;;  %v927_v56 = vadd.f32 %v911_v52, %v884_v27  ;;  %v8915_v6 = vrot.slane %v6713_v15, 1  ;;  %v276_v42 = vmul.f32 %v6572_v39, %v215_v3 }
  0xa1   :  { %v686_v41 = vsel %vm327_vm3, %v684_v36, %v8914_v33  ;;  %v1246_v51 = vadd.f32 %v6777_v59, %v1226_v8  ;;  %v960_v30 = vmul.f32 %v6587_v46, %v215_v3  ;;  %v1105_v18 = vmul.f32 %v6583_v44, %v215_v3  ;;  %v6895_v25 = vpop.permute.xlu0 %219 }
  0xa2   :  { %v1026_v4 = vsel %vm327_vm3, %v1024_v37, %v8915_v6  ;;  %v740_v58 = vadd.f32 %v686_v41, %v585_v22  ;;  %v489_v13 = vrot.slane %v6823_v24, 2  ;;  %v8916_v36 = vrot.slane %v6709_v14, 2  ;;  %v6908_v22 = vpop.permute.xlu1 %556 }
  0xa3   :  { %v1082_v31 = vadd.f32 %v1026_v4, %v927_v56  ;;  %v8917_v37 = vrot.slane %v6721_v50, 2  ;;  %v1262_v60 = vmax.f32 %v1246_v51, 0.0  ;;  %v8918_v28 = vrot.slane %v6681_v48, 1 }
  0xa4   :  { %v831_v15 = vsel %vm473_vm4, %v829_v63, %v8916_v36  ;;  %v275_v23 = vmul.f32 %v6572_v39, %v6845_v26  ;;  %v347_v14 = vrot.slane %v276_v42, 1  ;;  %v422_v24 = vmul.f32 %v6578_v43, %v215_v3 }
  0xa5   :  { %v1171_v40 = vsel %vm473_vm4, %v1169_v61, %v8917_v37  ;;  %v345_v12 = vsel %vm327_vm3, %v343_v7, %v8918_v28  ;;  %v885_v29 = vadd.f32 %v831_v15, %v740_v58  ;;  %1331 = vst.msk [vmem:[#allocation2 + $0x31] sm:$0xff] %vm1276_vm0, %v1262_v60  ;;  %v619_v50 = vmul.f32 %v6592_v49, %v215_v3 }
  0xa6   :  { %v1227_v17 = vadd.f32 %v1171_v40, %v1082_v31  ;;  %v1028_v0 = vrot.slane %v960_v30, 1  ;;  %v1173_v52 = vrot.slane %v1105_v18, 2  ;;  %v912_v55 = vmul.f32 %v6611_v9, %v6845_v26 }
  0xa7   :  { %v959_v27 = vmul.f32 %v6587_v46, %v6845_v26  ;;  %v421_v10 = vmul.f32 %v6578_v43, %v6845_v26  ;;  %v618_v34 = vmul.f32 %v6592_v49, %v6845_v26  ;;  %v1104_v54 = vmul.f32 %v6583_v44, %v6845_v26 }
  0xa8   :  { %v1247_v48 = vadd.f32 %v6777_v59, %v1227_v17  ;;  %v1361_v19 = vpack.c.bf16 %v1345_v20, %v1345_v20  ;;  %v346_v61 = vrot.slane %v275_v23, 1  ;;  %v928_v8 = vadd.f32 %v912_v55, %v885_v29 }
  0xa9   :  { %v1027_v7 = vrot.slane %v959_v27, 1  ;;  %v764_v56 = vmul.f32 %v6585_v45, %v215_v3  ;;  %v763_v33 = vmul.f32 %v6585_v45, %v6845_v26  ;;  %v1172_v41 = vrot.slane %v1104_v54, 2  ;;  %v1443_v3 = vpop.permute.xlu2 %1442 }
  0xaa   :  { %v1263_v63 = vmax.f32 %v1247_v48, 0.0  ;;  %v397_v6 = vadd.f32 %v345_v12, %v6815_v5  ;;  %v493_v4 = vrot.slane %v422_v24, 2  ;;  %v688_v42 = vrot.slane %v619_v50, 1  ;;  %1378 = vst.msk [vmem:[#allocation3] sm:$0xf] %vm1377_vm6, %v1361_v19  ;;  %v6937_v48 = vpop.permute.xlu0 %899 }
  0xab   :  { %v1029_v51 = vsel %vm327_vm3, %v1027_v7, %v1028_v0  ;;  %v492_v58 = vrot.slane %v421_v10, 2  ;;  %v687_v31 = vrot.slane %v618_v34, 1  ;;  %v570_v18 = vmul.f32 %v6604_v62, %v6845_v26  ;;  %1491 = vst.msk [vmem:[#allocation3] sm:$0xf] %vm1490_vm5, %v1443_v3  ;;  %v1395_v7 = vld [vmem:[#allocation2 + $0x11] sm:$0xff] }
  0xac   :  { %1332 = vst.msk [vmem:[#allocation2 + $0x41] sm:$0xff] %vm1276_vm0, %v1263_v63  ;;  %v1083_v30 = vadd.f32 %v1029_v51, %v928_v8  ;;  %v1174_v36 = vsel %vm473_vm4, %v1172_v41, %v1173_v52  ;;  %v156_v5 = vmul.f32 %v6589_v47, %v6845_v26  ;;  %v348_v15 = vsel %vm327_vm3, %v346_v61, %v347_v14  ;;  %v1620_v61 = vld [vmem:[#allocation2 + $0x10] sm:$0xff] }
  0xad   :  { %v833_v37 = vrot.slane %v764_v56, 2  ;;  %v832_v40 = vrot.slane %v763_v33, 2  ;;  %v8919_v28 = vrot.slane %v6689_v53, 2  ;;  %v8920_v29 = vrot.slane %v6783_v11, 2  ;;  %v1508_v8 = vld [vmem:[#allocation2 + $0x12] sm:$0xff]  ;;  %v943_v56 = vpop.permute.xlu1 %942 }
  0xae   :  { %v1228_v60 = vadd.f32 %v1174_v36, %v1083_v30  ;;  %v8921_v17 = vrot.slane %v6794_v1, 2  ;;  %v352_v20 = vrot.slane %v6804_v38, 1  ;;  %v398_v24 = vadd.f32 %v348_v15, %v156_v5 }
  0xaf   :  { %v491_v12 = vsel %vm473_vm4, %v489_v13, %v8919_v28  ;;  %v494_v0 = vsel %vm473_vm4, %v492_v58, %v493_v4  ;;  %v689_v53 = vsel %vm327_vm3, %v687_v31, %v688_v42  ;;  %v6941_v11 = vmul.f32 %v6572_v39, %v6875_v35 }
  0xb0   :  { %v1165_v23 = vsel %vm473_vm4, %v8921_v17, %v8920_v29  ;;  %v543_v50 = vadd.f32 %v491_v12, %v397_v6  ;;  %v1248_v14 = vadd.f32 %v6777_v59, %v1228_v60  ;;  %v6945_v1 = vmul.f32 %v6592_v49, %v6908_v22 }
  0xb1   :  { %v1225_v26 = vadd.f32 %v1165_v23, %v6865_v21  ;;  %v544_v13 = vadd.f32 %v494_v0, %v398_v24  ;;  %v963_v21 = vmul.f32 %v6587_v46, %v6908_v22  ;;  %v1108_v27 = vmul.f32 %v6583_v44, %v6908_v22 }
  0xb2   :  { %v586_v52 = vadd.f32 %v570_v18, %v543_v50  ;;  %v1264_v55 = vmax.f32 %v1248_v14, 0.0  ;;  %v834_v10 = vsel %vm473_vm4, %v832_v40, %v833_v37  ;;  %v835_v54 = vrot.slane %v6762_v57, 2  ;;  %v6177_v40 = vld [vmem:[%s8891_s3 + $0x40] sm:$0xff] }
  0xb3   :  { %v961_v19 = vmul.f32 %v6587_v46, %v6665_v32  ;;  %v621_v63 = vmul.f32 %v6592_v49, %v6895_v25  ;;  %v587_v33 = vadd.f32 %v6755_v16, %v544_v13  ;;  %v913_v41 = vmul.f32 %v6611_v9, %v6665_v32  ;;  %v8923_v50 = vld [vmem:[#allocation10_spill] sm:$0xff]  ;;  %2478 = vmatpush.bf16.msra.mxu1 %v6177_v40 }
  0xb4   :  { %v741_v34 = vadd.f32 %v689_v53, %v586_v52  ;;  %1333 = vst.msk [vmem:[#allocation2 + $0x51] sm:$0xff] %vm1276_vm0, %v1264_v55  ;;  %v1106_v57 = vmul.f32 %v6583_v44, %v6665_v32  ;;  %v766_v6 = vmul.f32 %v6585_v45, %v6895_v25  ;;  %v962_v42 = vmul.f32 %v6587_v46, %v6895_v25  ;;  %v6988_v52 = vpop.permute.xlu0 %224 }
  0xb5   :  { %v691_v51 = vrot.slane %v621_v63, 1  ;;  %v1107_v58 = vmul.f32 %v6583_v44, %v6895_v25  ;;  %v1636_v30 = vpack.c.bf16 %v1620_v61, %v1620_v61  ;;  %v6969_v16 = vpack.c.bf16 %v1508_v8, %v1508_v8  ;;  %v8924_v8 = vld [vmem:[#allocation7_spill] sm:$0xff] }
  0xb6   :  { %v886_v4 = vadd.f32 %v834_v10, %v741_v34  ;;  %v836_v31 = vrot.slane %v766_v6, 2  ;;  %v1411_v3 = vpack.c.bf16 %v1395_v7, %v1395_v7  ;;  %v1030_v18 = vrot.slane %v961_v19, 1 }
  0xb7   :  { %v8922_v36 = vrot.slane %v6736_v2, 1  ;;  %v1031_v15 = vrot.slane %v962_v42, 1  ;;  %v1176_v37 = vrot.slane %v1107_v58, 2  ;;  %v914_v60 = vmul.f32 %v6611_v9, %v6908_v22  ;;  %1668 = vrot.lane.b32.xlu2 %v1636_v30, %s6336_s25  ;;  %1557 = vrot.lane.b32.xlu1 %v6969_v16, %s6335_s12  ;;  %1379 = vst.msk [vmem:[#allocation3 + $0x8] sm:$0xf] %vm1377_vm6, %v1636_v30 }
  0xb8   :  { %v1033_v28 = vrot.slane %v963_v21, 1  ;;  %v929_v12 = vadd.f32 %v913_v41, %v886_v4  ;;  %v1178_v2 = vrot.slane %v1108_v27, 2  ;;  %v1175_v17 = vrot.slane %v1106_v57, 2  ;;  %1444 = vrot.lane.b32.xlu0 %v1411_v3, %s6334_s30  ;;  %v7013_v57 = vpop.permute.xlu1 %116 }
  0xb9   :  { %v692_v5 = vsel %vm327_vm3, %v8922_v36, %v691_v51  ;;  %v837_v23 = vsel %vm473_vm4, %v835_v54, %v836_v31  ;;  %v1032_v24 = vsel %vm327_vm3, %v1030_v18, %v1031_v15  ;;  %v498_v14 = vrot.slane %v8923_v50, 2  ;;  %v7108_v50 = vpop.permute.xlu2 %239 }
  0xba   :  { %v742_v29 = vadd.f32 %v692_v5, %v587_v33  ;;  %v278_v0 = vmul.f32 %v6572_v39, %v6895_v25  ;;  %v1084_v13 = vadd.f32 %v1032_v24, %v929_v12  ;;  %v1245_v55 = vadd.f32 %v6777_v59, %v1225_v26  ;;  %v8926_v33 = vld [vmem:[#allocation8_spill] sm:$0xff] }
  0xbb   :  { %v767_v21 = vmul.f32 %v6585_v45, %v6908_v22  ;;  %v424_v27 = vmul.f32 %v6578_v43, %v6895_v25  ;;  %v1177_v10 = vsel %vm473_vm4, %v1175_v17, %v1176_v37  ;;  %v356_v34 = vrot.slane %v6941_v11, 1 }
  0xbc   :  { %v887_v53 = vadd.f32 %v837_v23, %v742_v29  ;;  %v7000_v54 = vmul.f32 %v6578_v43, %v6875_v35  ;;  %v1229_v63 = vadd.f32 %v1177_v10, %v1084_v13  ;;  %v7004_v61 = vmul.f32 %v6592_v49, %v6875_v35 }
  0xbd   :  { %v693_v26 = vrot.slane %v6945_v1, 1  ;;  %v8925_v7 = vrot.slane %v8924_v8, 1  ;;  %v8927_v41 = vrot.slane %v8926_v33, 2  ;;  %v350_v6 = vrot.slane %v278_v0, 1 }
  0xbe   :  { %v930_v19 = vadd.f32 %v914_v60, %v887_v53  ;;  %v1249_v51 = vadd.f32 %v6777_v59, %v1229_v63  ;;  %v277_v42 = vmul.f32 %v6572_v39, %v6665_v32  ;;  %v496_v58 = vrot.slane %v424_v27, 2  ;;  %v8928_v63 = vld [vmem:[#allocation5_spill] sm:$0xff] }
  0xbf   :  { %v1035_v25 = vsel %vm327_vm3, %v1033_v28, %v8925_v7  ;;  %v1180_v11 = vsel %vm473_vm4, %v1178_v2, %v8927_v41  ;;  %v966_v1 = vmul.f32 %v6587_v46, %v943_v56  ;;  %v423_v31 = vmul.f32 %v6578_v43, %v6665_v32  ;;  %1781 = vrot.lane.b32.xlu1 %v1411_v3, %s6337_s26  ;;  %v8930_v7 = vld [vmem:[#allocation6_spill] sm:$0xff] }
  0xc0   :  { %v1085_v4 = vadd.f32 %v1035_v25, %v930_v19  ;;  %v838_v30 = vrot.slane %v767_v21, 2  ;;  %v1265_v36 = vmax.f32 %v1249_v51, 0.0  ;;  %v1111_v5 = vmul.f32 %v6583_v44, %v943_v56 }
  0xc1   :  { %v349_v15 = vrot.slane %v277_v42, 1  ;;  %v157_v37 = vmul.f32 %v6589_v47, %v6665_v32  ;;  %v495_v40 = vrot.slane %v423_v31, 2  ;;  %v965_v60 = vmul.f32 %v6587_v46, %v6937_v48  ;;  %v7060_v42 = vpop.permute.xlu1 %234 }
  0xc2   :  { %v1230_v18 = vadd.f32 %v1180_v11, %v1085_v4  ;;  %v1261_v28 = vmax.f32 %v1245_v55, 0.0  ;;  %1334 = vst.msk [vmem:[#allocation2 + $0x61] sm:$0xff] %vm1276_vm0, %v1265_v36  ;;  %v1110_v56 = vmul.f32 %v6583_v44, %v6937_v48  ;;  %v281_v3 = vmul.f32 %v6572_v39, %v7013_v57  ;;  %v7044_v55 = vpop.permute.xlu0 %121 }
  0xc3   :  { %v351_v29 = vsel %vm327_vm3, %v349_v15, %v350_v6  ;;  %v502_v2 = vrot.slane %v7000_v54, 2  ;;  %v697_v32 = vrot.slane %v7004_v61, 1  ;;  %v7038_v17 = vmul.f32 %v6585_v45, %v6875_v35  ;;  %v2187_v35 = vld [vmem:[#allocation2 + $0x32] sm:$0xff] }
  0xc4   :  { %v1250_v12 = vadd.f32 %v6777_v59, %v1230_v18  ;;  %v399_v23 = vadd.f32 %v351_v29, %v157_v37  ;;  %1330 = vst.msk [vmem:[#allocation2 + $0x21] sm:$0xff] %vm1276_vm0, %v1261_v28  ;;  %v572_v24 = vmul.f32 %v6604_v62, %v6908_v22  ;;  %v497_v53 = vsel %vm473_vm4, %v495_v40, %v496_v58 }
  0xc5   :  { %v355_v13 = vrot.slane %v281_v3, 1  ;;  %v1037_v21 = vrot.slane %v966_v1, 1  ;;  %v1036_v10 = vrot.slane %v965_v60, 1  ;;  %v427_v54 = vmul.f32 %v6578_v43, %v7013_v57 }
  0xc6   :  { %v1266_v0 = vmax.f32 %v1250_v12, 0.0  ;;  %v545_v27 = vadd.f32 %v497_v53, %v399_v23  ;;  %v1182_v19 = vrot.slane %v1111_v5, 2  ;;  %v8929_v8 = vrot.slane %v8928_v63, 1  ;;  %v8932_v23 = vld [vmem:[#allocation9_spill] sm:$0xff] }
  0xc7   :  { %v8931_v25 = vrot.slane %v8930_v7, 2  ;;  %v1181_v41 = vrot.slane %v1110_v56, 2  ;;  %v915_v6 = vmul.f32 %v6611_v9, %v6937_v48  ;;  %v357_v4 = vsel %vm327_vm3, %v355_v13, %v356_v34 }
  0xc8   :  { %1335 = vst.msk [vmem:[#allocation2 + $0x71] sm:$0xff] %vm1276_vm0, %v1266_v0  ;;  %v695_v22 = vsel %vm327_vm3, %v693_v26, %v8929_v8  ;;  %v588_v11 = vadd.f32 %v572_v24, %v545_v27  ;;  %v280_v51 = vmul.f32 %v6572_v39, %v6988_v52  ;;  %v159_v58 = vmul.f32 %v6589_v47, %v7013_v57 }
  0xc9   :  { %v840_v33 = vsel %vm473_vm4, %v838_v30, %v8931_v25  ;;  %v7066_v26 = vmul.f32 %v6592_v49, %v7013_v57  ;;  %v426_v1 = vmul.f32 %v6578_v43, %v6988_v52  ;;  %v7070_v31 = vpack.c.bf16 %v2187_v35, %v2187_v35 }
  0xca   :  { %v743_v48 = vadd.f32 %v695_v22, %v588_v11  ;;  %v1038_v34 = vsel %vm327_vm3, %v1036_v10, %v1037_v21  ;;  %v501_v30 = vrot.slane %v427_v54, 2  ;;  %v353_v18 = vrot.slane %v280_v51, 1  ;;  %v1556_v35 = vpop.permute.xlu0 %1555 }
  0xcb   :  { %v1183_v36 = vsel %vm473_vm4, %v1181_v41, %v1182_v19  ;;  %v1734_v5 = vld [vmem:[#allocation2 + $0x21] sm:$0xff]  ;;  %v401_v37 = vadd.f32 %v357_v4, %v159_v58  ;;  %v499_v40 = vrot.slane %v426_v1, 2  ;;  %2219 = vst.msk [vmem:[#allocation3 + $0xc] sm:$0xf] %vm1377_vm6, %v7070_v31  ;;  %v284_v52 = vmul.f32 %v6572_v39, %v7060_v42 }
  0xcc   :  { %v1621_v15 = vld [vmem:[#allocation2 + $0x20] sm:$0xff]  ;;  %v888_v28 = vadd.f32 %v840_v33, %v743_v48  ;;  %v7078_v12 = vpack.c.bf16 %v1734_v5, %v1734_v5  ;;  %v354_v56 = vsel %vm327_vm3, %v352_v20, %v353_v18  ;;  %v7085_v3 = vmul.f32 %v6585_v45, %v7013_v57  ;;  %1604 = vst.msk [vmem:[#allocation3] sm:$0xf] %vm1603_vm7, %v1556_v35 }
  0xcd   :  { %v2186_v60 = vld [vmem:[#allocation2 + $0x22] sm:$0xff]  ;;  %v1637_v29 = vpack.c.bf16 %v1621_v15, %v1621_v15  ;;  %v400_v24 = vadd.f32 %v354_v56, %v8932_v23  ;;  %v627_v53 = vmul.f32 %v6592_v49, %v7060_v42  ;;  %v842_v13 = vrot.slane %v7038_v17, 2 }
  0xce   :  { %v7088_v0 = vpack.c.bf16 %v2186_v60, %v2186_v60  ;;  %v931_v21 = vadd.f32 %v915_v6, %v888_v28  ;;  %1783 = vrot.lane.b32.xlu2 %v7078_v12, %s6337_s26  ;;  %v696_v38 = vrot.slane %v7066_v26, 1  ;;  %v500_v20 = vsel %vm473_vm4, %v498_v14, %v499_v40 }
  0xcf   :  { %1670 = vrot.lane.b32.xlu0 %v1637_v29, %s6336_s25  ;;  %1380 = vst.msk [vmem:[#allocation3 + $0x10] sm:$0xf] %vm1377_vm6, %v1637_v29  ;;  %v503_v27 = vsel %vm473_vm4, %v501_v30, %v502_v2  ;;  %v573_v10 = vmul.f32 %v6604_v62, %v7013_v57  ;;  %v546_v54 = vadd.f32 %v500_v20, %v400_v24  ;;  %v359_v63 = vrot.slane %v284_v52, 1 }
  0xd0   :  { %2218 = vst.msk [vmem:[#allocation3 + $0x4] sm:$0xf] %vm1377_vm6, %v7088_v0  ;;  %1896 = vrot.lane.b32.xlu1 %v7088_v0, %s6338_s27  ;;  %v1086_v14 = vadd.f32 %v1038_v34, %v931_v21  ;;  %v547_v19 = vadd.f32 %v503_v27, %v401_v37  ;;  %v283_v2 = vmul.f32 %v6572_v39, %v7044_v55  ;;  %v700_v22 = vrot.slane %v627_v53, 1  ;;  %v1961_v37 = vld [vmem:[#allocation2 + $0x30] sm:$0xff] }
  0xd1   :  { %v589_v57 = vadd.f32 %v573_v10, %v546_v54  ;;  %v430_v8 = vmul.f32 %v6578_v43, %v7060_v42  ;;  %v429_v7 = vmul.f32 %v6578_v43, %v7044_v55  ;;  %v574_v41 = vmul.f32 %v6604_v62, %v7044_v55  ;;  %v2074_v27 = vld [vmem:[#allocation2 + $0x31] sm:$0xff] }
  0xd2   :  { %v1231_v25 = vadd.f32 %v1183_v36, %v1086_v14  ;;  %v358_v33 = vrot.slane %v283_v2, 1  ;;  %v626_v11 = vmul.f32 %v6592_v49, %v7044_v55  ;;  %v7123_v6 = vmul.f32 %v6592_v49, %v7108_v50  ;;  %v5537_v1 = vld [vmem:[#allocation3 + $0x8] sm:$0xf0] }
  0xd3   :  { %v772_v4 = vmul.f32 %v6585_v45, %v7060_v42  ;;  %v160_v51 = vmul.f32 %v6589_v47, %v7044_v55  ;;  %v771_v58 = vmul.f32 %v6585_v45, %v7044_v55  ;;  %v590_v34 = vadd.f32 %v574_v41, %v547_v19  ;;  %v2189_v41 = vld [vmem:[#allocation2 + $0x52] sm:$0xff] }
  0xd4   :  { %v1251_v26 = vadd.f32 %v6777_v59, %v1231_v25  ;;  %v360_v48 = vsel %vm327_vm3, %v358_v33, %v359_v63  ;;  %v699_v30 = vrot.slane %v626_v11, 1  ;;  %v841_v18 = vrot.slane %v7085_v3, 2  ;;  %v7141_v3 = vpop.permute.xlu1 %126  ;;  %v2188_v33 = vld [vmem:[#allocation2 + $0x42] sm:$0xff] }
  0xd5   :  { %v698_v36 = vsel %vm327_vm3, %v696_v38, %v697_v32  ;;  %v505_v5 = vrot.slane %v430_v8, 2  ;;  %v504_v15 = vrot.slane %v429_v7, 2  ;;  %v402_v28 = vadd.f32 %v360_v48, %v160_v51 }
  0xd6   :  { %v1267_v40 = vmax.f32 %v1251_v26, 0.0  ;;  %v744_v60 = vadd.f32 %v698_v36, %v589_v57  ;;  %2008 = vrot.lane.b32.xlu2 %v1637_v29, %s6339_s28  ;;  %v701_v56 = vsel %vm327_vm3, %v699_v30, %v700_v22  ;;  %v845_v23 = vrot.slane %v772_v4, 2 }
  0xd7   :  { %v6153_v52 = vld [vmem:[#allocation3 + $0x4] sm:$0xf]  ;;  %1894 = vrot.lane.b32.xlu0 %v6969_v16, %s6338_s27  ;;  %v968_v32 = vmul.f32 %v6587_v46, %v7060_v42  ;;  %v844_v24 = vrot.slane %v771_v58, 2  ;;  %v703_v29 = vrot.slane %v7123_v6, 1  ;;  %v774_v16 = vmul.f32 %v6585_v45, %v7108_v50 }
  0xd8   :  { %v5540_v61 = vor.u32 %v6153_v52, %v5537_v1  ;;  %2121 = vrot.lane.b32.xlu1 %v7078_v12, %s6340_s29  ;;  %1336 = vst.msk [vmem:[#allocation2 + $0x81] sm:$0xff] %vm1276_vm0, %v1267_v40  ;;  %v745_v53 = vadd.f32 %v701_v56, %v590_v34  ;;  %v7151_v21 = vpack.c.bf16 %v1961_v37, %v1961_v37 }
  0xd9   :  { %v970_v38 = vmul.f32 %v6587_v46, %v7108_v50  ;;  %v843_v20 = vsel %vm473_vm4, %v841_v18, %v842_v13  ;;  %v506_v10 = vsel %vm473_vm4, %v504_v15, %v505_v5  ;;  %v575_v54 = vmul.f32 %v6604_v62, %v7141_v3  ;;  %v7171_v13 = vld [vmem:[%s8889_s1 + $0x8] ss:$0 sm:$0xff] }
  0xda   :  { %5633 = vmatmul.msk.bf16.vlgmr.msra.gmra.mxu1 %vm1276_vm0, %v5540_v61  ;;  %v1115_v35 = vmul.f32 %v6583_v44, %v7108_v50  ;;  %v889_v14 = vadd.f32 %v843_v20, %v744_v60  ;;  %v967_v19 = vmul.f32 %v6587_v46, %v7044_v55  ;;  %v548_v63 = vadd.f32 %v506_v10, %v402_v28 }
  0xdb   :  { %1381 = vst.msk [vmem:[#allocation3 + $0x18] sm:$0xf] %vm1377_vm6, %v7151_v21  ;;  %v1040_v17 = vrot.slane %v968_v32, 1  ;;  %v1113_v2 = vmul.f32 %v7171_v13, %v7060_v42  ;;  %v628_v44 = vmul.f32 %v6592_v49, %v7141_v3  ;;  %v846_v57 = vsel %vm473_vm4, %v844_v24, %v845_v23 }
  0xdc   :  { %v916_v8 = vmul.f32 %v6611_v9, %v7044_v55  ;;  %v7180_v22 = vpack.c.bf16 %v2074_v27, %v2074_v27  ;;  %v773_v7 = vmul.f32 %v6585_v45, %v7141_v3  ;;  %v890_v25 = vadd.f32 %v846_v57, %v745_v53  ;;  %v7205_v52 = vpop.permute.xlu1 %244  ;;  %v7215_v53 = vpop.permute.xlu0 %131 }
  0xdd   :  { %v1112_v11 = vmul.f32 %v7171_v13, %v7044_v55  ;;  %v591_v42 = vadd.f32 %v575_v54, %v548_v63  ;;  %v702_v6 = vrot.slane %v628_v44, 1  ;;  %v917_v4 = vmul.f32 %v6611_v9, %v7141_v3  ;;  %v2190_v63 = vld [vmem:[#allocation2 + $0x62] sm:$0xff]  ;;  %v2191_v44 = vld [vmem:[#allocation2 + $0x72] sm:$0xff] }
  0xde   :  { %v932_v51 = vadd.f32 %v916_v8, %v889_v14  ;;  %v1039_v58 = vrot.slane %v967_v19, 1  ;;  %2123 = vrot.lane.b32.xlu2 %v7180_v22, %s6340_s29  ;;  %v969_v26 = vmul.f32 %v6587_v46, %v7141_v3  ;;  %v1114_v1 = vmul.f32 %v7171_v13, %v7141_v3  ;;  %v1623_v19 = vld [vmem:[#allocation2 + $0x40] sm:$0xff]  ;;  %v2193_v8 = vld [vmem:[#allocation2 + $0x92] sm:$0xff] }
  0xdf   :  { %2010 = vrot.lane.b32.xlu0 %v7151_v21, %s6339_s28  ;;  %v704_v55 = vsel %vm327_vm3, %v702_v6, %v703_v29  ;;  %v933_v48 = vadd.f32 %v917_v4, %v890_v25  ;;  %v7197_v34 = vpack.c.bf16 %v2188_v33, %v2188_v33  ;;  %v7199_v30 = vpack.c.bf16 %v2189_v41, %v2189_v41  ;;  %v2192_v57 = vld [vmem:[#allocation2 + $0x82] sm:$0xff] }
  0xe0   :  { %1559 = vrot.lane.b32.xlu1 %v7088_v0, %s6335_s12  ;;  %v1043_v18 = vrot.slane %v970_v38, 1  ;;  %v847_v36 = vrot.slane %v773_v7, 2  ;;  %v1042_v5 = vrot.slane %v969_v26, 1  ;;  %v1187_v15 = vrot.slane %v1114_v1, 2  ;;  %v1963_v1 = vld [vmem:[#allocation2 + $0x50] sm:$0xff] }
  0xe1   :  { %v848_v37 = vrot.slane %v774_v16, 2  ;;  %v1188_v40 = vrot.slane %v1115_v35, 2  ;;  %v746_v60 = vadd.f32 %v704_v55, %v591_v42  ;;  %2220 = vst.msk [vmem:[#allocation3 + $0x14] sm:$0xf] %vm1377_vm6, %v7197_v34  ;;  %v1185_v28 = vrot.slane %v1113_v2, 2 }
  0xe2   :  { %v1041_v56 = vsel %vm327_vm3, %v1039_v58, %v1040_v17  ;;  %v1184_v61 = vrot.slane %v1112_v11, 2  ;;  %v1044_v23 = vsel %vm327_vm3, %v1042_v5, %v1043_v18  ;;  %2221 = vst.msk [vmem:[#allocation3 + $0x1c] sm:$0xf] %vm1377_vm6, %v7199_v30  ;;  %v972_v29 = vmul.f32 %v6587_v46, %v7205_v52 }
  0xe3   :  { %v1087_v0 = vadd.f32 %v1041_v56, %v932_v51  ;;  %v1088_v32 = vadd.f32 %v1044_v23, %v933_v48  ;;  %v1189_v24 = vsel %vm473_vm4, %v1187_v15, %v1188_v40  ;;  %v849_v16 = vsel %vm473_vm4, %v847_v36, %v848_v37  ;;  %v1965_v15 = vld [vmem:[#allocation2 + $0x70] sm:$0xff]  ;;  %v1625_v56 = vld [vmem:[#allocation2 + $0x60] sm:$0xff] }
  0xe4   :  { %v1117_v20 = vmul.f32 %v7171_v13, %v7205_v52  ;;  %v891_v27 = vadd.f32 %v849_v16, %v746_v60  ;;  %v1186_v10 = vsel %vm473_vm4, %v1184_v61, %v1185_v28  ;;  %v918_v14 = vmul.f32 %v6611_v9, %v7215_v53 }
  0xe5   :  { %v1233_v38 = vadd.f32 %v1189_v24, %v1088_v32  ;;  %v1232_v54 = vadd.f32 %v1186_v10, %v1087_v0  ;;  %v1046_v17 = vrot.slane %v972_v29, 1  ;;  %v971_v2 = vmul.f32 %v6587_v46, %v7215_v53  ;;  %v1736_v0 = vld [vmem:[#allocation2 + $0x41] sm:$0xff] }
  0xe6   :  { %1446 = vrot.lane.b32.xlu2 %v7078_v12, %s6334_s30  ;;  %v1191_v33 = vrot.slane %v1117_v20, 2  ;;  %v934_v41 = vadd.f32 %v918_v14, %v891_v27  ;;  %v1116_v6 = vmul.f32 %v7171_v13, %v7215_v53  ;;  %v1639_v4 = vpack.c.bf16 %v1623_v19, %v1623_v19 }
  0xe7   :  { %1448 = vrot.lane.b32.xlu0 %v7180_v22, %s6334_s30  ;;  %v1253_v35 = vadd.f32 %v6777_v59, %v1233_v38  ;;  %v1045_v42 = vrot.slane %v971_v2, 1  ;;  %v1252_v51 = vadd.f32 %v6777_v59, %v1232_v54  ;;  %v7233_v58 = vpack.c.bf16 %v2190_v63, %v2190_v63  ;;  %v2076_v63 = vld [vmem:[#allocation2 + $0x51] sm:$0xff] }
  0xe8   :  { %v6155_v12 = vld [vmem:[#allocation3 + $0x14] sm:$0xf]  ;;  %v7235_v26 = vpack.c.bf16 %v2191_v44, %v2191_v44  ;;  %v1190_v48 = vrot.slane %v1116_v6, 2  ;;  %1674 = vrot.lane.b32.xlu1 %v1639_v4, %s6336_s25  ;;  %v7240_v18 = vpack.c.bf16 %v2192_v57, %v2192_v57  ;;  %v2209_v36 = vpack.c.bf16 %v2193_v8, %v2193_v8  ;;  %1382 = vst.msk [vmem:[#allocation3 + $0x20] sm:$0xf] %vm1377_vm6, %v1639_v4 }
  0xe9   :  { %v1269_v7 = vmax.f32 %v1253_v35, 0.0  ;;  %v5545_v25 = vld [vmem:[#allocation3 + $0x18] sm:$0xf0]  ;;  %v1047_v55 = vsel %vm327_vm3, %v1045_v42, %v1046_v17  ;;  %2222 = vst.msk [vmem:[#allocation3 + $0x24] sm:$0xf] %vm1377_vm6, %v7233_v58  ;;  %v1979_v40 = vpack.c.bf16 %v1963_v1, %v1963_v1  ;;  %v1268_v28 = vmax.f32 %v1252_v51, 0.0 }
  0xea   :  { %v5548_v11 = vor.u32 %v6155_v12, %v5545_v25  ;;  %v1089_v5 = vadd.f32 %v1047_v55, %v934_v41  ;;  %v1192_v37 = vsel %vm473_vm4, %v1190_v48, %v1191_v33  ;;  %2223 = vst.msk [vmem:[#allocation3 + $0x2c] sm:$0xf] %vm1377_vm6, %v7235_v26  ;;  %v7254_v61 = vpack.c.bf16 %v1965_v15, %v1965_v15  ;;  %v6176_v12 = vld [vmem:[%s8891_s3 + $0x38] sm:$0xff]  ;;  %v1738_v33 = vld [vmem:[#allocation2 + $0x61] sm:$0xff] }
  0xeb   :  { %1338 = vst.msk [vmem:[#allocation2 + $0xc1] sm:$0xff] %vm1276_vm0, %v1269_v7  ;;  %v1641_v29 = vpack.c.bf16 %v1625_v56, %v1625_v56  ;;  %v1752_v16 = vpack.c.bf16 %v1736_v0, %v1736_v0  ;;  %v2092_v17 = vpack.c.bf16 %v2076_v63, %v2076_v63  ;;  %2422 = vmatpush.bf16.msra.mxu0 %v6176_v12  ;;  %v6174_v42 = vld [vmem:[%s8891_s3 + $0x28] sm:$0xff]  ;;  %v2078_v6 = vld [vmem:[#allocation2 + $0x71] sm:$0xff] }
  0xec   :  { %5634 = vmatmul.msk.bf16.gmra.mxu1 %vm1276_vm0, %v5548_v11  ;;  %v1234_v60 = vadd.f32 %v1192_v37, %v1089_v5  ;;  %2224 = vst.msk [vmem:[#allocation3 + $0x34] sm:$0xf] %vm1377_vm6, %v7240_v18  ;;  %v1754_v41 = vpack.c.bf16 %v1738_v33, %v1738_v33  ;;  %v6175_v11 = vld [vmem:[%s8891_s3 + $0x30] sm:$0xff]  ;;  %v2094_v51 = vpack.c.bf16 %v2078_v6, %v2078_v6  ;;  %v6172_v48 = vld [vmem:[%s8891_s3 + $0x18] sm:$0xff]  ;;  %v6170_v37 = vld [vmem:[%s8891_s3 + $0x8] sm:$0xff] }
  0xed   :  { %2225 = vst.msk [vmem:[#allocation3 + $0x3c] sm:$0xf] %vm1377_vm6, %v2209_v36  ;;  %v6171_v5 = vld [vmem:[%s8891_s3 + $0x10] sm:$0xff] }
  0xee   :  { %1561 = vrot.lane.b32.xlu2 %v7070_v31, %s6335_s12  ;;  %v1254_v23 = vadd.f32 %v6777_v59, %v1234_v60  ;;  %1337 = vst.msk [vmem:[#allocation2 + $0xb1] sm:$0xff] %vm1276_vm0, %v1268_v28  ;;  %v1627_v28 = vld [vmem:[#allocation2 + $0x80] sm:$0xff] }
  0xef   :  { %1672 = vrot.lane.b32.xlu0 %v7151_v21, %s6336_s25  ;;  %1383 = vst.msk [vmem:[#allocation3 + $0x28] sm:$0xf] %vm1377_vm6, %v1979_v40  ;;  %2423 = vmatpush.bf16.msra.mxu0 %v6175_v11 }
  0xf0   :  { %v1270_v32 = vmax.f32 %v1254_v23, 0.0  ;;  %1898 = vrot.lane.b32.xlu1 %v7070_v31, %s6338_s27  ;;  %1385 = vst.msk [vmem:[#allocation3 + $0x38] sm:$0xf] %vm1377_vm6, %v7254_v61  ;;  %v6157_v27 = vld [vmem:[#allocation3 + $0x24] sm:$0xf]  ;;  %v1643_v23 = vpack.c.bf16 %v1627_v28, %v1627_v28 }
  0xf1   :  { %v5553_v20 = vld [vmem:[#allocation3 + $0x28] sm:$0xf0]  ;;  %1384 = vst.msk [vmem:[#allocation3 + $0x30] sm:$0xf] %vm1377_vm6, %v1641_v29  ;;  %v58_v28 = vld [vmem:[%s8888_s0 + $0xf8] sm:$0x3] }
  0xf2   :  { %v2194_v21 = vld [vmem:[#allocation2 + $0xc2] sm:$0xff]  ;;  %1339 = vst.msk [vmem:[#allocation2 + $0xd1] sm:$0xff] %vm1276_vm0, %v1270_v32  ;;  %v5556_v54 = vor.u32 %v6157_v27, %v5553_v20  ;;  %v2080_v32 = vld [vmem:[#allocation2 + $0x91] sm:$0xff] }
  0xf3   :  { %v7259_v24 = vpack.c.bf16 %v2194_v21, %v2194_v21  ;;  %v1629_v38 = vld [vmem:[#allocation2 + $0xc0] sm:$0xff]  ;;  %v6159_v2 = vld [vmem:[#allocation3 + $0x34] sm:$0xf]  ;;  %2424 = vmatpush.bf16.msra.mxu0 %v6174_v42  ;;  %v2096_v20 = vpack.c.bf16 %v2080_v32, %v2080_v32 }
  0xf4   :  { %v7267_v59 = vpack.c.bf16 %v1629_v38, %v1629_v38  ;;  %v5561_v44 = vld [vmem:[#allocation3 + $0x38] sm:$0xf0]  ;;  %v1742_v6 = vld [vmem:[#allocation2 + $0xc1] sm:$0xff] }
  0xf5   :  { %2226 = vst.msk [vmem:[#allocation3 + $0x44] sm:$0xf] %vm1377_vm6, %v7259_v24  ;;  %v1628_v31 = vld [vmem:[#allocation2 + $0xb0] sm:$0xff]  ;;  %v5564_v57 = vor.u32 %v6159_v2, %v5561_v44 }
  0xf6   :  { %1785 = vrot.lane.b32.xlu2 %v7180_v22, %s6337_s26  ;;  %1388 = vst.msk [vmem:[#allocation3 + $0x50] sm:$0xf] %vm1377_vm6, %v7267_v59  ;;  %v7277_v10 = vpack.c.bf16 %v1628_v31, %v1628_v31  ;;  %v1403_v63 = vld [vmem:[#allocation2 + $0xb1] sm:$0xff] }
  0xf7   :  { %1787 = vrot.lane.b32.xlu0 %v1752_v16, %s6337_s26  ;;  %v1419_v44 = vpack.c.bf16 %v1403_v63, %v1403_v63 }
  0xf8   :  { %1387 = vst.msk [vmem:[#allocation3 + $0x48] sm:$0xf] %vm1377_vm6, %v7277_v10  ;;  %2014 = vrot.lane.b32.xlu1 %v1979_v40, %s6339_s28 }
  0xf9   :  { %v2195_v22 = vld [vmem:[#allocation2 + $0xd2] sm:$0xff] }
  0xfa   :  { %v1969_v35 = vld [vmem:[#allocation2 + $0xd0] sm:$0xff]  ;;  %v7283_v14 = vpack.c.bf16 %v2195_v22, %v2195_v22 }
  0xfb   :  { %v7285_v19 = vpack.c.bf16 %v1969_v35, %v1969_v35 }
  0xfc   :  { %5635 = vmatmul.msk.bf16.gmra.mxu1 %vm1276_vm0, %v5556_v54  ;;  %2227 = vst.msk [vmem:[#allocation3 + $0x4c] sm:$0xf] %vm1377_vm6, %v7283_v14  ;;  %v6161_v25 = vld [vmem:[#allocation3 + $0x44] sm:$0xf] }
  0xfd   :  { %1389 = vst.msk [vmem:[#allocation3 + $0x58] sm:$0xf] %vm1377_vm6, %v7285_v19 }
  0xfe   :  { %1900 = vrot.lane.b32.xlu2 %v7197_v34, %s6338_s27 }
  0xff   :  { %2012 = vrot.lane.b32.xlu0 %v1639_v4, %s6339_s28 }
 0x100   :  { %1450 = vrot.lane.b32.xlu1 %v1752_v16, %s6334_s30 }
 0x103   :  { %v5569_v7 = vld [vmem:[#allocation3 + $0x48] sm:$0xf0] }
 0x106   :  { %2125 = vrot.lane.b32.xlu2 %v1752_v16, %s6340_s29 }
 0x107   :  { %2127 = vrot.lane.b32.xlu0 %v2092_v17, %s6340_s29 }
 0x108   :  { %1565 = vrot.lane.b32.xlu1 %v7199_v30, %s6335_s12 }
 0x10c   :  { %5636 = vmatmul.msk.bf16.gmra.mxu1 %vm1276_vm0, %v5564_v57 }
 0x10e   :  { %1452 = vrot.lane.b32.xlu2 %v2092_v17, %s6334_s30 }
 0x10f   :  { %1563 = vrot.lane.b32.xlu0 %v7197_v34, %s6335_s12  ;;  %v5572_v34 = vor.u32 %v6161_v25, %v5569_v7  ;;  %v1516_v25 = vld [vmem:[#allocation2 + $0xb2] sm:$0xff] }
 0x110   :  { %1789 = vrot.lane.b32.xlu1 %v2092_v17, %s6337_s26 }
 0x111   :  { %v1669_v8 = vpop.permute.xlu2 %1668 }
 0x112   :  { %1717 = vst.msk [vmem:[#allocation3] sm:$0xf] %vm1716_vm8, %v1669_v8 }
 0x116   :  { %1676 = vrot.lane.b32.xlu2 %v1979_v40, %s6336_s25  ;;  %v1740_v40 = vld [vmem:[#allocation2 + $0x81] sm:$0xff] }
 0x117   :  { %1678 = vrot.lane.b32.xlu0 %v1641_v29, %s6336_s25  ;;  %v1756_v56 = vpack.c.bf16 %v1740_v40, %v1740_v40 }
 0x118   :  { %1904 = vrot.lane.b32.xlu1 %v7233_v58, %s6338_s27 }
 0x11c   :  { %5637 = vmatmul.msk.bf16.gmra.mxu1 %vm1276_vm0, %v5572_v34  ;;  %v1532_v34 = vpack.c.bf16 %v1516_v25, %v1516_v25 }
 0x11e   :  { %1791 = vrot.lane.b32.xlu2 %v1754_v41, %s6337_s26 }
 0x11f   :  { %1902 = vrot.lane.b32.xlu0 %v7199_v30, %s6338_s27  ;;  %v6173_v30 = vld [vmem:[%s8891_s3 + $0x20] sm:$0xff] }
 0x120   :  { %2129 = vrot.lane.b32.xlu1 %v1754_v41, %s6340_s29  ;;  %2425 = vmatpush.bf16.msra.mxu0 %v6173_v30 }
 0x124   :  { %2426 = vmatpush.bf16.msra.mxu0 %v6172_v48 }
 0x126   :  { %2016 = vrot.lane.b32.xlu2 %v1641_v29, %s6339_s28  ;;  %v1967_v29 = vld [vmem:[#allocation2 + $0x90] sm:$0xff] }
 0x127   :  { %2018 = vrot.lane.b32.xlu0 %v7254_v61, %s6339_s28  ;;  %v1983_v27 = vpack.c.bf16 %v1967_v29, %v1967_v29 }
 0x128   :  { %v1784_v4 = vpop.permute.xlu2 %1783  ;;  %1456 = vrot.lane.b32.xlu1 %v2094_v51, %s6334_s30  ;;  %2427 = vmatpush.bf16.msra.mxu0 %v6171_v5  ;;  %v57_v5 = vld [vmem:[%s8888_s0 + $0xf0] sm:$0xff] }
 0x129   :  { %v1558_v1 = vpop.permute.xlu1 %1557 }
 0x12a   :  { %v1445_v55 = vpop.permute.xlu0 %1444 }
 0x12b   :  { %1492 = vst.msk [vmem:[#allocation3 + $0x8] sm:$0xf] %vm1490_vm5, %v1445_v55 }
 0x12c   :  { %1605 = vst.msk [vmem:[#allocation3 + $0x8] sm:$0xf] %vm1603_vm7, %v1558_v1  ;;  %2428 = vmatpush.bf16.msra.mxu0 %v6170_v37 }
 0x12e   :  { %2131 = vrot.lane.b32.xlu2 %v2094_v51, %s6340_s29 }
 0x12f   :  { %1454 = vrot.lane.b32.xlu0 %v1754_v41, %s6334_s30 }
 0x130   :  { %v2009_v36 = vpop.permute.xlu2 %2008  ;;  %1680 = vrot.lane.b32.xlu1 %v7254_v61, %s6336_s25  ;;  %v6169_v61 = vld [vmem:[%s8891_s3] sm:$0xff] }
 0x131   :  { %v1782_v15 = vpop.permute.xlu1 %1781  ;;  %2429 = vmatpush.bf16.msra.mxu0 %v6169_v61 }
 0x132   :  { %1830 = vst.msk [vmem:[#allocation3] sm:$0xf] %vm1829_vm9, %v1782_v15 }
 0x136   :  { %1567 = vrot.lane.b32.xlu2 %v7233_v58, %s6335_s12 }
 0x137   :  { %1569 = vrot.lane.b32.xlu0 %v7235_v26, %s6335_s12 }
 0x138   :  { %v2124_v60 = vpop.permute.xlu2 %2123  ;;  %1795 = vrot.lane.b32.xlu1 %v1756_v56, %s6337_s26 }
 0x13e   :  { %1682 = vrot.lane.b32.xlu2 %v1643_v23, %s6336_s25 }
 0x13f   :  { %1793 = vrot.lane.b32.xlu0 %v2094_v51, %s6337_s26 }
 0x140   :  { %v1447_v58 = vpop.permute.xlu2 %1446  ;;  %2020 = vrot.lane.b32.xlu1 %v1643_v23, %s6339_s28 }
 0x141   :  { %v1671_v0 = vpop.permute.xlu0 %1670  ;;  %1493 = vst.msk [vmem:[#allocation3 + $0x10] sm:$0xf] %vm1490_vm5, %v1447_v58 }
 0x142   :  { %v1897_v21 = vpop.permute.xlu1 %1896  ;;  %1718 = vst.msk [vmem:[#allocation3 + $0x8] sm:$0xf] %vm1716_vm8, %v1671_v0 }
 0x143   :  { %1831 = vst.msk [vmem:[#allocation3 + $0x8] sm:$0xf] %vm1829_vm9, %v1784_v4  ;;  %v1758_v4 = vpack.c.bf16 %v1742_v6, %v1742_v6 }
 0x144   :  { %1944 = vst.msk [vmem:[#allocation3 + $0x8] sm:$0xf] %vm1942_vm10, %v1897_v21 }
 0x146   :  { %1906 = vrot.lane.b32.xlu2 %v7235_v26, %s6338_s27  ;;  %v1402_v26 = vld [vmem:[#allocation2 + $0xa1] sm:$0xff] }
 0x147   :  { %1908 = vrot.lane.b32.xlu0 %v7240_v18, %s6338_s27  ;;  %v1515_v18 = vld [vmem:[#allocation2 + $0xa2] sm:$0xff]  ;;  %v1418_v2 = vpack.c.bf16 %v1402_v26, %v1402_v26 }
 0x148   :  { %v1562_v16 = vpop.permute.xlu2 %1561  ;;  %2135 = vrot.lane.b32.xlu1 %v2096_v20, %s6340_s29  ;;  %v1531_v35 = vpack.c.bf16 %v1515_v18, %v1515_v18  ;;  %v1353_v20 = vld [vmem:[#allocation2 + $0xa0] sm:$0xff] }
 0x149   :  { %v1895_v38 = vpop.permute.xlu0 %1894  ;;  %v1369_v18 = vpack.c.bf16 %v1353_v20, %v1353_v20 }
 0x14a   :  { %1943 = vst.msk [vmem:[#allocation3] sm:$0xf] %vm1942_vm10, %v1895_v38  ;;  %v2122_v31 = vpop.permute.xlu1 %2121 }
 0x14b   :  { %2057 = vst.msk [vmem:[#allocation3] sm:$0xf] %vm2056_vm11, %v2009_v36  ;;  %v2082_v36 = vld [vmem:[#allocation2 + $0xd1] sm:$0xff] }
 0x14c   :  { %2170 = vst.msk [vmem:[#allocation3] sm:$0xf] %vm2169_vm12, %v2122_v31  ;;  %v2098_v15 = vpack.c.bf16 %v2082_v36, %v2082_v36  ;;  %v286_v36 = vmul.f32 %v6572_v39, %v7108_v50 }
 0x14d   :  { %1386 = vst.msk [vmem:[#allocation3 + $0x40] sm:$0xf] %vm1377_vm6, %v1369_v18 }
 0x14e   :  { %2022 = vrot.lane.b32.xlu2 %v1983_v27, %s6339_s28 }
 0x14f   :  { %2133 = vrot.lane.b32.xlu0 %v1756_v56, %s6340_s29  ;;  %v59_v56 = vld [vmem:[%s8888_s0 + $0x100] sm:$0xff] }
 0x150   :  { %v1786_v54 = vpop.permute.xlu2 %1785  ;;  %1571 = vrot.lane.b32.xlu1 %v1531_v35, %s6335_s12 }
 0x151   :  { %v2011_v22 = vpop.permute.xlu0 %2010 }
 0x152   :  { %2058 = vst.msk [vmem:[#allocation3 + $0x8] sm:$0xf] %vm2056_vm11, %v2011_v22  ;;  %v1560_v17 = vpop.permute.xlu1 %1559 }
 0x153   :  { %2171 = vst.msk [vmem:[#allocation3 + $0x8] sm:$0xf] %vm2169_vm12, %v2124_v60  ;;  %v5535_v57 = vld [vmem:[#allocation3] sm:$0xf] }
 0x154   :  { %1606 = vst.msk [vmem:[#allocation3 + $0x10] sm:$0xf] %vm1603_vm7, %v1560_v17  ;;  %v60_v60 = vld [vmem:[%s8888_s0 + $0x108] sm:$0x3] }
 0x156   :  { %1458 = vrot.lane.b32.xlu2 %v1418_v2, %s6334_s30 }
 0x157   :  { %1460 = vrot.lane.b32.xlu0 %v1419_v44, %s6334_s30 }
 0x158   :  { %v1901_v8 = vpop.permute.xlu2 %1900  ;;  %1686 = vrot.lane.b32.xlu1 %v7267_v59, %s6336_s25 }
 0x159   :  { %v1449_v7 = vpop.permute.xlu0 %1448 }
 0x15a   :  { %1494 = vst.msk [vmem:[#allocation3 + $0x18] sm:$0xf] %vm1490_vm5, %v1449_v7  ;;  %v6154_v12 = vld [vmem:[#allocation3 + $0x4] sm:$0xf0]  ;;  %v1675_v41 = vpop.permute.xlu1 %1674 }
 0x15b   :  { %1607 = vst.msk [vmem:[#allocation3 + $0x18] sm:$0xf] %vm1603_vm7, %v1562_v16  ;;  %v5536_v33 = vor.u32 %v6154_v12, %v5535_v57 }
 0x15c   :  { %1720 = vst.msk [vmem:[#allocation3 + $0x18] sm:$0xf] %vm1716_vm8, %v1675_v41 }
 0x15d   :  { %2430 = vmatmul.bf16.vlgmr.msra.gmra.mxu0 %v5536_v33 }
 0x15e   :  { %1573 = vrot.lane.b32.xlu2 %v1532_v34, %s6335_s12 }
 0x15f   :  { %1684 = vrot.lane.b32.xlu0 %v7277_v10, %s6336_s25 }
 0x160   :  { %v2126_v11 = vpop.permute.xlu2 %2125  ;;  %1910 = vrot.lane.b32.xlu1 %v1532_v34, %s6338_s27 }
 0x161   :  { %v1673_v42 = vpop.permute.xlu0 %1672 }
 0x162   :  { %1719 = vst.msk [vmem:[#allocation3 + $0x10] sm:$0xf] %vm1716_vm8, %v1673_v42  ;;  %v1899_v30 = vpop.permute.xlu1 %1898 }
 0x163   :  { %1832 = vst.msk [vmem:[#allocation3 + $0x10] sm:$0xf] %vm1829_vm9, %v1786_v54 }
 0x164   :  { %1945 = vst.msk [vmem:[#allocation3 + $0x10] sm:$0xf] %vm1942_vm10, %v1899_v30 }
 0x166   :  { %1797 = vrot.lane.b32.xlu2 %v1419_v44, %s6337_s26 }
 0x167   :  { %1799 = vrot.lane.b32.xlu0 %v1758_v4, %s6337_s26 }
 0x168   :  { %v1453_v10 = vpop.permute.xlu2 %1452  ;;  %2026 = vrot.lane.b32.xlu1 %v7285_v19, %s6339_s28 }
 0x169   :  { %v1788_v51 = vpop.permute.xlu0 %1787  ;;  %1496 = vst.msk [vmem:[#allocation3 + $0x28] sm:$0xf] %vm1490_vm5, %v1453_v10 }
 0x16a   :  { %1833 = vst.msk [vmem:[#allocation3 + $0x18] sm:$0xf] %vm1829_vm9, %v1788_v51  ;;  %v2015_v1 = vpop.permute.xlu1 %2014 }
 0x16b   :  { %1946 = vst.msk [vmem:[#allocation3 + $0x18] sm:$0xf] %vm1942_vm10, %v1901_v8 }
 0x16c   :  { %2060 = vst.msk [vmem:[#allocation3 + $0x18] sm:$0xf] %vm2056_vm11, %v2015_v1 }
 0x16e   :  { %1912 = vrot.lane.b32.xlu2 %v7259_v24, %s6338_s27 }
 0x16f   :  { %2024 = vrot.lane.b32.xlu0 %v7267_v59, %s6339_s28 }
 0x170   :  { %v1677_v55 = vpop.permute.xlu2 %1676  ;;  %136 = vperm.xlu1 %6316, %v57_v5  }
 0x171   :  { %v2013_v48 = vpop.permute.xlu0 %2012 }
 0x172   :  { %2059 = vst.msk [vmem:[#allocation3 + $0x10] sm:$0xf] %vm2056_vm11, %v2013_v48  ;;  %v1451_v59 = vpop.permute.xlu1 %1450  ;;  %v285_v48 = vmul.f32 %v6572_v39, %v7141_v3 }
 0x173   :  { %2172 = vst.msk [vmem:[#allocation3 + $0x10] sm:$0xf] %vm2169_vm12, %v2126_v11 }
 0x174   :  { %1495 = vst.msk [vmem:[#allocation3 + $0x20] sm:$0xf] %vm1490_vm5, %v1451_v59 }
 0x176   :  { %2137 = vrot.lane.b32.xlu2 %v1758_v4, %s6340_s29 }
 0x177   :  { %2139 = vrot.lane.b32.xlu0 %v2098_v15, %s6340_s29 }
 0x178   :  { %v1792_v37 = vpop.permute.xlu2 %1791  ;;  %254 = vperm.xlu1 %6316, %v60_v60   ;;  %v431_v60 = vmul.f32 %v6578_v43, %v7141_v3 }
 0x179   :  { %v2128_v40 = vpop.permute.xlu0 %2127 }
 0x17a   :  { %2173 = vst.msk [vmem:[#allocation3 + $0x18] sm:$0xf] %vm2169_vm12, %v2128_v40  ;;  %v1566_v61 = vpop.permute.xlu1 %1565  ;;  %v5543_v0 = vld [vmem:[#allocation3 + $0x10] sm:$0xf]  ;;  %v362_v40 = vrot.slane %v286_v36, 1 }
 0x17b   :  { %1609 = vst.msk [vmem:[#allocation3 + $0x28] sm:$0xf] %vm1603_vm7, %v1566_v61  ;;  %v161_v61 = vmul.f32 %v6589_v47, %v7141_v3  ;;  %v630_v3 = vmul.f32 %v6592_v49, %v7215_v53 }
 0x17e   :  { %249 = vperm.xlu2 %6317, %v58_v28   ;;  %v432_v28 = vmul.f32 %v6578_v43, %v7108_v50 }
 0x17f   :  { %141 = vperm.xlu0 %6315, %v59_v56  }
 0x180   :  { %v2017_v23 = vpop.permute.xlu2 %2016  ;;  %1575 = vrot.lane.b32.xlu1 %v7259_v24, %s6335_s12  ;;  %v508_v50 = vrot.slane %v432_v28, 2 }
 0x181   :  { %v1564_v58 = vpop.permute.xlu0 %1563  ;;  %v6156_v21 = vld [vmem:[#allocation3 + $0x14] sm:$0xf0] }
 0x182   :  { %1608 = vst.msk [vmem:[#allocation3 + $0x20] sm:$0xf] %vm1603_vm7, %v1564_v58  ;;  %v5544_v32 = vor.u32 %v6156_v21, %v5543_v0  ;;  %v1790_v29 = vpop.permute.xlu1 %1789  ;;  %v288_v58 = vmul.f32 %v6572_v39, %v7205_v52  ;;  %v287_v21 = vmul.f32 %v6572_v39, %v7215_v53 }
 0x183   :  { %1721 = vst.msk [vmem:[#allocation3 + $0x20] sm:$0xf] %vm1716_vm8, %v1677_v55 }
 0x184   :  { %2435 = vmatmul.bf16.gmra.mxu0 %v5544_v32  ;;  %1834 = vst.msk [vmem:[#allocation3 + $0x20] sm:$0xf] %vm1829_vm9, %v1790_v29  ;;  %v7480_v29 = vld [vmem:[%s8892_s4] ss:$0 sm:$0xff]  ;;  %v365_v20 = vrot.slane %v288_v58, 1 }
 0x186   :  { %1462 = vrot.lane.b32.xlu2 %v1758_v4, %s6334_s30 }
 0x187   :  { %1464 = vrot.lane.b32.xlu0 %v2098_v15, %s6334_s30 }
 0x188   :  { %v2132_v16 = vpop.permute.xlu2 %2131 }
 0x189   :  { %v1679_v38 = vpop.permute.xlu0 %1678 }
 0x18a   :  { %1722 = vst.msk [vmem:[#allocation3 + $0x28] sm:$0xf] %vm1716_vm8, %v1679_v38  ;;  %v1905_v24 = vpop.permute.xlu1 %1904 }
 0x18b   :  { %1835 = vst.msk [vmem:[#allocation3 + $0x28] sm:$0xf] %vm1829_vm9, %v1792_v37 }
 0x18c   :  { %1948 = vst.msk [vmem:[#allocation3 + $0x28] sm:$0xf] %vm1942_vm10, %v1905_v24 }
 0x18e   :  { %1577 = vrot.lane.b32.xlu2 %v7283_v14, %s6335_s12 }
 0x18f   :  { %1688 = vrot.lane.b32.xlu0 %v7285_v19, %s6336_s25 }
 0x190   :  { %v1568_v31 = vpop.permute.xlu2 %1567 }
 0x191   :  { %v1903_v27 = vpop.permute.xlu0 %1902 }
 0x192   :  { %1947 = vst.msk [vmem:[#allocation3 + $0x20] sm:$0xf] %vm1942_vm10, %v1903_v27  ;;  %v2130_v26 = vpop.permute.xlu1 %2129 }
 0x193   :  { %2061 = vst.msk [vmem:[#allocation3 + $0x20] sm:$0xf] %vm2056_vm11, %v2017_v23  ;;  %v507_v23 = vrot.slane %v431_v60, 2 }
 0x194   :  { %2174 = vst.msk [vmem:[#allocation3 + $0x20] sm:$0xf] %vm2169_vm12, %v2130_v26  ;;  %v364_v26 = vrot.slane %v287_v21, 1 }
 0x196   :  { %1801 = vrot.lane.b32.xlu2 %v2098_v15, %s6337_s26  ;;  %v361_v15 = vrot.slane %v285_v48, 1 }
 0x198   :  { %v1683_v14 = vpop.permute.xlu2 %1682  ;;  %v363_v56 = vsel %vm327_vm3, %v361_v15, %v362_v40 }
 0x199   :  { %v2019_v19 = vpop.permute.xlu0 %2018  ;;  %v403_v0 = vadd.f32 %v363_v56, %v161_v61 }
 0x19a   :  { %2062 = vst.msk [vmem:[#allocation3 + $0x28] sm:$0xf] %vm2056_vm11, %v2019_v19  ;;  %v1457_v54 = vpop.permute.xlu1 %1456 }
 0x19b   :  { %2175 = vst.msk [vmem:[#allocation3 + $0x28] sm:$0xf] %vm2169_vm12, %v2132_v16  ;;  %v5551_v22 = vld [vmem:[#allocation3 + $0x20] sm:$0xf]  ;;  %v631_v16 = vmul.f32 %v6592_v49, %v7205_v52 }
 0x19c   :  { %1498 = vst.msk [vmem:[#allocation3 + $0x38] sm:$0xf] %vm1490_vm5, %v1457_v54 }
 0x19d   :  { %v706_v54 = vrot.slane %v631_v16, 1 }
 0x1a0   :  { %v1907_v35 = vpop.permute.xlu2 %1906 }
 0x1a1   :  { %v1455_v63 = vpop.permute.xlu0 %1454 }
 0x1a2   :  { %1497 = vst.msk [vmem:[#allocation3 + $0x30] sm:$0xf] %vm1490_vm5, %v1455_v63  ;;  %v6158_v17 = vld [vmem:[#allocation3 + $0x24] sm:$0xf0]  ;;  %v1681_v44 = vpop.permute.xlu1 %1680  ;;  %v434_v63 = vmul.f32 %v6578_v43, %v7205_v52 }
 0x1a3   :  { %1610 = vst.msk [vmem:[#allocation3 + $0x30] sm:$0xf] %vm1603_vm7, %v1568_v31  ;;  %v5552_v2 = vor.u32 %v6158_v17, %v5551_v22  ;;  %v509_v31 = vsel %vm473_vm4, %v507_v23, %v508_v50  ;;  %v705_v22 = vrot.slane %v630_v3, 1  ;;  %v433_v17 = vmul.f32 %v6578_v43, %v7215_v53 }
 0x1a4   :  { %1723 = vst.msk [vmem:[#allocation3 + $0x30] sm:$0xf] %vm1716_vm8, %v1681_v44  ;;  %v549_v18 = vadd.f32 %v509_v31, %v403_v0  ;;  %v776_v44 = vmul.f32 %v6585_v45, %v7205_v52 }
 0x1a5   :  { %2440 = vmatmul.bf16.gmra.mxu0 %v5552_v2 }
 0x1a8   :  { %v2023_v57 = vpop.permute.xlu2 %2022 }
 0x1a9   :  { %v1570_v8 = vpop.permute.xlu0 %1569 }
 0x1aa   :  { %1611 = vst.msk [vmem:[#allocation3 + $0x38] sm:$0xf] %vm1603_vm7, %v1570_v8  ;;  %v1796_v7 = vpop.permute.xlu1 %1795 }
 0x1ab   :  { %1724 = vst.msk [vmem:[#allocation3 + $0x38] sm:$0xf] %vm1716_vm8, %v1683_v14  ;;  %v576_v14 = vmul.f32 %v6604_v62, %v7215_v53 }
 0x1ac   :  { %1837 = vst.msk [vmem:[#allocation3 + $0x38] sm:$0xf] %vm1829_vm9, %v1796_v7 }
 0x1ad   :  { %v592_v8 = vadd.f32 %v576_v14, %v549_v18 }
 0x1b0   :  { %v1459_v12 = vpop.permute.xlu2 %1458 }
 0x1b1   :  { %v1794_v25 = vpop.permute.xlu0 %1793  ;;  %1499 = vst.msk [vmem:[#allocation3 + $0x40] sm:$0xf] %vm1490_vm5, %v1459_v12 }
 0x1b2   :  { %1836 = vst.msk [vmem:[#allocation3 + $0x30] sm:$0xf] %vm1829_vm9, %v1794_v25  ;;  %v2021_v33 = vpop.permute.xlu1 %2020  ;;  %v366_v25 = vsel %vm327_vm3, %v364_v26, %v365_v20 }
 0x1b3   :  { %1949 = vst.msk [vmem:[#allocation3 + $0x30] sm:$0xf] %vm1942_vm10, %v1907_v35  ;;  %v2480_v35 = vpop.f32.mrf.mxu1 }
 0x1b4   :  { %2063 = vst.msk [vmem:[#allocation3 + $0x30] sm:$0xf] %vm2056_vm11, %v2021_v33  ;;  %v162_v33 = vmul.f32 %v6589_v47, %v7215_v53 }
 0x1b8   :  { %v1574_v34 = vpop.permute.xlu2 %1573 }
 0x1b9   :  { %v1909_v41 = vpop.permute.xlu0 %1908 }
 0x1ba   :  { %1950 = vst.msk [vmem:[#allocation3 + $0x38] sm:$0xf] %vm1942_vm10, %v1909_v41  ;;  %v2136_v11 = vpop.permute.xlu1 %2135  ;;  %v511_v41 = vrot.slane %v434_v63, 2 }
 0x1bb   :  { %2064 = vst.msk [vmem:[#allocation3 + $0x38] sm:$0xf] %vm2056_vm11, %v2023_v57  ;;  %v775_v57 = vmul.f32 %v6585_v45, %v7215_v53 }
 0x1bc   :  { %2177 = vst.msk [vmem:[#allocation3 + $0x38] sm:$0xf] %vm2169_vm12, %v2136_v11  ;;  %v510_v11 = vrot.slane %v433_v17, 2 }
 0x1be   :  { %v512_v15 = vsel %vm473_vm4, %v510_v11, %v511_v41 }
 0x1c0   :  { %v1798_v42 = vpop.permute.xlu2 %1797 }
 0x1c1   :  { %v2134_v6 = vpop.permute.xlu0 %2133 }
 0x1c2   :  { %2176 = vst.msk [vmem:[#allocation3 + $0x30] sm:$0xf] %vm2169_vm12, %v2134_v6  ;;  %v1572_v4 = vpop.permute.xlu1 %1571 }
 0x1c3   :  { %v6160_v30 = vld [vmem:[#allocation3 + $0x34] sm:$0xf0]  ;;  %1612 = vst.msk [vmem:[#allocation3 + $0x40] sm:$0xf] %vm1603_vm7, %v1572_v4  ;;  %v851_v4 = vrot.slane %v776_v44, 2 }
 0x1c8   :  { %v1913_v10 = vpop.permute.xlu2 %1912 }
 0x1c9   :  { %v1461_v51 = vpop.permute.xlu0 %1460  ;;  %v5559_v1 = vld [vmem:[#allocation3 + $0x30] sm:$0xf] }
 0x1ca   :  { %1500 = vst.msk [vmem:[#allocation3 + $0x48] sm:$0xf] %vm1490_vm5, %v1461_v51  ;;  %v5560_v55 = vor.u32 %v6160_v30, %v5559_v1  ;;  %v1687_v5 = vpop.permute.xlu1 %1686  ;;  %v850_v30 = vrot.slane %v775_v57, 2 }
 0x1cb   :  { %1613 = vst.msk [vmem:[#allocation3 + $0x48] sm:$0xf] %vm1603_vm7, %v1574_v34  ;;  %v707_v34 = vsel %vm327_vm3, %v705_v22, %v706_v54 }
 0x1cc   :  { %2445 = vmatmul.bf16.gmra.mxu0 %v5560_v55  ;;  %1726 = vst.msk [vmem:[#allocation3 + $0x48] sm:$0xf] %vm1716_vm8, %v1687_v5  ;;  %v747_v1 = vadd.f32 %v707_v34, %v592_v8  ;;  %v852_v40 = vsel %vm473_vm4, %v850_v30, %v851_v4 }
 0x1d0   :  { %v2138_v59 = vpop.permute.xlu2 %2137 }
 0x1d1   :  { %v1685_v37 = vpop.permute.xlu0 %1684 }
 0x1d2   :  { %1725 = vst.msk [vmem:[#allocation3 + $0x40] sm:$0xf] %vm1716_vm8, %v1685_v37  ;;  %v1911_v32 = vpop.permute.xlu1 %1910 }
 0x1d3   :  { %1838 = vst.msk [vmem:[#allocation3 + $0x40] sm:$0xf] %vm1829_vm9, %v1798_v42 }
 0x1d4   :  { %1951 = vst.msk [vmem:[#allocation3 + $0x40] sm:$0xf] %vm1942_vm10, %v1911_v32 }
 0x1d8   :  { %v250_v38 = vpop.permute.xlu2 %249 }
 0x1d9   :  { %v1800_v24 = vpop.permute.xlu0 %1799  ;;  %v290_v51 = vmul.f32 %v6572_v39, %v250_v38  ;;  %v436_v55 = vmul.f32 %v6578_v43, %v250_v38  ;;  %v633_v48 = vmul.f32 %v6592_v49, %v250_v38  ;;  %v974_v36 = vmul.f32 %v6587_v46, %v250_v38 }
 0x1da   :  { %1839 = vst.msk [vmem:[#allocation3 + $0x48] sm:$0xf] %vm1829_vm9, %v1800_v24  ;;  %v2431_v27 = vpop.f32.mrf.mxu0  ;;  %v2027_v12 = vpop.permute.xlu1 %2026  ;;  %v778_v28 = vmul.f32 %v6585_v45, %v250_v38  ;;  %v1119_v56 = vmul.f32 %v7171_v13, %v250_v38 }
 0x1db   :  { %1952 = vst.msk [vmem:[#allocation3 + $0x48] sm:$0xf] %vm1942_vm10, %v1913_v10  ;;  %v2432_v19 = vadd.f32 %v7480_v29, %v2431_v27  ;;  %v404_v10 = vadd.f32 %v366_v25, %v162_v33  ;;  %v368_v60 = vrot.slane %v290_v51, 1  ;;  %v514_v23 = vrot.slane %v436_v55, 2 }
 0x1dc   :  { %2066 = vst.msk [vmem:[#allocation3 + $0x48] sm:$0xf] %vm2056_vm11, %v2027_v12  ;;  %v709_v32 = vrot.slane %v633_v48, 1  ;;  %v1049_v50 = vrot.slane %v974_v36, 1  ;;  %v1194_v44 = vrot.slane %v1119_v56, 2  ;;  %v854_v12 = vrot.slane %v778_v28, 2 }
 0x1dd   :  { %v2481_v2 = vadd.f32 %v2480_v35, %v2432_v19  ;;  %v550_v37 = vadd.f32 %v512_v15, %v404_v10 }
 0x1df   :  { %v2520_v7 = vmax.f32 %v2481_v2, 0.0 }
 0x1e0   :  { %v1463_v52 = vpop.permute.xlu2 %1462 }
 0x1e1   :  { %v7506_v42 = vpack.c.bf16 %v2520_v7, %v2520_v7  ;;  %v2025_v6 = vpop.permute.xlu0 %2024  ;;  %1501 = vst.msk [vmem:[#allocation3 + $0x50] sm:$0xf] %vm1490_vm5, %v1463_v52 }
 0x1e2   :  { %2065 = vst.msk [vmem:[#allocation3 + $0x40] sm:$0xf] %vm2056_vm11, %v2025_v6  ;;  %v137_v61 = vpop.permute.xlu1 %136 }
 0x1e3   :  { %v2540_v53 = vrot.slane %v7506_v42, 3  ;;  %2178 = vst.msk [vmem:[#allocation3 + $0x40] sm:$0xf] %vm2169_vm12, %v2138_v59  ;;  %v892_v59 = vadd.f32 %v852_v40, %v747_v1  ;;  %v289_v58 = vmul.f32 %v6572_v39, %v137_v61  ;;  %v435_v0 = vmul.f32 %v6578_v43, %v137_v61 }
 0x1e4   :  { %v577_v21 = vmul.f32 %v6604_v62, %v137_v61  ;;  %v632_v16 = vmul.f32 %v6592_v49, %v137_v61  ;;  %v919_v3 = vmul.f32 %v6611_v9, %v137_v61  ;;  %v777_v38 = vmul.f32 %v6585_v45, %v137_v61 }
 0x1e5   :  { %v2545_v5 = vsel %vm2542_vm13, %v7506_v42, %v2540_v53  ;;  %v367_v20 = vrot.slane %v289_v58, 1  ;;  %v513_v31 = vrot.slane %v435_v0, 2  ;;  %v973_v27 = vmul.f32 %v6587_v46, %v137_v61 }
 0x1e6   :  { %2549 = vst [vmem:[#allocation1] ss:$4 sm:$0xff] %v2545_v5  ;;  %v163_v18 = vmul.f32 %v6589_v47, %v137_v61  ;;  %v593_v26 = vadd.f32 %v577_v21, %v550_v37  ;;  %v708_v14 = vrot.slane %v632_v16, 1  ;;  %v935_v19 = vadd.f32 %v919_v3, %v892_v59  ;;  %v7549_v37 = vld [vmem:[%s8890_s2] ss:$0 sm:$0xff] }
 0x1e7   :  { %v369_v54 = vsel %vm327_vm3, %v367_v20, %v368_v60  ;;  %v1048_v22 = vrot.slane %v973_v27, 1  ;;  %v1118_v35 = vmul.f32 %v7171_v13, %v137_v61  ;;  %v515_v63 = vsel %vm473_vm4, %v513_v31, %v514_v23  ;;  %v7563_v27 = vld [vmem:[%s8889_s1 + $0x8] ss:$0 sm:$0xff] }
 0x1e8   :  { %v405_v17 = vadd.f32 %v369_v54, %v163_v18  ;;  %v710_v2 = vsel %vm327_vm3, %v708_v14, %v709_v32  ;;  %v853_v57 = vrot.slane %v777_v38, 2 }
 0x1e9   :  { %v2140_v24 = vpop.permute.xlu0 %2139  ;;  %v1050_v8 = vsel %vm327_vm3, %v1048_v22, %v1049_v50  ;;  %v1193_v7 = vrot.slane %v1118_v35, 2  ;;  %v748_v25 = vadd.f32 %v710_v2, %v593_v26 }
 0x1ea   :  { %2179 = vst.msk [vmem:[#allocation3 + $0x48] sm:$0xf] %vm2169_vm12, %v2140_v24  ;;  %v1090_v33 = vadd.f32 %v1050_v8, %v935_v19  ;;  %v255_v34 = vpop.permute.xlu1 %254  ;;  %v551_v41 = vadd.f32 %v515_v63, %v405_v17  ;;  %v855_v15 = vsel %vm473_vm4, %v853_v57, %v854_v12  ;;  %v5567_v26 = vld [vmem:[#allocation3 + $0x40] sm:$0xf]  ;;  %v1578_v17 = vpop.permute.xlu2 %1577 }
 0x1eb   :  { %v1195_v11 = vsel %vm473_vm4, %v1193_v7, %v1194_v44  ;;  %v292_v52 = vmul.f32 %v6572_v39, %v255_v34  ;;  %v438_v6 = vmul.f32 %v6578_v43, %v255_v34  ;;  %v635_v4 = vmul.f32 %v6592_v49, %v255_v34 }
 0x1ec   :  { %v1235_v10 = vadd.f32 %v1195_v11, %v1090_v33  ;;  %v780_v51 = vmul.f32 %v6585_v45, %v255_v34  ;;  %v976_v53 = vmul.f32 %v6587_v46, %v255_v34  ;;  %v1121_v36 = vmul.f32 %v7171_v13, %v255_v34 }
 0x1ed   :  { %v7540_v30 = vld [vmem:[#allocation1] sm:$0xf]  ;;  %v371_v55 = vrot.slane %v292_v52, 1  ;;  %v517_v48 = vrot.slane %v438_v6, 2  ;;  %v712_v60 = vrot.slane %v635_v4, 1  ;;  %v893_v56 = vadd.f32 %v855_v15, %v748_v25 }
 0x1ee   :  { %2569 = vst [vmem:[#allocation1] ss:$4 sm:$0xff] %v2545_v5  ;;  %v1255_v40 = vadd.f32 %v7549_v37, %v1235_v10  ;;  %v857_v28 = vrot.slane %v780_v51, 2  ;;  %v1052_v61 = vrot.slane %v976_v53, 1  ;;  %v1197_v19 = vrot.slane %v1121_v36, 2 }
 0x1f0   :  { %v1271_v13 = vmax.f32 %v1255_v40, 0.0 }
 0x1f1   :  { %v142_v1 = vpop.permute.xlu0 %141  ;;  %v6162_v32 = vld [vmem:[#allocation3 + $0x44] sm:$0xf0] }
 0x1f2   :  { %v291_v59 = vmul.f32 %v6572_v39, %v142_v1  ;;  %v437_v5 = vmul.f32 %v6578_v43, %v142_v1  ;;  %v578_v23 = vmul.f32 %v6604_v62, %v142_v1  ;;  %v634_v58 = vmul.f32 %v6592_v49, %v142_v1  ;;  %1340 = vst.msk [vmem:[#allocation2 + $0xe1] sm:$0xff] %vm1276_vm0, %v1271_v13  ;;  %v1576_v14 = vpop.permute.xlu1 %1575 }
 0x1f3   :  { %v779_v0 = vmul.f32 %v6585_v45, %v142_v1  ;;  %v920_v21 = vmul.f32 %v6611_v9, %v142_v1  ;;  %v975_v24 = vmul.f32 %v6587_v46, %v142_v1  ;;  %v1120_v18 = vmul.f32 %v7563_v27, %v142_v1  ;;  %1614 = vst.msk [vmem:[#allocation3 + $0x50] sm:$0xf] %vm1603_vm7, %v1576_v14 }
 0x1f4   :  { %v370_v50 = vrot.slane %v291_v59, 1  ;;  %v516_v16 = vrot.slane %v437_v5, 2  ;;  %v594_v3 = vadd.f32 %v578_v23, %v551_v41  ;;  %v711_v20 = vrot.slane %v634_v58, 1 }
 0x1f5   :  { %v856_v31 = vrot.slane %v779_v0, 2  ;;  %v936_v38 = vadd.f32 %v920_v21, %v893_v56  ;;  %v164_v54 = vmul.f32 %v6589_v47, %v142_v1  ;;  %v1051_v22 = vrot.slane %v975_v24, 1  ;;  %v7568_v63 = vld [vmem:[#allocation1] sm:$0xf]  ;;  %v62_v21 = vld [vmem:[%s8888_s0 + $0x118] sm:$0x3] }
 0x1f6   :  { %v5568_v35 = vor.u32 %v6162_v32, %v5567_v26  ;;  %v713_v2 = vsel %vm327_vm3, %v711_v20, %v712_v60  ;;  %v1196_v44 = vrot.slane %v1120_v18, 2  ;;  %v372_v7 = vsel %vm327_vm3, %v370_v50, %v371_v55  ;;  %2591 = vst [vmem:[#allocation1] sm:$0xff] %v7506_v42  ;;  %v1802_v60 = vpop.permute.xlu2 %1801  ;;  %v1856_v56 = vld [vmem:[#allocation2 + $0xd2] sm:$0xff]  ;;  %v64_v18 = vld [vmem:[%s8888_s0 + $0x128] sm:$0x3] }
 0x1f7   :  { %v858_v8 = vsel %vm473_vm4, %v856_v31, %v857_v28  ;;  %v749_v12 = vadd.f32 %v713_v2, %v594_v3  ;;  %v1053_v25 = vsel %vm327_vm3, %v1051_v22, %v1052_v61  ;;  %v406_v33 = vadd.f32 %v372_v7, %v164_v54  ;;  %v63_v24 = vld [vmem:[%s8888_s0 + $0x120] sm:$0xff]  ;;  %v61_v31 = vld [vmem:[%s8888_s0 + $0x110] sm:$0xff]  ;;  %v2433_v22 = vpop.f32.mrf.mxu0 }
 0x1f8   :  { %2450 = vmatmul.bf16.gmra.mxu0 %v5568_v35  ;;  %v1091_v34 = vadd.f32 %v1053_v25, %v936_v38  ;;  %v518_v41 = vsel %vm473_vm4, %v516_v16, %v517_v48  ;;  %v1198_v11 = vsel %vm473_vm4, %v1196_v44, %v1197_v19  ;;  %v1872_v61 = vpack.c.bf16 %v1856_v56, %v1856_v56  ;;  %v2482_v19 = vpop.f32.mrf.mxu1 }
 0x1f9   :  { %v1465_v57 = vpop.permute.xlu0 %1464  ;;  %v7579_v52 = vadd.f32 %v858_v8, %v749_v12  ;;  %v7581_v6 = vadd.f32 %v518_v41, %v406_v33  ;;  %v1857_v10 = vld [vmem:[#allocation2 + $0xe2] sm:$0xff]  ;;  %v2434_v8 = vadd.f32 %v7480_v29, %v2433_v22 }
 0x1fa   :  { %1502 = vst.msk [vmem:[#allocation3 + $0x58] sm:$0xf] %vm1490_vm5, %v1465_v57  ;;  %v1236_v4 = vadd.f32 %v1198_v11, %v1091_v34  ;;  %v1744_v51 = vld [vmem:[#allocation2 + $0xe1] sm:$0xff]  ;;  %v1873_v55 = vpack.c.bf16 %v1857_v10, %v1857_v10 }
 0x1fb   :  { %1615 = vst.msk [vmem:[#allocation3 + $0x58] sm:$0xf] %vm1603_vm7, %v1578_v17  ;;  %v1631_v53 = vld [vmem:[#allocation2 + $0xe0] sm:$0xff]  ;;  %v1760_v36 = vpack.c.bf16 %v1744_v51, %v1744_v51  ;;  %v2483_v12 = vadd.f32 %v2482_v19, %v2434_v8 }
 0x1fc   :  { %v1256_v1 = vadd.f32 %v7549_v37, %v1236_v4  ;;  %v1647_v15 = vpack.c.bf16 %v1631_v53, %v1631_v53  ;;  %1916 = vrot.lane.b32.xlu2 %v1873_v55, %s6338_s27  ;;  %2228 = vst.msk [vmem:[#allocation3 + $0x54] sm:$0xf] %vm1377_vm6, %v1873_v55 }
 0x1fd   :  { %1803 = vrot.lane.b32.xlu0 %v1760_v36, %s6337_s26  ;;  %v2593_v28 = vld [vmem:[#allocation1 + $0x1] ss:$4 sm:$0xff]  ;;  %v2521_v34 = vmax.f32 %v2483_v12, 0.0 }
 0x1fe   :  { %v1272_v40 = vmax.f32 %v1256_v1, 0.0  ;;  %1690 = vrot.lane.b32.xlu1 %v1647_v15, %s6336_s25  ;;  %1390 = vst.msk [vmem:[#allocation3 + $0x60] sm:$0xf] %vm1377_vm6, %v1647_v15 }
 0x1ff   :  { %2597 = vst [vmem:[#allocation1] ss:$4 sm:$0xff] %v2593_v28  ;;  %v7650_v11 = vpack.c.bf16 %v2521_v34, %v2521_v34  ;;  %v2576_v34 = vunpack.c.l.b16 %v7568_v63 }
 0x200   :  { %1341 = vst.msk [vmem:[#allocation2 + $0xf1] sm:$0xff] %vm1276_vm0, %v1272_v40  ;;  %v7631_v35 = vpop.f32.mrf.mxu1 }
 0x201   :  { %v1689_v48 = vpop.permute.xlu0 %1688  ;;  %v7636_v2 = vpop.f32.mrf.mxu0  ;;  %v2756_v10 = vrot.slane %v7650_v11, 3  ;;  %v7708_v63 = vrot.slane %v2576_v34, 1 }
 0x202   :  { %1727 = vst.msk [vmem:[#allocation3 + $0x50] sm:$0xf] %vm1716_vm8, %v1689_v48 }
 0x203   :  { %1840 = vst.msk [vmem:[#allocation3 + $0x50] sm:$0xf] %vm1829_vm9, %v1802_v60  ;;  %v6163_v50 = vld [vmem:[#allocation3 + $0x54] sm:$0xf] }
 0x204   :  { %2141 = vrot.lane.b32.xlu2 %v1760_v36, %s6340_s29 }
 0x205   :  { %2028 = vrot.lane.b32.xlu0 %v1647_v15, %s6339_s28 }
 0x206   :  { %1914 = vrot.lane.b32.xlu1 %v1872_v61, %s6338_s27  ;;  %v7599_v0 = vld [vmem:[#allocation1] sm:$0xf] }
 0x207   :  { %v1971_v59 = vld [vmem:[#allocation2 + $0xf0] sm:$0xff]  ;;  %2619 = vst [vmem:[#allocation1] sm:$0xff] %v7506_v42 }
 0x208   :  { %v2197_v5 = vld [vmem:[#allocation2 + $0xf2] sm:$0xff]  ;;  %v1987_v23 = vpack.c.bf16 %v1971_v59, %v1971_v59  ;;  %v7638_v57 = vpop.f32.mrf.mxu1 }
 0x209   :  { %v7595_v13 = vpack.c.bf16 %v2197_v5, %v2197_v5  ;;  %v2084_v58 = vld [vmem:[#allocation2 + $0xf1] sm:$0xff]  ;;  %v7641_v7 = vpop.f32.mrf.mxu0 }
 0x20a   :  { %1391 = vst.msk [vmem:[#allocation3 + $0x68] sm:$0xf] %vm1377_vm6, %v1987_v23  ;;  %v2100_v32 = vpack.c.bf16 %v2084_v58, %v2084_v58 }
 0x20b   :  { %2229 = vst.msk [vmem:[#allocation3 + $0x5c] sm:$0xf] %vm1377_vm6, %v7595_v13 }
 0x20c   :  { %259 = vperm.xlu2 %6317, %v62_v21  }
 0x20d   :  { %2143 = vrot.lane.b32.xlu0 %v2100_v32, %s6340_s29 }
 0x20e   :  { %2030 = vrot.lane.b32.xlu1 %v1987_v23, %s6339_s28  ;;  %v2621_v20 = vld [vmem:[#allocation1 + $0x1] ss:$4 sm:$0xff] }
 0x20f   :  { %2625 = vst [vmem:[#allocation1] ss:$4 sm:$0xff] %v2621_v20 }
 0x210   :  { %v7646_v33 = vpop.f32.mrf.mxu1 }
 0x211   :  { %8933 = vst [vmem:[#allocation10_spill] sm:$0xff] %v7646_v33 }
 0x212   :  { %v5577_v16 = vld [vmem:[#allocation3 + $0x58] sm:$0xf0] }
 0x213   :  { %v5580_v3 = vor.u32 %v6163_v50, %v5577_v16 }
 0x214   :  { %1466 = vrot.lane.b32.xlu2 %v1760_v36, %s6334_s30 }
 0x215   :  { %5638 = vmatmul.msk.bf16.gmra.mxu1 %vm1276_vm0, %v5580_v3  ;;  %561 = vperm.xlu0 %6315, %v63_v24  }
 0x216   :  { %146 = vperm.xlu1 %6316, %v61_v31   ;;  %v7616_v38 = vld [vmem:[#allocation1] sm:$0xf] }
 0x217   :  { %2647 = vst [vmem:[#allocation1] sm:$0xff] %v7506_v42 }
 0x218   :  { %v7653_v51 = vpop.f32.mrf.mxu1 }
 0x219   :  { %8935 = vst [vmem:[#allocation8_spill] sm:$0xff] %v7653_v51 }
 0x21c   :  { %1581 = vrot.lane.b32.xlu2 %v7595_v13, %s6335_s12 }
 0x21d   :  { %1468 = vrot.lane.b32.xlu0 %v2100_v32, %s6334_s30 }
 0x21e   :  { %604 = vperm.xlu1 %6316, %v64_v18   ;;  %v2649_v26 = vld [vmem:[#allocation1 + $0x2] ss:$4 sm:$0xff] }
 0x21f   :  { %2653 = vst [vmem:[#allocation1] ss:$4 sm:$0xff] %v2649_v26 }
 0x220   :  { %v7661_v15 = vpop.f32.mrf.mxu1 }
 0x221   :  { %8937 = vst [vmem:[#allocation6_spill] sm:$0xff] %v7661_v15 }
 0x222   :  { %v7648_v41 = vpop.f32.mrf.mxu0 }
 0x223   :  { %8934 = vst [vmem:[#allocation7_spill] sm:$0xff] %v7648_v41 }
 0x224   :  { %1805 = vrot.lane.b32.xlu2 %v2100_v32, %s6337_s26 }
 0x225   :  { %1692 = vrot.lane.b32.xlu0 %v1987_v23, %s6336_s25 }
 0x226   :  { %1579 = vrot.lane.b32.xlu1 %v1873_v55, %s6335_s12  ;;  %v7628_v14 = vld [vmem:[#allocation1] sm:$0xf]  ;;  %v2760_v55 = vsel %vm2542_vm13, %v7650_v11, %v2756_v10 }
 0x227   :  { %2671 = vst [vmem:[#allocation1] sm:$0xff] %v7506_v42 }
 0x228   :  { %v7669_v56 = vpop.f32.mrf.mxu1 }
 0x229   :  { %8939 = vst [vmem:[#allocation11_spill] sm:$0xff] %v7669_v56 }
 0x22a   :  { %v7655_v1 = vpop.f32.mrf.mxu0 }
 0x22b   :  { %8936 = vst [vmem:[#allocation5_spill] sm:$0xff] %v7655_v1 }
 0x22e   :  { %v2673_v54 = vld [vmem:[#allocation1 + $0x2] ss:$4 sm:$0xff] }
 0x22f   :  { %2677 = vst [vmem:[#allocation1] ss:$4 sm:$0xff] %v2673_v54 }
 0x230   :  { %v2500_v50 = vpop.f32.mrf.mxu1 }
 0x236   :  { %v7633_v17 = vld [vmem:[#allocation1] sm:$0xf] }
 0x237   :  { %2698 = vst [vmem:[#allocation1] sm:$0xff] %v7506_v42 }
 0x23e   :  { %v2700_v44 = vld [vmem:[#allocation1 + $0x3] ss:$4 sm:$0xff] }
 0x23f   :  { %2704 = vst [vmem:[#allocation1] ss:$4 sm:$0xff] %v2700_v44 }
 0x246   :  { %v7643_v25 = vld [vmem:[#allocation1] sm:$0xf] }
 0x247   :  { %2725 = vst [vmem:[#allocation1] sm:$0xff] %v7506_v42 }
 0x249   :  { %v7663_v40 = vpop.f32.mrf.mxu0 }
 0x24a   :  { %8938 = vst [vmem:[#allocation9_spill] sm:$0xff] %v7663_v40 }
 0x24e   :  { %v2727_v4 = vld [vmem:[#allocation1 + $0x3] ss:$4 sm:$0xff] }
 0x24f   :  { %2731 = vst [vmem:[#allocation1] ss:$4 sm:$0xff] %v2727_v4 }
 0x251   :  { %v7671_v61 = vpop.f32.mrf.mxu0 }
 0x252   :  { %8940 = vst [vmem:[#allocation12_spill] sm:$0xff] %v7671_v61 }
 0x256   :  { %v1917_v53 = vpop.permute.xlu2 %1916  ;;  %v7659_v42 = vld [vmem:[#allocation1] sm:$0xf] }
 0x257   :  { %2764 = vst [vmem:[#allocation1] ss:$4 sm:$0xff] %v2760_v55 }
 0x25e   :  { %v2142_v36 = vpop.permute.xlu2 %2141  ;;  %v7665_v48 = vld [vmem:[#allocation1] sm:$0xf] }
 0x25f   :  { %2782 = vst [vmem:[#allocation1] ss:$4 sm:$0xff] %v2760_v55 }
 0x266   :  { %v260_v60 = vpop.permute.xlu2 %259  ;;  %v7667_v28 = vld [vmem:[#allocation1] sm:$0xf] }
 0x267   :  { %2803 = vst [vmem:[#allocation1] sm:$0xff] %v7650_v11  ;;  %v7693_v44 = vmul.f32 %v6572_v39, %v260_v60  ;;  %v7696_v8 = vmul.f32 %v6578_v43, %v260_v60  ;;  %v637_v12 = vmul.f32 %v6592_v49, %v260_v60  ;;  %v782_v10 = vmul.f32 %v6585_v45, %v260_v60 }
 0x268   :  { %v1123_v55 = vmul.f32 %v7563_v27, %v260_v60 }
 0x26e   :  { %v1467_v59 = vpop.permute.xlu2 %1466  ;;  %v2805_v58 = vld [vmem:[#allocation1 + $0x1] ss:$4 sm:$0xff] }
 0x26f   :  { %v1804_v5 = vpop.permute.xlu0 %1803  ;;  %1503 = vst.msk [vmem:[#allocation3 + $0x60] sm:$0xf] %vm1490_vm5, %v1467_v59 }
 0x270   :  { %v1691_v23 = vpop.permute.xlu1 %1690  ;;  %2809 = vst [vmem:[#allocation1] ss:$4 sm:$0xff] %v2805_v58  ;;  %v715_v58 = vrot.slane %v637_v12, 1 }
 0x271   :  { %1728 = vst.msk [vmem:[#allocation3 + $0x58] sm:$0xf] %vm1716_vm8, %v1691_v23 }
 0x272   :  { %1841 = vst.msk [vmem:[#allocation3 + $0x58] sm:$0xf] %vm1829_vm9, %v1804_v5 }
 0x273   :  { %1954 = vst.msk [vmem:[#allocation3 + $0x58] sm:$0xf] %vm1942_vm10, %v1917_v53  ;;  %v978_v53 = vmul.f32 %v6587_v46, %v260_v60 }
 0x275   :  { %v2451_v21 = vpop.f32.mrf.mxu0 }
 0x276   :  { %v2452_v32 = vadd.f32 %v7480_v29, %v2451_v21 }
 0x277   :  { %v2029_v3 = vpop.permute.xlu0 %2028  ;;  %v7684_v18 = vld [vmem:[#allocation1] sm:$0xf] }
 0x278   :  { %v2501_v16 = vadd.f32 %v2500_v50, %v2452_v32  ;;  %v1915_v20 = vpop.permute.xlu1 %1914  ;;  %2830 = vst [vmem:[#allocation1] sm:$0xff] %v7650_v11  ;;  %v860_v32 = vrot.slane %v782_v10, 2  ;;  %v1055_v50 = vrot.slane %v978_v53, 1 }
 0x279   :  { %1953 = vst.msk [vmem:[#allocation3 + $0x50] sm:$0xf] %vm1942_vm10, %v1915_v20 }
 0x27a   :  { %v2528_v24 = vmax.f32 %v2501_v16, 0.0  ;;  %2067 = vst.msk [vmem:[#allocation3 + $0x50] sm:$0xf] %vm2056_vm11, %v2029_v3  ;;  %v1200_v16 = vrot.slane %v1123_v55, 2 }
 0x27b   :  { %2180 = vst.msk [vmem:[#allocation3 + $0x50] sm:$0xf] %vm2169_vm12, %v2142_v36 }
 0x27c   :  { %v7680_v31 = vpack.c.bf16 %v2528_v24, %v2528_v24 }
 0x27e   :  { %v2541_v26 = vrot.slane %v7680_v31, 3 }
 0x27f   :  { %v2144_v54 = vpop.permute.xlu0 %2143  ;;  %v2832_v4 = vld [vmem:[#allocation1 + $0x1] ss:$4 sm:$0xff] }
 0x280   :  { %v2548_v19 = vsel %vm2542_vm13, %v7680_v31, %v2541_v26  ;;  %v2031_v22 = vpop.permute.xlu1 %2030  ;;  %2836 = vst [vmem:[#allocation1] ss:$4 sm:$0xff] %v2832_v4 }
 0x281   :  { %2553 = vst [vmem:[#allocation1 + $0x20] ss:$4 sm:$0xff] %v2548_v19 }
 0x282   :  { %2068 = vst.msk [vmem:[#allocation3 + $0x58] sm:$0xf] %vm2056_vm11, %v2031_v22 }
 0x283   :  { %2181 = vst.msk [vmem:[#allocation3 + $0x58] sm:$0xf] %vm2169_vm12, %v2144_v54 }
 0x287   :  { %v7706_v21 = vpop.permute.xlu0 %561  ;;  %v7732_v5 = vld [vmem:[#allocation1] sm:$0xf] }
 0x288   :  { %v2554_v36 = vld [vmem:[#allocation1 + $0x20] sm:$0xf]  ;;  %v147_v3 = vpop.permute.xlu1 %146  ;;  %v7712_v60 = vmul.f32 %v6592_v49, %v7706_v21  ;;  %v7719_v54 = vmul.f32 %v6587_v46, %v7706_v21  ;;  %v7723_v12 = vmul.f32 %v6585_v45, %v7706_v21  ;;  %v922_v34 = vmul.f32 %v6611_v9, %v7706_v21  ;;  %2857 = vst [vmem:[#allocation1] sm:$0xff] %v7650_v11 }
 0x289   :  { %2573 = vst [vmem:[#allocation1 + $0x20] ss:$4 sm:$0xff] %v2548_v19  ;;  %v921_v24 = vmul.f32 %v6611_v9, %v147_v3  ;;  %v977_v20 = vmul.f32 %v6587_v46, %v147_v3  ;;  %v1122_v26 = vmul.f32 %v7563_v27, %v147_v3  ;;  %v5575_v19 = vld [vmem:[#allocation3 + $0x50] sm:$0xf]  ;;  %v2557_v10 = vunpack.c.l.b16 %v2554_v36 }
 0x28a   :  { %v6164_v22 = vld [vmem:[#allocation3 + $0x54] sm:$0xf0]  ;;  %v7730_v23 = vmul.f32 %v7563_v27, %v7706_v21  ;;  %v717_v56 = vrot.slane %v7712_v60, 1  ;;  %v579_v61 = vmul.f32 %v6604_v62, %v147_v3  ;;  %v636_v15 = vmul.f32 %v6592_v49, %v147_v3 }
 0x28b   :  { %v5576_v4 = vor.u32 %v6164_v22, %v5575_v19  ;;  %v937_v53 = vadd.f32 %v921_v24, %v7579_v52  ;;  %v1054_v55 = vrot.slane %v977_v20, 1  ;;  %v1199_v59 = vrot.slane %v1122_v26, 2 }
 0x28c   :  { %v781_v36 = vmul.f32 %v6585_v45, %v147_v3  ;;  %v1057_v20 = vrot.slane %v7719_v54, 1  ;;  %v293_v26 = vmul.f32 %v6572_v39, %v147_v3  ;;  %v714_v22 = vrot.slane %v636_v15, 1 }
 0x28d   :  { %2455 = vmatmul.bf16.gmra.mxu0 %v5576_v4  ;;  %v1056_v52 = vsel %vm327_vm3, %v1054_v55, %v1055_v50  ;;  %v1201_v24 = vsel %vm473_vm4, %v1199_v59, %v1200_v16  ;;  %v595_v4 = vadd.f32 %v579_v61, %v7581_v6  ;;  %v165_v1 = vmul.f32 %v6589_v47, %v147_v3  ;;  %v1582_v59 = vpop.permute.xlu2 %1581 }
 0x28e   :  { %v1092_v19 = vadd.f32 %v1056_v52, %v937_v53  ;;  %v859_v60 = vrot.slane %v781_v36, 2  ;;  %v373_v33 = vrot.slane %v293_v26, 1  ;;  %v439_v41 = vmul.f32 %v6578_v43, %v147_v3 }
 0x28f   :  { %v1469_v51 = vpop.permute.xlu0 %1468  ;;  %v716_v54 = vsel %vm327_vm3, %v714_v22, %v715_v58  ;;  %v2558_v6 = vrot.slane %v2557_v10, 7  ;;  %v8941_v58 = vrot.slane %v7693_v44, 1  ;;  %v2859_v52 = vld [vmem:[#allocation1 + $0x2] ss:$4 sm:$0xff] }
 0x290   :  { %v2574_v40 = vld [vmem:[#allocation1 + $0x20] sm:$0xf]  ;;  %v1237_v16 = vadd.f32 %v1201_v24, %v1092_v19  ;;  %v861_v39 = vsel %vm473_vm4, %v859_v60, %v860_v32  ;;  %v605_v15 = vpop.permute.xlu1 %604  ;;  %1504 = vst.msk [vmem:[#allocation3 + $0x68] sm:$0xf] %vm1490_vm5, %v1469_v51  ;;  %v750_v53 = vadd.f32 %v716_v54, %v595_v4  ;;  %v519_v55 = vrot.slane %v439_v41, 2 }
 0x291   :  { %2594 = vst [vmem:[#allocation1 + $0x20] sm:$0xff] %v7680_v31  ;;  %v2577_v50 = vunpack.c.l.b16 %v2574_v40  ;;  %v639_v61 = vmul.f32 %v6592_v49, %v605_v15  ;;  %v784_v47 = vmul.f32 %v6585_v45, %v605_v15  ;;  %v980_v43 = vmul.f32 %v6587_v46, %v605_v15 }
 0x292   :  { %1617 = vst.msk [vmem:[#allocation3 + $0x68] sm:$0xf] %vm1603_vm7, %v1582_v59  ;;  %v1257_v40 = vadd.f32 %v7549_v37, %v1237_v16  ;;  %v1125_v3 = vmul.f32 %v7563_v27, %v605_v15  ;;  %v375_v32 = vsel %vm327_vm3, %v373_v33, %v8941_v58  ;;  %v895_v36 = vadd.f32 %v861_v39, %v750_v53 }
 0x293   :  { %v718_v51 = vrot.slane %v639_v61, 1  ;;  %v863_v10 = vrot.slane %v784_v47, 2  ;;  %v1058_v49 = vrot.slane %v980_v43, 1  ;;  %v407_v26 = vadd.f32 %v375_v32, %v165_v1  ;;  %2863 = vst [vmem:[#allocation1] ss:$4 sm:$0xff] %v2859_v52 }
 0x294   :  { %v1273_v24 = vmax.f32 %v1257_v40, 0.0  ;;  %v1203_v45 = vrot.slane %v1125_v3, 2  ;;  %v8942_v19 = vrot.slane %v7696_v8, 2  ;;  %v862_v60 = vrot.slane %v7723_v12, 2 }
 0x295   :  { %v938_v4 = vadd.f32 %v922_v34, %v895_v36  ;;  %v1059_v44 = vsel %vm327_vm3, %v1057_v20, %v1058_v49  ;;  %v7766_v33 = vsel %vm2559_vm14, %v2577_v50, %v7708_v63  ;;  %v580_v41 = vmul.f32 %v6604_v62, %v7706_v21  ;;  %v1806_v61 = vpop.permute.xlu2 %1805 }
 0x296   :  { %v521_v22 = vsel %vm473_vm4, %v519_v55, %v8942_v19  ;;  %1342 = vst.msk [vmem:[#allocation2 + $0x101] sm:$0xff] %vm1276_vm0, %v1273_v24  ;;  %v1202_v1 = vrot.slane %v7730_v23, 2  ;;  %v8943_v16 = vunpack.c.l.b16 %v7540_v30  ;;  %v719_v20 = vsel %vm327_vm3, %v717_v56, %v718_v51 }
 0x297   :  { %v553_v8 = vadd.f32 %v521_v22, %v407_v26  ;;  %v1093_v34 = vadd.f32 %v1059_v44, %v938_v4  ;;  %v1693_v54 = vpop.permute.xlu0 %1692  ;;  %v864_v63 = vsel %vm473_vm4, %v862_v60, %v863_v10  ;;  %v2604_v36 = vunpack.c.l.b16 %v7599_v0  ;;  %v66_v44 = vld [vmem:[%s8888_s0 + $0x138] sm:$0x3] }
 0x298   :  { %v2596_v59 = vld [vmem:[#allocation1 + $0x21] ss:$4 sm:$0xff]  ;;  %v2560_v12 = vsel %vm2559_vm14, %v2558_v6, %v8943_v16  ;;  %v1204_v39 = vsel %vm473_vm4, %v1202_v1, %v1203_v45  ;;  %v1580_v15 = vpop.permute.xlu1 %1579  ;;  %v2632_v1 = vunpack.c.l.b16 %v7616_v38 }
 0x299   :  { %2601 = vst [vmem:[#allocation1 + $0x20] ss:$4 sm:$0xff] %v2596_v59  ;;  %v2561_v50 = vpack.c.b16 %v2560_v12, %v2560_v12  ;;  %v596_v62 = vadd.f32 %v580_v41, %v553_v8  ;;  %v1238_v21 = vadd.f32 %v1204_v39, %v1093_v34  ;;  %v65_v38 = vld [vmem:[%s8888_s0 + $0x130] sm:$0xff] }
 0x29a   :  { %1616 = vst.msk [vmem:[#allocation3 + $0x60] sm:$0xf] %vm1603_vm7, %v1580_v15  ;;  %v7782_v56 = vld [vmem:[#allocation1] sm:$0xf]  ;;  %v2634_v34 = vrot.slane %v2632_v1, 1 }
 0x29b   :  { %v2562_v23 = vrot.slane %v2561_v50, 3  ;;  %1729 = vst.msk [vmem:[#allocation3 + $0x60] sm:$0xf] %vm1716_vm8, %v1693_v54  ;;  %v751_v30 = vadd.f32 %v719_v20, %v596_v62  ;;  %v1258_v6 = vadd.f32 %v7549_v37, %v1238_v21 }
 0x29c   :  { %1842 = vst.msk [vmem:[#allocation3 + $0x60] sm:$0xf] %vm1829_vm9, %v1806_v61 }
 0x29d   :  { %v2565_v53 = vsel %vm2542_vm13, %v2561_v50, %v2562_v23  ;;  %v7785_v47 = vadd.f32 %v864_v63, %v751_v30  ;;  %2881 = vst [vmem:[#allocation1] sm:$0xff] %v7650_v11  ;;  %v1274_v43 = vmax.f32 %v1258_v6, 0.0  ;;  %v1859_v40 = vld [vmem:[#allocation2 + $0x102] sm:$0xff]  ;;  %v2437_v63 = vadd.f32 %v7480_v29, %v7636_v2 }
 0x29e   :  { %v1746_v3 = vld [vmem:[#allocation2 + $0x101] sm:$0xff]  ;;  %2568 = vst.msk [vmem:[#allocation4] sm:$0x1] %vm2567_vm15, %v2565_v53  ;;  %v1875_v32 = vpack.c.bf16 %v1859_v40, %v1859_v40 }
 0x29f   :  { %v1633_v58 = vld [vmem:[#allocation2 + $0x100] sm:$0xff]  ;;  %v1762_v55 = vpack.c.bf16 %v1746_v3, %v1746_v3  ;;  %1343 = vst.msk [vmem:[#allocation2 + $0x111] sm:$0xff] %vm1276_vm0, %v1274_v43  ;;  %v2486_v39 = vadd.f32 %v7631_v35, %v2437_v63  ;;  %v2660_v35 = vunpack.c.l.b16 %v7628_v14 }
 0x2a0   :  { %v1649_v51 = vpack.c.bf16 %v1633_v58, %v1633_v58  ;;  %v2602_v37 = vld [vmem:[#allocation1 + $0x20] sm:$0xf]  ;;  %1920 = vrot.lane.b32.xlu2 %v1875_v32, %s6338_s27  ;;  %2230 = vst.msk [vmem:[#allocation3 + $0x64] sm:$0xf] %vm1377_vm6, %v1875_v32 }
 0x2a1   :  { %v2605_v10 = vunpack.c.l.b16 %v2602_v37  ;;  %1807 = vrot.lane.b32.xlu0 %v1762_v55, %s6337_s26  ;;  %2622 = vst [vmem:[#allocation1 + $0x20] sm:$0xff] %v7680_v31  ;;  %v2522_v62 = vmax.f32 %v2486_v39, 0.0 }
 0x2a2   :  { %1694 = vrot.lane.b32.xlu1 %v1649_v51, %s6336_s25  ;;  %1392 = vst.msk [vmem:[#allocation3 + $0x70] sm:$0xf] %vm1377_vm6, %v1649_v51 }
 0x2a3   :  { %v2606_v49 = vrot.slane %v2605_v10, 7  ;;  %v7837_v21 = vpack.c.bf16 %v2522_v62, %v2522_v62 }
 0x2a4   :  { %v2883_v24 = vld [vmem:[#allocation1 + $0x2] ss:$4 sm:$0xff] }
 0x2a5   :  { %v7798_v52 = vsel %vm2559_vm14, %v2606_v49, %v2604_v36  ;;  %2887 = vst [vmem:[#allocation1] ss:$4 sm:$0xff] %v2883_v24  ;;  %v2966_v6 = vrot.slane %v7837_v21, 3  ;;  %v2453_v24 = vpop.f32.mrf.mxu0 }
 0x2a6   :  { %v1973_v45 = vld [vmem:[#allocation2 + $0x110] sm:$0xff] }
 0x2a7   :  { %v2199_v26 = vld [vmem:[#allocation2 + $0x112] sm:$0xff]  ;;  %v1989_v19 = vpack.c.bf16 %v1973_v45, %v1973_v45  ;;  %v2970_v58 = vsel %vm2542_vm13, %v7837_v21, %v2966_v6 }
 0x2a8   :  { %v7800_v22 = vpack.c.bf16 %v2199_v26, %v2199_v26  ;;  %2145 = vrot.lane.b32.xlu2 %v1762_v55, %s6340_s29  ;;  %v2624_v0 = vld [vmem:[#allocation1 + $0x21] ss:$4 sm:$0xff]  ;;  %v2502_v26 = vpop.f32.mrf.mxu1 }
 0x2a9   :  { %2032 = vrot.lane.b32.xlu0 %v1649_v51, %s6339_s28  ;;  %1393 = vst.msk [vmem:[#allocation3 + $0x78] sm:$0xf] %vm1377_vm6, %v1989_v19  ;;  %v2086_v60 = vld [vmem:[#allocation2 + $0x111] sm:$0xff] }
 0x2aa   :  { %1918 = vrot.lane.b32.xlu1 %v7595_v13, %s6338_s27  ;;  %2231 = vst.msk [vmem:[#allocation3 + $0x6c] sm:$0xf] %vm1377_vm6, %v7800_v22  ;;  %v2102_v41 = vpack.c.bf16 %v2086_v60, %v2086_v60  ;;  %v6165_v13 = vld [vmem:[#allocation3 + $0x64] sm:$0xf] }
 0x2ab   :  { %2629 = vst [vmem:[#allocation1 + $0x20] ss:$4 sm:$0xff] %v2624_v0 }
 0x2ac   :  { %v7809_v4 = vld [vmem:[#allocation1] sm:$0xf] }
 0x2ad   :  { %2908 = vst [vmem:[#allocation1] sm:$0xff] %v7650_v11 }
 0x2b0   :  { %947 = vperm.xlu2 %6317, %v66_v44  }
 0x2b1   :  { %2147 = vrot.lane.b32.xlu0 %v2102_v41, %s6340_s29  ;;  %v5585_v8 = vld [vmem:[#allocation3 + $0x68] sm:$0xf0] }
 0x2b2   :  { %2034 = vrot.lane.b32.xlu1 %v1989_v19, %s6339_s28  ;;  %v5588_v59 = vor.u32 %v6165_v13, %v5585_v8  ;;  %v2630_v16 = vld [vmem:[#allocation1 + $0x20] sm:$0xf] }
 0x2b3   :  { %v2633_v12 = vunpack.c.l.b16 %v2630_v16  ;;  %2650 = vst [vmem:[#allocation1 + $0x20] sm:$0xff] %v7680_v31 }
 0x2b4   :  { %5639 = vmatmul.msk.bf16.gmra.mxu1 %vm1276_vm0, %v5588_v59  ;;  %v2910_v54 = vld [vmem:[#allocation1 + $0x3] ss:$4 sm:$0xff] }
 0x2b5   :  { %2914 = vst [vmem:[#allocation1] ss:$4 sm:$0xff] %v2910_v54  ;;  %v7821_v20 = vsel %vm2559_vm14, %v2633_v12, %v2634_v34  ;;  %v2738_v12 = vunpack.c.l.b16 %v7659_v42  ;;  %v2771_v42 = vunpack.c.l.b16 %v7665_v48 }
 0x2b8   :  { %1583 = vrot.lane.b32.xlu2 %v1875_v32, %s6335_s12  ;;  %v2684_v32 = vunpack.c.l.b16 %v7633_v17  ;;  %v2454_v17 = vadd.f32 %v7480_v29, %v2453_v24 }
 0x2b9   :  { %1470 = vrot.lane.b32.xlu0 %v1762_v55, %s6334_s30 }
 0x2ba   :  { %904 = vperm.xlu1 %6316, %v65_v38   ;;  %v2652_v50 = vld [vmem:[#allocation1 + $0x22] ss:$4 sm:$0xff]  ;;  %v2686_v37 = vrot.slane %v2684_v32, 1  ;;  %v2740_v38 = vrot.slane %v2738_v12, 1 }
 0x2bb   :  { %2657 = vst [vmem:[#allocation1 + $0x20] ss:$4 sm:$0xff] %v2652_v50 }
 0x2bc   :  { %v7831_v15 = vld [vmem:[#allocation1] sm:$0xf] }
 0x2bd   :  { %2935 = vst [vmem:[#allocation1] sm:$0xff] %v7650_v11 }
 0x2c1   :  { %1585 = vrot.lane.b32.xlu0 %v7800_v22, %s6335_s12 }
 0x2c2   :  { %1472 = vrot.lane.b32.xlu1 %v2102_v41, %s6334_s30  ;;  %v2658_v2 = vld [vmem:[#allocation1 + $0x20] sm:$0xf] }
 0x2c3   :  { %2674 = vst [vmem:[#allocation1 + $0x20] sm:$0xff] %v7680_v31  ;;  %v2661_v61 = vunpack.c.l.b16 %v2658_v2 }
 0x2c4   :  { %v2937_v23 = vld [vmem:[#allocation1 + $0x3] ss:$4 sm:$0xff] }
 0x2c5   :  { %2941 = vst [vmem:[#allocation1] ss:$4 sm:$0xff] %v2937_v23  ;;  %v2662_v30 = vrot.slane %v2661_v61, 7  ;;  %v2789_v61 = vunpack.c.l.b16 %v7667_v28 }
 0x2c7   :  { %v2663_v11 = vsel %vm2559_vm14, %v2662_v30, %v2660_v35 }
 0x2c8   :  { %v2664_v53 = vpack.c.b16 %v2663_v11, %v2663_v11 }
 0x2c9   :  { %1809 = vrot.lane.b32.xlu0 %v2102_v41, %s6337_s26  ;;  %v2711_v41 = vunpack.c.l.b16 %v7643_v25 }
 0x2ca   :  { %1696 = vrot.lane.b32.xlu1 %v1989_v19, %s6336_s25  ;;  %v2676_v43 = vld [vmem:[#allocation1 + $0x22] ss:$4 sm:$0xff]  ;;  %v2665_v40 = vrot.slane %v2664_v53, 3  ;;  %v2503_v19 = vadd.f32 %v2502_v26, %v2454_v17  ;;  %v2816_v17 = vunpack.c.l.b16 %v7684_v18  ;;  %v2843_v18 = vunpack.c.l.b16 %v7732_v5 }
 0x2cb   :  { %2681 = vst [vmem:[#allocation1 + $0x20] ss:$4 sm:$0xff] %v2676_v43  ;;  %v2791_v43 = vrot.slane %v2789_v61, 1 }
 0x2cc   :  { %v7845_v3 = vld [vmem:[#allocation1] sm:$0xf]  ;;  %v2668_v14 = vsel %vm2542_vm13, %v2664_v53, %v2665_v40  ;;  %v2529_v13 = vmax.f32 %v2503_v19, 0.0 }
 0x2cd   :  { %2974 = vst [vmem:[#allocation1] ss:$4 sm:$0xff] %v2970_v58 }
 0x2ce   :  { %2670 = vst.msk [vmem:[#allocation4 + $0x1] sm:$0x1] %vm2567_vm15, %v2668_v14  ;;  %v7867_v59 = vpack.c.bf16 %v2529_v13, %v2529_v13 }
 0x2d2   :  { %v2682_v55 = vld [vmem:[#allocation1 + $0x20] sm:$0xf] }
 0x2d3   :  { %v2685_v51 = vunpack.c.l.b16 %v2682_v55  ;;  %2701 = vst [vmem:[#allocation1 + $0x20] sm:$0xff] %v7680_v31 }
 0x2d4   :  { %v7853_v10 = vld [vmem:[#allocation1] sm:$0xf] }
 0x2d5   :  { %2992 = vst [vmem:[#allocation1] ss:$4 sm:$0xff] %v2970_v58  ;;  %v7856_v36 = vsel %vm2559_vm14, %v2685_v51, %v2686_v37 }
 0x2da   :  { %v2703_v49 = vld [vmem:[#allocation1 + $0x23] ss:$4 sm:$0xff] }
 0x2db   :  { %2708 = vst [vmem:[#allocation1 + $0x20] ss:$4 sm:$0xff] %v2703_v49 }
 0x2dc   :  { %v7858_v45 = vld [vmem:[#allocation1] sm:$0xf] }
 0x2dd   :  { %3013 = vst [vmem:[#allocation1] sm:$0xff] %v7837_v21 }
 0x2e2   :  { %v2709_v0 = vld [vmem:[#allocation1 + $0x20] sm:$0xf] }
 0x2e3   :  { %2728 = vst [vmem:[#allocation1 + $0x20] sm:$0xff] %v7680_v31  ;;  %v2712_v60 = vunpack.c.l.b16 %v2709_v0  ;;  %v2757_v31 = vrot.slane %v7867_v59, 3 }
 0x2e4   :  { %v3015_v44 = vld [vmem:[#allocation1 + $0x1] ss:$4 sm:$0xff] }
 0x2e5   :  { %3019 = vst [vmem:[#allocation1] ss:$4 sm:$0xff] %v3015_v44  ;;  %v2713_v1 = vrot.slane %v2712_v60, 7  ;;  %v2763_v25 = vsel %vm2542_vm13, %v7867_v59, %v2757_v31 }
 0x2e7   :  { %v7865_v8 = vsel %vm2559_vm14, %v2713_v1, %v2711_v41 }
 0x2ea   :  { %v2730_v16 = vld [vmem:[#allocation1 + $0x23] ss:$4 sm:$0xff] }
 0x2eb   :  { %2735 = vst [vmem:[#allocation1 + $0x20] ss:$4 sm:$0xff] %v2730_v16 }
 0x2ec   :  { %v7869_v29 = vld [vmem:[#allocation1] sm:$0xf] }
 0x2ed   :  { %3040 = vst [vmem:[#allocation1] sm:$0xff] %v7837_v21 }
 0x2f2   :  { %v2736_v34 = vld [vmem:[#allocation1 + $0x20] sm:$0xf] }
 0x2f3   :  { %2768 = vst [vmem:[#allocation1 + $0x20] ss:$4 sm:$0xff] %v2763_v25  ;;  %v2739_v54 = vunpack.c.l.b16 %v2736_v34  ;;  %v2845_v34 = vrot.slane %v2843_v18, 1 }
 0x2f4   :  { %v3042_v63 = vld [vmem:[#allocation1 + $0x1] ss:$4 sm:$0xff] }
 0x2f5   :  { %3046 = vst [vmem:[#allocation1] ss:$4 sm:$0xff] %v3042_v63  ;;  %v7877_v50 = vsel %vm2559_vm14, %v2739_v54, %v2740_v38 }
 0x2fa   :  { %v2769_v39 = vld [vmem:[#allocation1 + $0x20] sm:$0xf]  ;;  %v1921_v32 = vpop.permute.xlu2 %1920 }
 0x2fb   :  { %2786 = vst [vmem:[#allocation1 + $0x20] ss:$4 sm:$0xff] %v2763_v25  ;;  %v2772_v2 = vunpack.c.l.b16 %v2769_v39 }
 0x2fc   :  { %v7879_v62 = vld [vmem:[#allocation1] sm:$0xf] }
 0x2fd   :  { %3067 = vst [vmem:[#allocation1] sm:$0xff] %v7837_v21  ;;  %v2773_v23 = vrot.slane %v2772_v2, 7  ;;  %v7919_v2 = vld [vmem:[%s8892_s4] ss:$0 sm:$0xff] }
 0x2ff   :  { %v2774_v35 = vsel %vm2559_vm14, %v2773_v23, %v2771_v42  ;;  %v2439_v42 = vadd.f32 %v7919_v2, %v7641_v7 }
 0x300   :  { %v2775_v30 = vpack.c.b16 %v2774_v35, %v2774_v35 }
 0x302   :  { %v2787_v6 = vld [vmem:[#allocation1 + $0x20] sm:$0xf]  ;;  %v2776_v11 = vrot.slane %v2775_v30, 3  ;;  %v2146_v19 = vpop.permute.xlu2 %2145 }
 0x303   :  { %2806 = vst [vmem:[#allocation1 + $0x20] sm:$0xff] %v7867_v59  ;;  %v2790_v53 = vunpack.c.l.b16 %v2787_v6 }
 0x304   :  { %v3069_v40 = vld [vmem:[#allocation1 + $0x2] ss:$4 sm:$0xff]  ;;  %v2779_v58 = vsel %vm2542_vm13, %v2775_v30, %v2776_v11 }
 0x305   :  { %3073 = vst [vmem:[#allocation1] ss:$4 sm:$0xff] %v3069_v40  ;;  %v7888_v14 = vsel %vm2559_vm14, %v2790_v53, %v2791_v43  ;;  %v2201_v40 = vld [vmem:[#allocation2 + $0x132] sm:$0xff] }
 0x306   :  { %2781 = vst.msk [vmem:[#allocation4 + $0x2] sm:$0x1] %vm2567_vm15, %v2779_v58 }
 0x30a   :  { %v2808_v48 = vld [vmem:[#allocation1 + $0x21] ss:$4 sm:$0xff]  ;;  %v948_v13 = vpop.permute.xlu2 %947 }
 0x30b   :  { %2813 = vst [vmem:[#allocation1 + $0x20] ss:$4 sm:$0xff] %v2808_v48  ;;  %v982_v5 = vmul.f32 %v6587_v46, %v948_v13  ;;  %v1127_v30 = vmul.f32 %v7563_v27, %v948_v13  ;;  %v2217_v48 = vpack.c.bf16 %v2201_v40, %v2201_v40  ;;  %v2870_v13 = vunpack.c.l.b16 %v7782_v56 }
 0x30c   :  { %v7891_v28 = vld [vmem:[#allocation1] sm:$0xf] }
 0x30d   :  { %3091 = vst [vmem:[#allocation1] sm:$0xff] %v7837_v21  ;;  %v1061_v7 = vrot.slane %v982_v5, 1 }
 0x30e   :  { %2233 = vst.msk [vmem:[#allocation3 + $0x7c] sm:$0xf] %vm1377_vm6, %v2217_v48 }
 0x312   :  { %v2814_v51 = vld [vmem:[#allocation1 + $0x20] sm:$0xf]  ;;  %v1584_v23 = vpop.permute.xlu2 %1583 }
 0x313   :  { %v1808_v55 = vpop.permute.xlu0 %1807  ;;  %v2817_v49 = vunpack.c.l.b16 %v2814_v51  ;;  %2833 = vst [vmem:[#allocation1 + $0x20] sm:$0xff] %v7867_v59 }
 0x314   :  { %v1695_v37 = vpop.permute.xlu1 %1694  ;;  %v3093_v24 = vld [vmem:[#allocation1 + $0x2] ss:$4 sm:$0xff] }
 0x315   :  { %1730 = vst.msk [vmem:[#allocation3 + $0x68] sm:$0xf] %vm1716_vm8, %v1695_v37  ;;  %v2818_v26 = vrot.slane %v2817_v49, 7 }
 0x316   :  { %1843 = vst.msk [vmem:[#allocation3 + $0x68] sm:$0xf] %vm1829_vm9, %v1808_v55 }
 0x317   :  { %1956 = vst.msk [vmem:[#allocation3 + $0x68] sm:$0xf] %vm1942_vm10, %v1921_v32  ;;  %v7900_v0 = vsel %vm2559_vm14, %v2818_v26, %v2816_v17 }
 0x318   :  { %3097 = vst [vmem:[#allocation1] ss:$4 sm:$0xff] %v3093_v24 }
 0x31a   :  { %v2835_v44 = vld [vmem:[#allocation1 + $0x21] ss:$4 sm:$0xff] }
 0x31b   :  { %v2033_v60 = vpop.permute.xlu0 %2032  ;;  %2840 = vst [vmem:[#allocation1 + $0x20] ss:$4 sm:$0xff] %v2835_v44 }
 0x31c   :  { %v1919_v41 = vpop.permute.xlu1 %1918 }
 0x31d   :  { %1955 = vst.msk [vmem:[#allocation3 + $0x60] sm:$0xf] %vm1942_vm10, %v1919_v41 }
 0x31e   :  { %2069 = vst.msk [vmem:[#allocation3 + $0x60] sm:$0xf] %vm2056_vm11, %v2033_v60 }
 0x31f   :  { %2182 = vst.msk [vmem:[#allocation3 + $0x60] sm:$0xf] %vm2169_vm12, %v2146_v19  ;;  %v7905_v1 = vld [vmem:[#allocation1] sm:$0xf] }
 0x320   :  { %3118 = vst [vmem:[#allocation1] sm:$0xff] %v7837_v21 }
 0x322   :  { %v2841_v31 = vld [vmem:[#allocation1 + $0x20] sm:$0xf] }
 0x323   :  { %v2148_v16 = vpop.permute.xlu0 %2147  ;;  %2860 = vst [vmem:[#allocation1 + $0x20] sm:$0xff] %v7867_v59  ;;  %v2844_v25 = vunpack.c.l.b16 %v2841_v31 }
 0x324   :  { %v2035_v12 = vpop.permute.xlu1 %2034 }
 0x325   :  { %2070 = vst.msk [vmem:[#allocation3 + $0x68] sm:$0xf] %vm2056_vm11, %v2035_v12  ;;  %v7913_v54 = vsel %vm2559_vm14, %v2844_v25, %v2845_v34 }
 0x326   :  { %2183 = vst.msk [vmem:[#allocation3 + $0x68] sm:$0xf] %vm2169_vm12, %v2148_v16  ;;  %v5583_v35 = vld [vmem:[#allocation3 + $0x60] sm:$0xf] }
 0x327   :  { %v3120_v38 = vld [vmem:[#allocation1 + $0x3] ss:$4 sm:$0xff] }
 0x328   :  { %3124 = vst [vmem:[#allocation1] ss:$4 sm:$0xff] %v3120_v38 }
 0x32a   :  { %v2862_v39 = vld [vmem:[#allocation1 + $0x22] ss:$4 sm:$0xff] }
 0x32b   :  { %v1471_v63 = vpop.permute.xlu0 %1470  ;;  %2867 = vst [vmem:[#allocation1 + $0x20] ss:$4 sm:$0xff] %v2862_v39 }
 0x32c   :  { %v905_v61 = vpop.permute.xlu1 %904  ;;  %1505 = vst.msk [vmem:[#allocation3 + $0x70] sm:$0xf] %vm1490_vm5, %v1471_v63 }
 0x32d   :  { %v923_v6 = vmul.f32 %v6611_v9, %v905_v61  ;;  %v981_v11 = vmul.f32 %v6587_v46, %v905_v61  ;;  %v1126_v53 = vmul.f32 %v7563_v27, %v905_v61  ;;  %1618 = vst.msk [vmem:[#allocation3 + $0x70] sm:$0xf] %vm1603_vm7, %v1584_v23  ;;  %v6166_v43 = vld [vmem:[#allocation3 + $0x64] sm:$0xf0]  ;;  %v2488_v9 = vadd.f32 %v7638_v57, %v2439_v42  ;;  %v6330_v57 = vld [vmem:[%s8890_s2] ss:$0 sm:$0xff] }
 0x32e   :  { %v5584_v58 = vor.u32 %v6166_v43, %v5583_v35  ;;  %v1206_v46 = vrot.slane %v1127_v30, 2 }
 0x32f   :  { %v939_v32 = vadd.f32 %v923_v6, %v7785_v47  ;;  %v1060_v55 = vrot.slane %v981_v11, 1  ;;  %v1205_v51 = vrot.slane %v1126_v53, 2  ;;  %v7930_v37 = vld [vmem:[#allocation1] sm:$0xf]  ;;  %v2523_v26 = vmax.f32 %v2488_v9, 0.0 }
 0x330   :  { %2460 = vmatmul.bf16.gmra.mxu0 %v5584_v58  ;;  %3145 = vst [vmem:[#allocation1] sm:$0xff] %v7837_v21  ;;  %v5593_v58 = vld [vmem:[#allocation3 + $0x78] sm:$0xf0] }
 0x331   :  { %v1062_v27 = vsel %vm327_vm3, %v1060_v55, %v1061_v7  ;;  %v1207_v24 = vsel %vm473_vm4, %v1205_v51, %v1206_v46  ;;  %v7943_v21 = vpack.c.bf16 %v2523_v26, %v2523_v26  ;;  %v2636_v7 = vpack.c.b16 %v7821_v20, %v7821_v20  ;;  %v2088_v55 = vld [vmem:[#allocation2 + $0x131] sm:$0xff]  ;;  %v2456_v46 = vpop.f32.mrf.mxu0 }
 0x332   :  { %v1094_v49 = vadd.f32 %v1062_v27, %v939_v32  ;;  %v2868_v60 = vld [vmem:[#allocation1 + $0x20] sm:$0xf]  ;;  %v1975_v51 = vld [vmem:[#allocation2 + $0x130] sm:$0xff] }
 0x333   :  { %v1586_v17 = vpop.permute.xlu0 %1585  ;;  %v2871_v41 = vunpack.c.l.b16 %v2868_v60  ;;  %2884 = vst [vmem:[#allocation1 + $0x20] sm:$0xff] %v7867_v59  ;;  %v3176_v38 = vrot.slane %v7943_v21, 3  ;;  %v2637_v27 = vrot.slane %v2636_v7, 3  ;;  %v1991_v20 = vpack.c.bf16 %v1975_v51, %v1975_v51  ;;  %v2505_v60 = vpop.f32.mrf.mxu1 }
 0x334   :  { %v1239_v47 = vadd.f32 %v1207_v24, %v1094_v49  ;;  %v1473_v19 = vpop.permute.xlu1 %1472  ;;  %v2104_v49 = vpack.c.bf16 %v2088_v55, %v2088_v55 }
 0x335   :  { %1506 = vst.msk [vmem:[#allocation3 + $0x78] sm:$0xf] %vm1490_vm5, %v1473_v19  ;;  %v2872_v16 = vrot.slane %v2871_v41, 7  ;;  %v3180_v42 = vsel %vm2542_vm13, %v7943_v21, %v3176_v38  ;;  %v2640_v26 = vsel %vm2542_vm13, %v2636_v7, %v2637_v27  ;;  %v2580_v19 = vpack.c.b16 %v7766_v33, %v7766_v33 }
 0x336   :  { %v1259_v44 = vadd.f32 %v6330_v57, %v1239_v47  ;;  %1619 = vst.msk [vmem:[#allocation3 + $0x78] sm:$0xf] %vm1603_vm7, %v1586_v17  ;;  %v2457_v17 = vadd.f32 %v7919_v2, %v2456_v46  ;;  %v2608_v47 = vpack.c.b16 %v7798_v52, %v7798_v52  ;;  %v2820_v33 = vpack.c.b16 %v7900_v0, %v7900_v0 }
 0x337   :  { %v3147_v31 = vld [vmem:[#allocation1 + $0x3] ss:$4 sm:$0xff]  ;;  %v2873_v12 = vsel %vm2559_vm14, %v2872_v16, %v2870_v13  ;;  %vm5500_vm5 = vcmask 1041408  }
 0x338   :  { %v1275_v18 = vmax.f32 %v1259_v44, 0.0  ;;  %3151 = vst [vmem:[#allocation1] ss:$4 sm:$0xff] %v3147_v31  ;;  %v2874_v34 = vpack.c.b16 %v2873_v12, %v2873_v12  ;;  %v2506_v57 = vadd.f32 %v2505_v60, %v2457_v17  ;;  %v2742_v12 = vpack.c.b16 %v7877_v50, %v7877_v50 }
 0x33a   :  { %1344 = vst.msk [vmem:[#allocation2 + $0x121] sm:$0xff] %vm1276_vm0, %v1275_v18  ;;  %v2875_v63 = vrot.slane %v2874_v34, 3  ;;  %v2886_v39 = vld [vmem:[#allocation1 + $0x22] ss:$4 sm:$0xff]  ;;  %v2609_v18 = vrot.slane %v2608_v47, 3  ;;  %v2530_v52 = vmax.f32 %v2506_v57, 0.0 }
 0x33b   :  { %v1810_v25 = vpop.permute.xlu0 %1809  ;;  %2891 = vst [vmem:[#allocation1 + $0x20] ss:$4 sm:$0xff] %v2886_v39 }
 0x33c   :  { %v1697_v5 = vpop.permute.xlu1 %1696  ;;  %v2878_v56 = vsel %vm2542_vm13, %v2874_v34, %v2875_v63  ;;  %v2612_v31 = vsel %vm2542_vm13, %v2608_v47, %v2609_v18  ;;  %v8000_v34 = vpack.c.bf16 %v2530_v52, %v2530_v52  ;;  %v2743_v63 = vrot.slane %v2742_v12, 3 }
 0x33d   :  { %1731 = vst.msk [vmem:[#allocation3 + $0x70] sm:$0xf] %vm1716_vm8, %v1697_v5  ;;  %v2821_v5 = vrot.slane %v2820_v33, 3 }
 0x33e   :  { %1844 = vst.msk [vmem:[#allocation3 + $0x70] sm:$0xf] %vm1829_vm9, %v1810_v25  ;;  %v2715_v25 = vpack.c.b16 %v7865_v8, %v7865_v8 }
 0x33f   :  { %2880 = vst.msk [vmem:[#allocation4 + $0x3] sm:$0x1] %vm2567_vm15, %v2878_v56  ;;  %v7955_v23 = vld [vmem:[#allocation1] sm:$0xf]  ;;  %v2967_v56 = vrot.slane %v8000_v34, 3  ;;  %v2824_v8 = vsel %vm2542_vm13, %v2820_v33, %v2821_v5 }
 0x340   :  { %3184 = vst [vmem:[#allocation1] ss:$4 sm:$0xff] %v3180_v42  ;;  %v2716_v0 = vrot.slane %v2715_v25, 3 }
 0x341   :  { %v1861_v61 = vld [vmem:[#allocation2 + $0x122] sm:$0xff] }
 0x342   :  { %v1748_v35 = vld [vmem:[#allocation2 + $0x121] sm:$0xff]  ;;  %v1877_v6 = vpack.c.bf16 %v1861_v61, %v1861_v61  ;;  %v7961_v43 = vld [vmem:[#allocation1 + $0x20] sm:$0xf]  ;;  %v2746_v61 = vsel %vm2542_vm13, %v2742_v12, %v2743_v63 }
 0x343   :  { %v1635_v30 = vld [vmem:[#allocation2 + $0x120] sm:$0xff]  ;;  %v1764_v11 = vpack.c.bf16 %v1748_v35, %v1748_v35  ;;  %2911 = vst [vmem:[#allocation1 + $0x20] sm:$0xff] %v7867_v59  ;;  %v2948_v35 = vunpack.c.l.b16 %v7845_v3  ;;  %v2973_v3 = vsel %vm2542_vm13, %v8000_v34, %v2967_v56 }
 0x344   :  { %v1651_v53 = vpack.c.bf16 %v1635_v30, %v1635_v30  ;;  %1924 = vrot.lane.b32.xlu0 %v1877_v6, %s6338_s27  ;;  %2232 = vst.msk [vmem:[#allocation3 + $0x74] sm:$0xf] %vm1377_vm6, %v1877_v6  ;;  %v2793_v30 = vpack.c.b16 %v7888_v14, %v7888_v14  ;;  %v2719_v6 = vsel %vm2542_vm13, %v2715_v25, %v2716_v0  ;;  %v2921_v14 = vunpack.c.l.b16 %v7831_v15 }
 0x345   :  { %1811 = vrot.lane.b32.xlu1 %v1764_v11, %s6337_s26  ;;  %v2950_v7 = vrot.slane %v2948_v35, 1 }
 0x346   :  { %1698 = vrot.lane.b32.xlu2 %v1651_v53, %s6336_s25 }
 0x347   :  { %v7964_v40 = vld [vmem:[#allocation1] sm:$0xf] }
 0x348   :  { %3202 = vst [vmem:[#allocation1] ss:$4 sm:$0xff] %v3180_v42  ;;  %v2894_v42 = vunpack.c.l.b16 %v7809_v4  ;;  %v2895_v4 = vunpack.c.l.b16 %v7961_v43 }
 0x34a   :  { %v2913_v9 = vld [vmem:[#allocation1 + $0x23] ss:$4 sm:$0xff]  ;;  %v2896_v55 = vrot.slane %v2894_v42, 1 }
 0x34b   :  { %v6167_v48 = vld [vmem:[#allocation3 + $0x74] sm:$0xf]  ;;  %2918 = vst [vmem:[#allocation1 + $0x20] ss:$4 sm:$0xff] %v2913_v9 }
 0x34c   :  { %2149 = vrot.lane.b32.xlu0 %v1764_v11, %s6340_s29  ;;  %v5596_v32 = vor.u32 %v6167_v48, %v5593_v58  ;;  %v2847_v11 = vpack.c.b16 %v7913_v54, %v7913_v54  ;;  %v2897_v27 = vsel %vm2559_vm14, %v2895_v4, %v2896_v55 }
 0x34d   :  { %2036 = vrot.lane.b32.xlu1 %v1651_v53, %s6339_s28 }
 0x34e   :  { %1922 = vrot.lane.b32.xlu2 %v7800_v22, %s6338_s27  ;;  %5640 = vmatmul.msk.bf16.gmra.mxu1 %vm1276_vm0, %v5596_v32  ;;  %v2688_v22 = vpack.c.b16 %v7856_v36, %v7856_v36  ;;  %v2581_v36 = vrot.slane %v2580_v19, 3  ;;  %v2794_v32 = vrot.slane %v2793_v30, 3  ;;  %v2848_v51 = vrot.slane %v2847_v11, 3 }
 0x34f   :  { %v7973_v24 = vld [vmem:[#allocation1] sm:$0xf]  ;;  %vm2589_vm0 = vcmask 516352  }
 0x350   :  { %3223 = vst [vmem:[#allocation1] sm:$0xff] %v7943_v21  ;;  %v2689_v41 = vrot.slane %v2688_v22, 3  ;;  %v2851_v15 = vsel %vm2542_vm13, %v2847_v11, %v2848_v51 }
 0x352   :  { %v2919_v44 = vld [vmem:[#allocation1 + $0x20] sm:$0xf]  ;;  %v2692_v16 = vsel %vm2542_vm13, %v2688_v22, %v2689_v41  ;;  %v2981_v41 = vunpack.c.l.b16 %v7853_v10 }
 0x353   :  { %2938 = vst [vmem:[#allocation1 + $0x20] sm:$0xff] %v7867_v59  ;;  %v2584_v59 = vsel %vm2542_vm13, %v2580_v19, %v2581_v36  ;;  %v2922_v39 = vunpack.c.l.b16 %v2919_v44  ;;  %v2999_v36 = vunpack.c.l.b16 %v7858_v45 }
 0x354   :  { %2642 = vrot.lane.b32.xlu0 %v2640_v26, %s6339_s28  ;;  %v2898_v26 = vpack.c.b16 %v2897_v27, %v2897_v27 }
 0x355   :  { %2151 = vrot.lane.b32.xlu1 %v2104_v49, %s6340_s29  ;;  %v2923_v53 = vrot.slane %v2922_v39, 7  ;;  %v2797_v49 = vsel %vm2542_vm13, %v2793_v30, %v2794_v32  ;;  %v3001_v10 = vrot.slane %v2999_v36, 1 }
 0x356   :  { %2038 = vrot.lane.b32.xlu2 %v1991_v20, %s6339_s28  ;;  %v2899_v57 = vrot.slane %v2898_v26, 3 }
 0x357   :  { %v3225_v13 = vld [vmem:[#allocation1 + $0x1] ss:$4 sm:$0xff]  ;;  %v2924_v9 = vsel %vm2559_vm14, %v2923_v53, %v2921_v14  ;;  %v3053_v14 = vunpack.c.l.b16 %v7879_v62 }
 0x358   :  { %3229 = vst [vmem:[#allocation1] ss:$4 sm:$0xff] %v3225_v13  ;;  %v2925_v20 = vpack.c.b16 %v2924_v9, %v2924_v9 }
 0x35a   :  { %v2940_v38 = vld [vmem:[#allocation1 + $0x23] ss:$4 sm:$0xff]  ;;  %v2926_v19 = vrot.slane %v2925_v20, 3 }
 0x35b   :  { %2945 = vst [vmem:[#allocation1 + $0x20] ss:$4 sm:$0xff] %v2940_v38 }
 0x35c   :  { %2694 = vrot.lane.b32.xlu0 %v2692_v16, %s6335_s12  ;;  %v2929_v13 = vsel %vm2542_vm13, %v2925_v20, %v2926_v19  ;;  %v2902_v16 = vsel %vm2542_vm13, %v2898_v26, %v2899_v57 }
 0x35d   :  { %2614 = vrot.lane.b32.xlu1 %v2612_v31, %s6337_s26 }
 0x35e   :  { %2586 = vrot.lane.b32.xlu2 %v2584_v59, %s6335_s12 }
 0x35f   :  { %v8002_v50 = vld [vmem:[#allocation1] sm:$0xf] }
 0x360   :  { %3250 = vst [vmem:[#allocation1] sm:$0xff] %v7943_v21 }
 0x362   :  { %v2946_v58 = vld [vmem:[#allocation1 + $0x20] sm:$0xf] }
 0x363   :  { %v2949_v48 = vunpack.c.l.b16 %v2946_v58  ;;  %2978 = vst [vmem:[#allocation1 + $0x20] ss:$4 sm:$0xff] %v2973_v3 }
 0x364   :  { %2826 = vrot.lane.b32.xlu0 %v2824_v8, %s6337_s26 }
 0x365   :  { %2748 = vrot.lane.b32.xlu1 %v2746_v61, %s6339_s28  ;;  %v2951_v46 = vsel %vm2559_vm14, %v2949_v48, %v2950_v7  ;;  %v3026_v61 = vunpack.c.l.b16 %v7869_v29  ;;  %v3055_v7 = vrot.slane %v3053_v14, 1 }
 0x366   :  { %2721 = vrot.lane.b32.xlu2 %v2719_v6, %s6337_s26  ;;  %v2952_v43 = vpack.c.b16 %v2951_v46, %v2951_v46 }
 0x367   :  { %v3252_v54 = vld [vmem:[#allocation1 + $0x1] ss:$4 sm:$0xff] }
 0x368   :  { %3256 = vst [vmem:[#allocation1] ss:$4 sm:$0xff] %v3252_v54  ;;  %v2953_v17 = vrot.slane %v2952_v43, 3  ;;  %v8944_v54 = vld [vmem:[#allocation7_spill] sm:$0xff] }
 0x369   :  { %v2442_v46 = vadd.f32 %v7919_v2, %v8944_v54 }
 0x36a   :  { %v2956_v22 = vsel %vm2542_vm13, %v2952_v43, %v2953_v17  ;;  %v2979_v47 = vld [vmem:[#allocation1 + $0x20] sm:$0xf] }
 0x36b   :  { %2996 = vst [vmem:[#allocation1 + $0x20] ss:$4 sm:$0xff] %v2973_v3  ;;  %v2982_v60 = vunpack.c.l.b16 %v2979_v47 }
 0x36c   :  { %2958 = vrot.lane.b32.xlu0 %v2956_v22, %s6339_s28 }
 0x36d   :  { %2799 = vrot.lane.b32.xlu1 %v2797_v49, %s6335_s12  ;;  %v2983_v18 = vrot.slane %v2982_v60, 7  ;;  %v8945_v49 = vld [vmem:[#allocation10_spill] sm:$0xff]  ;;  %v3080_v60 = vunpack.c.l.b16 %v7891_v28 }
 0x36e   :  { %2853 = vrot.lane.b32.xlu2 %v2851_v15, %s6339_s28  ;;  %v2491_v20 = vadd.f32 %v8945_v49, %v2442_v46 }
 0x36f   :  { %v8031_v44 = vld [vmem:[#allocation1] sm:$0xf]  ;;  %v2984_v52 = vsel %vm2559_vm14, %v2983_v18, %v2981_v41 }
 0x370   :  { %3277 = vst [vmem:[#allocation1] sm:$0xff] %v7943_v21  ;;  %v2985_v31 = vpack.c.b16 %v2984_v52, %v2984_v52  ;;  %v2524_v15 = vmax.f32 %v2491_v20, 0.0 }
 0x372   :  { %v2997_v33 = vld [vmem:[#allocation1 + $0x20] sm:$0xf]  ;;  %v2986_v12 = vrot.slane %v2985_v31, 3  ;;  %v8072_v19 = vpack.c.bf16 %v2524_v15, %v2524_v15 }
 0x373   :  { %v3000_v59 = vunpack.c.l.b16 %v2997_v33  ;;  %3016 = vst [vmem:[#allocation1 + $0x20] sm:$0xff] %v8000_v34 }
 0x374   :  { %v2989_v25 = vsel %vm2542_vm13, %v2985_v31, %v2986_v12  ;;  %v3104_v12 = vunpack.c.l.b16 %v7905_v1 }
 0x375   :  { %2931 = vrot.lane.b32.xlu1 %v2929_v13, %s6337_s26  ;;  %v3002_v38 = vsel %vm2559_vm14, %v3000_v59, %v3001_v10  ;;  %2991 = vst.msk [vmem:[#allocation4 + $0x4] sm:$0x1] %vm2567_vm15, %v2989_v25 }
 0x376   :  { %2904 = vrot.lane.b32.xlu2 %v2902_v16, %s6335_s12  ;;  %v3003_v5 = vpack.c.b16 %v3002_v38, %v3002_v38  ;;  %v3106_v38 = vrot.slane %v3104_v12, 1 }
 0x377   :  { %v3279_v45 = vld [vmem:[#allocation1 + $0x2] ss:$4 sm:$0xff] }
 0x378   :  { %3283 = vst [vmem:[#allocation1] ss:$4 sm:$0xff] %v3279_v45  ;;  %v3004_v63 = vrot.slane %v3003_v5, 3 }
 0x37a   :  { %v3007_v0 = vsel %vm2542_vm13, %v3003_v5, %v3004_v63  ;;  %v3018_v39 = vld [vmem:[#allocation1 + $0x21] ss:$4 sm:$0xff] }
 0x37b   :  { %3009 = vrot.lane.b32.xlu0 %v3007_v0, %s6335_s12  ;;  %3023 = vst [vmem:[#allocation1 + $0x20] ss:$4 sm:$0xff] %v3018_v39 }
 0x37f   :  { %v8047_v56 = vld [vmem:[#allocation1] sm:$0xf] }
 0x380   :  { %3301 = vst [vmem:[#allocation1] sm:$0xff] %v7943_v21 }
 0x382   :  { %v3024_v42 = vld [vmem:[#allocation1 + $0x20] sm:$0xf] }
 0x383   :  { %v3027_v8 = vunpack.c.l.b16 %v3024_v42  ;;  %3043 = vst [vmem:[#allocation1 + $0x20] sm:$0xff] %v8000_v34 }
 0x385   :  { %v3028_v35 = vrot.slane %v3027_v8, 7 }
 0x387   :  { %v3303_v30 = vld [vmem:[#allocation1 + $0x2] ss:$4 sm:$0xff]  ;;  %v3029_v6 = vsel %vm2559_vm14, %v3028_v35, %v3026_v61 }
 0x388   :  { %3307 = vst [vmem:[#allocation1] ss:$4 sm:$0xff] %v3303_v30  ;;  %v3030_v11 = vpack.c.b16 %v3029_v6, %v3029_v6 }
 0x38a   :  { %v3031_v53 = vrot.slane %v3030_v11, 3  ;;  %v3045_v4 = vld [vmem:[#allocation1 + $0x21] ss:$4 sm:$0xff] }
 0x38b   :  { %3050 = vst [vmem:[#allocation1 + $0x20] ss:$4 sm:$0xff] %v3045_v4 }
 0x38c   :  { %v3034_v58 = vsel %vm2542_vm13, %v3030_v11, %v3031_v53  ;;  %v2458_v11 = vpop.f32.mrf.mxu0 }
 0x38d   :  { %3036 = vrot.lane.b32.xlu2 %v3034_v58, %s6337_s26  ;;  %v2459_v58 = vadd.f32 %v7919_v2, %v2458_v11 }
 0x38f   :  { %v8055_v3 = vld [vmem:[#allocation1] sm:$0xf] }
 0x390   :  { %3328 = vst [vmem:[#allocation1] sm:$0xff] %v7943_v21 }
 0x392   :  { %v3051_v29 = vld [vmem:[#allocation1 + $0x20] sm:$0xf] }
 0x393   :  { %v3054_v48 = vunpack.c.l.b16 %v3051_v29  ;;  %3070 = vst [vmem:[#allocation1 + $0x20] sm:$0xff] %v8000_v34 }
 0x395   :  { %v3056_v32 = vsel %vm2559_vm14, %v3054_v48, %v3055_v7  ;;  %v2507_v7 = vpop.f32.mrf.mxu1 }
 0x396   :  { %v3057_v51 = vpack.c.b16 %v3056_v32, %v3056_v32  ;;  %v2508_v32 = vadd.f32 %v2507_v7, %v2459_v58 }
 0x397   :  { %v3330_v55 = vld [vmem:[#allocation1 + $0x3] ss:$4 sm:$0xff] }
 0x398   :  { %3334 = vst [vmem:[#allocation1] ss:$4 sm:$0xff] %v3330_v55  ;;  %v3058_v9 = vrot.slane %v3057_v51, 3  ;;  %v3131_v55 = vunpack.c.l.b16 %v7930_v37  ;;  %v2531_v49 = vmax.f32 %v2508_v32, 0.0 }
 0x39a   :  { %v3061_v27 = vsel %vm2542_vm13, %v3057_v51, %v3058_v9  ;;  %v3072_v43 = vld [vmem:[#allocation1 + $0x22] ss:$4 sm:$0xff] }
 0x39b   :  { %3063 = vrot.lane.b32.xlu1 %v3061_v27, %s6339_s28  ;;  %3077 = vst [vmem:[#allocation1 + $0x20] ss:$4 sm:$0xff] %v3072_v43 }
 0x39f   :  { %v8067_v17 = vld [vmem:[#allocation1] sm:$0xf] }
 0x3a0   :  { %v1699_v62 = vpop.permute.xlu2 %1698  ;;  %3355 = vst [vmem:[#allocation1] sm:$0xff] %v7943_v21  ;;  %v3386_v21 = vrot.slane %v8072_v19, 3 }
 0x3a1   :  { %1732 = vst.msk [vmem:[#allocation3 + $0x78] sm:$0xf] %vm1716_vm8, %v1699_v62 }
 0x3a2   :  { %v3078_v26 = vld [vmem:[#allocation1 + $0x20] sm:$0xf]  ;;  %v3390_v28 = vsel %vm2542_vm13, %v8072_v19, %v3386_v21 }
 0x3a3   :  { %3094 = vst [vmem:[#allocation1 + $0x20] sm:$0xff] %v8000_v34  ;;  %v3081_v47 = vunpack.c.l.b16 %v3078_v26 }
 0x3a5   :  { %v3082_v57 = vrot.slane %v3081_v47, 7  ;;  %v8109_v47 = vpack.c.bf16 %v2531_v49, %v2531_v49 }
 0x3a7   :  { %v3357_v41 = vld [vmem:[#allocation1 + $0x3] ss:$4 sm:$0xff]  ;;  %v3083_v18 = vsel %vm2559_vm14, %v3082_v57, %v3080_v60 }
 0x3a8   :  { %v1923_v22 = vpop.permute.xlu2 %1922  ;;  %3361 = vst [vmem:[#allocation1] ss:$4 sm:$0xff] %v3357_v41  ;;  %v3084_v36 = vpack.c.b16 %v3083_v18, %v3083_v18  ;;  %v3177_v41 = vrot.slane %v8109_v47, 3  ;;  %v3158_v18 = vunpack.c.l.b16 %v7955_v23 }
 0x3a9   :  { %1957 = vst.msk [vmem:[#allocation3 + $0x70] sm:$0xf] %vm1942_vm10, %v1923_v22 }
 0x3aa   :  { %v3096_v13 = vld [vmem:[#allocation1 + $0x22] ss:$4 sm:$0xff]  ;;  %v3085_v52 = vrot.slane %v3084_v36, 3 }
 0x3ab   :  { %3101 = vst [vmem:[#allocation1 + $0x20] ss:$4 sm:$0xff] %v3096_v13 }
 0x3ac   :  { %v3088_v31 = vsel %vm2542_vm13, %v3084_v36, %v3085_v52  ;;  %v3183_v36 = vsel %vm2542_vm13, %v8109_v47, %v3177_v41  ;;  %v3160_v52 = vrot.slane %v3158_v18, 1 }
 0x3ad   :  { %3090 = vst.msk [vmem:[#allocation4 + $0x5] sm:$0x1] %vm2567_vm15, %v3088_v31 }
 0x3af   :  { %v8079_v33 = vld [vmem:[#allocation1] sm:$0xf] }
 0x3b0   :  { %v2039_v16 = vpop.permute.xlu2 %2038  ;;  %3394 = vst [vmem:[#allocation1] ss:$4 sm:$0xff] %v3390_v28 }
 0x3b2   :  { %v3102_v59 = vld [vmem:[#allocation1 + $0x20] sm:$0xf] }
 0x3b3   :  { %v3105_v45 = vunpack.c.l.b16 %v3102_v59  ;;  %3121 = vst [vmem:[#allocation1 + $0x20] sm:$0xff] %v8000_v34 }
 0x3b5   :  { %v3107_v63 = vsel %vm2559_vm14, %v3105_v45, %v3106_v38  ;;  %v3191_v45 = vunpack.c.l.b16 %v7964_v40 }
 0x3b6   :  { %v1925_v25 = vpop.permute.xlu0 %1924  ;;  %v3108_v39 = vpack.c.b16 %v3107_v63, %v3107_v63  ;;  %v3209_v63 = vunpack.c.l.b16 %v7973_v24 }
 0x3b7   :  { %v1812_v10 = vpop.permute.xlu1 %1811  ;;  %v8088_v0 = vld [vmem:[#allocation1] sm:$0xf] }
 0x3b8   :  { %v2587_v5 = vpop.permute.xlu2 %2586  ;;  %1845 = vst.msk [vmem:[#allocation3 + $0x78] sm:$0xf] %vm1829_vm9, %v1812_v10  ;;  %v3109_v1 = vrot.slane %v3108_v39, 3 }
 0x3b9   :  { %2590 = vst.msk [vmem:[#allocation4] sm:$0x1] %vm2589_vm0, %v2587_v5 }
 0x3ba   :  { %1958 = vst.msk [vmem:[#allocation3 + $0x78] sm:$0xf] %vm1942_vm10, %v1925_v25  ;;  %v3112_v42 = vsel %vm2542_vm13, %v3108_v39, %v3109_v1  ;;  %v3123_v35 = vld [vmem:[#allocation1 + $0x23] ss:$4 sm:$0xff] }
 0x3bb   :  { %2072 = vst.msk [vmem:[#allocation3 + $0x78] sm:$0xf] %vm2056_vm11, %v2039_v16  ;;  %3114 = vrot.lane.b32.xlu1 %v3112_v42, %s6335_s12 }
 0x3bc   :  { %3412 = vst [vmem:[#allocation1] ss:$4 sm:$0xff] %v3390_v28 }
 0x3bd   :  { %3128 = vst [vmem:[#allocation1 + $0x20] ss:$4 sm:$0xff] %v3123_v35  ;;  %v3211_v35 = vrot.slane %v3209_v63, 1  ;;  %v3263_v63 = vunpack.c.l.b16 %v8031_v44 }
 0x3be   :  { %v2150_v61 = vpop.permute.xlu0 %2149 }
 0x3bf   :  { %v2037_v8 = vpop.permute.xlu1 %2036 }
 0x3c0   :  { %2071 = vst.msk [vmem:[#allocation3 + $0x70] sm:$0xf] %vm2056_vm11, %v2037_v8  ;;  %v2722_v30 = vpop.permute.xlu2 %2721 }
 0x3c1   :  { %2184 = vst.msk [vmem:[#allocation3 + $0x70] sm:$0xf] %vm2169_vm12, %v2150_v61 }
 0x3c3   :  { %v8096_v6 = vld [vmem:[#allocation1] sm:$0xf] }
 0x3c4   :  { %3433 = vst [vmem:[#allocation1] sm:$0xff] %v8072_v19  ;;  %v3129_v29 = vld [vmem:[#allocation1 + $0x20] sm:$0xf] }
 0x3c5   :  { %v3132_v48 = vunpack.c.l.b16 %v3129_v29  ;;  %3148 = vst [vmem:[#allocation1 + $0x20] sm:$0xff] %v8000_v34 }
 0x3c6   :  { %v2643_v4 = vpop.permute.xlu0 %2642 }
 0x3c7   :  { %v2152_v53 = vpop.permute.xlu1 %2151  ;;  %v3133_v51 = vrot.slane %v3132_v48, 7 }
 0x3c8   :  { %2185 = vst.msk [vmem:[#allocation3 + $0x78] sm:$0xf] %vm2169_vm12, %v2152_v53  ;;  %v2854_v14 = vpop.permute.xlu2 %2853  ;;  %v5591_v43 = vld [vmem:[#allocation3 + $0x70] sm:$0xf] }
 0x3c9   :  { %v3134_v54 = vsel %vm2559_vm14, %v3133_v51, %v3131_v55  ;;  %v3236_v51 = vunpack.c.l.b16 %v8002_v50  ;;  %v8946_v50 = vld [vmem:[#allocation5_spill] sm:$0xff] }
 0x3ca   :  { %v3135_v46 = vpack.c.b16 %v3134_v54, %v3134_v54 }
 0x3cb   :  { %v3435_v9 = vld [vmem:[#allocation1 + $0x1] ss:$4 sm:$0xff] }
 0x3cc   :  { %3439 = vst [vmem:[#allocation1] ss:$4 sm:$0xff] %v3435_v9  ;;  %v3136_v26 = vrot.slane %v3135_v46, 3  ;;  %v3150_v37 = vld [vmem:[#allocation1 + $0x23] ss:$4 sm:$0xff] }
 0x3cd   :  { %3155 = vst [vmem:[#allocation1 + $0x20] ss:$4 sm:$0xff] %v3150_v37 }
 0x3ce   :  { %v2695_v34 = vpop.permute.xlu0 %2694  ;;  %v3139_v22 = vsel %vm2542_vm13, %v3135_v46, %v3136_v26 }
 0x3cf   :  { %v2615_v27 = vpop.permute.xlu1 %2614  ;;  %v6168_v62 = vld [vmem:[#allocation3 + $0x74] sm:$0xf0]  ;;  %2697 = vst.msk [vmem:[#allocation4 + $0x1] sm:$0x1] %vm2589_vm0, %v2695_v34  ;;  %3141 = vrot.lane.b32.xlu0 %v3139_v22, %s6337_s26  ;;  %v8947_v22 = vld [vmem:[#allocation8_spill] sm:$0xff] }
 0x3d0   :  { %2618 = vst.msk [vmem:[#allocation4] sm:$0x1] %vm2617_vm1, %v2615_v27  ;;  %v2905_v20 = vpop.permute.xlu2 %2904  ;;  %v5592_v15 = vor.u32 %v6168_v62, %v5591_v43 }
 0x3d1   :  { %2646 = vst.msk [vmem:[#allocation4] sm:$0x1] %vm2645_vm2, %v2643_v4 }
 0x3d2   :  { %2907 = vst.msk [vmem:[#allocation4 + $0x3] sm:$0x1] %vm2589_vm0, %v2905_v20  ;;  %2465 = vmatmul.bf16.gmra.mxu0 %v5592_v15  ;;  %v2444_v15 = vadd.f32 %v7919_v2, %v8946_v50 }
 0x3d3   :  { %2724 = vst.msk [vmem:[#allocation4 + $0x1] sm:$0x1] %vm2617_vm1, %v2722_v30  ;;  %v8113_v60 = vld [vmem:[#allocation1] sm:$0xf] }
 0x3d4   :  { %3460 = vst [vmem:[#allocation1] sm:$0xff] %v8072_v19  ;;  %v3156_v21 = vld [vmem:[#allocation1 + $0x20] sm:$0xf] }
 0x3d5   :  { %3188 = vst [vmem:[#allocation1 + $0x20] ss:$4 sm:$0xff] %v3183_v36  ;;  %v3159_v13 = vunpack.c.l.b16 %v3156_v21 }
 0x3d6   :  { %v2827_v31 = vpop.permute.xlu0 %2826 }
 0x3d7   :  { %v2749_v57 = vpop.permute.xlu1 %2748  ;;  %v8122_v12 = vsel %vm2559_vm14, %v3159_v13, %v3160_v52 }
 0x3d8   :  { %2751 = vst.msk [vmem:[#allocation4 + $0x1] sm:$0x1] %vm2645_vm2, %v2749_v57  ;;  %v2493_v57 = vadd.f32 %v8947_v22, %v2444_v15 }
 0x3da   :  { %v2525_v18 = vmax.f32 %v2493_v57, 0.0  ;;  %v3368_v57 = vunpack.c.l.b16 %v8079_v33 }
 0x3db   :  { %v3462_v16 = vld [vmem:[#allocation1 + $0x1] ss:$4 sm:$0xff] }
 0x3dc   :  { %3466 = vst [vmem:[#allocation1] ss:$4 sm:$0xff] %v3462_v16  ;;  %v3189_v23 = vld [vmem:[#allocation1 + $0x20] sm:$0xf]  ;;  %v8162_v21 = vpack.c.bf16 %v2525_v18, %v2525_v18  ;;  %v3290_v16 = vunpack.c.l.b16 %v8047_v56  ;;  %v3314_v56 = vunpack.c.l.b16 %v8055_v3 }
 0x3dd   :  { %3206 = vst [vmem:[#allocation1 + $0x20] ss:$4 sm:$0xff] %v3183_v36  ;;  %v3192_v59 = vunpack.c.l.b16 %v3189_v23 }
 0x3de   :  { %v2959_v5 = vpop.permute.xlu0 %2958  ;;  %v3596_v23 = vrot.slane %v8162_v21, 3 }
 0x3df   :  { %v2800_v28 = vpop.permute.xlu1 %2799  ;;  %v3193_v38 = vrot.slane %v3192_v59, 7 }
 0x3e0   :  { %2802 = vst.msk [vmem:[#allocation4 + $0x2] sm:$0x1] %vm2589_vm0, %v2800_v28 }
 0x3e1   :  { %2829 = vst.msk [vmem:[#allocation4 + $0x2] sm:$0x1] %vm2617_vm1, %v2827_v31  ;;  %v3194_v39 = vsel %vm2559_vm14, %v3193_v38, %v3191_v45  ;;  %v3600_v38 = vsel %vm2542_vm13, %v8162_v21, %v3596_v23 }
 0x3e2   :  { %2856 = vst.msk [vmem:[#allocation4 + $0x2] sm:$0x1] %vm2645_vm2, %v2854_v14  ;;  %v3195_v1 = vpack.c.b16 %v3194_v39, %v3194_v39 }
 0x3e3   :  { %v8127_v10 = vld [vmem:[#allocation1] sm:$0xf] }
 0x3e4   :  { %3487 = vst [vmem:[#allocation1] sm:$0xff] %v8072_v19  ;;  %v3207_v42 = vld [vmem:[#allocation1 + $0x20] sm:$0xf]  ;;  %v3196_v8 = vrot.slane %v3195_v1, 3 }
 0x3e5   :  { %v3210_v61 = vunpack.c.l.b16 %v3207_v42  ;;  %3226 = vst [vmem:[#allocation1 + $0x20] sm:$0xff] %v8109_v47  ;;  %v3316_v42 = vrot.slane %v3314_v56, 1  ;;  %v3401_v56 = vunpack.c.l.b16 %v8088_v0 }
 0x3e6   :  { %v3199_v40 = vsel %vm2542_vm13, %v3195_v1, %v3196_v8 }
 0x3e7   :  { %v2932_v25 = vpop.permute.xlu1 %2931  ;;  %v3212_v11 = vsel %vm2559_vm14, %v3210_v61, %v3211_v35  ;;  %3201 = vst.msk [vmem:[#allocation4 + $0x6] sm:$0x1] %vm2567_vm15, %v3199_v40  ;;  %v3037_v58 = vpop.permute.xlu2 %3036 }
 0x3e8   :  { %2934 = vst.msk [vmem:[#allocation4 + $0x3] sm:$0x1] %vm2617_vm1, %v2932_v25  ;;  %v3213_v24 = vpack.c.b16 %v3212_v11, %v3212_v11 }
 0x3e9   :  { %2961 = vst.msk [vmem:[#allocation4 + $0x3] sm:$0x1] %vm2645_vm2, %v2959_v5 }
 0x3ea   :  { %v3214_v53 = vrot.slane %v3213_v24, 3 }
 0x3eb   :  { %v3489_v30 = vld [vmem:[#allocation1 + $0x2] ss:$4 sm:$0xff] }
 0x3ec   :  { %3493 = vst [vmem:[#allocation1] ss:$4 sm:$0xff] %v3489_v30  ;;  %v3217_v14 = vsel %vm2542_vm13, %v3213_v24, %v3214_v53  ;;  %v3228_v29 = vld [vmem:[#allocation1 + $0x21] ss:$4 sm:$0xff]  ;;  %v3265_v30 = vrot.slane %v3263_v63, 1 }
 0x3ed   :  { %v3010_v4 = vpop.permute.xlu0 %3009  ;;  %3219 = vrot.lane.b32.xlu2 %v3217_v14, %s6335_s12  ;;  %3233 = vst [vmem:[#allocation1 + $0x20] ss:$4 sm:$0xff] %v3228_v29 }
 0x3ee   :  { %3012 = vst.msk [vmem:[#allocation4 + $0x4] sm:$0x1] %vm2589_vm0, %v3010_v4 }
 0x3ef   :  { %3039 = vst.msk [vmem:[#allocation4 + $0x4] sm:$0x1] %vm2617_vm1, %v3037_v58  ;;  %v2461_v58 = vpop.f32.mrf.mxu0 }
 0x3f0   :  { %v2462_v29 = vadd.f32 %v7919_v2, %v2461_v58 }
 0x3f3   :  { %v8143_v48 = vld [vmem:[#allocation1] sm:$0xf] }
 0x3f4   :  { %3511 = vst [vmem:[#allocation1] sm:$0xff] %v8072_v19  ;;  %v3234_v7 = vld [vmem:[#allocation1 + $0x20] sm:$0xf] }
 0x3f5   :  { %v3237_v32 = vunpack.c.l.b16 %v3234_v7  ;;  %3253 = vst [vmem:[#allocation1 + $0x20] sm:$0xff] %v8109_v47 }
 0x3f7   :  { %v3238_v9 = vrot.slane %v3237_v32, 7  ;;  %v2510_v32 = vpop.f32.mrf.mxu1 }
 0x3f9   :  { %v3239_v54 = vsel %vm2559_vm14, %v3238_v9, %v3236_v51 }
 0x3fa   :  { %v3240_v46 = vpack.c.b16 %v3239_v54, %v3239_v54 }
 0x3fb   :  { %v3513_v55 = vld [vmem:[#allocation1 + $0x2] ss:$4 sm:$0xff] }
 0x3fc   :  { %3517 = vst [vmem:[#allocation1] ss:$4 sm:$0xff] %v3513_v55  ;;  %v3241_v27 = vrot.slane %v3240_v46, 3  ;;  %v3255_v43 = vld [vmem:[#allocation1 + $0x21] ss:$4 sm:$0xff]  ;;  %v2511_v55 = vadd.f32 %v2510_v32, %v2462_v29  ;;  %v3446_v32 = vunpack.c.l.b16 %v8113_v60 }
 0x3fd   :  { %3260 = vst [vmem:[#allocation1 + $0x20] ss:$4 sm:$0xff] %v3255_v43 }
 0x3fe   :  { %v3244_v49 = vsel %vm2542_vm13, %v3240_v46, %v3241_v27  ;;  %v3341_v27 = vunpack.c.l.b16 %v8067_v17 }
 0x3ff   :  { %3246 = vrot.lane.b32.xlu1 %v3244_v49, %s6337_s26  ;;  %v2532_v49 = vmax.f32 %v2511_v55, 0.0 }
 0x403   :  { %v8149_v62 = vld [vmem:[#allocation1] sm:$0xf] }
 0x404   :  { %3538 = vst [vmem:[#allocation1] sm:$0xff] %v8072_v19  ;;  %v3261_v20 = vld [vmem:[#allocation1 + $0x20] sm:$0xf] }
 0x405   :  { %3280 = vst [vmem:[#allocation1 + $0x20] sm:$0xff] %v8109_v47  ;;  %v3264_v8 = vunpack.c.l.b16 %v3261_v20 }
 0x407   :  { %v3266_v11 = vsel %vm2559_vm14, %v3264_v8, %v3265_v30 }
 0x408   :  { %v3267_v3 = vpack.c.b16 %v3266_v11, %v3266_v11 }
 0x40a   :  { %v3268_v7 = vrot.slane %v3267_v3, 3 }
 0x40b   :  { %v3540_v34 = vld [vmem:[#allocation1 + $0x3] ss:$4 sm:$0xff] }
 0x40c   :  { %3544 = vst [vmem:[#allocation1] ss:$4 sm:$0xff] %v3540_v34  ;;  %v3282_v37 = vld [vmem:[#allocation1 + $0x22] ss:$4 sm:$0xff]  ;;  %v3271_v51 = vsel %vm2542_vm13, %v3267_v3, %v3268_v7  ;;  %v8193_v34 = vpack.c.bf16 %v2532_v49, %v2532_v49 }
 0x40d   :  { %v3064_v26 = vpop.permute.xlu1 %3063  ;;  %3287 = vst [vmem:[#allocation1 + $0x20] ss:$4 sm:$0xff] %v3282_v37 }
 0x40e   :  { %3066 = vst.msk [vmem:[#allocation4 + $0x4] sm:$0x1] %vm2645_vm2, %v3064_v26  ;;  %v3387_v17 = vrot.slane %v8193_v34, 3 }
 0x413   :  { %v8159_v41 = vld [vmem:[#allocation1] sm:$0xf] }
 0x414   :  { %3565 = vst [vmem:[#allocation1] sm:$0xff] %v8072_v19  ;;  %v3288_v36 = vld [vmem:[#allocation1 + $0x20] sm:$0xf] }
 0x415   :  { %3304 = vst [vmem:[#allocation1 + $0x20] sm:$0xff] %v8109_v47  ;;  %v3291_v13 = vunpack.c.l.b16 %v3288_v36 }
 0x417   :  { %v3292_v31 = vrot.slane %v3291_v13, 7  ;;  %v3393_v13 = vsel %vm2542_vm13, %v8193_v34, %v3387_v17  ;;  %v8948_v17 = vld [vmem:[#allocation9_spill] sm:$0xff] }
 0x419   :  { %v3293_v28 = vsel %vm2559_vm14, %v3292_v31, %v3290_v16  ;;  %v3370_v16 = vrot.slane %v3368_v57, 1 }
 0x41a   :  { %v3294_v59 = vpack.c.b16 %v3293_v28, %v3293_v28 }
 0x41b   :  { %v3567_v52 = vld [vmem:[#allocation1 + $0x3] ss:$4 sm:$0xff] }
 0x41c   :  { %3571 = vst [vmem:[#allocation1] ss:$4 sm:$0xff] %v3567_v52  ;;  %v3306_v25 = vld [vmem:[#allocation1 + $0x22] ss:$4 sm:$0xff]  ;;  %v3295_v45 = vrot.slane %v3294_v59, 3 }
 0x41d   :  { %3311 = vst [vmem:[#allocation1 + $0x20] ss:$4 sm:$0xff] %v3306_v25 }
 0x41e   :  { %v3298_v5 = vsel %vm2542_vm13, %v3294_v59, %v3295_v45 }
 0x41f   :  { %3300 = vst.msk [vmem:[#allocation4 + $0x7] sm:$0x1] %vm2567_vm15, %v3298_v5 }
 0x423   :  { %v8168_v19 = vld [vmem:[#allocation1] sm:$0xf] }
 0x424   :  { %3604 = vst [vmem:[#allocation1] ss:$4 sm:$0xff] %v3600_v38  ;;  %v3312_v39 = vld [vmem:[#allocation1 + $0x20] sm:$0xf] }
 0x425   :  { %v3315_v1 = vunpack.c.l.b16 %v3312_v39  ;;  %3331 = vst [vmem:[#allocation1 + $0x20] sm:$0xff] %v8109_v47  ;;  %v3419_v39 = vunpack.c.l.b16 %v8096_v6 }
 0x427   :  { %v3317_v35 = vsel %vm2559_vm14, %v3315_v1, %v3316_v42 }
 0x428   :  { %v3318_v40 = vpack.c.b16 %v3317_v35, %v3317_v35 }
 0x42a   :  { %v3319_v24 = vrot.slane %v3318_v40, 3 }
 0x42b   :  { %v8177_v61 = vld [vmem:[#allocation1] sm:$0xf] }
 0x42c   :  { %3622 = vst [vmem:[#allocation1] ss:$4 sm:$0xff] %v3600_v38  ;;  %v3322_v44 = vsel %vm2542_vm13, %v3318_v40, %v3319_v24  ;;  %v3333_v4 = vld [vmem:[#allocation1 + $0x23] ss:$4 sm:$0xff]  ;;  %v3421_v40 = vrot.slane %v3419_v39, 1 }
 0x42d   :  { %v3115_v53 = vpop.permute.xlu1 %3114  ;;  %3324 = vrot.lane.b32.xlu0 %v3322_v44, %s6335_s12  ;;  %3338 = vst [vmem:[#allocation1 + $0x20] ss:$4 sm:$0xff] %v3333_v4 }
 0x42e   :  { %3117 = vst.msk [vmem:[#allocation4 + $0x5] sm:$0x1] %vm2589_vm0, %v3115_v53 }
 0x433   :  { %v8184_v14 = vld [vmem:[#allocation1] sm:$0xf] }
 0x434   :  { %3643 = vst [vmem:[#allocation1] sm:$0xff] %v8162_v21  ;;  %v3339_v9 = vld [vmem:[#allocation1 + $0x20] sm:$0xf] }
 0x435   :  { %3273 = vrot.lane.b32.xlu0 %v3271_v51, %s6339_s28  ;;  %v3342_v54 = vunpack.c.l.b16 %v3339_v9  ;;  %3358 = vst [vmem:[#allocation1 + $0x20] sm:$0xff] %v8109_v47  ;;  %v3162_v47 = vpack.c.b16 %v8122_v12, %v8122_v12 }
 0x437   :  { %v3343_v43 = vrot.slane %v3342_v54, 7  ;;  %v3163_v18 = vrot.slane %v3162_v47, 3 }
 0x439   :  { %v3344_v20 = vsel %vm2559_vm14, %v3343_v43, %v3341_v27  ;;  %v3166_v12 = vsel %vm2542_vm13, %v3162_v47, %v3163_v18  ;;  %v8243_v47 = vld [vmem:[%s8892_s4] ss:$0 sm:$0xff] }
 0x43a   :  { %v3345_v2 = vpack.c.b16 %v3344_v20, %v3344_v20  ;;  %v3473_v20 = vunpack.c.l.b16 %v8127_v10  ;;  %v2447_v10 = vadd.f32 %v8243_v47, %v8948_v17  ;;  %v3578_v17 = vunpack.c.l.b16 %v8168_v19 }
 0x43b   :  { %v3645_v46 = vld [vmem:[#allocation1 + $0x1] ss:$4 sm:$0xff] }
 0x43c   :  { %3649 = vst [vmem:[#allocation1] ss:$4 sm:$0xff] %v3645_v46  ;;  %v3346_v50 = vrot.slane %v3345_v2, 3  ;;  %v3360_v15 = vld [vmem:[#allocation1 + $0x23] ss:$4 sm:$0xff] }
 0x43d   :  { %3365 = vst [vmem:[#allocation1 + $0x20] ss:$4 sm:$0xff] %v3360_v15 }
 0x43e   :  { %v3349_v37 = vsel %vm2542_vm13, %v3345_v2, %v3346_v50  ;;  %v3475_v50 = vrot.slane %v3473_v20, 1 }
 0x43f   :  { %3351 = vrot.lane.b32.xlu2 %v3349_v37, %s6337_s26 }
 0x441   :  { %v3142_v22 = vpop.permute.xlu0 %3141 }
 0x442   :  { %3144 = vst.msk [vmem:[#allocation4 + $0x5] sm:$0x1] %vm2617_vm1, %v3142_v22 }
 0x443   :  { %v8195_v26 = vld [vmem:[#allocation1] sm:$0xf] }
 0x444   :  { %3670 = vst [vmem:[#allocation1] sm:$0xff] %v8162_v21  ;;  %v3366_v36 = vld [vmem:[#allocation1 + $0x20] sm:$0xf] }
 0x445   :  { %v3369_v52 = vunpack.c.l.b16 %v3366_v36  ;;  %3398 = vst [vmem:[#allocation1 + $0x20] ss:$4 sm:$0xff] %v3393_v13 }
 0x447   :  { %3168 = vrot.lane.b32.xlu2 %v3166_v12, %s6339_s28  ;;  %v3220_v28 = vpop.permute.xlu2 %3219  ;;  %v3371_v23 = vsel %vm2559_vm14, %v3369_v52, %v3370_v16 }
 0x448   :  { %3222 = vst.msk [vmem:[#allocation4 + $0x6] sm:$0x1] %vm2589_vm0, %v3220_v28  ;;  %v3372_v33 = vpack.c.b16 %v3371_v23, %v3371_v23 }
 0x44a   :  { %v3373_v59 = vrot.slane %v3372_v33, 3 }
 0x44b   :  { %v3672_v31 = vld [vmem:[#allocation1 + $0x1] ss:$4 sm:$0xff] }
 0x44c   :  { %3676 = vst [vmem:[#allocation1] ss:$4 sm:$0xff] %v3672_v31  ;;  %v3376_v25 = vsel %vm2542_vm13, %v3372_v33, %v3373_v59  ;;  %v3399_v45 = vld [vmem:[#allocation1 + $0x20] sm:$0xf]  ;;  %v3500_v59 = vunpack.c.l.b16 %v8143_v48  ;;  %v3524_v48 = vunpack.c.l.b16 %v8149_v62 }
 0x44d   :  { %3378 = vrot.lane.b32.xlu1 %v3376_v25, %s6339_s28  ;;  %3416 = vst [vmem:[#allocation1 + $0x20] ss:$4 sm:$0xff] %v3393_v13  ;;  %v3402_v38 = vunpack.c.l.b16 %v3399_v45  ;;  %v8949_v13 = vld [vmem:[#allocation6_spill] sm:$0xff] }
 0x44e   :  { %v2496_v52 = vadd.f32 %v8949_v13, %v2447_v10 }
 0x44f   :  { %v3403_v63 = vrot.slane %v3402_v38, 7 }
 0x450   :  { %v2526_v31 = vmax.f32 %v2496_v52, 0.0 }
 0x451   :  { %v3404_v1 = vsel %vm2559_vm14, %v3403_v63, %v3401_v56 }
 0x452   :  { %v3405_v42 = vpack.c.b16 %v3404_v1, %v3404_v1  ;;  %v8253_v28 = vpack.c.bf16 %v2526_v31, %v2526_v31 }
 0x453   :  { %v8213_v5 = vld [vmem:[#allocation1] sm:$0xf] }
 0x454   :  { %3697 = vst [vmem:[#allocation1] sm:$0xff] %v8162_v21  ;;  %v3417_v8 = vld [vmem:[#allocation1 + $0x20] sm:$0xf]  ;;  %v3406_v35 = vrot.slane %v3405_v42, 3  ;;  %v3806_v38 = vrot.slane %v8253_v28, 3 }
 0x455   :  { %v3420_v30 = vunpack.c.l.b16 %v3417_v8  ;;  %3436 = vst [vmem:[#allocation1 + $0x20] sm:$0xff] %v8193_v34 }
 0x456   :  { %v3409_v24 = vsel %vm2542_vm13, %v3405_v42, %v3406_v35  ;;  %v3810_v1 = vsel %vm2542_vm13, %v8253_v28, %v3806_v38  ;;  %v3611_v38 = vunpack.c.l.b16 %v8177_v61 }
 0x457   :  { %v3422_v53 = vsel %vm2559_vm14, %v3420_v30, %v3421_v40  ;;  %3411 = vst.msk [vmem:[#allocation4 + $0x8] sm:$0x1] %vm2567_vm15, %v3409_v24  ;;  %v3526_v30 = vrot.slane %v3524_v48, 1 }
 0x458   :  { %v3423_v0 = vpack.c.b16 %v3422_v53, %v3422_v53 }
 0x45a   :  { %v3424_v44 = vrot.slane %v3423_v0, 3 }
 0x45b   :  { %v3699_v11 = vld [vmem:[#allocation1 + $0x2] ss:$4 sm:$0xff] }
 0x45c   :  { %3703 = vst [vmem:[#allocation1] ss:$4 sm:$0xff] %v3699_v11  ;;  %v3427_v6 = vsel %vm2542_vm13, %v3423_v0, %v3424_v44  ;;  %v3438_v3 = vld [vmem:[#allocation1 + $0x21] ss:$4 sm:$0xff] }
 0x45d   :  { %3429 = vrot.lane.b32.xlu2 %v3427_v6, %s6335_s12  ;;  %3443 = vst [vmem:[#allocation1 + $0x20] ss:$4 sm:$0xff] %v3438_v3  ;;  %v2463_v3 = vpop.f32.mrf.mxu0 }
 0x463   :  { %v8225_v4 = vld [vmem:[#allocation1] sm:$0xf] }
 0x464   :  { %3721 = vst [vmem:[#allocation1] sm:$0xff] %v8162_v21  ;;  %v3444_v58 = vld [vmem:[#allocation1 + $0x20] sm:$0xf] }
 0x465   :  { %v3447_v29 = vunpack.c.l.b16 %v3444_v58  ;;  %3463 = vst [vmem:[#allocation1 + $0x20] sm:$0xff] %v8193_v34 }
 0x467   :  { %v3448_v55 = vrot.slane %v3447_v29, 7  ;;  %v2464_v29 = vadd.f32 %v8243_v47, %v2463_v3 }
 0x469   :  { %v3449_v51 = vsel %vm2559_vm14, %v3448_v55, %v3446_v32  ;;  %v2512_v32 = vpop.f32.mrf.mxu1 }
 0x46a   :  { %v3450_v9 = vpack.c.b16 %v3449_v51, %v3449_v51  ;;  %v2513_v55 = vadd.f32 %v2512_v32, %v2464_v29  ;;  %v3656_v29 = vunpack.c.l.b16 %v8195_v26 }
 0x46b   :  { %v3723_v7 = vld [vmem:[#allocation1 + $0x2] ss:$4 sm:$0xff] }
 0x46c   :  { %3727 = vst [vmem:[#allocation1] ss:$4 sm:$0xff] %v3723_v7  ;;  %v3451_v54 = vrot.slane %v3450_v9, 3  ;;  %v3465_v46 = vld [vmem:[#allocation1 + $0x21] ss:$4 sm:$0xff]  ;;  %v2533_v20 = vmax.f32 %v2513_v55, 0.0 }
 0x46d   :  { %3470 = vst [vmem:[#allocation1 + $0x20] ss:$4 sm:$0xff] %v3465_v46 }
 0x46e   :  { %v3454_v43 = vsel %vm2542_vm13, %v3450_v9, %v3451_v54 }
 0x46f   :  { %3456 = vrot.lane.b32.xlu1 %v3454_v43, %s6337_s26  ;;  %v3551_v43 = vunpack.c.l.b16 %v8159_v41 }
 0x471   :  { %v3247_v49 = vpop.permute.xlu1 %3246 }
 0x472   :  { %3249 = vst.msk [vmem:[#allocation4 + $0x6] sm:$0x1] %vm2617_vm1, %v3247_v49 }
 0x473   :  { %v8231_v27 = vld [vmem:[#allocation1] sm:$0xf] }
 0x474   :  { %3748 = vst [vmem:[#allocation1] sm:$0xff] %v8162_v21  ;;  %v3471_v60 = vld [vmem:[#allocation1 + $0x20] sm:$0xf] }
 0x475   :  { %v3474_v2 = vunpack.c.l.b16 %v3471_v60  ;;  %3490 = vst [vmem:[#allocation1 + $0x20] sm:$0xff] %v8193_v34 }
 0x477   :  { %v3476_v37 = vsel %vm2559_vm14, %v3474_v2, %v3475_v50  ;;  %v8283_v50 = vpack.c.bf16 %v2533_v20, %v2533_v20 }
 0x478   :  { %v3477_v22 = vpack.c.b16 %v3476_v37, %v3476_v37 }
 0x479   :  { %v3597_v41 = vrot.slane %v8283_v50, 3 }
 0x47a   :  { %v3478_v57 = vrot.slane %v3477_v22, 3 }
 0x47b   :  { %v3750_v15 = vld [vmem:[#allocation1 + $0x3] ss:$4 sm:$0xff] }
 0x47c   :  { %3754 = vst [vmem:[#allocation1] ss:$4 sm:$0xff] %v3750_v15  ;;  %v3481_v18 = vsel %vm2542_vm13, %v3477_v22, %v3478_v57  ;;  %v3492_v36 = vld [vmem:[#allocation1 + $0x22] ss:$4 sm:$0xff]  ;;  %v3603_v57 = vsel %vm2542_vm13, %v8283_v50, %v3597_v41 }
 0x47d   :  { %3483 = vrot.lane.b32.xlu0 %v3481_v18, %s6339_s28  ;;  %3497 = vst [vmem:[#allocation1 + $0x20] ss:$4 sm:$0xff] %v3492_v36  ;;  %v3580_v36 = vrot.slane %v3578_v17, 1 }
 0x483   :  { %v8250_v16 = vld [vmem:[#allocation1] sm:$0xf] }
 0x484   :  { %3775 = vst [vmem:[#allocation1] sm:$0xff] %v8162_v21  ;;  %v3498_v12 = vld [vmem:[#allocation1 + $0x20] sm:$0xf] }
 0x485   :  { %3514 = vst [vmem:[#allocation1 + $0x20] sm:$0xff] %v8193_v34  ;;  %v3501_v23 = vunpack.c.l.b16 %v3498_v12 }
 0x487   :  { %v3502_v25 = vrot.slane %v3501_v23, 7 }
 0x489   :  { %v3503_v45 = vsel %vm2559_vm14, %v3502_v25, %v3500_v59 }
 0x48a   :  { %v3504_v56 = vpack.c.b16 %v3503_v45, %v3503_v45 }
 0x48b   :  { %v3777_v33 = vld [vmem:[#allocation1 + $0x3] ss:$4 sm:$0xff] }
 0x48c   :  { %3781 = vst [vmem:[#allocation1] ss:$4 sm:$0xff] %v3777_v33  ;;  %v3516_v63 = vld [vmem:[#allocation1 + $0x22] ss:$4 sm:$0xff]  ;;  %v3505_v39 = vrot.slane %v3504_v56, 3 }
 0x48d   :  { %3521 = vst [vmem:[#allocation1 + $0x20] ss:$4 sm:$0xff] %v3516_v63  ;;  %v3629_v63 = vunpack.c.l.b16 %v8184_v14 }
 0x48e   :  { %v3508_v42 = vsel %vm2542_vm13, %v3504_v56, %v3505_v39 }
 0x48f   :  { %3510 = vst.msk [vmem:[#allocation4 + $0x9] sm:$0x1] %vm2567_vm15, %v3508_v42 }
 0x493   :  { %v8259_v21 = vld [vmem:[#allocation1] sm:$0xf] }
 0x494   :  { %3814 = vst [vmem:[#allocation1] ss:$4 sm:$0xff] %v3810_v1  ;;  %v3522_v8 = vld [vmem:[#allocation1 + $0x20] sm:$0xf] }
 0x495   :  { %v3525_v35 = vunpack.c.l.b16 %v3522_v8  ;;  %3541 = vst [vmem:[#allocation1 + $0x20] sm:$0xff] %v8193_v34 }
 0x497   :  { %v3527_v11 = vsel %vm2559_vm14, %v3525_v35, %v3526_v30  ;;  %v3631_v35 = vrot.slane %v3629_v63, 1 }
 0x498   :  { %v3528_v24 = vpack.c.b16 %v3527_v11, %v3527_v11 }
 0x499   :  { %v3352_v53 = vpop.permute.xlu2 %3351 }
 0x49a   :  { %v3529_v0 = vrot.slane %v3528_v24, 3 }
 0x49b   :  { %v8267_v40 = vld [vmem:[#allocation1] sm:$0xf] }
 0x49c   :  { %3832 = vst [vmem:[#allocation1] ss:$4 sm:$0xff] %v3810_v1  ;;  %v3532_v44 = vsel %vm2542_vm13, %v3528_v24, %v3529_v0  ;;  %v3543_v6 = vld [vmem:[#allocation1 + $0x23] ss:$4 sm:$0xff] }
 0x49d   :  { %3534 = vrot.lane.b32.xlu0 %v3532_v44, %s6335_s12  ;;  %3548 = vst [vmem:[#allocation1 + $0x20] ss:$4 sm:$0xff] %v3543_v6 }
 0x49f   :  { %v3325_v58 = vpop.permute.xlu0 %3324 }
 0x4a0   :  { %3327 = vst.msk [vmem:[#allocation4 + $0x7] sm:$0x1] %vm2589_vm0, %v3325_v58 }
 0x4a1   :  { %3354 = vst.msk [vmem:[#allocation4 + $0x7] sm:$0x1] %vm2617_vm1, %v3352_v53  ;;  %v3169_v7 = vpop.permute.xlu2 %3168 }
 0x4a2   :  { %3171 = vst.msk [vmem:[#allocation4 + $0x5] sm:$0x1] %vm2645_vm2, %v3169_v7 }
 0x4a3   :  { %v8272_v62 = vld [vmem:[#allocation1] sm:$0xf] }
 0x4a4   :  { %3853 = vst [vmem:[#allocation1] sm:$0xff] %v8253_v28  ;;  %v3549_v51 = vld [vmem:[#allocation1 + $0x20] sm:$0xf] }
 0x4a5   :  { %v3552_v9 = vunpack.c.l.b16 %v3549_v51  ;;  %3568 = vst [vmem:[#allocation1 + $0x20] sm:$0xff] %v8193_v34 }
 0x4a7   :  { %v3274_v46 = vpop.permute.xlu0 %3273  ;;  %v3553_v49 = vrot.slane %v3552_v9, 7 }
 0x4a8   :  { %3276 = vst.msk [vmem:[#allocation4 + $0x6] sm:$0x1] %vm2645_vm2, %v3274_v46 }
 0x4a9   :  { %v3554_v60 = vsel %vm2559_vm14, %v3553_v49, %v3551_v43  ;;  %v3683_v49 = vunpack.c.l.b16 %v8213_v5  ;;  %v8951_v5 = vld [vmem:[#allocation11_spill] sm:$0xff] }
 0x4aa   :  { %v3555_v2 = vpack.c.b16 %v3554_v60, %v3554_v60 }
 0x4ab   :  { %v3855_v54 = vld [vmem:[#allocation1 + $0x1] ss:$4 sm:$0xff]  ;;  %v3685_v60 = vrot.slane %v3683_v49, 1 }
 0x4ac   :  { %3859 = vst [vmem:[#allocation1] ss:$4 sm:$0xff] %v3855_v54  ;;  %v3556_v15 = vrot.slane %v3555_v2, 3  ;;  %v3570_v37 = vld [vmem:[#allocation1 + $0x23] ss:$4 sm:$0xff] }
 0x4ad   :  { %3575 = vst [vmem:[#allocation1 + $0x20] ss:$4 sm:$0xff] %v3570_v37 }
 0x4ae   :  { %v3559_v34 = vsel %vm2542_vm13, %v3555_v2, %v3556_v15 }
 0x4af   :  { %3561 = vrot.lane.b32.xlu2 %v3559_v34, %s6337_s26  ;;  %v8950_v34 = vld [vmem:[#allocation12_spill] sm:$0xff] }
 0x4b0   :  { %v2449_v41 = vadd.f32 %v8243_v47, %v8950_v34 }
 0x4b3   :  { %v8285_v22 = vld [vmem:[#allocation1] sm:$0xf] }
 0x4b4   :  { %3880 = vst [vmem:[#allocation1] sm:$0xff] %v8253_v28  ;;  %v3576_v10 = vld [vmem:[#allocation1 + $0x20] sm:$0xf] }
 0x4b5   :  { %v3579_v18 = vunpack.c.l.b16 %v3576_v10  ;;  %3608 = vst [vmem:[#allocation1 + $0x20] ss:$4 sm:$0xff] %v3603_v57 }
 0x4b7   :  { %v3430_v52 = vpop.permute.xlu2 %3429  ;;  %v3581_v31 = vsel %vm2559_vm14, %v3579_v18, %v3580_v36  ;;  %v2498_v18 = vadd.f32 %v8951_v5, %v2449_v41 }
 0x4b8   :  { %3432 = vst.msk [vmem:[#allocation4 + $0x8] sm:$0x1] %vm2589_vm0, %v3430_v52  ;;  %v3582_v12 = vpack.c.b16 %v3581_v31, %v3581_v31 }
 0x4b9   :  { %v2527_v52 = vmax.f32 %v2498_v18, 0.0 }
 0x4ba   :  { %v3583_v23 = vrot.slane %v3582_v12, 3 }
 0x4bb   :  { %v3882_v13 = vld [vmem:[#allocation1 + $0x1] ss:$4 sm:$0xff] }
 0x4bc   :  { %3886 = vst [vmem:[#allocation1] ss:$4 sm:$0xff] %v3882_v13  ;;  %v3586_v33 = vsel %vm2542_vm13, %v3582_v12, %v3583_v23  ;;  %v3609_v59 = vld [vmem:[#allocation1 + $0x20] sm:$0xf]  ;;  %v8335_v12 = vpack.c.bf16 %v2527_v52, %v2527_v52 }
 0x4bd   :  { %3626 = vst [vmem:[#allocation1 + $0x20] ss:$4 sm:$0xff] %v3603_v57  ;;  %3588 = vrot.lane.b32.xlu1 %v3586_v33, %s6339_s28  ;;  %v3612_v19 = vunpack.c.l.b16 %v3609_v59  ;;  %v3710_v59 = vunpack.c.l.b16 %v8225_v4  ;;  %v3734_v4 = vunpack.c.l.b16 %v8231_v27 }
 0x4bf   :  { %v3379_v45 = vpop.permute.xlu1 %3378  ;;  %v3613_v56 = vrot.slane %v3612_v19, 7 }
 0x4c0   :  { %3381 = vst.msk [vmem:[#allocation4 + $0x7] sm:$0x1] %vm2645_vm2, %v3379_v45  ;;  %v4016_v45 = vrot.slane %v8335_v12, 3 }
 0x4c1   :  { %v3614_v39 = vsel %vm2559_vm14, %v3613_v56, %v3611_v38 }
 0x4c2   :  { %v3615_v1 = vpack.c.b16 %v3614_v39, %v3614_v39  ;;  %v4020_v39 = vsel %vm2542_vm13, %v8335_v12, %v4016_v45  ;;  %v3839_v45 = vunpack.c.l.b16 %v8272_v62 }
 0x4c3   :  { %v8298_v25 = vld [vmem:[#allocation1] sm:$0xf] }
 0x4c4   :  { %3907 = vst [vmem:[#allocation1] sm:$0xff] %v8253_v28  ;;  %v3627_v42 = vld [vmem:[#allocation1 + $0x20] sm:$0xf]  ;;  %v3616_v48 = vrot.slane %v3615_v1, 3 }
 0x4c5   :  { %v3630_v8 = vunpack.c.l.b16 %v3627_v42  ;;  %3646 = vst [vmem:[#allocation1 + $0x20] sm:$0xff] %v8283_v50 }
 0x4c6   :  { %v3619_v11 = vsel %vm2542_vm13, %v3615_v1, %v3616_v48 }
 0x4c7   :  { %v3632_v61 = vsel %vm2559_vm14, %v3630_v8, %v3631_v35  ;;  %3621 = vst.msk [vmem:[#allocation4 + $0xa] sm:$0x1] %vm2567_vm15, %v3619_v11  ;;  %v3736_v35 = vrot.slane %v3734_v4, 1 }
 0x4c8   :  { %v3633_v24 = vpack.c.b16 %v3632_v61, %v3632_v61 }
 0x4ca   :  { %v3634_v53 = vrot.slane %v3633_v24, 3 }
 0x4cb   :  { %v3909_v30 = vld [vmem:[#allocation1 + $0x2] ss:$4 sm:$0xff] }
 0x4cc   :  { %3913 = vst [vmem:[#allocation1] ss:$4 sm:$0xff] %v3909_v30  ;;  %v3637_v14 = vsel %vm2542_vm13, %v3633_v24, %v3634_v53  ;;  %v3648_v0 = vld [vmem:[#allocation1 + $0x21] ss:$4 sm:$0xff] }
 0x4cd   :  { %3639 = vrot.lane.b32.xlu1 %v3637_v14, %s6335_s12  ;;  %3653 = vst [vmem:[#allocation1 + $0x20] ss:$4 sm:$0xff] %v3648_v0  ;;  %v2466_v0 = vpop.f32.mrf.mxu0 }
 0x4d3   :  { %v8311_v44 = vld [vmem:[#allocation1] sm:$0xf] }
 0x4d4   :  { %3931 = vst [vmem:[#allocation1] sm:$0xff] %v8253_v28  ;;  %v3654_v6 = vld [vmem:[#allocation1 + $0x20] sm:$0xf] }
 0x4d5   :  { %v3657_v3 = vunpack.c.l.b16 %v3654_v6  ;;  %3673 = vst [vmem:[#allocation1 + $0x20] sm:$0xff] %v8283_v50 }
 0x4d7   :  { %v3658_v7 = vrot.slane %v3657_v3, 7  ;;  %v2467_v3 = vadd.f32 %v8243_v47, %v2466_v0 }
 0x4d9   :  { %v3659_v32 = vsel %vm2559_vm14, %v3658_v7, %v3656_v29  ;;  %v2515_v29 = vpop.f32.mrf.mxu1 }
 0x4da   :  { %v3660_v55 = vpack.c.b16 %v3659_v32, %v3659_v32  ;;  %v2516_v7 = vadd.f32 %v2515_v29, %v2467_v3 }
 0x4db   :  { %v3933_v58 = vld [vmem:[#allocation1 + $0x2] ss:$4 sm:$0xff] }
 0x4dc   :  { %3937 = vst [vmem:[#allocation1] ss:$4 sm:$0xff] %v3933_v58  ;;  %v3661_v51 = vrot.slane %v3660_v55, 3  ;;  %v3675_v9 = vld [vmem:[#allocation1 + $0x21] ss:$4 sm:$0xff] }
 0x4dd   :  { %3680 = vst [vmem:[#allocation1 + $0x20] ss:$4 sm:$0xff] %v3675_v9  ;;  %v3761_v9 = vunpack.c.l.b16 %v8250_v16 }
 0x4de   :  { %v3664_v46 = vsel %vm2542_vm13, %v3660_v55, %v3661_v51 }
 0x4df   :  { %3666 = vrot.lane.b32.xlu0 %v3664_v46, %s6337_s26 }
 0x4e1   :  { %v3457_v43 = vpop.permute.xlu1 %3456 }
 0x4e2   :  { %3459 = vst.msk [vmem:[#allocation4 + $0x8] sm:$0x1] %vm2617_vm1, %v3457_v43  ;;  %v2534_v43 = vmax.f32 %v2516_v7, 0.0 }
 0x4e3   :  { %v8317_v54 = vld [vmem:[#allocation1] sm:$0xf] }
 0x4e4   :  { %3958 = vst [vmem:[#allocation1] sm:$0xff] %v8253_v28  ;;  %v3681_v26 = vld [vmem:[#allocation1 + $0x20] sm:$0xf] }
 0x4e5   :  { %v3684_v20 = vunpack.c.l.b16 %v3681_v26  ;;  %3700 = vst [vmem:[#allocation1 + $0x20] sm:$0xff] %v8283_v50 }
 0x4e7   :  { %v3686_v15 = vsel %vm2559_vm14, %v3684_v20, %v3685_v60  ;;  %v8363_v20 = vpack.c.bf16 %v2534_v43, %v2534_v43 }
 0x4e8   :  { %v3687_v37 = vpack.c.b16 %v3686_v15, %v3686_v15 }
 0x4e9   :  { %v3807_v16 = vrot.slane %v8363_v20, 3 }
 0x4ea   :  { %v3688_v17 = vrot.slane %v3687_v37, 3 }
 0x4eb   :  { %v3960_v2 = vld [vmem:[#allocation1 + $0x3] ss:$4 sm:$0xff]  ;;  %v3813_v41 = vsel %vm2542_vm13, %v8363_v20, %v3807_v16 }
 0x4ec   :  { %3964 = vst [vmem:[#allocation1] ss:$4 sm:$0xff] %v3960_v2  ;;  %v3691_v10 = vsel %vm2542_vm13, %v3687_v37, %v3688_v17  ;;  %v3702_v57 = vld [vmem:[#allocation1 + $0x22] ss:$4 sm:$0xff] }
 0x4ed   :  { %3693 = vrot.lane.b32.xlu2 %v3691_v10, %s6339_s28  ;;  %3707 = vst [vmem:[#allocation1 + $0x20] ss:$4 sm:$0xff] %v3702_v57 }
 0x4ef   :  { %v3484_v13 = vpop.permute.xlu0 %3483 }
 0x4f0   :  { %3486 = vst.msk [vmem:[#allocation4 + $0x8] sm:$0x1] %vm2645_vm2, %v3484_v13 }
 0x4f3   :  { %v8331_v36 = vld [vmem:[#allocation1] sm:$0xf] }
 0x4f4   :  { %3985 = vst [vmem:[#allocation1] sm:$0xff] %v8253_v28  ;;  %v3708_v31 = vld [vmem:[#allocation1 + $0x20] sm:$0xf] }
 0x4f5   :  { %3724 = vst [vmem:[#allocation1 + $0x20] sm:$0xff] %v8283_v50  ;;  %v3711_v23 = vunpack.c.l.b16 %v3708_v31 }
 0x4f7   :  { %v3712_v19 = vrot.slane %v3711_v23, 7 }
 0x4f9   :  { %v3713_v38 = vsel %vm2559_vm14, %v3712_v19, %v3710_v59  ;;  %v3821_v59 = vunpack.c.l.b16 %v8267_v40 }
 0x4fa   :  { %v3714_v28 = vpack.c.b16 %v3713_v38, %v3713_v38 }
 0x4fb   :  { %v3987_v33 = vld [vmem:[#allocation1 + $0x3] ss:$4 sm:$0xff] }
 0x4fc   :  { %3991 = vst [vmem:[#allocation1] ss:$4 sm:$0xff] %v3987_v33  ;;  %v3726_v56 = vld [vmem:[#allocation1 + $0x22] ss:$4 sm:$0xff]  ;;  %v3715_v63 = vrot.slane %v3714_v28, 3 }
 0x4fd   :  { %3731 = vst [vmem:[#allocation1 + $0x20] ss:$4 sm:$0xff] %v3726_v56 }
 0x4fe   :  { %v3718_v42 = vsel %vm2542_vm13, %v3714_v28, %v3715_v63 }
 0x4ff   :  { %3720 = vst.msk [vmem:[#allocation4 + $0xb] sm:$0x1] %vm2567_vm15, %v3718_v42  ;;  %v3841_v42 = vrot.slane %v3839_v45, 1 }
 0x503   :  { %v8343_v1 = vld [vmem:[#allocation1] sm:$0xf] }
 0x504   :  { %4024 = vst [vmem:[#allocation1] ss:$4 sm:$0xff] %v4020_v39  ;;  %v3732_v48 = vld [vmem:[#allocation1 + $0x20] sm:$0xf] }
 0x505   :  { %v3735_v8 = vunpack.c.l.b16 %v3732_v48  ;;  %3751 = vst [vmem:[#allocation1 + $0x20] sm:$0xff] %v8283_v50 }
 0x507   :  { %v3737_v11 = vsel %vm2559_vm14, %v3735_v8, %v3736_v35 }
 0x508   :  { %v3738_v61 = vpack.c.b16 %v3737_v11, %v3737_v11 }
 0x509   :  { %v3562_v58 = vpop.permute.xlu2 %3561 }
 0x50a   :  { %v3739_v24 = vrot.slane %v3738_v61, 3 }
 0x50b   :  { %v8349_v30 = vld [vmem:[#allocation1] sm:$0xf] }
 0x50c   :  { %4042 = vst [vmem:[#allocation1] ss:$4 sm:$0xff] %v4020_v39  ;;  %v3742_v53 = vsel %vm2542_vm13, %v3738_v61, %v3739_v24  ;;  %v3753_v14 = vld [vmem:[#allocation1 + $0x23] ss:$4 sm:$0xff] }
 0x50d   :  { %3744 = vrot.lane.b32.xlu2 %v3742_v53, %s6335_s12  ;;  %3758 = vst [vmem:[#allocation1 + $0x20] ss:$4 sm:$0xff] %v3753_v14 }
 0x50f   :  { %v3535_v6 = vpop.permute.xlu0 %3534 }
 0x510   :  { %3537 = vst.msk [vmem:[#allocation4 + $0x9] sm:$0x1] %vm2589_vm0, %v3535_v6  ;;  %v3866_v6 = vunpack.c.l.b16 %v8285_v22 }
 0x511   :  { %3564 = vst.msk [vmem:[#allocation4 + $0x9] sm:$0x1] %vm2617_vm1, %v3562_v58 }
 0x513   :  { %v8354_v27 = vld [vmem:[#allocation1] sm:$0xf] }
 0x514   :  { %4063 = vst [vmem:[#allocation1] sm:$0xff] %v8335_v12  ;;  %v3759_v32 = vld [vmem:[#allocation1 + $0x20] sm:$0xf] }
 0x515   :  { %v3762_v55 = vunpack.c.l.b16 %v3759_v32  ;;  %3778 = vst [vmem:[#allocation1 + $0x20] sm:$0xff] %v8283_v50  ;;  %v3788_v50 = vunpack.c.l.b16 %v8259_v21 }
 0x517   :  { %v3763_v46 = vrot.slane %v3762_v55, 7  ;;  %v3790_v10 = vrot.slane %v3788_v50, 1 }
 0x519   :  { %v3764_v49 = vsel %vm2559_vm14, %v3763_v46, %v3761_v9  ;;  %v3893_v46 = vunpack.c.l.b16 %v8298_v25 }
 0x51a   :  { %v3765_v26 = vpack.c.b16 %v3764_v49, %v3764_v49 }
 0x51b   :  { %v4065_v51 = vld [vmem:[#allocation1 + $0x1] ss:$4 sm:$0xff] }
 0x51c   :  { %4069 = vst [vmem:[#allocation1] ss:$4 sm:$0xff] %v4065_v51  ;;  %v3766_v60 = vrot.slane %v3765_v26, 3  ;;  %v3780_v2 = vld [vmem:[#allocation1 + $0x23] ss:$4 sm:$0xff] }
 0x51d   :  { %3785 = vst [vmem:[#allocation1 + $0x20] ss:$4 sm:$0xff] %v3780_v2 }
 0x51e   :  { %v3769_v37 = vsel %vm2542_vm13, %v3765_v26, %v3766_v60  ;;  %v3895_v26 = vrot.slane %v3893_v46, 1 }
 0x51f   :  { %3771 = vrot.lane.b32.xlu1 %v3769_v37, %s6337_s26 }
 0x523   :  { %v8365_v15 = vld [vmem:[#allocation1] sm:$0xf] }
 0x524   :  { %4090 = vst [vmem:[#allocation1] sm:$0xff] %v8335_v12  ;;  %v3786_v34 = vld [vmem:[#allocation1 + $0x20] sm:$0xf] }
 0x525   :  { %v3789_v17 = vunpack.c.l.b16 %v3786_v34  ;;  %3818 = vst [vmem:[#allocation1 + $0x20] ss:$4 sm:$0xff] %v3813_v41 }
 0x527   :  { %v3791_v5 = vsel %vm2559_vm14, %v3789_v17, %v3790_v10 }
 0x528   :  { %v3792_v18 = vpack.c.b16 %v3791_v5, %v3791_v5  ;;  %v3920_v5 = vunpack.c.l.b16 %v8311_v44 }
 0x52a   :  { %v3793_v13 = vrot.slane %v3792_v18, 3 }
 0x52b   :  { %v4092_v57 = vld [vmem:[#allocation1 + $0x1] ss:$4 sm:$0xff] }
 0x52c   :  { %4096 = vst [vmem:[#allocation1] ss:$4 sm:$0xff] %v4092_v57  ;;  %v3796_v52 = vsel %vm2542_vm13, %v3792_v18, %v3793_v13  ;;  %v3819_v31 = vld [vmem:[#allocation1 + $0x20] sm:$0xf] }
 0x52d   :  { %3798 = vrot.lane.b32.xlu0 %v3796_v52, %s6339_s28  ;;  %3836 = vst [vmem:[#allocation1 + $0x20] ss:$4 sm:$0xff] %v3813_v41  ;;  %v3822_v21 = vunpack.c.l.b16 %v3819_v31 }
 0x52f   :  { %v3589_v33 = vpop.permute.xlu1 %3588  ;;  %v3823_v19 = vrot.slane %v3822_v21, 7 }
 0x530   :  { %3591 = vst.msk [vmem:[#allocation4 + $0x9] sm:$0x1] %vm2645_vm2, %v3589_v33  ;;  %v3944_v33 = vunpack.c.l.b16 %v8317_v54 }
 0x531   :  { %v3824_v38 = vsel %vm2559_vm14, %v3823_v19, %v3821_v59 }
 0x532   :  { %v3825_v28 = vpack.c.b16 %v3824_v38, %v3824_v38  ;;  %v3946_v45 = vrot.slane %v3944_v33, 1  ;;  %v6191_v33 = vld [vmem:[%s8893_s5 + $0x68] sm:$0xff] }
 0x533   :  { %v8377_v23 = vld [vmem:[#allocation1] sm:$0xf] }
 0x534   :  { %4117 = vst [vmem:[#allocation1] sm:$0xff] %v8335_v12  ;;  %v3837_v56 = vld [vmem:[#allocation1 + $0x20] sm:$0xf]  ;;  %v3826_v63 = vrot.slane %v3825_v28, 3 }
 0x535   :  { %v3840_v39 = vunpack.c.l.b16 %v3837_v56  ;;  %3856 = vst [vmem:[#allocation1 + $0x20] sm:$0xff] %v8363_v20 }
 0x536   :  { %v3829_v48 = vsel %vm2542_vm13, %v3825_v28, %v3826_v63 }
 0x537   :  { %v3842_v40 = vsel %vm2559_vm14, %v3840_v39, %v3841_v42  ;;  %3831 = vst.msk [vmem:[#allocation4 + $0xc] sm:$0x1] %vm2567_vm15, %v3829_v48  ;;  %v2468_v39 = vpop.f32.mrf.mxu0 }
 0x538   :  { %v3843_v8 = vpack.c.b16 %v3842_v40, %v3842_v40  ;;  %v2469_v42 = vadd.f32 %v8243_v47, %v2468_v39 }
 0x53a   :  { %v3844_v35 = vrot.slane %v3843_v8, 3 }
 0x53b   :  { %v4119_v4 = vld [vmem:[#allocation1 + $0x2] ss:$4 sm:$0xff] }
 0x53c   :  { %4123 = vst [vmem:[#allocation1] ss:$4 sm:$0xff] %v4119_v4  ;;  %v3847_v62 = vsel %vm2542_vm13, %v3843_v8, %v3844_v35  ;;  %v3858_v11 = vld [vmem:[#allocation1 + $0x21] ss:$4 sm:$0xff]  ;;  %v2517_v4 = vpop.f32.mrf.mxu1  ;;  %v3971_v8 = vunpack.c.l.b16 %v8331_v36 }
 0x53d   :  { %3849 = vrot.lane.b32.xlu0 %v3847_v62, %s6335_s12  ;;  %3863 = vst [vmem:[#allocation1 + $0x20] ss:$4 sm:$0xff] %v3858_v11  ;;  %v2518_v54 = vadd.f32 %v2517_v4, %v2469_v42  ;;  %v6189_v42 = vld [vmem:[%s8893_s5 + $0x58] sm:$0xff]  ;;  %v6180_v4 = vld [vmem:[%s8893_s5 + $0x10] sm:$0xff] }
 0x53f   :  { %v3640_v24 = vpop.permute.xlu1 %3639  ;;  %v2535_v62 = vmax.f32 %v2518_v54, 0.0  ;;  %v6188_v54 = vld [vmem:[%s8893_s5 + $0x50] sm:$0xff] }
 0x540   :  { %3642 = vst.msk [vmem:[#allocation4 + $0xa] sm:$0x1] %vm2589_vm0, %v3640_v24 }
 0x543   :  { %v8390_v61 = vld [vmem:[#allocation1] sm:$0xf] }
 0x544   :  { %4141 = vst [vmem:[#allocation1] sm:$0xff] %v8335_v12  ;;  %v3864_v53 = vld [vmem:[#allocation1 + $0x20] sm:$0xf] }
 0x545   :  { %v3867_v14 = vunpack.c.l.b16 %v3864_v53  ;;  %3883 = vst [vmem:[#allocation1 + $0x20] sm:$0xff] %v8363_v20  ;;  %v8427_v53 = vpack.c.bf16 %v2535_v62, %v2535_v62  ;;  %v6178_v62 = vld [vmem:[%s8893_s5] sm:$0xff] }
 0x547   :  { %v3868_v3 = vrot.slane %v3867_v14, 7  ;;  %v3694_v43 = vpop.permute.xlu2 %3693 }
 0x549   :  { %v3869_v58 = vsel %vm2559_vm14, %v3868_v3, %v3866_v6  ;;  %v4017_v6 = vrot.slane %v8427_v53, 3 }
 0x54a   :  { %v3870_v29 = vpack.c.b16 %v3869_v58, %v3869_v58 }
 0x54b   :  { %v4143_v0 = vld [vmem:[#allocation1 + $0x2] ss:$4 sm:$0xff]  ;;  %v4023_v36 = vsel %vm2542_vm13, %v8427_v53, %v4017_v6 }
 0x54c   :  { %4147 = vst [vmem:[#allocation1] ss:$4 sm:$0xff] %v4143_v0  ;;  %v3871_v7 = vrot.slane %v3870_v29, 3  ;;  %v3885_v32 = vld [vmem:[#allocation1 + $0x21] ss:$4 sm:$0xff] }
 0x54d   :  { %3890 = vst [vmem:[#allocation1 + $0x20] ss:$4 sm:$0xff] %v3885_v32  ;;  %v6208_v6 = vld [vmem:[%s8893_s5 + $0xf0] sm:$0xff] }
 0x54e   :  { %v3874_v51 = vsel %vm2542_vm13, %v3870_v29, %v3871_v7 }
 0x54f   :  { %3876 = vrot.lane.b32.xlu2 %v3874_v51, %s6337_s26 }
 0x551   :  { %v3667_v9 = vpop.permute.xlu0 %3666 }
 0x552   :  { %3669 = vst.msk [vmem:[#allocation4 + $0xa] sm:$0x1] %vm2617_vm1, %v3667_v9 }
 0x553   :  { %v8397_v55 = vld [vmem:[#allocation1] sm:$0xf]  ;;  %3696 = vst.msk [vmem:[#allocation4 + $0xa] sm:$0x1] %vm2645_vm2, %v3694_v43  ;;  %v4031_v43 = vunpack.c.l.b16 %v8349_v30 }
 0x554   :  { %4168 = vst [vmem:[#allocation1] sm:$0xff] %v8335_v12  ;;  %v3891_v22 = vld [vmem:[#allocation1 + $0x20] sm:$0xf] }
 0x555   :  { %v3894_v49 = vunpack.c.l.b16 %v3891_v22  ;;  %3910 = vst [vmem:[#allocation1 + $0x20] sm:$0xff] %v8363_v20 }
 0x557   :  { %v3896_v2 = vsel %vm2559_vm14, %v3894_v49, %v3895_v26 }
 0x558   :  { %v3897_v37 = vpack.c.b16 %v3896_v2, %v3896_v2 }
 0x55a   :  { %v3898_v16 = vrot.slane %v3897_v37, 3 }
 0x55b   :  { %v4170_v60 = vld [vmem:[#allocation1 + $0x3] ss:$4 sm:$0xff] }
 0x55c   :  { %4174 = vst [vmem:[#allocation1] ss:$4 sm:$0xff] %v4170_v60  ;;  %v3901_v50 = vsel %vm2542_vm13, %v3897_v37, %v3898_v16  ;;  %v3912_v34 = vld [vmem:[#allocation1 + $0x22] ss:$4 sm:$0xff] }
 0x55d   :  { %3903 = vrot.lane.b32.xlu1 %v3901_v50, %s6339_s28  ;;  %3917 = vst [vmem:[#allocation1 + $0x20] ss:$4 sm:$0xff] %v3912_v34 }
 0x563   :  { %v8409_v25 = vld [vmem:[#allocation1] sm:$0xf] }
 0x564   :  { %4195 = vst [vmem:[#allocation1] sm:$0xff] %v8335_v12  ;;  %v3918_v41 = vld [vmem:[#allocation1 + $0x20] sm:$0xf] }
 0x565   :  { %3934 = vst [vmem:[#allocation1 + $0x20] sm:$0xff] %v8363_v20  ;;  %v3921_v17 = vunpack.c.l.b16 %v3918_v41 }
 0x567   :  { %v3745_v57 = vpop.permute.xlu2 %3744  ;;  %v3922_v18 = vrot.slane %v3921_v17, 7 }
 0x568   :  { %3747 = vst.msk [vmem:[#allocation4 + $0xb] sm:$0x1] %vm2589_vm0, %v3745_v57 }
 0x569   :  { %v3923_v13 = vsel %vm2559_vm14, %v3922_v18, %v3920_v5  ;;  %v6185_v5 = vld [vmem:[%s8893_s5 + $0x38] sm:$0xff] }
 0x56a   :  { %v3924_v52 = vpack.c.b16 %v3923_v13, %v3923_v13  ;;  %v6193_v18 = vld [vmem:[%s8893_s5 + $0x78] sm:$0xff]  ;;  %5288 = vmatpush.bf16.msra.mxu2 %v6185_v5  ;;  %v6184_v13 = vld [vmem:[%s8893_s5 + $0x30] sm:$0xff] }
 0x56b   :  { %v4197_v10 = vld [vmem:[#allocation1 + $0x3] ss:$4 sm:$0xff]  ;;  %5301 = vmatpush.bf16.msra.mxu3 %v6193_v18 }
 0x56c   :  { %4201 = vst [vmem:[#allocation1] ss:$4 sm:$0xff] %v4197_v10  ;;  %v3936_v31 = vld [vmem:[#allocation1 + $0x22] ss:$4 sm:$0xff]  ;;  %v3925_v21 = vrot.slane %v3924_v52, 3 }
 0x56d   :  { %3941 = vst [vmem:[#allocation1 + $0x20] ss:$4 sm:$0xff] %v3936_v31  ;;  %v6194_v18 = vld [vmem:[%s8893_s5 + $0x80] sm:$0xff] }
 0x56e   :  { %v3928_v12 = vsel %vm2542_vm13, %v3924_v52, %v3925_v21  ;;  %v6192_v52 = vld [vmem:[%s8893_s5 + $0x70] sm:$0xff]  ;;  %5289 = vmatpush.bf16.msra.mxu2 %v6184_v13  ;;  %v6202_v13 = vld [vmem:[%s8893_s5 + $0xc0] sm:$0xff] }
 0x56f   :  { %3930 = vst.msk [vmem:[#allocation4 + $0xd] sm:$0x1] %vm2567_vm15, %v3928_v12  ;;  %5302 = vmatpush.bf16.msra.mxu3 %v6192_v52  ;;  %v6183_v12 = vld [vmem:[%s8893_s5 + $0x28] sm:$0xff] }
 0x572   :  { %5290 = vmatpush.bf16.msra.mxu2 %v6183_v12 }
 0x573   :  { %5303 = vmatpush.bf16.msra.mxu3 %v6191_v33 }
 0x574   :  { %v3942_v59 = vld [vmem:[#allocation1 + $0x20] sm:$0xf] }
 0x575   :  { %v3945_v19 = vunpack.c.l.b16 %v3942_v59  ;;  %3961 = vst [vmem:[#allocation1 + $0x20] sm:$0xff] %v8363_v20  ;;  %v4076_v59 = vunpack.c.l.b16 %v8365_v15  ;;  %v6181_v15 = vld [vmem:[%s8893_s5 + $0x18] sm:$0xff] }
 0x577   :  { %v3947_v44 = vsel %vm2559_vm14, %v3945_v19, %v3946_v45 }
 0x578   :  { %v3948_v38 = vpack.c.b16 %v3947_v44, %v3947_v44 }
 0x57a   :  { %v3949_v28 = vrot.slane %v3948_v38, 3 }
 0x57c   :  { %v3952_v56 = vsel %vm2542_vm13, %v3948_v38, %v3949_v28  ;;  %v3963_v63 = vld [vmem:[#allocation1 + $0x23] ss:$4 sm:$0xff] }
 0x57d   :  { %3954 = vrot.lane.b32.xlu1 %v3952_v56, %s6335_s12  ;;  %3968 = vst [vmem:[#allocation1 + $0x20] ss:$4 sm:$0xff] %v3963_v63  ;;  %v6182_v38 = vld [vmem:[%s8893_s5 + $0x20] sm:$0xff] }
 0x57e   :  { %v6190_v28 = vld [vmem:[%s8893_s5 + $0x60] sm:$0xff]  ;;  %5291 = vmatpush.bf16.msra.mxu2 %v6182_v38 }
 0x57f   :  { %5304 = vmatpush.bf16.msra.mxu3 %v6190_v28  ;;  %v4181_v28 = vunpack.c.l.b16 %v8409_v25 }
 0x582   :  { %5292 = vmatpush.bf16.msra.mxu2 %v6181_v15 }
 0x583   :  { %5305 = vmatpush.bf16.msra.mxu3 %v6189_v42 }
 0x584   :  { %v3969_v48 = vld [vmem:[#allocation1 + $0x20] sm:$0xf] }
 0x585   :  { %v3972_v40 = vunpack.c.l.b16 %v3969_v48  ;;  %3988 = vst [vmem:[#allocation1 + $0x20] sm:$0xff] %v8363_v20  ;;  %v3998_v20 = vunpack.c.l.b16 %v8343_v1  ;;  %v4049_v1 = vunpack.c.l.b16 %v8354_v27 }
 0x586   :  { %5293 = vmatpush.bf16.msra.mxu2 %v6180_v4 }
 0x587   :  { %v3973_v35 = vrot.slane %v3972_v40, 7  ;;  %v4000_v7 = vrot.slane %v3998_v20, 1  ;;  %v4051_v16 = vrot.slane %v4049_v1, 1  ;;  %5306 = vmatpush.bf16.msra.mxu3 %v6188_v54  ;;  %v6179_v40 = vld [vmem:[%s8893_s5 + $0x8] sm:$0xff] }
 0x589   :  { %v3974_v11 = vsel %vm2559_vm14, %v3973_v35, %v3971_v8  ;;  %v6187_v8 = vld [vmem:[%s8893_s5 + $0x48] sm:$0xff] }
 0x58a   :  { %v3975_v24 = vpack.c.b16 %v3974_v11, %v3974_v11  ;;  %5294 = vmatpush.bf16.msra.mxu2 %v6179_v40  ;;  %v6186_v11 = vld [vmem:[%s8893_s5 + $0x40] sm:$0xff] }
 0x58b   :  { %5307 = vmatpush.bf16.msra.mxu3 %v6187_v8  ;;  %v6248_v8 = vld [vmem:[%s8893_s5 + $0x230] sm:$0xff] }
 0x58c   :  { %v3976_v14 = vrot.slane %v3975_v24, 3  ;;  %v3990_v0 = vld [vmem:[#allocation1 + $0x23] ss:$4 sm:$0xff] }
 0x58d   :  { %3995 = vst [vmem:[#allocation1 + $0x20] ss:$4 sm:$0xff] %v3990_v0  ;;  %v6209_v0 = vld [vmem:[%s8893_s5 + $0xf8] sm:$0xff] }
 0x58e   :  { %v3979_v47 = vsel %vm2542_vm13, %v3975_v24, %v3976_v14  ;;  %5295 = vmatpush.bf16.msra.mxu2 %v6178_v62  ;;  %v6201_v14 = vld [vmem:[%s8893_s5 + $0xb8] sm:$0xff]  ;;  %v4222_v62 = vld [vmem:[#allocation4] sm:$0xff] }
 0x58f   :  { %3981 = vrot.lane.b32.xlu0 %v3979_v47, %s6337_s26  ;;  %5308 = vmatpush.bf16.msra.mxu3 %v6186_v11  ;;  %v6200_v47 = vld [vmem:[%s8893_s5 + $0xb0] sm:$0xff] }
 0x591   :  { %v3772_v3 = vpop.permute.xlu1 %3771 }
 0x592   :  { %3774 = vst.msk [vmem:[#allocation4 + $0xb] sm:$0x1] %vm2617_vm1, %v3772_v3  ;;  %5314 = vmatpush.bf16.msrb.mxu2 %v6201_v14 }
 0x593   :  { %5327 = vmatpush.bf16.msrb.mxu3 %v6209_v0 }
 0x594   :  { %v3996_v58 = vld [vmem:[#allocation1 + $0x20] sm:$0xf] }
 0x595   :  { %4028 = vst [vmem:[#allocation1 + $0x20] ss:$4 sm:$0xff] %v4023_v36  ;;  %v3999_v29 = vunpack.c.l.b16 %v3996_v58  ;;  %v6207_v58 = vld [vmem:[%s8893_s5 + $0xe8] sm:$0xff] }
 0x596   :  { %5315 = vmatpush.bf16.msrb.mxu2 %v6200_v47 }
 0x597   :  { %v8437_v32 = vsel %vm2559_vm14, %v3999_v29, %v4000_v7  ;;  %5328 = vmatpush.bf16.msrb.mxu3 %v6208_v6  ;;  %v4130_v29 = vunpack.c.l.b16 %v8390_v61 }
 0x598   :  { %v4002_v54 = vpack.c.b16 %v8437_v32, %v8437_v32 }
 0x59a   :  { %v4003_v25 = vrot.slane %v4002_v54, 3 }
 0x59b   :  { %5329 = vmatpush.bf16.msrb.mxu3 %v6207_v58 }
 0x59c   :  { %v4029_v51 = vld [vmem:[#allocation1 + $0x20] sm:$0xf]  ;;  %v4006_v14 = vsel %vm2542_vm13, %v4002_v54, %v4003_v25  ;;  %v6265_v54 = vld [vmem:[%s8893_s5 + $0x2b8] sm:$0xff]  ;;  %v6272_v25 = vld [vmem:[%s8893_s5 + $0x2f0] sm:$0xff] }
 0x59d   :  { %4046 = vst [vmem:[#allocation1 + $0x20] ss:$4 sm:$0xff] %v4023_v36  ;;  %v4032_v9 = vunpack.c.l.b16 %v4029_v51  ;;  %v6199_v36 = vld [vmem:[%s8893_s5 + $0xa8] sm:$0xff] }
 0x59e   :  { %5316 = vmatpush.bf16.msrb.mxu2 %v6199_v36  ;;  %v6225_v36 = vld [vmem:[%s8893_s5 + $0x178] sm:$0xff] }
 0x59f   :  { %v3799_v46 = vpop.permute.xlu0 %3798  ;;  %v4033_v22 = vrot.slane %v4032_v9, 7  ;;  %v6198_v9 = vld [vmem:[%s8893_s5 + $0xa0] sm:$0xff] }
 0x5a0   :  { %3801 = vst.msk [vmem:[#allocation4 + $0xb] sm:$0x1] %vm2645_vm2, %v3799_v46  ;;  %v6206_v46 = vld [vmem:[%s8893_s5 + $0xe0] sm:$0xff] }
 0x5a1   :  { %v4034_v49 = vsel %vm2559_vm14, %v4033_v22, %v4031_v43  ;;  %5330 = vmatpush.bf16.msrb.mxu3 %v6206_v46  ;;  %v6215_v46 = vld [vmem:[%s8893_s5 + $0x128] sm:$0xff] }
 0x5a2   :  { %v4035_v26 = vpack.c.b16 %v4034_v49, %v4034_v49  ;;  %5317 = vmatpush.bf16.msrb.mxu2 %v6198_v9  ;;  %v6197_v49 = vld [vmem:[%s8893_s5 + $0x98] sm:$0xff]  ;;  %v6224_v9 = vld [vmem:[%s8893_s5 + $0x170] sm:$0xff] }
 0x5a4   :  { %v4047_v60 = vld [vmem:[#allocation1 + $0x20] sm:$0xf]  ;;  %v4036_v2 = vrot.slane %v4035_v26, 3 }
 0x5a5   :  { %v4050_v37 = vunpack.c.l.b16 %v4047_v60  ;;  %4066 = vst [vmem:[#allocation1 + $0x20] sm:$0xff] %v8427_v53  ;;  %v4154_v60 = vunpack.c.l.b16 %v8397_v55 }
 0x5a6   :  { %v4039_v50 = vsel %vm2542_vm13, %v4035_v26, %v4036_v2  ;;  %v6205_v26 = vld [vmem:[%s8893_s5 + $0xd8] sm:$0xff]  ;;  %5318 = vmatpush.bf16.msrb.mxu2 %v6197_v49  ;;  %v6196_v2 = vld [vmem:[%s8893_s5 + $0x90] sm:$0xff]  ;;  %v6222_v49 = vld [vmem:[%s8893_s5 + $0x160] sm:$0xff] }
 0x5a7   :  { %v4052_v34 = vsel %vm2559_vm14, %v4050_v37, %v4051_v16  ;;  %4041 = vst.msk [vmem:[#allocation4 + $0xe] sm:$0x1] %vm2567_vm15, %v4039_v50  ;;  %5331 = vmatpush.bf16.msrb.mxu3 %v6205_v26  ;;  %v6204_v37 = vld [vmem:[%s8893_s5 + $0xd0] sm:$0xff]  ;;  %v4103_v16 = vunpack.c.l.b16 %v8377_v23  ;;  %v6203_v23 = vld [vmem:[%s8893_s5 + $0xc8] sm:$0xff]  ;;  %v6213_v26 = vld [vmem:[%s8893_s5 + $0x118] sm:$0xff] }
 0x5a8   :  { %v4053_v30 = vpack.c.b16 %v4052_v34, %v4052_v34 }
 0x5a9   :  { %v3877_v57 = vpop.permute.xlu2 %3876 }
 0x5aa   :  { %v4054_v41 = vrot.slane %v4053_v30, 3  ;;  %5319 = vmatpush.bf16.msrb.mxu2 %v6196_v2 }
 0x5ab   :  { %5332 = vmatpush.bf16.msrb.mxu3 %v6204_v37 }
 0x5ac   :  { %v4057_v17 = vsel %vm2542_vm13, %v4053_v30, %v4054_v41  ;;  %v4068_v27 = vld [vmem:[#allocation1 + $0x21] ss:$4 sm:$0xff]  ;;  %v4156_v30 = vrot.slane %v4154_v60, 1 }
 0x5ad   :  { %4059 = vrot.lane.b32.xlu2 %v4057_v17, %s6335_s12  ;;  %4073 = vst [vmem:[#allocation1 + $0x20] ss:$4 sm:$0xff] %v4068_v27  ;;  %v4105_v17 = vrot.slane %v4103_v16, 1  ;;  %v6221_v60 = vld [vmem:[%s8893_s5 + $0x158] sm:$0xff]  ;;  %v6212_v16 = vld [vmem:[%s8893_s5 + $0x110] sm:$0xff] }
 0x5af   :  { %v3850_v10 = vpop.permute.xlu0 %3849  ;;  %5333 = vmatpush.bf16.msrb.mxu3 %v6203_v23  ;;  %v6241_v23 = vld [vmem:[%s8893_s5 + $0x1f8] sm:$0xff] }
 0x5b0   :  { %3852 = vst.msk [vmem:[#allocation4 + $0xc] sm:$0x1] %vm2589_vm0, %v3850_v10  ;;  %v6195_v10 = vld [vmem:[%s8893_s5 + $0x88] sm:$0xff] }
 0x5b1   :  { %3879 = vst.msk [vmem:[#allocation4 + $0xc] sm:$0x1] %vm2617_vm1, %v3877_v57  ;;  %5320 = vmatpush.bf16.msrb.mxu2 %v6195_v10  ;;  %v6233_v10 = vld [vmem:[%s8893_s5 + $0x1b8] sm:$0xff] }
 0x5b3   :  { %5334 = vmatpush.bf16.msrb.mxu3 %v6202_v13 }
 0x5b4   :  { %v4074_v31 = vld [vmem:[#allocation1 + $0x20] sm:$0xf] }
 0x5b5   :  { %v4077_v21 = vunpack.c.l.b16 %v4074_v31  ;;  %4093 = vst [vmem:[#allocation1 + $0x20] sm:$0xff] %v8427_v53  ;;  %5321 = vmatpush.bf16.msrb.mxu2 %v6194_v18  ;;  %v6253_v18 = vld [vmem:[%s8893_s5 + $0x258] sm:$0xff] }
 0x5b7   :  { %v4078_v19 = vrot.slane %v4077_v21, 7 }
 0x5b9   :  { %v4079_v45 = vsel %vm2559_vm14, %v4078_v19, %v4076_v59  ;;  %v6249_v59 = vld [vmem:[%s8893_s5 + $0x238] sm:$0xff] }
 0x5ba   :  { %v4080_v44 = vpack.c.b16 %v4079_v45, %v4079_v45  ;;  %v6257_v19 = vld [vmem:[%s8893_s5 + $0x278] sm:$0xff]  ;;  %5392 = vmatpush.bf16.msrb.mxu1 %v6249_v59  ;;  %v6230_v59 = vld [vmem:[%s8893_s5 + $0x1a0] sm:$0xff] }
 0x5bb   :  { %5405 = vmatpush.bf16.msrb.mxu0 %v6257_v19  ;;  %v6238_v19 = vld [vmem:[%s8893_s5 + $0x1e0] sm:$0xff] }
 0x5bc   :  { %v4081_v56 = vrot.slane %v4080_v44, 3  ;;  %v4095_v63 = vld [vmem:[#allocation1 + $0x21] ss:$4 sm:$0xff] }
 0x5bd   :  { %4100 = vst [vmem:[#allocation1 + $0x20] ss:$4 sm:$0xff] %v4095_v63 }
 0x5be   :  { %v4084_v39 = vsel %vm2542_vm13, %v4080_v44, %v4081_v56  ;;  %5393 = vmatpush.bf16.msrb.mxu1 %v6248_v8 }
 0x5bf   :  { %4086 = vrot.lane.b32.xlu1 %v4084_v39, %s6337_s26 }
 0x5c4   :  { %v8492_v48 = vld [vmem:[#allocation1 + $0x20] sm:$0xf] }
 0x5c5   :  { %4120 = vst [vmem:[#allocation1 + $0x20] sm:$0xff] %v8427_v53  ;;  %v4104_v41 = vunpack.c.l.b16 %v8492_v48  ;;  %v4202_v48 = vld [vmem:[#allocation1] sm:$0xf] }
 0x5c6   :  { %v4208_v40 = vunpack.c.l.b16 %v4202_v48  ;;  %v6273_v48 = vld [vmem:[%s8893_s5 + $0x2f8] sm:$0xff] }
 0x5c7   :  { %v4106_v57 = vsel %vm2559_vm14, %v4104_v41, %v4105_v17  ;;  %v6246_v41 = vld [vmem:[%s8893_s5 + $0x220] sm:$0xff] }
 0x5c8   :  { %v4107_v31 = vpack.c.b16 %v4106_v57, %v4106_v57  ;;  %v4210_v32 = vrot.slane %v4208_v40, 1  ;;  %v6210_v17 = vld [vmem:[%s8893_s5 + $0x100] sm:$0xff]  ;;  %v6232_v57 = vld [vmem:[%s8893_s5 + $0x1b0] sm:$0xff] }
 0x5ca   :  { %v4108_v33 = vrot.slane %v4107_v31, 3 }
 0x5cc   :  { %v4122_v35 = vld [vmem:[#allocation1 + $0x22] ss:$4 sm:$0xff]  ;;  %v4111_v45 = vsel %vm2542_vm13, %v4107_v31, %v4108_v33 }
 0x5cd   :  { %4127 = vst [vmem:[#allocation1 + $0x20] ss:$4 sm:$0xff] %v4122_v35  ;;  %v6256_v35 = vld [vmem:[%s8893_s5 + $0x270] sm:$0xff] }
 0x5ce   :  { %5406 = vmatpush.bf16.msrb.mxu0 %v6256_v35  ;;  %v6243_v35 = vld [vmem:[%s8893_s5 + $0x208] sm:$0xff] }
 0x5cf   :  { %v3904_v24 = vpop.permute.xlu1 %3903 }
 0x5d0   :  { %3906 = vst.msk [vmem:[#allocation4 + $0xc] sm:$0x1] %vm2645_vm2, %v3904_v24 }
 0x5d4   :  { %v4128_v3 = vld [vmem:[#allocation1 + $0x20] sm:$0xf] }
 0x5d5   :  { %4144 = vst [vmem:[#allocation1 + $0x20] sm:$0xff] %v8427_v53  ;;  %v4131_v20 = vunpack.c.l.b16 %v4128_v3 }
 0x5d7   :  { %v4132_v7 = vrot.slane %v4131_v20, 7  ;;  %v6217_v20 = vld [vmem:[%s8893_s5 + $0x138] sm:$0xff] }
 0x5d9   :  { %v4133_v51 = vsel %vm2559_vm14, %v4132_v7, %v4130_v29 }
 0x5da   :  { %v4134_v43 = vpack.c.b16 %v4133_v51, %v4133_v51  ;;  %v6216_v51 = vld [vmem:[%s8893_s5 + $0x130] sm:$0xff] }
 0x5dc   :  { %v4146_v22 = vld [vmem:[#allocation1 + $0x22] ss:$4 sm:$0xff]  ;;  %v4135_v1 = vrot.slane %v4134_v43, 3 }
 0x5dd   :  { %4151 = vst [vmem:[#allocation1 + $0x20] ss:$4 sm:$0xff] %v4146_v22  ;;  %v6247_v22 = vld [vmem:[%s8893_s5 + $0x228] sm:$0xff] }
 0x5de   :  { %v4138_v61 = vsel %vm2542_vm13, %v4134_v43, %v4135_v1  ;;  %v6223_v43 = vld [vmem:[%s8893_s5 + $0x168] sm:$0xff]  ;;  %5394 = vmatpush.bf16.msrb.mxu1 %v6247_v22  ;;  %v6266_v22 = vld [vmem:[%s8893_s5 + $0x2c0] sm:$0xff] }
 0x5df   :  { %4140 = vst.msk [vmem:[#allocation4 + $0xf] sm:$0x1] %vm2567_vm15, %v4138_v61  ;;  %v6255_v1 = vld [vmem:[%s8893_s5 + $0x268] sm:$0xff]  ;;  %v6214_v61 = vld [vmem:[%s8893_s5 + $0x120] sm:$0xff] }
 0x5e0   :  { %5407 = vmatpush.bf16.msrb.mxu0 %v6255_v1  ;;  %v6281_v1 = vld [vmem:[%s8893_s5 + $0x338] sm:$0xff] }
 0x5e2   :  { %5395 = vmatpush.bf16.msrb.mxu1 %v6246_v41  ;;  %v6303_v41 = vld [vmem:[%s8893_s5 + $0x3e8] sm:$0xff] }
 0x5e4   :  { %v4152_v50 = vld [vmem:[#allocation1 + $0x20] sm:$0xf] }
 0x5e5   :  { %v4155_v34 = vunpack.c.l.b16 %v4152_v50  ;;  %4171 = vst [vmem:[#allocation1 + $0x20] sm:$0xff] %v8427_v53  ;;  %v6220_v50 = vld [vmem:[%s8893_s5 + $0x150] sm:$0xff] }
 0x5e7   :  { %v4157_v55 = vsel %vm2559_vm14, %v4155_v34, %v4156_v30  ;;  %v6211_v34 = vld [vmem:[%s8893_s5 + $0x108] sm:$0xff] }
 0x5e8   :  { %v4158_v27 = vpack.c.b16 %v4157_v55, %v4157_v55  ;;  %v6219_v30 = vld [vmem:[%s8893_s5 + $0x148] sm:$0xff]  ;;  %v6254_v55 = vld [vmem:[%s8893_s5 + $0x260] sm:$0xff] }
 0x5e9   :  { %5408 = vmatpush.bf16.msrb.mxu0 %v6254_v55  ;;  %v6278_v55 = vld [vmem:[%s8893_s5 + $0x320] sm:$0xff] }
 0x5ea   :  { %v4159_v5 = vrot.slane %v4158_v27, 3 }
 0x5ec   :  { %v4162_v52 = vsel %vm2542_vm13, %v4158_v27, %v4159_v5  ;;  %v4173_v21 = vld [vmem:[#allocation1 + $0x23] ss:$4 sm:$0xff] }
 0x5ed   :  { %4164 = vrot.lane.b32.xlu0 %v4162_v52, %s6335_s12  ;;  %4178 = vst [vmem:[#allocation1 + $0x20] ss:$4 sm:$0xff] %v4173_v21  ;;  %v6218_v27 = vld [vmem:[%s8893_s5 + $0x140] sm:$0xff]  ;;  %v6245_v5 = vld [vmem:[%s8893_s5 + $0x218] sm:$0xff]  ;;  %v6240_v52 = vld [vmem:[%s8893_s5 + $0x1f0] sm:$0xff]  ;;  %5409 = vmatpush.bf16.msrb.mxu0 %v6253_v18 }
 0x5ee   :  { %5396 = vmatpush.bf16.msrb.mxu1 %v6245_v5  ;;  %v6231_v21 = vld [vmem:[%s8893_s5 + $0x1a8] sm:$0xff]  ;;  %v6293_v5 = vld [vmem:[%s8893_s5 + $0x398] sm:$0xff] }
 0x5ef   :  { %v3955_v12 = vpop.permute.xlu1 %3954  ;;  %v6301_v18 = vld [vmem:[%s8893_s5 + $0x3d8] sm:$0xff] }
 0x5f0   :  { %3957 = vst.msk [vmem:[#allocation4 + $0xd] sm:$0x1] %vm2589_vm0, %v3955_v12  ;;  %v6239_v12 = vld [vmem:[%s8893_s5 + $0x1e8] sm:$0xff] }
 0x5f4   :  { %v4179_v44 = vld [vmem:[#allocation1 + $0x20] sm:$0xf] }
 0x5f5   :  { %4113 = vrot.lane.b32.xlu0 %v4111_v45, %s6339_s28  ;;  %v4182_v38 = vunpack.c.l.b16 %v4179_v44  ;;  %4198 = vst [vmem:[#allocation1 + $0x20] sm:$0xff] %v8427_v53  ;;  %v6229_v45 = vld [vmem:[%s8893_s5 + $0x198] sm:$0xff] }
 0x5f6   :  { %v6237_v44 = vld [vmem:[%s8893_s5 + $0x1d8] sm:$0xff] }
 0x5f7   :  { %v4183_v56 = vrot.slane %v4182_v38, 7  ;;  %v6228_v38 = vld [vmem:[%s8893_s5 + $0x190] sm:$0xff] }
 0x5f9   :  { %v4184_v63 = vsel %vm2559_vm14, %v4183_v56, %v4181_v28  ;;  %v6236_v28 = vld [vmem:[%s8893_s5 + $0x1d0] sm:$0xff]  ;;  %v6227_v56 = vld [vmem:[%s8893_s5 + $0x188] sm:$0xff] }
 0x5fa   :  { %v4185_v39 = vpack.c.b16 %v4184_v63, %v4184_v63  ;;  %v6235_v63 = vld [vmem:[%s8893_s5 + $0x1c8] sm:$0xff] }
 0x5fc   :  { %v4186_v15 = vrot.slane %v4185_v39, 3  ;;  %v4200_v42 = vld [vmem:[#allocation1 + $0x23] ss:$4 sm:$0xff] }
 0x5fd   :  { %4205 = vst [vmem:[#allocation1 + $0x20] ss:$4 sm:$0xff] %v4200_v42  ;;  %v6226_v42 = vld [vmem:[%s8893_s5 + $0x180] sm:$0xff] }
 0x5fe   :  { %v4189_v4 = vsel %vm2542_vm13, %v4185_v39, %v4186_v15  ;;  %4485 = vst [vmem:[#allocation1] ss:$9 sm:$0xff] %v4222_v62  ;;  %v6244_v39 = vld [vmem:[%s8893_s5 + $0x210] sm:$0xff]  ;;  %v6251_v62 = vld [vmem:[%s8893_s5 + $0x248] sm:$0xff] }
 0x5ff   :  { %4191 = vrot.lane.b32.xlu2 %v4189_v4, %s6337_s26  ;;  %v6252_v15 = vld [vmem:[%s8893_s5 + $0x250] sm:$0xff]  ;;  %v6234_v4 = vld [vmem:[%s8893_s5 + $0x1c0] sm:$0xff]  ;;  %5397 = vmatpush.bf16.msrb.mxu1 %v6244_v39 }
 0x600   :  { %5410 = vmatpush.bf16.msrb.mxu0 %v6252_v15  ;;  %v6321_v39 = vld [vmem:[%s8894_s6] ss:$0 sm:$0xff] }
 0x601   :  { %v3982_v53 = vpop.permute.xlu0 %3981 }
 0x602   :  { %3984 = vst.msk [vmem:[#allocation4 + $0xd] sm:$0x1] %vm2617_vm1, %v3982_v53  ;;  %v6264_v53 = vld [vmem:[%s8893_s5 + $0x2b0] sm:$0xff] }
 0x603   :  { %5398 = vmatpush.bf16.msrb.mxu1 %v6243_v35 }
 0x604   :  { %v4206_v11 = vld [vmem:[#allocation1 + $0x20] sm:$0xf]  ;;  %5411 = vmatpush.bf16.msrb.mxu0 %v6251_v62 }
 0x605   :  { %v4209_v24 = vunpack.c.l.b16 %v4206_v11  ;;  %v4486_v29 = vld [vmem:[#allocation1] sm:$0xff]  ;;  %v4487_v7 = vld [vmem:[#allocation1 + $0x9] sm:$0xff]  ;;  %v4488_v2 = vld [vmem:[#allocation1 + $0x12] sm:$0xff] }
 0x606   :  { %5296 = vmatmul.bf16.vlgmr.msra.gmra.mxu2 %v4486_v29  ;;  %5309 = vmatmul.bf16.vlgmr.msra.gmra.mxu3 %v4487_v7  ;;  %v4489_v37 = vld [vmem:[#allocation1 + $0x1b] sm:$0xff]  ;;  %v4490_v13 = vld [vmem:[#allocation1 + $0x24] sm:$0xff]  ;;  %v4491_v31 = vld [vmem:[#allocation1 + $0x2d] sm:$0xff] }
 0x607   :  { %4008 = vrot.lane.b32.xlu2 %v4006_v14, %s6339_s28  ;;  %v4060_v0 = vpop.permute.xlu2 %4059  ;;  %v4211_v47 = vsel %vm2559_vm14, %v4209_v24, %v4210_v32  ;;  %5340 = vmatpush.bf16.msra.mxu2 %v6217_v20  ;;  %v4492_v40 = vld [vmem:[#allocation1 + $0x36] sm:$0xff]  ;;  %v4493_v8 = vld [vmem:[#allocation1 + $0x3f] sm:$0xff]  ;;  %v6263_v11 = vld [vmem:[%s8893_s5 + $0x2a8] sm:$0xff] }
 0x608   :  { %4062 = vst.msk [vmem:[#allocation4 + $0xe] sm:$0x1] %vm2589_vm0, %v4060_v0  ;;  %v4212_v6 = vpack.c.b16 %v4211_v47, %v4211_v47  ;;  %5353 = vmatpush.bf16.msra.mxu3 %v6225_v36  ;;  %v6271_v24 = vld [vmem:[%s8893_s5 + $0x2e8] sm:$0xff]  ;;  %v6262_v32 = vld [vmem:[%s8893_s5 + $0x2a0] sm:$0xff]  ;;  %v6261_v0 = vld [vmem:[%s8893_s5 + $0x298] sm:$0xff] }
 0x609   :  { %v6270_v14 = vld [vmem:[%s8893_s5 + $0x2e0] sm:$0xff]  ;;  %v6269_v47 = vld [vmem:[%s8893_s5 + $0x2d8] sm:$0xff]  ;;  %v6268_v20 = vld [vmem:[%s8893_s5 + $0x2d0] sm:$0xff] }
 0x60a   :  { %v4213_v3 = vrot.slane %v4212_v6, 3  ;;  %v6259_v36 = vld [vmem:[%s8893_s5 + $0x288] sm:$0xff] }
 0x60b   :  { %5341 = vmatpush.bf16.msra.mxu2 %v6216_v51 }
 0x60c   :  { %v4216_v58 = vsel %vm2542_vm13, %v4212_v6, %v4213_v3  ;;  %5354 = vmatpush.bf16.msra.mxu3 %v6224_v9  ;;  %v6260_v6 = vld [vmem:[%s8893_s5 + $0x290] sm:$0xff]  ;;  %v6242_v9 = vld [vmem:[%s8893_s5 + $0x200] sm:$0xff] }
 0x60d   :  { %4218 = vrot.lane.b32.xlu1 %v4216_v58, %s6339_s28  ;;  %v6267_v58 = vld [vmem:[%s8893_s5 + $0x2c8] sm:$0xff]  ;;  %5399 = vmatpush.bf16.msrb.mxu1 %v6242_v9 }
 0x60f   :  { %5342 = vmatpush.bf16.msra.mxu2 %v6215_v46  ;;  %v6250_v46 = vld [vmem:[%s8893_s5 + $0x240] sm:$0xff] }
 0x610   :  { %5355 = vmatpush.bf16.msra.mxu3 %v6223_v43  ;;  %v6258_v43 = vld [vmem:[%s8893_s5 + $0x280] sm:$0xff]  ;;  %5412 = vmatpush.bf16.msrb.mxu0 %v6250_v46 }
 0x611   :  { %5444 = vmatpush.bf16.msra.mxu1 %v6281_v1 }
 0x613   :  { %5343 = vmatpush.bf16.msra.mxu2 %v6214_v61  ;;  %v6289_v61 = vld [vmem:[%s8893_s5 + $0x378] sm:$0xff] }
 0x614   :  { %5356 = vmatpush.bf16.msra.mxu3 %v6222_v49  ;;  %v6297_v49 = vld [vmem:[%s8893_s5 + $0x3b8] sm:$0xff]  ;;  %5457 = vmatpush.bf16.msra.mxu0 %v6289_v61 }
 0x616   :  { %5322 = vmatmul.bf16.vlgmr.msrb.gmra.mxu2 %v4488_v2  ;;  %5335 = vmatmul.bf16.vlgmr.msrb.gmra.mxu3 %v4489_v37  ;;  %v6288_v2 = vld [vmem:[%s8893_s5 + $0x370] sm:$0xff] }
 0x617   :  { %5344 = vmatpush.bf16.msra.mxu2 %v6213_v26  ;;  %v6305_v26 = vld [vmem:[%s8893_s5 + $0x3f8] sm:$0xff]  ;;  %v6296_v37 = vld [vmem:[%s8893_s5 + $0x3b0] sm:$0xff] }
 0x618   :  { %5357 = vmatpush.bf16.msra.mxu3 %v6221_v60  ;;  %v6280_v60 = vld [vmem:[%s8893_s5 + $0x330] sm:$0xff]  ;;  %5458 = vmatpush.bf16.msra.mxu0 %v6288_v2 }
 0x619   :  { %5445 = vmatpush.bf16.msra.mxu1 %v6280_v60 }
 0x61b   :  { %5345 = vmatpush.bf16.msra.mxu2 %v6212_v16  ;;  %v6304_v16 = vld [vmem:[%s8893_s5 + $0x3f0] sm:$0xff] }
 0x61c   :  { %5358 = vmatpush.bf16.msra.mxu3 %v6220_v50  ;;  %v6279_v50 = vld [vmem:[%s8893_s5 + $0x328] sm:$0xff] }
 0x61d   :  { %5446 = vmatpush.bf16.msra.mxu1 %v6279_v50 }
 0x61f   :  { %5346 = vmatpush.bf16.msra.mxu2 %v6211_v34  ;;  %v6287_v34 = vld [vmem:[%s8893_s5 + $0x368] sm:$0xff] }
 0x620   :  { %5359 = vmatpush.bf16.msra.mxu3 %v6219_v30  ;;  %v6295_v30 = vld [vmem:[%s8893_s5 + $0x3a8] sm:$0xff]  ;;  %5459 = vmatpush.bf16.msra.mxu0 %v6287_v34 }
 0x621   :  { %5447 = vmatpush.bf16.msra.mxu1 %v6278_v55 }
 0x623   :  { %5347 = vmatpush.bf16.msra.mxu2 %v6210_v17  ;;  %v6286_v17 = vld [vmem:[%s8893_s5 + $0x360] sm:$0xff] }
 0x624   :  { %5360 = vmatpush.bf16.msra.mxu3 %v6218_v27  ;;  %v6294_v27 = vld [vmem:[%s8893_s5 + $0x3a0] sm:$0xff]  ;;  %5460 = vmatpush.bf16.msra.mxu0 %v6286_v17 }
 0x626   :  { %5348 = vmatmul.bf16.vlgmr.msra.gmra.mxu2 %v4490_v13  ;;  %v6276_v13 = vld [vmem:[%s8893_s5 + $0x310] sm:$0xff] }
 0x627   :  { %5366 = vmatpush.bf16.msrb.mxu2 %v6233_v10  ;;  %5361 = vmatmul.bf16.vlgmr.msra.gmra.mxu3 %v4491_v31  ;;  %v6302_v10 = vld [vmem:[%s8893_s5 + $0x3e0] sm:$0xff]  ;;  %v6292_v31 = vld [vmem:[%s8893_s5 + $0x390] sm:$0xff] }
 0x628   :  { %5379 = vmatpush.bf16.msrb.mxu3 %v6241_v23  ;;  %v6277_v23 = vld [vmem:[%s8893_s5 + $0x318] sm:$0xff] }
 0x629   :  { %5448 = vmatpush.bf16.msra.mxu1 %v6277_v23 }
 0x62b   :  { %5367 = vmatpush.bf16.msrb.mxu2 %v6232_v57  ;;  %v6285_v57 = vld [vmem:[%s8893_s5 + $0x358] sm:$0xff] }
 0x62c   :  { %5380 = vmatpush.bf16.msrb.mxu3 %v6240_v52  ;;  %5461 = vmatpush.bf16.msra.mxu0 %v6285_v57  ;;  %v6284_v52 = vld [vmem:[%s8893_s5 + $0x350] sm:$0xff]  ;;  %v5496_v57 = vlaneseq }
 0x62d   :  { %5449 = vmatpush.bf16.msra.mxu1 %v6276_v13 }
 0x62f   :  { %5368 = vmatpush.bf16.msrb.mxu2 %v6231_v21  ;;  %v6300_v21 = vld [vmem:[%s8893_s5 + $0x3d0] sm:$0xff] }
 0x630   :  { %5381 = vmatpush.bf16.msrb.mxu3 %v6239_v12  ;;  %5462 = vmatpush.bf16.msra.mxu0 %v6284_v52 }
 0x631   :  { %v4087_v33 = vpop.permute.xlu1 %4086 }
 0x632   :  { %4089 = vst.msk [vmem:[#allocation4 + $0xe] sm:$0x1] %vm2617_vm1, %v4087_v33  ;;  %v6275_v33 = vld [vmem:[%s8893_s5 + $0x308] sm:$0xff] }
 0x633   :  { %5369 = vmatpush.bf16.msrb.mxu2 %v6230_v59  ;;  %v6283_v59 = vld [vmem:[%s8893_s5 + $0x348] sm:$0xff]  ;;  %5450 = vmatpush.bf16.msra.mxu1 %v6275_v33 }
 0x634   :  { %5382 = vmatpush.bf16.msrb.mxu3 %v6238_v19  ;;  %v6291_v19 = vld [vmem:[%s8893_s5 + $0x388] sm:$0xff]  ;;  %5463 = vmatpush.bf16.msra.mxu0 %v6283_v59 }
 0x637   :  { %5370 = vmatpush.bf16.msrb.mxu2 %v6229_v45  ;;  %v6299_v45 = vld [vmem:[%s8893_s5 + $0x3c8] sm:$0xff] }
 0x638   :  { %5383 = vmatpush.bf16.msrb.mxu3 %v6237_v44  ;;  %v6274_v44 = vld [vmem:[%s8893_s5 + $0x300] sm:$0xff] }
 0x639   :  { %5451 = vmatpush.bf16.msra.mxu1 %v6274_v44 }
 0x63b   :  { %5371 = vmatpush.bf16.msrb.mxu2 %v6228_v38  ;;  %v6282_v38 = vld [vmem:[%s8893_s5 + $0x340] sm:$0xff] }
 0x63c   :  { %5384 = vmatpush.bf16.msrb.mxu3 %v6236_v28  ;;  %v6290_v28 = vld [vmem:[%s8893_s5 + $0x380] sm:$0xff]  ;;  %5464 = vmatpush.bf16.msra.mxu0 %v6282_v38 }
 0x63f   :  { %5372 = vmatpush.bf16.msrb.mxu2 %v6227_v56  ;;  %v6298_v56 = vld [vmem:[%s8893_s5 + $0x3c0] sm:$0xff] }
 0x640   :  { %5385 = vmatpush.bf16.msrb.mxu3 %v6235_v63 }
 0x643   :  { %5373 = vmatpush.bf16.msrb.mxu2 %v6226_v42 }
 0x644   :  { %5386 = vmatpush.bf16.msrb.mxu3 %v6234_v4 }
 0x646   :  { %5374 = vmatmul.bf16.vlgmr.msrb.gmra.mxu2 %v4492_v40 }
 0x647   :  { %5418 = vmatpush.bf16.msra.mxu2 %v6265_v54  ;;  %5387 = vmatmul.bf16.vlgmr.msrb.gmra.mxu3 %v4493_v8 }
 0x648   :  { %5431 = vmatpush.bf16.msra.mxu3 %v6273_v48 }
 0x64b   :  { %5419 = vmatpush.bf16.msra.mxu2 %v6264_v53 }
 0x64c   :  { %5432 = vmatpush.bf16.msra.mxu3 %v6272_v25 }
 0x64f   :  { %5420 = vmatpush.bf16.msra.mxu2 %v6263_v11 }
 0x650   :  { %5433 = vmatpush.bf16.msra.mxu3 %v6271_v24 }
 0x653   :  { %5421 = vmatpush.bf16.msra.mxu2 %v6262_v32 }
 0x654   :  { %5434 = vmatpush.bf16.msra.mxu3 %v6270_v14 }
 0x657   :  { %5422 = vmatpush.bf16.msra.mxu2 %v6261_v0 }
 0x658   :  { %5435 = vmatpush.bf16.msra.mxu3 %v6269_v47 }
 0x659   :  { %v4192_v3 = vpop.permute.xlu2 %4191 }
 0x65b   :  { %5423 = vmatpush.bf16.msra.mxu2 %v6260_v6 }
 0x65c   :  { %5436 = vmatpush.bf16.msra.mxu3 %v6268_v20 }
 0x65f   :  { %v4165_v29 = vpop.permute.xlu0 %4164  ;;  %5424 = vmatpush.bf16.msra.mxu2 %v6259_v36 }
 0x660   :  { %4167 = vst.msk [vmem:[#allocation4 + $0xf] sm:$0x1] %vm2589_vm0, %v4165_v29  ;;  %5437 = vmatpush.bf16.msra.mxu3 %v6267_v58 }
 0x661   :  { %4194 = vst.msk [vmem:[#allocation4 + $0xf] sm:$0x1] %vm2617_vm1, %v4192_v3  ;;  %v4009_v7 = vpop.permute.xlu2 %4008 }
 0x662   :  { %4011 = vst.msk [vmem:[#allocation4 + $0xd] sm:$0x1] %vm2645_vm2, %v4009_v7 }
 0x663   :  { %5425 = vmatpush.bf16.msra.mxu2 %v6258_v43 }
 0x664   :  { %5438 = vmatpush.bf16.msra.mxu3 %v6266_v22 }
 0x667   :  { %v4114_v51 = vpop.permute.xlu0 %4113  ;;  %5470 = vmatpush.bf16.msrb.mxu2 %v6297_v49 }
 0x668   :  { %4116 = vst.msk [vmem:[#allocation4 + $0xe] sm:$0x1] %vm2645_vm2, %v4114_v51  ;;  %5483 = vmatpush.bf16.msrb.mxu3 %v6305_v26 }
 0x66b   :  { %5471 = vmatpush.bf16.msrb.mxu2 %v6296_v37 }
 0x66c   :  { %5484 = vmatpush.bf16.msrb.mxu3 %v6304_v16 }
 0x66f   :  { %5472 = vmatpush.bf16.msrb.mxu2 %v6295_v30 }
 0x670   :  { %5485 = vmatpush.bf16.msrb.mxu3 %v6303_v41 }
 0x673   :  { %5473 = vmatpush.bf16.msrb.mxu2 %v6294_v27 }
 0x674   :  { %5486 = vmatpush.bf16.msrb.mxu3 %v6302_v10 }
 0x677   :  { %5474 = vmatpush.bf16.msrb.mxu2 %v6293_v5 }
 0x678   :  { %5487 = vmatpush.bf16.msrb.mxu3 %v6301_v18  ;;  %v5497_v18 = vand.u32 127, %v5496_v57 }
 0x67a   :  { %vm5498_vm3 = vcmp.lt.s32.totalorder %v5497_v18, 64  ;;  %vm5525_vm4 = vcmp.eq.s32.totalorder %v5497_v18, 64 }
 0x67b   :  { %5475 = vmatpush.bf16.msrb.mxu2 %v6292_v31 }
 0x67c   :  { %5488 = vmatpush.bf16.msrb.mxu3 %v6300_v21 }
 0x67f   :  { %v4219_v12 = vpop.permute.xlu1 %4218  ;;  %5476 = vmatpush.bf16.msrb.mxu2 %v6291_v19 }
 0x680   :  { %4221 = vst.msk [vmem:[#allocation4 + $0xf] sm:$0x1] %vm2645_vm2, %v4219_v12  ;;  %5489 = vmatpush.bf16.msrb.mxu3 %v6299_v45 }
 0x683   :  { %5477 = vmatpush.bf16.msrb.mxu2 %v6290_v28 }
 0x684   :  { %5490 = vmatpush.bf16.msrb.mxu3 %v6298_v56 }
 0x687   :  { %v4223_v63 = vld [vmem:[#allocation4 + $0x8] sm:$0xff] }
 0x688   :  { %4495 = vst [vmem:[#allocation1] ss:$9 sm:$0xff] %v4223_v63 }
 0x689   :  { %v5297_v54 = vpop.f32.mrf.mxu2  ;;  %v5310_v40 = vpop.f32.mrf.mxu3 }
 0x68a   :  { %v5298_v53 = vadd.f32 %v6321_v39, %v5297_v54 }
 0x68c   :  { %v5311_v25 = vadd.f32 %v5310_v40, %v5298_v53 }
 0x68f   :  { %v4496_v15 = vld [vmem:[#allocation1] sm:$0xff]  ;;  %v4497_v42 = vld [vmem:[#allocation1 + $0x9] sm:$0xff]  ;;  %v4498_v4 = vld [vmem:[#allocation1 + $0x12] sm:$0xff] }
 0x690   :  { %5400 = vmatmul.bf16.vlgmr.msrb.gmra.mxu1 %v4496_v15  ;;  %5413 = vmatmul.bf16.vlgmr.msrb.gmra.mxu0 %v4497_v42  ;;  %v4499_v48 = vld [vmem:[#allocation1 + $0x1b] sm:$0xff]  ;;  %v4500_v62 = vld [vmem:[#allocation1 + $0x24] sm:$0xff]  ;;  %v4501_v11 = vld [vmem:[#allocation1 + $0x2d] sm:$0xff] }
 0x691   :  { %5426 = vmatmul.bf16.vlgmr.msra.gmra.mxu2 %v4498_v4  ;;  %5439 = vmatmul.bf16.vlgmr.msra.gmra.mxu3 %v4499_v48  ;;  %v5299_v8 = vpop.f32.mrf.mxu2  ;;  %v5312_v35 = vpop.f32.mrf.mxu3  ;;  %v4502_v32 = vld [vmem:[#allocation1 + $0x36] sm:$0xff]  ;;  %v4503_v14 = vld [vmem:[#allocation1 + $0x3f] sm:$0xff] }
 0x699   :  { %v5323_v24 = vpop.f32.mrf.mxu2  ;;  %v5336_v47 = vpop.f32.mrf.mxu3 }
 0x69a   :  { %v5324_v0 = vadd.f32 %v5323_v24, %v5311_v25 }
 0x69c   :  { %v5337_v6 = vadd.f32 %v5336_v47, %v5324_v0 }
 0x6a0   :  { %5452 = vmatmul.bf16.vlgmr.msra.gmra.mxu1 %v4500_v62  ;;  %5465 = vmatmul.bf16.vlgmr.msra.gmra.mxu0 %v4501_v11 }
 0x6a1   :  { %5478 = vmatmul.bf16.vlgmr.msrb.gmra.mxu2 %v4502_v32  ;;  %5491 = vmatmul.bf16.vlgmr.msrb.gmra.mxu3 %v4503_v14  ;;  %v5325_v3 = vpop.f32.mrf.mxu2  ;;  %v5338_v20 = vpop.f32.mrf.mxu3 }
 0x6a9   :  { %v5349_v36 = vpop.f32.mrf.mxu2 }
 0x6aa   :  { %v5350_v58 = vadd.f32 %v5349_v36, %v5337_v6  ;;  %v5362_v29 = vpop.f32.mrf.mxu3 }
 0x6ac   :  { %v5363_v7 = vadd.f32 %v5362_v29, %v5350_v58 }
 0x6b1   :  { %v5351_v51 = vpop.f32.mrf.mxu2 }
 0x6b2   :  { %v5364_v9 = vpop.f32.mrf.mxu3 }
 0x6c9   :  { %v5375_v46 = vpop.f32.mrf.mxu2 }
 0x6ca   :  { %v5376_v43 = vadd.f32 %v5375_v46, %v5363_v7  ;;  %v5388_v22 = vpop.f32.mrf.mxu3 }
 0x6cc   :  { %v5389_v1 = vadd.f32 %v5388_v22, %v5376_v43 }
 0x6d1   :  { %v5377_v61 = vpop.f32.mrf.mxu2 }
 0x6d2   :  { %v5390_v49 = vpop.f32.mrf.mxu3 }
 0x70d   :  { %v5401_v26 = vpop.f32.mrf.mxu1  ;;  %v5414_v60 = vpop.f32.mrf.mxu0 }
 0x70e   :  { %v5402_v2 = vadd.f32 %v5401_v26, %v5389_v1 }
 0x710   :  { %v5415_v30 = vadd.f32 %v5414_v60, %v5402_v2 }
 0x714   :  { %v5427_v37 = vpop.f32.mrf.mxu2  ;;  %v5440_v16 = vpop.f32.mrf.mxu3 }
 0x715   :  { %v5403_v50 = vpop.f32.mrf.mxu1  ;;  %v5416_v34 = vpop.f32.mrf.mxu0  ;;  %v5428_v41 = vadd.f32 %v5427_v37, %v5415_v30 }
 0x717   :  { %v5441_v27 = vadd.f32 %v5440_v16, %v5428_v41 }
 0x71c   :  { %v5429_v55 = vpop.f32.mrf.mxu2  ;;  %v5442_v17 = vpop.f32.mrf.mxu3 }
 0x71d   :  { %v5453_v10 = vpop.f32.mrf.mxu1  ;;  %v5466_v23 = vpop.f32.mrf.mxu0 }
 0x71e   :  { %v5454_v5 = vadd.f32 %v5453_v10, %v5441_v27 }
 0x720   :  { %v5467_v13 = vadd.f32 %v5466_v23, %v5454_v5 }
 0x724   :  { %v5479_v52 = vpop.f32.mrf.mxu2  ;;  %v5492_v31 = vpop.f32.mrf.mxu3 }
 0x725   :  { %v5480_v21 = vadd.f32 %v5479_v52, %v5467_v13  ;;  %v5455_v12 = vpop.f32.mrf.mxu1  ;;  %v5468_v33 = vpop.f32.mrf.mxu0 }
 0x727   :  { %v5493_v59 = vadd.f32 %v5492_v31, %v5480_v21 }
 0x729   :  { %v5499_v19 = vsel %vm5498_vm3, %v5493_v59, -inf  ;;  %v5526_v45 = vsel %vm5525_vm4, %v5493_v59, 0.0 }
 0x72a   :  { %v5501_v44 = vsel %vm5500_vm5, %v5499_v19, -inf }
 0x72b   :  { %5502 = vmax.xlane.f32.xlu2 %v5501_v44 }
 0x72c   :  { %v5481_v38 = vpop.f32.mrf.mxu2  ;;  %v5494_v28 = vpop.f32.mrf.mxu3 }
 0x79e   :  { %v5503_v56 = vpop.xlane.xlu2 %5502 }
 0x79f   :  { %v5504_v63 = vsub.f32 %v5499_v19, %v5503_v56 }
 0x7a1   :  { %v5505_v39 = vmul.f32 1.442695, %v5504_v63 }
 0x7a3   :  { %6322 = vpow2.f32 %v5505_v39 }
 0x7a9   :  { %v6323_v15 = vpop.eup %6322 }
 0x7aa   :  { %v5507_v42 = vsel %vm5500_vm5, %v6323_v15, 0.0 }
 0x7ab   :  { %5508 = vadd.xlane.f32.xlu0 %v5507_v42 }
 0x81e   :  { %v5509_v4 = vpop.xlane.xlu0 %5508 }
 0x81f   :  { %6324 = vrcp.f32 %v5509_v4  ;;  %v5521_v40 = vand.u32 2147483648, %v5509_v4  ;;  %v5519_v8 = vand.u32 2147483647, %v5509_v4  ;;  %vm5515_vm7 = vweird.f32 %v5509_v4 }
 0x821   :  { %v5522_v62 = vor.u32 1.1754944e-38, %v5521_v40  ;;  %vm5520_vm9 = vcmp.eq.f32.partialorder %v5519_v8, 8.507059e+37 }
 0x825   :  { %v6325_v54 = vpop.eup %6324 }
 0x826   :  { %v5511_v48 = vmul.f32 %v6325_v54, %v5509_v4  ;;  %vm5516_vm6 = vweird.f32 %v6325_v54 }
 0x827   :  { %vm5517_vm8 = vmor %vm5515_vm7, %vm5516_vm6 }
 0x828   :  { %v5512_v53 = vsub.f32 1.0, %v5511_v48 }
 0x82a   :  { %v5513_v25 = vmul.f32 %v6325_v54, %v5512_v53 }
 0x82c   :  { %v5514_v35 = vadd.f32 %v6325_v54, %v5513_v25 }
 0x82e   :  { %v5518_v11 = vsel %vm5517_vm8, %v6325_v54, %v5514_v35 }
 0x82f   :  { %v5523_v24 = vsel %vm5520_vm9, %v5522_v62, %v5518_v11 }
 0x830   :  { %v5524_v32 = vmul.f32 %v6323_v15, %v5523_v24 }
 0x832   :  { %v5527_v14 = vsel %vm5498_vm3, %v5524_v32, %v5526_v45 }
 0x833   :  { %5528 = vst [vmem:[%s8895_s7] sm:$0x3] %v5527_v14 }

</bundles_post_ra>
